<compile_context>
chip_gen: v7x
topology: tpu7x:2x2x1
jax: 0.10.0
libtpu: 0.0.40
codegen_flags: <defaults>
</compile_context>

<pallas_src>
import functools
import math

import jax
import jax.numpy as jnp
from jax import lax
from jax.experimental import pallas as pl
from jax.experimental.pallas import tpu as pltpu


# ----------------------------------------------------------------------------
# Fused block body: conv3x3+relu -> conv3x3+relu -> maxpool2x2 (one image)
# ----------------------------------------------------------------------------
def _conv_pair_pool(x_ref, wa_ref, ba_ref, wb_ref, bb_ref, pb_ref, *, H, W):
    """x_ref : (1, (H+2)*(W+2), Cin) f32  flat SAME-padded input
       wa_ref: (9, Cin, Cmid) bf16        conv-a weights, tap-major (dy*3+dx)
       ba_ref: (1, Cmid) f32
       wb_ref: (9, Cmid, Cmid) bf16       conv-b weights
       bb_ref: (1, Cmid) f32
       pb_ref: VMEM ((H+2)*(W+2), Cmid) f32 scratch (padded conv-a output)
       returns pooled (H//2*W//2, Cmid) f32
    """
    Wp = W + 2
    M = H * Wp - 2                    # rows 0..H*Wp-3 cover every output pixel
    cmid = wa_ref.shape[-1]

    # ---- conv a: 9 unit-stride shifted windows accumulated on the MXU ------
    acc = jnp.zeros((M, cmid), jnp.float32)
    for t in range(9):
        dy, dx = divmod(t, 3)
        lhs = x_ref[0, pl.ds(dy * Wp + dx, M), :].astype(jnp.bfloat16)
        acc = acc + jnp.dot(lhs, wa_ref[t], preferred_element_type=jnp.float32)
    y1 = jnp.maximum(acc + ba_ref[...], 0.0)                     # (M, Cmid)

    # ---- SAME-pad conv-a output into the scratch (interior rows only) ------
    pb_ref[...] = jnp.zeros_like(pb_ref)
    for h in range(H):
        pb_ref[pl.ds((h + 1) * Wp + 1, W), :] = y1[h * Wp:h * Wp + W]

    # ---- conv b -------------------------------------------------------------
    acc = jnp.zeros((M, cmid), jnp.float32)
    for t in range(9):
        dy, dx = divmod(t, 3)
        lhs = pb_ref[pl.ds(dy * Wp + dx, M), :].astype(jnp.bfloat16)
        acc = acc + jnp.dot(lhs, wb_ref[t], preferred_element_type=jnp.float32)
    y2 = jnp.maximum(acc + bb_ref[...], 0.0)                     # (M, Cmid)

    # ---- 2x2 max pool: 4 shifted maxima + 0/1 selection matmul to compact --
    H2, W2 = H // 2, W // 2
    P = H2 * W2
    L = M - Wp - 1
    m2 = jnp.maximum(jnp.maximum(y2[0:L], y2[1:1 + L]),
                     jnp.maximum(y2[Wp:Wp + L], y2[Wp + 1:Wp + 1 + L]))
    shift = W2.bit_length() - 1                                  # log2(W2)
    q = lax.broadcasted_iota(jnp.int32, (P, L), 0)
    r = lax.broadcasted_iota(jnp.int32, (P, L), 1)
    anchor = 2 * Wp * (q >> shift) + 2 * (q & (W2 - 1))
    sel = (r == anchor).astype(jnp.float32)
    pooled = jnp.dot(sel, m2, preferred_element_type=jnp.float32)  # (P, Cmid)
    return pooled


def _block_kernel(x_ref, wa_ref, ba_ref, wb_ref, bb_ref,
                  feat_ref, next_ref, pb_ref, *, H, W):
    pooled = _conv_pair_pool(x_ref, wa_ref, ba_ref, wb_ref, bb_ref, pb_ref,
                             H=H, W=W)
    feat_ref[0] = pooled
    # emit next block's input already SAME-padded + row-flattened (no XLA glue)
    H2, W2 = H // 2, W // 2
    Wp2 = W2 + 2
    next_ref[...] = jnp.zeros_like(next_ref)
    for i in range(H2):
        next_ref[0, pl.ds((i + 1) * Wp2 + 1, W2), :] = pooled[i * W2:(i + 1) * W2]


def _block_head_kernel(x_ref, wa_ref, ba_ref, wb_ref, bb_ref, wc_ref, bc_ref,
                       feat_ref, logits_ref, pb_ref, *, H, W):
    pooled = _conv_pair_pool(x_ref, wa_ref, ba_ref, wb_ref, bb_ref, pb_ref,
                             H=H, W=W)
    feat_ref[0] = pooled
    # fused head: global average pool + linear classifier
    m = jnp.mean(pooled, axis=0, keepdims=True)                   # (1, Cmid)
    logits_ref[0] = (jnp.dot(m, wc_ref[...], preferred_element_type=jnp.float32)
                     + bc_ref[...])


# ----------------------------------------------------------------------------
# pallas_call wrappers
# ----------------------------------------------------------------------------
def conv_block(x_flat, wa9, ba, wb9, bb, *, H, W):
    # x_flat: (N, (H+2)*(W+2), Cin) f32 -> (feat (N,P,Cout) f32,
    #                                       next  (N,(H/2+2)*(W/2+2),Cout) f32)
    N, Mp, Cin = x_flat.shape
    Cout = wa9.shape[-1]
    H2, W2 = H // 2, W // 2
    P = H2 * W2
    Mp2 = (H2 + 2) * (W2 + 2)
    M = H * (W + 2) - 2
    flops = 2 * N * 9 * M * Cout * (Cin + Cout) + 2 * N * P * M * Cout
    bytes_accessed = (x_flat.size * 4 + wa9.size * 2 + wb9.size * 2
                      + N * P * Cout * 4 + N * Mp2 * Cout * 4)
    kern = functools.partial(_block_kernel, H=H, W=W)
    feat, nxt = pl.pallas_call(
        kern,
        out_shape=(jax.ShapeDtypeStruct((N, P, Cout), jnp.float32),
                   jax.ShapeDtypeStruct((N, Mp2, Cout), jnp.float32)),
        grid=(N,),
        in_specs=[
            pl.BlockSpec((1, Mp, Cin), lambda n: (n, 0, 0)),
            pl.BlockSpec((9, Cin, Cout), lambda n: (0, 0, 0)),
            pl.BlockSpec((1, Cout), lambda n: (0, 0)),
            pl.BlockSpec((9, Cout, Cout), lambda n: (0, 0, 0)),
            pl.BlockSpec((1, Cout), lambda n: (0, 0)),
        ],
        out_specs=(
            pl.BlockSpec((1, P, Cout), lambda n: (n, 0, 0)),
            pl.BlockSpec((1, Mp2, Cout), lambda n: (n, 0, 0)),
        ),
        scratch_shapes=[pltpu.VMEM((Mp, Cout), jnp.float32)],
        compiler_params=pltpu.CompilerParams(dimension_semantics=("parallel",)),
        cost_estimate=pl.CostEstimate(flops=flops, transcendentals=0,
                                      bytes_accessed=bytes_accessed),
    )(x_flat, wa9, ba, wb9, bb)
    return feat, nxt


def conv_block_with_head(x_flat, wa9, ba, wb9, bb, wc, bc, *, H, W):
    # last block + fused (global mean -> linear) head
    N, Mp, Cin = x_flat.shape
    Cout = wa9.shape[-1]
    nc = wc.shape[-1]
    H2, W2 = H // 2, W // 2
    P = H2 * W2
    M = H * (W + 2) - 2
    flops = (2 * N * 9 * M * Cout * (Cin + Cout) + 2 * N * P * M * Cout
             + 2 * N * Cout * nc)
    bytes_accessed = (x_flat.size * 4 + wa9.size * 2 + wb9.size * 2
                      + wc.size * 4 + N * P * Cout * 4 + N * nc * 4)
    kern = functools.partial(_block_head_kernel, H=H, W=W)
    feat, logits = pl.pallas_call(
        kern,
        out_shape=(jax.ShapeDtypeStruct((N, P, Cout), jnp.float32),
                   jax.ShapeDtypeStruct((N, 1, nc), jnp.float32)),
        grid=(N,),
        in_specs=[
            pl.BlockSpec((1, Mp, Cin), lambda n: (n, 0, 0)),
            pl.BlockSpec((9, Cin, Cout), lambda n: (0, 0, 0)),
            pl.BlockSpec((1, Cout), lambda n: (0, 0)),
            pl.BlockSpec((9, Cout, Cout), lambda n: (0, 0, 0)),
            pl.BlockSpec((1, Cout), lambda n: (0, 0)),
            pl.BlockSpec((Cout, nc), lambda n: (0, 0)),
            pl.BlockSpec((1, nc), lambda n: (0, 0)),
        ],
        out_specs=(
            pl.BlockSpec((1, P, Cout), lambda n: (n, 0, 0)),
            pl.BlockSpec((1, 1, nc), lambda n: (n, 0, 0)),
        ),
        scratch_shapes=[pltpu.VMEM((Mp, Cout), jnp.float32)],
        compiler_params=pltpu.CompilerParams(dimension_semantics=("parallel",)),
        cost_estimate=pl.CostEstimate(flops=flops, transcendentals=0,
                                      bytes_accessed=bytes_accessed),
    )(x_flat, wa9, ba, wb9, bb, wc, bc)
    return feat, logits


# ----------------------------------------------------------------------------
# Model
# ----------------------------------------------------------------------------
def init_params(key, num_classes=10):
    def conv_p(k, cin, cout):
        k1, k2 = jax.random.split(k)
        w = jax.random.normal(k1, (3, 3, cin, cout), jnp.float32) / math.sqrt(9 * cin)
        b = 0.01 * jax.random.normal(k2, (1, cout), jnp.float32)
        return w, b

    keys = jax.random.split(key, 7)
    params = {}
    params["w1a"], params["b1a"] = conv_p(keys[0], 3, 32)
    params["w1b"], params["b1b"] = conv_p(keys[1], 32, 32)
    params["w2a"], params["b2a"] = conv_p(keys[2], 32, 64)
    params["w2b"], params["b2b"] = conv_p(keys[3], 64, 64)
    params["w3a"], params["b3a"] = conv_p(keys[4], 64, 128)
    params["w3b"], params["b3b"] = conv_p(keys[5], 128, 128)
    kc1, kc2 = jax.random.split(keys[6])
    params["wc"] = jax.random.normal(kc1, (128, num_classes), jnp.float32) / math.sqrt(128)
    params["bc"] = 0.01 * jax.random.normal(kc2, (1, num_classes), jnp.float32)
    return params


def _pad_flat(x_nhwc):
    # (N, H, W, C) -> (N, (H+2)*(W+2), C): SAME padding + row flatten
    n, h, w, c = x_nhwc.shape
    xp = jnp.pad(x_nhwc, ((0, 0), (1, 1), (1, 1), (0, 0)))
    return xp.reshape(n, (h + 2) * (w + 2), c)


def _prep_conv(w_hwio):
    kh, kw, cin, cout = w_hwio.shape
    return w_hwio.reshape(kh * kw, cin, cout).astype(jnp.bfloat16)


def mystyle_cnn_forward(x_nchw, params):
    """Matches MyStyleCNN.forward: returns (logits, features) with features
    in NCHW like the PyTorch module."""
    x = jnp.transpose(x_nchw, (0, 2, 3, 1)).astype(jnp.float32)   # NHWC
    N, H, W, _ = x.shape

    w1a, w1b = _prep_conv(params["w1a"]), _prep_conv(params["w1b"])
    w2a, w2b = _prep_conv(params["w2a"]), _prep_conv(params["w2b"])
    w3a, w3b = _prep_conv(params["w3a"]), _prep_conv(params["w3b"])

    x1 = _pad_flat(x)
    feat1, x2 = conv_block(x1, w1a, params["b1a"], w1b, params["b1b"], H=H, W=W)
    feat2, x3 = conv_block(x2, w2a, params["b2a"], w2b, params["b2b"],
                           H=H // 2, W=W // 2)
    feat3, logits = conv_block_with_head(
        x3, w3a, params["b3a"], w3b, params["b3b"], params["wc"], params["bc"],
        H=H // 4, W=W // 4)

    def to_nchw(f, h, w):
        n, p, c = f.shape
        return jnp.transpose(f.reshape(n, h, w, c), (0, 3, 1, 2))

    feats = {
        "conv1": to_nchw(feat1, H // 2, W // 2),
        "conv2": to_nchw(feat2, H // 4, W // 4),
        "conv3": to_nchw(feat3, H // 8, W // 8),
    }
    return logits.reshape(N, -1), feats


# ----------------------------------------------------------------------------
# Pure-JAX reference (sanity check only)
# ----------------------------------------------------------------------------
def reference_forward(x_nchw, params):
    x = jnp.transpose(x_nchw, (0, 2, 3, 1)).astype(jnp.float32)

    def conv(x, w, b):
        y = lax.conv_general_dilated(
            x, w, (1, 1), "SAME",
            dimension_numbers=("NHWC", "HWIO", "NHWC"),
            precision=lax.Precision.HIGHEST)
        return jnp.maximum(y + b.reshape(1, 1, 1, -1), 0.0)

    def pool(x):
        N, H, W, C = x.shape
        return jnp.max(x.reshape(N, H // 2, 2, W // 2, 2, C), axis=(2, 4))

    feats = {}
    x = pool(conv(conv(x, params["w1a"], params["b1a"]), params["w1b"], params["b1b"]))
    feats["conv1"] = jnp.transpose(x, (0, 3, 1, 2))
    x = pool(conv(conv(x, params["w2a"], params["b2a"]), params["w2b"], params["b2b"]))
    feats["conv2"] = jnp.transpose(x, (0, 3, 1, 2))
    x = pool(conv(conv(x, params["w3a"], params["b3a"]), params["w3b"], params["b3b"]))
    feats["conv3"] = jnp.transpose(x, (0, 3, 1, 2))
    logits = jnp.mean(x, axis=(1, 2)) @ params["wc"] + params["bc"]
    return logits, feats


# ----------------------------------------------------------------------------
if __name__ == "__main__":
    key = jax.random.PRNGKey(0)
    kx, kp = jax.random.split(key)

    # Small, module-consistent shapes: batch=2, 3 input channels, 16x16 spatial.
    x = jax.random.normal(kx, (2, 3, 16, 16), jnp.float32)
    params = init_params(kp, num_classes=10)

    fwd = jax.jit(mystyle_cnn_forward)
    logits, feats = jax.block_until_ready(fwd(x, params))

    # Sanity check vs pure-JAX f32 reference (Pallas path uses bf16 matmuls,
    # so tolerance is modestly relaxed).
    ref_logits, ref_feats = reference_forward(x, params)
    assert logits.shape == (2, 10)
    assert feats["conv1"].shape == (2, 32, 8, 8)
    assert feats["conv2"].shape == (2, 64, 4, 4)
    assert feats["conv3"].shape == (2, 128, 2, 2)
    assert jnp.allclose(logits, ref_logits, atol=5e-2, rtol=5e-2)
    for k in ("conv1", "conv2", "conv3"):
        assert jnp.allclose(feats[k], ref_feats[k], atol=5e-2, rtol=5e-2)

    print("KERNEL_OK")
</pallas_src>

<mosaic_0001>
module attributes {stable_mosaic.version = 11 : i64} {
  func.func @_block_kernel(%arg0: i32, %arg1: memref<1x100x32xf32, #tpu.memory_space<vmem>>, %arg2: memref<9x32x64xbf16, #tpu.memory_space<vmem>>, %arg3: memref<1x64xf32, #tpu.memory_space<vmem>>, %arg4: memref<9x64x64xbf16, #tpu.memory_space<vmem>>, %arg5: memref<1x64xf32, #tpu.memory_space<vmem>>, %arg6: memref<1x16x64xf32, #tpu.memory_space<vmem>>, %arg7: memref<1x36x64xf32, #tpu.memory_space<vmem>>, %arg8: memref<100x64xf32, #tpu.memory_space<vmem>>) attributes {dimension_semantics = [#tpu.dimension_semantics<parallel>], iteration_bounds = array<i64: 2>, scalar_prefetch = 0 : i64, scratch_operands = 1 : i64, tpu.core_type = #tpu.core_type<tc>, window_params = [{transform_indices = @transform_0, window_bounds = array<i64: 1, 100, 32>}, {pipeline_mode = #tpu.pipeline_mode<synchronous>, transform_indices = @transform_1, window_bounds = array<i64: 9, 32, 64>}, {pipeline_mode = #tpu.pipeline_mode<synchronous>, transform_indices = @transform_2, window_bounds = array<i64: 1, 64>}, {pipeline_mode = #tpu.pipeline_mode<synchronous>, transform_indices = @transform_3, window_bounds = array<i64: 9, 64, 64>}, {pipeline_mode = #tpu.pipeline_mode<synchronous>, transform_indices = @transform_4, window_bounds = array<i64: 1, 64>}, {transform_indices = @transform_5, window_bounds = array<i64: 1, 16, 64>}, {transform_indices = @transform_6, window_bounds = array<i64: 1, 36, 64>}]} {
    %cst = arith.constant 0.000000e+00 : f32
    %0 = vector.broadcast %cst : f32 to vector<78x64xf32>
    %c0 = arith.constant 0 : index
    %c0_0 = arith.constant 0 : index
    %c0_1 = arith.constant 0 : index
    %1 = vector.load %arg1[%c0, %c0_0, %c0_1] : memref<1x100x32xf32, #tpu.memory_space<vmem>>, vector<1x78x32xf32>
    %2 = vector.shape_cast %1 : vector<1x78x32xf32> to vector<78x32xf32>
    %3 = arith.truncf %2 : vector<78x32xf32> to vector<78x32xbf16>
    %c0_2 = arith.constant 0 : index
    %c0_3 = arith.constant 0 : index
    %c0_4 = arith.constant 0 : index
    %4 = vector.load %arg2[%c0_2, %c0_3, %c0_4] : memref<9x32x64xbf16, #tpu.memory_space<vmem>>, vector<1x32x64xbf16>
    %5 = vector.shape_cast %4 : vector<1x32x64xbf16> to vector<32x64xbf16>
    %cst_5 = arith.constant dense<0.000000e+00> : vector<78x64xf32>
    %6 = tpu.matmul %3, %5, %cst_5 {dimension_numbers = #tpu.dot_dimension_numbers<[1], [0], [0], [1], [0, 0, 1, 1], [], []>} : vector<78x32xbf16>, vector<32x64xbf16>, vector<78x64xf32> -> vector<78x64xf32>
    %7 = arith.addf %0, %6 : vector<78x64xf32>
    %c0_6 = arith.constant 0 : index
    %c1 = arith.constant 1 : index
    %c0_7 = arith.constant 0 : index
    %8 = vector.load %arg1[%c0_6, %c1, %c0_7] : memref<1x100x32xf32, #tpu.memory_space<vmem>>, vector<1x78x32xf32>
    %9 = vector.shape_cast %8 : vector<1x78x32xf32> to vector<78x32xf32>
    %10 = arith.truncf %9 : vector<78x32xf32> to vector<78x32xbf16>
    %c1_8 = arith.constant 1 : index
    %c0_9 = arith.constant 0 : index
    %c0_10 = arith.constant 0 : index
    %11 = vector.load %arg2[%c1_8, %c0_9, %c0_10] : memref<9x32x64xbf16, #tpu.memory_space<vmem>>, vector<1x32x64xbf16>
    %12 = vector.shape_cast %11 : vector<1x32x64xbf16> to vector<32x64xbf16>
    %cst_11 = arith.constant dense<0.000000e+00> : vector<78x64xf32>
    %13 = tpu.matmul %10, %12, %cst_11 {dimension_numbers = #tpu.dot_dimension_numbers<[1], [0], [0], [1], [0, 0, 1, 1], [], []>} : vector<78x32xbf16>, vector<32x64xbf16>, vector<78x64xf32> -> vector<78x64xf32>
    %14 = arith.addf %7, %13 : vector<78x64xf32>
    %c0_12 = arith.constant 0 : index
    %c2 = arith.constant 2 : index
    %c0_13 = arith.constant 0 : index
    %15 = vector.load %arg1[%c0_12, %c2, %c0_13] : memref<1x100x32xf32, #tpu.memory_space<vmem>>, vector<1x78x32xf32>
    %16 = vector.shape_cast %15 : vector<1x78x32xf32> to vector<78x32xf32>
    %17 = arith.truncf %16 : vector<78x32xf32> to vector<78x32xbf16>
    %c2_14 = arith.constant 2 : index
    %c0_15 = arith.constant 0 : index
    %c0_16 = arith.constant 0 : index
    %18 = vector.load %arg2[%c2_14, %c0_15, %c0_16] : memref<9x32x64xbf16, #tpu.memory_space<vmem>>, vector<1x32x64xbf16>
    %19 = vector.shape_cast %18 : vector<1x32x64xbf16> to vector<32x64xbf16>
    %cst_17 = arith.constant dense<0.000000e+00> : vector<78x64xf32>
    %20 = tpu.matmul %17, %19, %cst_17 {dimension_numbers = #tpu.dot_dimension_numbers<[1], [0], [0], [1], [0, 0, 1, 1], [], []>} : vector<78x32xbf16>, vector<32x64xbf16>, vector<78x64xf32> -> vector<78x64xf32>
    %21 = arith.addf %14, %20 : vector<78x64xf32>
    %c0_18 = arith.constant 0 : index
    %c10 = arith.constant 10 : index
    %c0_19 = arith.constant 0 : index
    %22 = vector.load %arg1[%c0_18, %c10, %c0_19] : memref<1x100x32xf32, #tpu.memory_space<vmem>>, vector<1x78x32xf32>
    %23 = vector.shape_cast %22 : vector<1x78x32xf32> to vector<78x32xf32>
    %24 = arith.truncf %23 : vector<78x32xf32> to vector<78x32xbf16>
    %c3 = arith.constant 3 : index
    %c0_20 = arith.constant 0 : index
    %c0_21 = arith.constant 0 : index
    %25 = vector.load %arg2[%c3, %c0_20, %c0_21] : memref<9x32x64xbf16, #tpu.memory_space<vmem>>, vector<1x32x64xbf16>
    %26 = vector.shape_cast %25 : vector<1x32x64xbf16> to vector<32x64xbf16>
    %cst_22 = arith.constant dense<0.000000e+00> : vector<78x64xf32>
    %27 = tpu.matmul %24, %26, %cst_22 {dimension_numbers = #tpu.dot_dimension_numbers<[1], [0], [0], [1], [0, 0, 1, 1], [], []>} : vector<78x32xbf16>, vector<32x64xbf16>, vector<78x64xf32> -> vector<78x64xf32>
    %28 = arith.addf %21, %27 : vector<78x64xf32>
    %c0_23 = arith.constant 0 : index
    %c11 = arith.constant 11 : index
    %c0_24 = arith.constant 0 : index
    %29 = vector.load %arg1[%c0_23, %c11, %c0_24] : memref<1x100x32xf32, #tpu.memory_space<vmem>>, vector<1x78x32xf32>
    %30 = vector.shape_cast %29 : vector<1x78x32xf32> to vector<78x32xf32>
    %31 = arith.truncf %30 : vector<78x32xf32> to vector<78x32xbf16>
    %c4 = arith.constant 4 : index
    %c0_25 = arith.constant 0 : index
    %c0_26 = arith.constant 0 : index
    %32 = vector.load %arg2[%c4, %c0_25, %c0_26] : memref<9x32x64xbf16, #tpu.memory_space<vmem>>, vector<1x32x64xbf16>
    %33 = vector.shape_cast %32 : vector<1x32x64xbf16> to vector<32x64xbf16>
    %cst_27 = arith.constant dense<0.000000e+00> : vector<78x64xf32>
    %34 = tpu.matmul %31, %33, %cst_27 {dimension_numbers = #tpu.dot_dimension_numbers<[1], [0], [0], [1], [0, 0, 1, 1], [], []>} : vector<78x32xbf16>, vector<32x64xbf16>, vector<78x64xf32> -> vector<78x64xf32>
    %35 = arith.addf %28, %34 : vector<78x64xf32>
    %c0_28 = arith.constant 0 : index
    %c12 = arith.constant 12 : index
    %c0_29 = arith.constant 0 : index
    %36 = vector.load %arg1[%c0_28, %c12, %c0_29] : memref<1x100x32xf32, #tpu.memory_space<vmem>>, vector<1x78x32xf32>
    %37 = vector.shape_cast %36 : vector<1x78x32xf32> to vector<78x32xf32>
    %38 = arith.truncf %37 : vector<78x32xf32> to vector<78x32xbf16>
    %c5 = arith.constant 5 : index
    %c0_30 = arith.constant 0 : index
    %c0_31 = arith.constant 0 : index
    %39 = vector.load %arg2[%c5, %c0_30, %c0_31] : memref<9x32x64xbf16, #tpu.memory_space<vmem>>, vector<1x32x64xbf16>
    %40 = vector.shape_cast %39 : vector<1x32x64xbf16> to vector<32x64xbf16>
    %cst_32 = arith.constant dense<0.000000e+00> : vector<78x64xf32>
    %41 = tpu.matmul %38, %40, %cst_32 {dimension_numbers = #tpu.dot_dimension_numbers<[1], [0], [0], [1], [0, 0, 1, 1], [], []>} : vector<78x32xbf16>, vector<32x64xbf16>, vector<78x64xf32> -> vector<78x64xf32>
    %42 = arith.addf %35, %41 : vector<78x64xf32>
    %c0_33 = arith.constant 0 : index
    %c20 = arith.constant 20 : index
    %c0_34 = arith.constant 0 : index
    %43 = vector.load %arg1[%c0_33, %c20, %c0_34] : memref<1x100x32xf32, #tpu.memory_space<vmem>>, vector<1x78x32xf32>
    %44 = vector.shape_cast %43 : vector<1x78x32xf32> to vector<78x32xf32>
    %45 = arith.truncf %44 : vector<78x32xf32> to vector<78x32xbf16>
    %c6 = arith.constant 6 : index
    %c0_35 = arith.constant 0 : index
    %c0_36 = arith.constant 0 : index
    %46 = vector.load %arg2[%c6, %c0_35, %c0_36] : memref<9x32x64xbf16, #tpu.memory_space<vmem>>, vector<1x32x64xbf16>
    %47 = vector.shape_cast %46 : vector<1x32x64xbf16> to vector<32x64xbf16>
    %cst_37 = arith.constant dense<0.000000e+00> : vector<78x64xf32>
    %48 = tpu.matmul %45, %47, %cst_37 {dimension_numbers = #tpu.dot_dimension_numbers<[1], [0], [0], [1], [0, 0, 1, 1], [], []>} : vector<78x32xbf16>, vector<32x64xbf16>, vector<78x64xf32> -> vector<78x64xf32>
    %49 = arith.addf %42, %48 : vector<78x64xf32>
    %c0_38 = arith.constant 0 : index
    %c21 = arith.constant 21 : index
    %c0_39 = arith.constant 0 : index
    %50 = vector.load %arg1[%c0_38, %c21, %c0_39] : memref<1x100x32xf32, #tpu.memory_space<vmem>>, vector<1x78x32xf32>
    %51 = vector.shape_cast %50 : vector<1x78x32xf32> to vector<78x32xf32>
    %52 = arith.truncf %51 : vector<78x32xf32> to vector<78x32xbf16>
    %c7 = arith.constant 7 : index
    %c0_40 = arith.constant 0 : index
    %c0_41 = arith.constant 0 : index
    %53 = vector.load %arg2[%c7, %c0_40, %c0_41] : memref<9x32x64xbf16, #tpu.memory_space<vmem>>, vector<1x32x64xbf16>
    %54 = vector.shape_cast %53 : vector<1x32x64xbf16> to vector<32x64xbf16>
    %cst_42 = arith.constant dense<0.000000e+00> : vector<78x64xf32>
    %55 = tpu.matmul %52, %54, %cst_42 {dimension_numbers = #tpu.dot_dimension_numbers<[1], [0], [0], [1], [0, 0, 1, 1], [], []>} : vector<78x32xbf16>, vector<32x64xbf16>, vector<78x64xf32> -> vector<78x64xf32>
    %56 = arith.addf %49, %55 : vector<78x64xf32>
    %c0_43 = arith.constant 0 : index
    %c22 = arith.constant 22 : index
    %c0_44 = arith.constant 0 : index
    %57 = vector.load %arg1[%c0_43, %c22, %c0_44] : memref<1x100x32xf32, #tpu.memory_space<vmem>>, vector<1x78x32xf32>
    %58 = vector.shape_cast %57 : vector<1x78x32xf32> to vector<78x32xf32>
    %59 = arith.truncf %58 : vector<78x32xf32> to vector<78x32xbf16>
    %c8 = arith.constant 8 : index
    %c0_45 = arith.constant 0 : index
    %c0_46 = arith.constant 0 : index
    %60 = vector.load %arg2[%c8, %c0_45, %c0_46] : memref<9x32x64xbf16, #tpu.memory_space<vmem>>, vector<1x32x64xbf16>
    %61 = vector.shape_cast %60 : vector<1x32x64xbf16> to vector<32x64xbf16>
    %cst_47 = arith.constant dense<0.000000e+00> : vector<78x64xf32>
    %62 = tpu.matmul %59, %61, %cst_47 {dimension_numbers = #tpu.dot_dimension_numbers<[1], [0], [0], [1], [0, 0, 1, 1], [], []>} : vector<78x32xbf16>, vector<32x64xbf16>, vector<78x64xf32> -> vector<78x64xf32>
    %63 = arith.addf %56, %62 : vector<78x64xf32>
    %c0_48 = arith.constant 0 : index
    %c0_49 = arith.constant 0 : index
    %64 = vector.load %arg3[%c0_48, %c0_49] : memref<1x64xf32, #tpu.memory_space<vmem>>, vector<1x64xf32>
    %65 = vector.broadcast %64 : vector<1x64xf32> to vector<78x64xf32>
    %66 = arith.addf %63, %65 : vector<78x64xf32>
    %cst_50 = arith.constant 0.000000e+00 : f32
    %67 = vector.broadcast %cst_50 : f32 to vector<78x64xf32>
    %68 = arith.maximumf %66, %67 : vector<78x64xf32>
    %cst_51 = arith.constant 0.000000e+00 : f32
    %69 = vector.broadcast %cst_51 : f32 to vector<100x64xf32>
    %c0_52 = arith.constant 0 : index
    %c0_53 = arith.constant 0 : index
    %70 = vector.load %arg8[%c0_52, %c0_53] : memref<100x64xf32, #tpu.memory_space<vmem>>, vector<100x64xf32>
    tpu.vector_store %arg8[%c0_52, %c0_53], %69 {strides = array<i32>} : memref<100x64xf32, #tpu.memory_space<vmem>>, vector<100x64xf32>,
    %71 = vector.extract_strided_slice %68 {offsets = [0, 0], sizes = [8, 64], strides = [1, 1]} : vector<78x64xf32> to vector<8x64xf32>
    %c11_54 = arith.constant 11 : index
    %c0_55 = arith.constant 0 : index
    %72 = vector.load %arg8[%c11_54, %c0_55] : memref<100x64xf32, #tpu.memory_space<vmem>>, vector<8x64xf32>
    tpu.vector_store %arg8[%c11_54, %c0_55], %71 {strides = array<i32>} : memref<100x64xf32, #tpu.memory_space<vmem>>, vector<8x64xf32>,
    %73 = vector.extract_strided_slice %68 {offsets = [10, 0], sizes = [8, 64], strides = [1, 1]} : vector<78x64xf32> to vector<8x64xf32>
    %c21_56 = arith.constant 21 : index
    %c0_57 = arith.constant 0 : index
    %74 = vector.load %arg8[%c21_56, %c0_57] : memref<100x64xf32, #tpu.memory_space<vmem>>, vector<8x64xf32>
    tpu.vector_store %arg8[%c21_56, %c0_57], %73 {strides = array<i32>} : memref<100x64xf32, #tpu.memory_space<vmem>>, vector<8x64xf32>,
    %75 = vector.extract_strided_slice %68 {offsets = [20, 0], sizes = [8, 64], strides = [1, 1]} : vector<78x64xf32> to vector<8x64xf32>
    %c31 = arith.constant 31 : index
    %c0_58 = arith.constant 0 : index
    %76 = vector.load %arg8[%c31, %c0_58] : memref<100x64xf32, #tpu.memory_space<vmem>>, vector<8x64xf32>
    tpu.vector_store %arg8[%c31, %c0_58], %75 {strides = array<i32>} : memref<100x64xf32, #tpu.memory_space<vmem>>, vector<8x64xf32>,
    %77 = vector.extract_strided_slice %68 {offsets = [30, 0], sizes = [8, 64], strides = [1, 1]} : vector<78x64xf32> to vector<8x64xf32>
    %c41 = arith.constant 41 : index
    %c0_59 = arith.constant 0 : index
    %78 = vector.load %arg8[%c41, %c0_59] : memref<100x64xf32, #tpu.memory_space<vmem>>, vector<8x64xf32>
    tpu.vector_store %arg8[%c41, %c0_59], %77 {strides = array<i32>} : memref<100x64xf32, #tpu.memory_space<vmem>>, vector<8x64xf32>,
    %79 = vector.extract_strided_slice %68 {offsets = [40, 0], sizes = [8, 64], strides = [1, 1]} : vector<78x64xf32> to vector<8x64xf32>
    %c51 = arith.constant 51 : index
    %c0_60 = arith.constant 0 : index
    %80 = vector.load %arg8[%c51, %c0_60] : memref<100x64xf32, #tpu.memory_space<vmem>>, vector<8x64xf32>
    tpu.vector_store %arg8[%c51, %c0_60], %79 {strides = array<i32>} : memref<100x64xf32, #tpu.memory_space<vmem>>, vector<8x64xf32>,
    %81 = vector.extract_strided_slice %68 {offsets = [50, 0], sizes = [8, 64], strides = [1, 1]} : vector<78x64xf32> to vector<8x64xf32>
    %c61 = arith.constant 61 : index
    %c0_61 = arith.constant 0 : index
    %82 = vector.load %arg8[%c61, %c0_61] : memref<100x64xf32, #tpu.memory_space<vmem>>, vector<8x64xf32>
    tpu.vector_store %arg8[%c61, %c0_61], %81 {strides = array<i32>} : memref<100x64xf32, #tpu.memory_space<vmem>>, vector<8x64xf32>,
    %83 = vector.extract_strided_slice %68 {offsets = [60, 0], sizes = [8, 64], strides = [1, 1]} : vector<78x64xf32> to vector<8x64xf32>
    %c71 = arith.constant 71 : index
    %c0_62 = arith.constant 0 : index
    %84 = vector.load %arg8[%c71, %c0_62] : memref<100x64xf32, #tpu.memory_space<vmem>>, vector<8x64xf32>
    tpu.vector_store %arg8[%c71, %c0_62], %83 {strides = array<i32>} : memref<100x64xf32, #tpu.memory_space<vmem>>, vector<8x64xf32>,
    %85 = vector.extract_strided_slice %68 {offsets = [70, 0], sizes = [8, 64], strides = [1, 1]} : vector<78x64xf32> to vector<8x64xf32>
    %c81 = arith.constant 81 : index
    %c0_63 = arith.constant 0 : index
    %86 = vector.load %arg8[%c81, %c0_63] : memref<100x64xf32, #tpu.memory_space<vmem>>, vector<8x64xf32>
    tpu.vector_store %arg8[%c81, %c0_63], %85 {strides = array<i32>} : memref<100x64xf32, #tpu.memory_space<vmem>>, vector<8x64xf32>,
    %cst_64 = arith.constant 0.000000e+00 : f32
    %87 = vector.broadcast %cst_64 : f32 to vector<78x64xf32>
    %c0_65 = arith.constant 0 : index
    %c0_66 = arith.constant 0 : index
    %88 = vector.load %arg8[%c0_65, %c0_66] : memref<100x64xf32, #tpu.memory_space<vmem>>, vector<78x64xf32>
    %89 = arith.truncf %88 : vector<78x64xf32> to vector<78x64xbf16>
    %c0_67 = arith.constant 0 : index
    %c0_68 = arith.constant 0 : index
    %c0_69 = arith.constant 0 : index
    %90 = vector.load %arg4[%c0_67, %c0_68, %c0_69] : memref<9x64x64xbf16, #tpu.memory_space<vmem>>, vector<1x64x64xbf16>
    %91 = vector.shape_cast %90 : vector<1x64x64xbf16> to vector<64x64xbf16>
    %cst_70 = arith.constant dense<0.000000e+00> : vector<78x64xf32>
    %92 = tpu.matmul %89, %91, %cst_70 {dimension_numbers = #tpu.dot_dimension_numbers<[1], [0], [0], [1], [0, 0, 1, 1], [], []>} : vector<78x64xbf16>, vector<64x64xbf16>, vector<78x64xf32> -> vector<78x64xf32>
    %93 = arith.addf %87, %92 : vector<78x64xf32>
    %c1_71 = arith.constant 1 : index
    %c0_72 = arith.constant 0 : index
    %94 = vector.load %arg8[%c1_71, %c0_72] : memref<100x64xf32, #tpu.memory_space<vmem>>, vector<78x64xf32>
    %95 = arith.truncf %94 : vector<78x64xf32> to vector<78x64xbf16>
    %c1_73 = arith.constant 1 : index
    %c0_74 = arith.constant 0 : index
    %c0_75 = arith.constant 0 : index
    %96 = vector.load %arg4[%c1_73, %c0_74, %c0_75] : memref<9x64x64xbf16, #tpu.memory_space<vmem>>, vector<1x64x64xbf16>
    %97 = vector.shape_cast %96 : vector<1x64x64xbf16> to vector<64x64xbf16>
    %cst_76 = arith.constant dense<0.000000e+00> : vector<78x64xf32>
    %98 = tpu.matmul %95, %97, %cst_76 {dimension_numbers = #tpu.dot_dimension_numbers<[1], [0], [0], [1], [0, 0, 1, 1], [], []>} : vector<78x64xbf16>, vector<64x64xbf16>, vector<78x64xf32> -> vector<78x64xf32>
    %99 = arith.addf %93, %98 : vector<78x64xf32>
    %c2_77 = arith.constant 2 : index
    %c0_78 = arith.constant 0 : index
    %100 = vector.load %arg8[%c2_77, %c0_78] : memref<100x64xf32, #tpu.memory_space<vmem>>, vector<78x64xf32>
    %101 = arith.truncf %100 : vector<78x64xf32> to vector<78x64xbf16>
    %c2_79 = arith.constant 2 : index
    %c0_80 = arith.constant 0 : index
    %c0_81 = arith.constant 0 : index
    %102 = vector.load %arg4[%c2_79, %c0_80, %c0_81] : memref<9x64x64xbf16, #tpu.memory_space<vmem>>, vector<1x64x64xbf16>
    %103 = vector.shape_cast %102 : vector<1x64x64xbf16> to vector<64x64xbf16>
    %cst_82 = arith.constant dense<0.000000e+00> : vector<78x64xf32>
    %104 = tpu.matmul %101, %103, %cst_82 {dimension_numbers = #tpu.dot_dimension_numbers<[1], [0], [0], [1], [0, 0, 1, 1], [], []>} : vector<78x64xbf16>, vector<64x64xbf16>, vector<78x64xf32> -> vector<78x64xf32>
    %105 = arith.addf %99, %104 : vector<78x64xf32>
    %c10_83 = arith.constant 10 : index
    %c0_84 = arith.constant 0 : index
    %106 = vector.load %arg8[%c10_83, %c0_84] : memref<100x64xf32, #tpu.memory_space<vmem>>, vector<78x64xf32>
    %107 = arith.truncf %106 : vector<78x64xf32> to vector<78x64xbf16>
    %c3_85 = arith.constant 3 : index
    %c0_86 = arith.constant 0 : index
    %c0_87 = arith.constant 0 : index
    %108 = vector.load %arg4[%c3_85, %c0_86, %c0_87] : memref<9x64x64xbf16, #tpu.memory_space<vmem>>, vector<1x64x64xbf16>
    %109 = vector.shape_cast %108 : vector<1x64x64xbf16> to vector<64x64xbf16>
    %cst_88 = arith.constant dense<0.000000e+00> : vector<78x64xf32>
    %110 = tpu.matmul %107, %109, %cst_88 {dimension_numbers = #tpu.dot_dimension_numbers<[1], [0], [0], [1], [0, 0, 1, 1], [], []>} : vector<78x64xbf16>, vector<64x64xbf16>, vector<78x64xf32> -> vector<78x64xf32>
    %111 = arith.addf %105, %110 : vector<78x64xf32>
    %c11_89 = arith.constant 11 : index
    %c0_90 = arith.constant 0 : index
    %112 = vector.load %arg8[%c11_89, %c0_90] : memref<100x64xf32, #tpu.memory_space<vmem>>, vector<78x64xf32>
    %113 = arith.truncf %112 : vector<78x64xf32> to vector<78x64xbf16>
    %c4_91 = arith.constant 4 : index
    %c0_92 = arith.constant 0 : index
    %c0_93 = arith.constant 0 : index
    %114 = vector.load %arg4[%c4_91, %c0_92, %c0_93] : memref<9x64x64xbf16, #tpu.memory_space<vmem>>, vector<1x64x64xbf16>
    %115 = vector.shape_cast %114 : vector<1x64x64xbf16> to vector<64x64xbf16>
    %cst_94 = arith.constant dense<0.000000e+00> : vector<78x64xf32>
    %116 = tpu.matmul %113, %115, %cst_94 {dimension_numbers = #tpu.dot_dimension_numbers<[1], [0], [0], [1], [0, 0, 1, 1], [], []>} : vector<78x64xbf16>, vector<64x64xbf16>, vector<78x64xf32> -> vector<78x64xf32>
    %117 = arith.addf %111, %116 : vector<78x64xf32>
    %c12_95 = arith.constant 12 : index
    %c0_96 = arith.constant 0 : index
    %118 = vector.load %arg8[%c12_95, %c0_96] : memref<100x64xf32, #tpu.memory_space<vmem>>, vector<78x64xf32>
    %119 = arith.truncf %118 : vector<78x64xf32> to vector<78x64xbf16>
    %c5_97 = arith.constant 5 : index
    %c0_98 = arith.constant 0 : index
    %c0_99 = arith.constant 0 : index
    %120 = vector.load %arg4[%c5_97, %c0_98, %c0_99] : memref<9x64x64xbf16, #tpu.memory_space<vmem>>, vector<1x64x64xbf16>
    %121 = vector.shape_cast %120 : vector<1x64x64xbf16> to vector<64x64xbf16>
    %cst_100 = arith.constant dense<0.000000e+00> : vector<78x64xf32>
    %122 = tpu.matmul %119, %121, %cst_100 {dimension_numbers = #tpu.dot_dimension_numbers<[1], [0], [0], [1], [0, 0, 1, 1], [], []>} : vector<78x64xbf16>, vector<64x64xbf16>, vector<78x64xf32> -> vector<78x64xf32>
    %123 = arith.addf %117, %122 : vector<78x64xf32>
    %c20_101 = arith.constant 20 : index
    %c0_102 = arith.constant 0 : index
    %124 = vector.load %arg8[%c20_101, %c0_102] : memref<100x64xf32, #tpu.memory_space<vmem>>, vector<78x64xf32>
    %125 = arith.truncf %124 : vector<78x64xf32> to vector<78x64xbf16>
    %c6_103 = arith.constant 6 : index
    %c0_104 = arith.constant 0 : index
    %c0_105 = arith.constant 0 : index
    %126 = vector.load %arg4[%c6_103, %c0_104, %c0_105] : memref<9x64x64xbf16, #tpu.memory_space<vmem>>, vector<1x64x64xbf16>
    %127 = vector.shape_cast %126 : vector<1x64x64xbf16> to vector<64x64xbf16>
    %cst_106 = arith.constant dense<0.000000e+00> : vector<78x64xf32>
    %128 = tpu.matmul %125, %127, %cst_106 {dimension_numbers = #tpu.dot_dimension_numbers<[1], [0], [0], [1], [0, 0, 1, 1], [], []>} : vector<78x64xbf16>, vector<64x64xbf16>, vector<78x64xf32> -> vector<78x64xf32>
    %129 = arith.addf %123, %128 : vector<78x64xf32>
    %c21_107 = arith.constant 21 : index
    %c0_108 = arith.constant 0 : index
    %130 = vector.load %arg8[%c21_107, %c0_108] : memref<100x64xf32, #tpu.memory_space<vmem>>, vector<78x64xf32>
    %131 = arith.truncf %130 : vector<78x64xf32> to vector<78x64xbf16>
    %c7_109 = arith.constant 7 : index
    %c0_110 = arith.constant 0 : index
    %c0_111 = arith.constant 0 : index
    %132 = vector.load %arg4[%c7_109, %c0_110, %c0_111] : memref<9x64x64xbf16, #tpu.memory_space<vmem>>, vector<1x64x64xbf16>
    %133 = vector.shape_cast %132 : vector<1x64x64xbf16> to vector<64x64xbf16>
    %cst_112 = arith.constant dense<0.000000e+00> : vector<78x64xf32>
    %134 = tpu.matmul %131, %133, %cst_112 {dimension_numbers = #tpu.dot_dimension_numbers<[1], [0], [0], [1], [0, 0, 1, 1], [], []>} : vector<78x64xbf16>, vector<64x64xbf16>, vector<78x64xf32> -> vector<78x64xf32>
    %135 = arith.addf %129, %134 : vector<78x64xf32>
    %c22_113 = arith.constant 22 : index
    %c0_114 = arith.constant 0 : index
    %136 = vector.load %arg8[%c22_113, %c0_114] : memref<100x64xf32, #tpu.memory_space<vmem>>, vector<78x64xf32>
    %137 = arith.truncf %136 : vector<78x64xf32> to vector<78x64xbf16>
    %c8_115 = arith.constant 8 : index
    %c0_116 = arith.constant 0 : index
    %c0_117 = arith.constant 0 : index
    %138 = vector.load %arg4[%c8_115, %c0_116, %c0_117] : memref<9x64x64xbf16, #tpu.memory_space<vmem>>, vector<1x64x64xbf16>
    %139 = vector.shape_cast %138 : vector<1x64x64xbf16> to vector<64x64xbf16>
    %cst_118 = arith.constant dense<0.000000e+00> : vector<78x64xf32>
    %140 = tpu.matmul %137, %139, %cst_118 {dimension_numbers = #tpu.dot_dimension_numbers<[1], [0], [0], [1], [0, 0, 1, 1], [], []>} : vector<78x64xbf16>, vector<64x64xbf16>, vector<78x64xf32> -> vector<78x64xf32>
    %141 = arith.addf %135, %140 : vector<78x64xf32>
    %c0_119 = arith.constant 0 : index
    %c0_120 = arith.constant 0 : index
    %142 = vector.load %arg5[%c0_119, %c0_120] : memref<1x64xf32, #tpu.memory_space<vmem>>, vector<1x64xf32>
    %143 = vector.broadcast %142 : vector<1x64xf32> to vector<78x64xf32>
    %144 = arith.addf %141, %143 : vector<78x64xf32>
    %cst_121 = arith.constant 0.000000e+00 : f32
    %145 = vector.broadcast %cst_121 : f32 to vector<78x64xf32>
    %146 = arith.maximumf %144, %145 : vector<78x64xf32>
    %147 = vector.extract_strided_slice %146 {offsets = [0, 0], sizes = [67, 64], strides = [1, 1]} : vector<78x64xf32> to vector<67x64xf32>
    %148 = vector.extract_strided_slice %146 {offsets = [1, 0], sizes = [67, 64], strides = [1, 1]} : vector<78x64xf32> to vector<67x64xf32>
    %149 = arith.maximumf %147, %148 : vector<67x64xf32>
    %150 = vector.extract_strided_slice %146 {offsets = [10, 0], sizes = [67, 64], strides = [1, 1]} : vector<78x64xf32> to vector<67x64xf32>
    %151 = vector.extract_strided_slice %146 {offsets = [11, 0], sizes = [67, 64], strides = [1, 1]} : vector<78x64xf32> to vector<67x64xf32>
    %152 = arith.maximumf %150, %151 : vector<67x64xf32>
    %153 = arith.maximumf %149, %152 : vector<67x64xf32>
    %154 = tpu.iota {dimensions = array<i32: 0>} : vector<16x67xi32>
    %155 = tpu.iota {dimensions = array<i32: 1>} : vector<16x67xi32>
    %c2_i32 = arith.constant 2 : i32
    %156 = vector.broadcast %c2_i32 : i32 to vector<16x67xi32>
    %157 = arith.shrsi %154, %156 : vector<16x67xi32>
    %c20_i32 = arith.constant 20 : i32
    %158 = vector.broadcast %c20_i32 : i32 to vector<16x67xi32>
    %159 = arith.muli %158, %157 : vector<16x67xi32>
    %c3_i32 = arith.constant 3 : i32
    %160 = vector.broadcast %c3_i32 : i32 to vector<16x67xi32>
    %161 = arith.andi %154, %160 : vector<16x67xi32>
    %c2_i32_122 = arith.constant 2 : i32
    %162 = vector.broadcast %c2_i32_122 : i32 to vector<16x67xi32>
    %163 = arith.muli %162, %161 : vector<16x67xi32>
    %164 = arith.addi %159, %163 : vector<16x67xi32>
    %165 = arith.cmpi eq, %155, %164 : vector<16x67xi32>
    %166 = arith.extui %165 : vector<16x67xi1> to vector<16x67xi32>
    %167 = arith.sitofp %166 : vector<16x67xi32> to vector<16x67xf32>
    %cst_123 = arith.constant dense<0.000000e+00> : vector<16x64xf32>
    %168 = tpu.matmul %167, %153, %cst_123 {dimension_numbers = #tpu.dot_dimension_numbers<[1], [0], [0], [1], [0, 0, 1, 1], [], []>} : vector<16x67xf32>, vector<67x64xf32>, vector<16x64xf32> -> vector<16x64xf32>
    %c0_124 = arith.constant 0 : index
    %c0_125 = arith.constant 0 : index
    %c0_126 = arith.constant 0 : index
    %169 = vector.load %arg6[%c0_124, %c0_125, %c0_126] : memref<1x16x64xf32, #tpu.memory_space<vmem>>, vector<1x16x64xf32>
    %170 = vector.shape_cast %169 : vector<1x16x64xf32> to vector<16x64xf32>
    %171 = vector.shape_cast %168 : vector<16x64xf32> to vector<1x16x64xf32>
    tpu.vector_store %arg6[%c0_124, %c0_125, %c0_126], %171 {strides = array<i32>} : memref<1x16x64xf32, #tpu.memory_space<vmem>>, vector<1x16x64xf32>,
    %cst_127 = arith.constant 0.000000e+00 : f32
    %172 = vector.broadcast %cst_127 : f32 to vector<1x36x64xf32>
    %c0_128 = arith.constant 0 : index
    %c0_129 = arith.constant 0 : index
    %c0_130 = arith.constant 0 : index
    %173 = vector.load %arg7[%c0_128, %c0_129, %c0_130] : memref<1x36x64xf32, #tpu.memory_space<vmem>>, vector<1x36x64xf32>
    tpu.vector_store %arg7[%c0_128, %c0_129, %c0_130], %172 {strides = array<i32>} : memref<1x36x64xf32, #tpu.memory_space<vmem>>, vector<1x36x64xf32>,
    %174 = vector.extract_strided_slice %168 {offsets = [0, 0], sizes = [4, 64], strides = [1, 1]} : vector<16x64xf32> to vector<4x64xf32>
    %c0_131 = arith.constant 0 : index
    %c7_132 = arith.constant 7 : index
    %c0_133 = arith.constant 0 : index
    %175 = vector.load %arg7[%c0_131, %c7_132, %c0_133] : memref<1x36x64xf32, #tpu.memory_space<vmem>>, vector<1x4x64xf32>
    %176 = vector.shape_cast %175 : vector<1x4x64xf32> to vector<4x64xf32>
    %177 = vector.shape_cast %174 : vector<4x64xf32> to vector<1x4x64xf32>
    tpu.vector_store %arg7[%c0_131, %c7_132, %c0_133], %177 {strides = array<i32>} : memref<1x36x64xf32, #tpu.memory_space<vmem>>, vector<1x4x64xf32>,
    %178 = vector.extract_strided_slice %168 {offsets = [4, 0], sizes = [4, 64], strides = [1, 1]} : vector<16x64xf32> to vector<4x64xf32>
    %c0_134 = arith.constant 0 : index
    %c13 = arith.constant 13 : index
    %c0_135 = arith.constant 0 : index
    %179 = vector.load %arg7[%c0_134, %c13, %c0_135] : memref<1x36x64xf32, #tpu.memory_space<vmem>>, vector<1x4x64xf32>
    %180 = vector.shape_cast %179 : vector<1x4x64xf32> to vector<4x64xf32>
    %181 = vector.shape_cast %178 : vector<4x64xf32> to vector<1x4x64xf32>
    tpu.vector_store %arg7[%c0_134, %c13, %c0_135], %181 {strides = array<i32>} : memref<1x36x64xf32, #tpu.memory_space<vmem>>, vector<1x4x64xf32>,
    %182 = vector.extract_strided_slice %168 {offsets = [8, 0], sizes = [4, 64], strides = [1, 1]} : vector<16x64xf32> to vector<4x64xf32>
    %c0_136 = arith.constant 0 : index
    %c19 = arith.constant 19 : index
    %c0_137 = arith.constant 0 : index
    %183 = vector.load %arg7[%c0_136, %c19, %c0_137] : memref<1x36x64xf32, #tpu.memory_space<vmem>>, vector<1x4x64xf32>
    %184 = vector.shape_cast %183 : vector<1x4x64xf32> to vector<4x64xf32>
    %185 = vector.shape_cast %182 : vector<4x64xf32> to vector<1x4x64xf32>
    tpu.vector_store %arg7[%c0_136, %c19, %c0_137], %185 {strides = array<i32>} : memref<1x36x64xf32, #tpu.memory_space<vmem>>, vector<1x4x64xf32>,
    %186 = vector.extract_strided_slice %168 {offsets = [12, 0], sizes = [4, 64], strides = [1, 1]} : vector<16x64xf32> to vector<4x64xf32>
    %c0_138 = arith.constant 0 : index
    %c25 = arith.constant 25 : index
    %c0_139 = arith.constant 0 : index
    %187 = vector.load %arg7[%c0_138, %c25, %c0_139] : memref<1x36x64xf32, #tpu.memory_space<vmem>>, vector<1x4x64xf32>
    %188 = vector.shape_cast %187 : vector<1x4x64xf32> to vector<4x64xf32>
    %189 = vector.shape_cast %186 : vector<4x64xf32> to vector<1x4x64xf32>
    tpu.vector_store %arg7[%c0_138, %c25, %c0_139], %189 {strides = array<i32>} : memref<1x36x64xf32, #tpu.memory_space<vmem>>, vector<1x4x64xf32>,
    return
  }
  func.func @transform_0(%arg0: i32) -> (i32, i32, i32) {
    %c0_i32 = arith.constant 0 : i32
    %c0_i32_0 = arith.constant 0 : i32
    %c0_i32_1 = arith.constant 0 : i32
    return %arg0, %c0_i32, %c0_i32_0 : i32, i32, i32
  }
  func.func @transform_1(%arg0: i32) -> (i32, i32, i32) {
    %c0_i32 = arith.constant 0 : i32
    %c0_i32_0 = arith.constant 0 : i32
    %c0_i32_1 = arith.constant 0 : i32
    %c0_i32_2 = arith.constant 0 : i32
    return %c0_i32, %c0_i32_0, %c0_i32_1 : i32, i32, i32
  }
  func.func @transform_2(%arg0: i32) -> (i32, i32) {
    %c0_i32 = arith.constant 0 : i32
    %c0_i32_0 = arith.constant 0 : i32
    %c0_i32_1 = arith.constant 0 : i32
    return %c0_i32, %c0_i32_0 : i32, i32
  }
  func.func @transform_3(%arg0: i32) -> (i32, i32, i32) {
    %c0_i32 = arith.constant 0 : i32
    %c0_i32_0 = arith.constant 0 : i32
    %c0_i32_1 = arith.constant 0 : i32
    %c0_i32_2 = arith.constant 0 : i32
    return %c0_i32, %c0_i32_0, %c0_i32_1 : i32, i32, i32
  }
  func.func @transform_4(%arg0: i32) -> (i32, i32) {
    %c0_i32 = arith.constant 0 : i32
    %c0_i32_0 = arith.constant 0 : i32
    %c0_i32_1 = arith.constant 0 : i32
    return %c0_i32, %c0_i32_0 : i32, i32
  }
  func.func @transform_5(%arg0: i32) -> (i32, i32, i32) {
    %c0_i32 = arith.constant 0 : i32
    %c0_i32_0 = arith.constant 0 : i32
    %c0_i32_1 = arith.constant 0 : i32
    return %arg0, %c0_i32, %c0_i32_0 : i32, i32, i32
  }
  func.func @transform_6(%arg0: i32) -> (i32, i32, i32) {
    %c0_i32 = arith.constant 0 : i32
    %c0_i32_0 = arith.constant 0 : i32
    %c0_i32_1 = arith.constant 0 : i32
    return %arg0, %c0_i32, %c0_i32_0 : i32, i32, i32
  }
}

module attributes {stable_mosaic.version = 11 : i64} {
  func.func @_block_kernel(%arg0: i32, %arg1: memref<1x324x3xf32, #tpu.memory_space<vmem>>, %arg2: memref<9x3x32xbf16, #tpu.memory_space<vmem>>, %arg3: memref<1x32xf32, #tpu.memory_space<vmem>>, %arg4: memref<9x32x32xbf16, #tpu.memory_space<vmem>>, %arg5: memref<1x32xf32, #tpu.memory_space<vmem>>, %arg6: memref<1x64x32xf32, #tpu.memory_space<vmem>>, %arg7: memref<1x100x32xf32, #tpu.memory_space<vmem>>, %arg8: memref<324x32xf32, #tpu.memory_space<vmem>>) attributes {dimension_semantics = [#tpu.dimension_semantics<parallel>], iteration_bounds = array<i64: 2>, scalar_prefetch = 0 : i64, scratch_operands = 1 : i64, tpu.core_type = #tpu.core_type<tc>, window_params = [{transform_indices = @transform_0, window_bounds = array<i64: 1, 324, 3>}, {pipeline_mode = #tpu.pipeline_mode<synchronous>, transform_indices = @transform_1, window_bounds = array<i64: 9, 3, 32>}, {pipeline_mode = #tpu.pipeline_mode<synchronous>, transform_indices = @transform_2, window_bounds = array<i64: 1, 32>}, {pipeline_mode = #tpu.pipeline_mode<synchronous>, transform_indices = @transform_3, window_bounds = array<i64: 9, 32, 32>}, {pipeline_mode = #tpu.pipeline_mode<synchronous>, transform_indices = @transform_4, window_bounds = array<i64: 1, 32>}, {transform_indices = @transform_5, window_bounds = array<i64: 1, 64, 32>}, {transform_indices = @transform_6, window_bounds = array<i64: 1, 100, 32>}]} {
    %cst = arith.constant 0.000000e+00 : f32
    %0 = vector.broadcast %cst : f32 to vector<286x32xf32>
    %c0 = arith.constant 0 : index
    %c0_0 = arith.constant 0 : index
    %c0_1 = arith.constant 0 : index
    %1 = vector.load %arg1[%c0, %c0_0, %c0_1] : memref<1x324x3xf32, #tpu.memory_space<vmem>>, vector<1x286x3xf32>
    %2 = vector.shape_cast %1 : vector<1x286x3xf32> to vector<286x3xf32>
    %3 = arith.truncf %2 : vector<286x3xf32> to vector<286x3xbf16>
    %c0_2 = arith.constant 0 : index
    %c0_3 = arith.constant 0 : index
    %c0_4 = arith.constant 0 : index
    %4 = vector.load %arg2[%c0_2, %c0_3, %c0_4] : memref<9x3x32xbf16, #tpu.memory_space<vmem>>, vector<1x3x32xbf16>
    %5 = vector.shape_cast %4 : vector<1x3x32xbf16> to vector<3x32xbf16>
    %cst_5 = arith.constant dense<0.000000e+00> : vector<286x32xf32>
    %6 = tpu.matmul %3, %5, %cst_5 {dimension_numbers = #tpu.dot_dimension_numbers<[1], [0], [0], [1], [0, 0, 1, 1], [], []>} : vector<286x3xbf16>, vector<3x32xbf16>, vector<286x32xf32> -> vector<286x32xf32>
    %7 = arith.addf %0, %6 : vector<286x32xf32>
    %c0_6 = arith.constant 0 : index
    %c1 = arith.constant 1 : index
    %c0_7 = arith.constant 0 : index
    %8 = vector.load %arg1[%c0_6, %c1, %c0_7] : memref<1x324x3xf32, #tpu.memory_space<vmem>>, vector<1x286x3xf32>
    %9 = vector.shape_cast %8 : vector<1x286x3xf32> to vector<286x3xf32>
    %10 = arith.truncf %9 : vector<286x3xf32> to vector<286x3xbf16>
    %c1_8 = arith.constant 1 : index
    %c0_9 = arith.constant 0 : index
    %c0_10 = arith.constant 0 : index
    %11 = vector.load %arg2[%c1_8, %c0_9, %c0_10] : memref<9x3x32xbf16, #tpu.memory_space<vmem>>, vector<1x3x32xbf16>
    %12 = vector.shape_cast %11 : vector<1x3x32xbf16> to vector<3x32xbf16>
    %cst_11 = arith.constant dense<0.000000e+00> : vector<286x32xf32>
    %13 = tpu.matmul %10, %12, %cst_11 {dimension_numbers = #tpu.dot_dimension_numbers<[1], [0], [0], [1], [0, 0, 1, 1], [], []>} : vector<286x3xbf16>, vector<3x32xbf16>, vector<286x32xf32> -> vector<286x32xf32>
    %14 = arith.addf %7, %13 : vector<286x32xf32>
    %c0_12 = arith.constant 0 : index
    %c2 = arith.constant 2 : index
    %c0_13 = arith.constant 0 : index
    %15 = vector.load %arg1[%c0_12, %c2, %c0_13] : memref<1x324x3xf32, #tpu.memory_space<vmem>>, vector<1x286x3xf32>
    %16 = vector.shape_cast %15 : vector<1x286x3xf32> to vector<286x3xf32>
    %17 = arith.truncf %16 : vector<286x3xf32> to vector<286x3xbf16>
    %c2_14 = arith.constant 2 : index
    %c0_15 = arith.constant 0 : index
    %c0_16 = arith.constant 0 : index
    %18 = vector.load %arg2[%c2_14, %c0_15, %c0_16] : memref<9x3x32xbf16, #tpu.memory_space<vmem>>, vector<1x3x32xbf16>
    %19 = vector.shape_cast %18 : vector<1x3x32xbf16> to vector<3x32xbf16>
    %cst_17 = arith.constant dense<0.000000e+00> : vector<286x32xf32>
    %20 = tpu.matmul %17, %19, %cst_17 {dimension_numbers = #tpu.dot_dimension_numbers<[1], [0], [0], [1], [0, 0, 1, 1], [], []>} : vector<286x3xbf16>, vector<3x32xbf16>, vector<286x32xf32> -> vector<286x32xf32>
    %21 = arith.addf %14, %20 : vector<286x32xf32>
    %c0_18 = arith.constant 0 : index
    %c18 = arith.constant 18 : index
    %c0_19 = arith.constant 0 : index
    %22 = vector.load %arg1[%c0_18, %c18, %c0_19] : memref<1x324x3xf32, #tpu.memory_space<vmem>>, vector<1x286x3xf32>
    %23 = vector.shape_cast %22 : vector<1x286x3xf32> to vector<286x3xf32>
    %24 = arith.truncf %23 : vector<286x3xf32> to vector<286x3xbf16>
    %c3 = arith.constant 3 : index
    %c0_20 = arith.constant 0 : index
    %c0_21 = arith.constant 0 : index
    %25 = vector.load %arg2[%c3, %c0_20, %c0_21] : memref<9x3x32xbf16, #tpu.memory_space<vmem>>, vector<1x3x32xbf16>
    %26 = vector.shape_cast %25 : vector<1x3x32xbf16> to vector<3x32xbf16>
    %cst_22 = arith.constant dense<0.000000e+00> : vector<286x32xf32>
    %27 = tpu.matmul %24, %26, %cst_22 {dimension_numbers = #tpu.dot_dimension_numbers<[1], [0], [0], [1], [0, 0, 1, 1], [], []>} : vector<286x3xbf16>, vector<3x32xbf16>, vector<286x32xf32> -> vector<286x32xf32>
    %28 = arith.addf %21, %27 : vector<286x32xf32>
    %c0_23 = arith.constant 0 : index
    %c19 = arith.constant 19 : index
    %c0_24 = arith.constant 0 : index
    %29 = vector.load %arg1[%c0_23, %c19, %c0_24] : memref<1x324x3xf32, #tpu.memory_space<vmem>>, vector<1x286x3xf32>
    %30 = vector.shape_cast %29 : vector<1x286x3xf32> to vector<286x3xf32>
    %31 = arith.truncf %30 : vector<286x3xf32> to vector<286x3xbf16>
    %c4 = arith.constant 4 : index
    %c0_25 = arith.constant 0 : index
    %c0_26 = arith.constant 0 : index
    %32 = vector.load %arg2[%c4, %c0_25, %c0_26] : memref<9x3x32xbf16, #tpu.memory_space<vmem>>, vector<1x3x32xbf16>
    %33 = vector.shape_cast %32 : vector<1x3x32xbf16> to vector<3x32xbf16>
    %cst_27 = arith.constant dense<0.000000e+00> : vector<286x32xf32>
    %34 = tpu.matmul %31, %33, %cst_27 {dimension_numbers = #tpu.dot_dimension_numbers<[1], [0], [0], [1], [0, 0, 1, 1], [], []>} : vector<286x3xbf16>, vector<3x32xbf16>, vector<286x32xf32> -> vector<286x32xf32>
    %35 = arith.addf %28, %34 : vector<286x32xf32>
    %c0_28 = arith.constant 0 : index
    %c20 = arith.constant 20 : index
    %c0_29 = arith.constant 0 : index
    %36 = vector.load %arg1[%c0_28, %c20, %c0_29] : memref<1x324x3xf32, #tpu.memory_space<vmem>>, vector<1x286x3xf32>
    %37 = vector.shape_cast %36 : vector<1x286x3xf32> to vector<286x3xf32>
    %38 = arith.truncf %37 : vector<286x3xf32> to vector<286x3xbf16>
    %c5 = arith.constant 5 : index
    %c0_30 = arith.constant 0 : index
    %c0_31 = arith.constant 0 : index
    %39 = vector.load %arg2[%c5, %c0_30, %c0_31] : memref<9x3x32xbf16, #tpu.memory_space<vmem>>, vector<1x3x32xbf16>
    %40 = vector.shape_cast %39 : vector<1x3x32xbf16> to vector<3x32xbf16>
    %cst_32 = arith.constant dense<0.000000e+00> : vector<286x32xf32>
    %41 = tpu.matmul %38, %40, %cst_32 {dimension_numbers = #tpu.dot_dimension_numbers<[1], [0], [0], [1], [0, 0, 1, 1], [], []>} : vector<286x3xbf16>, vector<3x32xbf16>, vector<286x32xf32> -> vector<286x32xf32>
    %42 = arith.addf %35, %41 : vector<286x32xf32>
    %c0_33 = arith.constant 0 : index
    %c36 = arith.constant 36 : index
    %c0_34 = arith.constant 0 : index
    %43 = vector.load %arg1[%c0_33, %c36, %c0_34] : memref<1x324x3xf32, #tpu.memory_space<vmem>>, vector<1x286x3xf32>
    %44 = vector.shape_cast %43 : vector<1x286x3xf32> to vector<286x3xf32>
    %45 = arith.truncf %44 : vector<286x3xf32> to vector<286x3xbf16>
    %c6 = arith.constant 6 : index
    %c0_35 = arith.constant 0 : index
    %c0_36 = arith.constant 0 : index
    %46 = vector.load %arg2[%c6, %c0_35, %c0_36] : memref<9x3x32xbf16, #tpu.memory_space<vmem>>, vector<1x3x32xbf16>
    %47 = vector.shape_cast %46 : vector<1x3x32xbf16> to vector<3x32xbf16>
    %cst_37 = arith.constant dense<0.000000e+00> : vector<286x32xf32>
    %48 = tpu.matmul %45, %47, %cst_37 {dimension_numbers = #tpu.dot_dimension_numbers<[1], [0], [0], [1], [0, 0, 1, 1], [], []>} : vector<286x3xbf16>, vector<3x32xbf16>, vector<286x32xf32> -> vector<286x32xf32>
    %49 = arith.addf %42, %48 : vector<286x32xf32>
    %c0_38 = arith.constant 0 : index
    %c37 = arith.constant 37 : index
    %c0_39 = arith.constant 0 : index
    %50 = vector.load %arg1[%c0_38, %c37, %c0_39] : memref<1x324x3xf32, #tpu.memory_space<vmem>>, vector<1x286x3xf32>
    %51 = vector.shape_cast %50 : vector<1x286x3xf32> to vector<286x3xf32>
    %52 = arith.truncf %51 : vector<286x3xf32> to vector<286x3xbf16>
    %c7 = arith.constant 7 : index
    %c0_40 = arith.constant 0 : index
    %c0_41 = arith.constant 0 : index
    %53 = vector.load %arg2[%c7, %c0_40, %c0_41] : memref<9x3x32xbf16, #tpu.memory_space<vmem>>, vector<1x3x32xbf16>
    %54 = vector.shape_cast %53 : vector<1x3x32xbf16> to vector<3x32xbf16>
    %cst_42 = arith.constant dense<0.000000e+00> : vector<286x32xf32>
    %55 = tpu.matmul %52, %54, %cst_42 {dimension_numbers = #tpu.dot_dimension_numbers<[1], [0], [0], [1], [0, 0, 1, 1], [], []>} : vector<286x3xbf16>, vector<3x32xbf16>, vector<286x32xf32> -> vector<286x32xf32>
    %56 = arith.addf %49, %55 : vector<286x32xf32>
    %c0_43 = arith.constant 0 : index
    %c38 = arith.constant 38 : index
    %c0_44 = arith.constant 0 : index
    %57 = vector.load %arg1[%c0_43, %c38, %c0_44] : memref<1x324x3xf32, #tpu.memory_space<vmem>>, vector<1x286x3xf32>
    %58 = vector.shape_cast %57 : vector<1x286x3xf32> to vector<286x3xf32>
    %59 = arith.truncf %58 : vector<286x3xf32> to vector<286x3xbf16>
    %c8 = arith.constant 8 : index
    %c0_45 = arith.constant 0 : index
    %c0_46 = arith.constant 0 : index
    %60 = vector.load %arg2[%c8, %c0_45, %c0_46] : memref<9x3x32xbf16, #tpu.memory_space<vmem>>, vector<1x3x32xbf16>
    %61 = vector.shape_cast %60 : vector<1x3x32xbf16> to vector<3x32xbf16>
    %cst_47 = arith.constant dense<0.000000e+00> : vector<286x32xf32>
    %62 = tpu.matmul %59, %61, %cst_47 {dimension_numbers = #tpu.dot_dimension_numbers<[1], [0], [0], [1], [0, 0, 1, 1], [], []>} : vector<286x3xbf16>, vector<3x32xbf16>, vector<286x32xf32> -> vector<286x32xf32>
    %63 = arith.addf %56, %62 : vector<286x32xf32>
    %c0_48 = arith.constant 0 : index
    %c0_49 = arith.constant 0 : index
    %64 = vector.load %arg3[%c0_48, %c0_49] : memref<1x32xf32, #tpu.memory_space<vmem>>, vector<1x32xf32>
    %65 = vector.broadcast %64 : vector<1x32xf32> to vector<286x32xf32>
    %66 = arith.addf %63, %65 : vector<286x32xf32>
    %cst_50 = arith.constant 0.000000e+00 : f32
    %67 = vector.broadcast %cst_50 : f32 to vector<286x32xf32>
    %68 = arith.maximumf %66, %67 : vector<286x32xf32>
    %cst_51 = arith.constant 0.000000e+00 : f32
    %69 = vector.broadcast %cst_51 : f32 to vector<324x32xf32>
    %c0_52 = arith.constant 0 : index
    %c0_53 = arith.constant 0 : index
    %70 = vector.load %arg8[%c0_52, %c0_53] : memref<324x32xf32, #tpu.memory_space<vmem>>, vector<324x32xf32>
    tpu.vector_store %arg8[%c0_52, %c0_53], %69 {strides = array<i32>} : memref<324x32xf32, #tpu.memory_space<vmem>>, vector<324x32xf32>,
    %71 = vector.extract_strided_slice %68 {offsets = [0, 0], sizes = [16, 32], strides = [1, 1]} : vector<286x32xf32> to vector<16x32xf32>
    %c19_54 = arith.constant 19 : index
    %c0_55 = arith.constant 0 : index
    %72 = vector.load %arg8[%c19_54, %c0_55] : memref<324x32xf32, #tpu.memory_space<vmem>>, vector<16x32xf32>
    tpu.vector_store %arg8[%c19_54, %c0_55], %71 {strides = array<i32>} : memref<324x32xf32, #tpu.memory_space<vmem>>, vector<16x32xf32>,
    %73 = vector.extract_strided_slice %68 {offsets = [18, 0], sizes = [16, 32], strides = [1, 1]} : vector<286x32xf32> to vector<16x32xf32>
    %c37_56 = arith.constant 37 : index
    %c0_57 = arith.constant 0 : index
    %74 = vector.load %arg8[%c37_56, %c0_57] : memref<324x32xf32, #tpu.memory_space<vmem>>, vector<16x32xf32>
    tpu.vector_store %arg8[%c37_56, %c0_57], %73 {strides = array<i32>} : memref<324x32xf32, #tpu.memory_space<vmem>>, vector<16x32xf32>,
    %75 = vector.extract_strided_slice %68 {offsets = [36, 0], sizes = [16, 32], strides = [1, 1]} : vector<286x32xf32> to vector<16x32xf32>
    %c55 = arith.constant 55 : index
    %c0_58 = arith.constant 0 : index
    %76 = vector.load %arg8[%c55, %c0_58] : memref<324x32xf32, #tpu.memory_space<vmem>>, vector<16x32xf32>
    tpu.vector_store %arg8[%c55, %c0_58], %75 {strides = array<i32>} : memref<324x32xf32, #tpu.memory_space<vmem>>, vector<16x32xf32>,
    %77 = vector.extract_strided_slice %68 {offsets = [54, 0], sizes = [16, 32], strides = [1, 1]} : vector<286x32xf32> to vector<16x32xf32>
    %c73 = arith.constant 73 : index
    %c0_59 = arith.constant 0 : index
    %78 = vector.load %arg8[%c73, %c0_59] : memref<324x32xf32, #tpu.memory_space<vmem>>, vector<16x32xf32>
    tpu.vector_store %arg8[%c73, %c0_59], %77 {strides = array<i32>} : memref<324x32xf32, #tpu.memory_space<vmem>>, vector<16x32xf32>,
    %79 = vector.extract_strided_slice %68 {offsets = [72, 0], sizes = [16, 32], strides = [1, 1]} : vector<286x32xf32> to vector<16x32xf32>
    %c91 = arith.constant 91 : index
    %c0_60 = arith.constant 0 : index
    %80 = vector.load %arg8[%c91, %c0_60] : memref<324x32xf32, #tpu.memory_space<vmem>>, vector<16x32xf32>
    tpu.vector_store %arg8[%c91, %c0_60], %79 {strides = array<i32>} : memref<324x32xf32, #tpu.memory_space<vmem>>, vector<16x32xf32>,
    %81 = vector.extract_strided_slice %68 {offsets = [90, 0], sizes = [16, 32], strides = [1, 1]} : vector<286x32xf32> to vector<16x32xf32>
    %c109 = arith.constant 109 : index
    %c0_61 = arith.constant 0 : index
    %82 = vector.load %arg8[%c109, %c0_61] : memref<324x32xf32, #tpu.memory_space<vmem>>, vector<16x32xf32>
    tpu.vector_store %arg8[%c109, %c0_61], %81 {strides = array<i32>} : memref<324x32xf32, #tpu.memory_space<vmem>>, vector<16x32xf32>,
    %83 = vector.extract_strided_slice %68 {offsets = [108, 0], sizes = [16, 32], strides = [1, 1]} : vector<286x32xf32> to vector<16x32xf32>
    %c127 = arith.constant 127 : index
    %c0_62 = arith.constant 0 : index
    %84 = vector.load %arg8[%c127, %c0_62] : memref<324x32xf32, #tpu.memory_space<vmem>>, vector<16x32xf32>
    tpu.vector_store %arg8[%c127, %c0_62], %83 {strides = array<i32>} : memref<324x32xf32, #tpu.memory_space<vmem>>, vector<16x32xf32>,
    %85 = vector.extract_strided_slice %68 {offsets = [126, 0], sizes = [16, 32], strides = [1, 1]} : vector<286x32xf32> to vector<16x32xf32>
    %c145 = arith.constant 145 : index
    %c0_63 = arith.constant 0 : index
    %86 = vector.load %arg8[%c145, %c0_63] : memref<324x32xf32, #tpu.memory_space<vmem>>, vector<16x32xf32>
    tpu.vector_store %arg8[%c145, %c0_63], %85 {strides = array<i32>} : memref<324x32xf32, #tpu.memory_space<vmem>>, vector<16x32xf32>,
    %87 = vector.extract_strided_slice %68 {offsets = [144, 0], sizes = [16, 32], strides = [1, 1]} : vector<286x32xf32> to vector<16x32xf32>
    %c163 = arith.constant 163 : index
    %c0_64 = arith.constant 0 : index
    %88 = vector.load %arg8[%c163, %c0_64] : memref<324x32xf32, #tpu.memory_space<vmem>>, vector<16x32xf32>
    tpu.vector_store %arg8[%c163, %c0_64], %87 {strides = array<i32>} : memref<324x32xf32, #tpu.memory_space<vmem>>, vector<16x32xf32>,
    %89 = vector.extract_strided_slice %68 {offsets = [162, 0], sizes = [16, 32], strides = [1, 1]} : vector<286x32xf32> to vector<16x32xf32>
    %c181 = arith.constant 181 : index
    %c0_65 = arith.constant 0 : index
    %90 = vector.load %arg8[%c181, %c0_65] : memref<324x32xf32, #tpu.memory_space<vmem>>, vector<16x32xf32>
    tpu.vector_store %arg8[%c181, %c0_65], %89 {strides = array<i32>} : memref<324x32xf32, #tpu.memory_space<vmem>>, vector<16x32xf32>,
    %91 = vector.extract_strided_slice %68 {offsets = [180, 0], sizes = [16, 32], strides = [1, 1]} : vector<286x32xf32> to vector<16x32xf32>
    %c199 = arith.constant 199 : index
    %c0_66 = arith.constant 0 : index
    %92 = vector.load %arg8[%c199, %c0_66] : memref<324x32xf32, #tpu.memory_space<vmem>>, vector<16x32xf32>
    tpu.vector_store %arg8[%c199, %c0_66], %91 {strides = array<i32>} : memref<324x32xf32, #tpu.memory_space<vmem>>, vector<16x32xf32>,
    %93 = vector.extract_strided_slice %68 {offsets = [198, 0], sizes = [16, 32], strides = [1, 1]} : vector<286x32xf32> to vector<16x32xf32>
    %c217 = arith.constant 217 : index
    %c0_67 = arith.constant 0 : index
    %94 = vector.load %arg8[%c217, %c0_67] : memref<324x32xf32, #tpu.memory_space<vmem>>, vector<16x32xf32>
    tpu.vector_store %arg8[%c217, %c0_67], %93 {strides = array<i32>} : memref<324x32xf32, #tpu.memory_space<vmem>>, vector<16x32xf32>,
    %95 = vector.extract_strided_slice %68 {offsets = [216, 0], sizes = [16, 32], strides = [1, 1]} : vector<286x32xf32> to vector<16x32xf32>
    %c235 = arith.constant 235 : index
    %c0_68 = arith.constant 0 : index
    %96 = vector.load %arg8[%c235, %c0_68] : memref<324x32xf32, #tpu.memory_space<vmem>>, vector<16x32xf32>
    tpu.vector_store %arg8[%c235, %c0_68], %95 {strides = array<i32>} : memref<324x32xf32, #tpu.memory_space<vmem>>, vector<16x32xf32>,
    %97 = vector.extract_strided_slice %68 {offsets = [234, 0], sizes = [16, 32], strides = [1, 1]} : vector<286x32xf32> to vector<16x32xf32>
    %c253 = arith.constant 253 : index
    %c0_69 = arith.constant 0 : index
    %98 = vector.load %arg8[%c253, %c0_69] : memref<324x32xf32, #tpu.memory_space<vmem>>, vector<16x32xf32>
    tpu.vector_store %arg8[%c253, %c0_69], %97 {strides = array<i32>} : memref<324x32xf32, #tpu.memory_space<vmem>>, vector<16x32xf32>,
    %99 = vector.extract_strided_slice %68 {offsets = [252, 0], sizes = [16, 32], strides = [1, 1]} : vector<286x32xf32> to vector<16x32xf32>
    %c271 = arith.constant 271 : index
    %c0_70 = arith.constant 0 : index
    %100 = vector.load %arg8[%c271, %c0_70] : memref<324x32xf32, #tpu.memory_space<vmem>>, vector<16x32xf32>
    tpu.vector_store %arg8[%c271, %c0_70], %99 {strides = array<i32>} : memref<324x32xf32, #tpu.memory_space<vmem>>, vector<16x32xf32>,
    %101 = vector.extract_strided_slice %68 {offsets = [270, 0], sizes = [16, 32], strides = [1, 1]} : vector<286x32xf32> to vector<16x32xf32>
    %c289 = arith.constant 289 : index
    %c0_71 = arith.constant 0 : index
    %102 = vector.load %arg8[%c289, %c0_71] : memref<324x32xf32, #tpu.memory_space<vmem>>, vector<16x32xf32>
    tpu.vector_store %arg8[%c289, %c0_71], %101 {strides = array<i32>} : memref<324x32xf32, #tpu.memory_space<vmem>>, vector<16x32xf32>,
    %cst_72 = arith.constant 0.000000e+00 : f32
    %103 = vector.broadcast %cst_72 : f32 to vector<286x32xf32>
    %c0_73 = arith.constant 0 : index
    %c0_74 = arith.constant 0 : index
    %104 = vector.load %arg8[%c0_73, %c0_74] : memref<324x32xf32, #tpu.memory_space<vmem>>, vector<286x32xf32>
    %105 = arith.truncf %104 : vector<286x32xf32> to vector<286x32xbf16>
    %c0_75 = arith.constant 0 : index
    %c0_76 = arith.constant 0 : index
    %c0_77 = arith.constant 0 : index
    %106 = vector.load %arg4[%c0_75, %c0_76, %c0_77] : memref<9x32x32xbf16, #tpu.memory_space<vmem>>, vector<1x32x32xbf16>
    %107 = vector.shape_cast %106 : vector<1x32x32xbf16> to vector<32x32xbf16>
    %cst_78 = arith.constant dense<0.000000e+00> : vector<286x32xf32>
    %108 = tpu.matmul %105, %107, %cst_78 {dimension_numbers = #tpu.dot_dimension_numbers<[1], [0], [0], [1], [0, 0, 1, 1], [], []>} : vector<286x32xbf16>, vector<32x32xbf16>, vector<286x32xf32> -> vector<286x32xf32>
    %109 = arith.addf %103, %108 : vector<286x32xf32>
    %c1_79 = arith.constant 1 : index
    %c0_80 = arith.constant 0 : index
    %110 = vector.load %arg8[%c1_79, %c0_80] : memref<324x32xf32, #tpu.memory_space<vmem>>, vector<286x32xf32>
    %111 = arith.truncf %110 : vector<286x32xf32> to vector<286x32xbf16>
    %c1_81 = arith.constant 1 : index
    %c0_82 = arith.constant 0 : index
    %c0_83 = arith.constant 0 : index
    %112 = vector.load %arg4[%c1_81, %c0_82, %c0_83] : memref<9x32x32xbf16, #tpu.memory_space<vmem>>, vector<1x32x32xbf16>
    %113 = vector.shape_cast %112 : vector<1x32x32xbf16> to vector<32x32xbf16>
    %cst_84 = arith.constant dense<0.000000e+00> : vector<286x32xf32>
    %114 = tpu.matmul %111, %113, %cst_84 {dimension_numbers = #tpu.dot_dimension_numbers<[1], [0], [0], [1], [0, 0, 1, 1], [], []>} : vector<286x32xbf16>, vector<32x32xbf16>, vector<286x32xf32> -> vector<286x32xf32>
    %115 = arith.addf %109, %114 : vector<286x32xf32>
    %c2_85 = arith.constant 2 : index
    %c0_86 = arith.constant 0 : index
    %116 = vector.load %arg8[%c2_85, %c0_86] : memref<324x32xf32, #tpu.memory_space<vmem>>, vector<286x32xf32>
    %117 = arith.truncf %116 : vector<286x32xf32> to vector<286x32xbf16>
    %c2_87 = arith.constant 2 : index
    %c0_88 = arith.constant 0 : index
    %c0_89 = arith.constant 0 : index
    %118 = vector.load %arg4[%c2_87, %c0_88, %c0_89] : memref<9x32x32xbf16, #tpu.memory_space<vmem>>, vector<1x32x32xbf16>
    %119 = vector.shape_cast %118 : vector<1x32x32xbf16> to vector<32x32xbf16>
    %cst_90 = arith.constant dense<0.000000e+00> : vector<286x32xf32>
    %120 = tpu.matmul %117, %119, %cst_90 {dimension_numbers = #tpu.dot_dimension_numbers<[1], [0], [0], [1], [0, 0, 1, 1], [], []>} : vector<286x32xbf16>, vector<32x32xbf16>, vector<286x32xf32> -> vector<286x32xf32>
    %121 = arith.addf %115, %120 : vector<286x32xf32>
    %c18_91 = arith.constant 18 : index
    %c0_92 = arith.constant 0 : index
    %122 = vector.load %arg8[%c18_91, %c0_92] : memref<324x32xf32, #tpu.memory_space<vmem>>, vector<286x32xf32>
    %123 = arith.truncf %122 : vector<286x32xf32> to vector<286x32xbf16>
    %c3_93 = arith.constant 3 : index
    %c0_94 = arith.constant 0 : index
    %c0_95 = arith.constant 0 : index
    %124 = vector.load %arg4[%c3_93, %c0_94, %c0_95] : memref<9x32x32xbf16, #tpu.memory_space<vmem>>, vector<1x32x32xbf16>
    %125 = vector.shape_cast %124 : vector<1x32x32xbf16> to vector<32x32xbf16>
    %cst_96 = arith.constant dense<0.000000e+00> : vector<286x32xf32>
    %126 = tpu.matmul %123, %125, %cst_96 {dimension_numbers = #tpu.dot_dimension_numbers<[1], [0], [0], [1], [0, 0, 1, 1], [], []>} : vector<286x32xbf16>, vector<32x32xbf16>, vector<286x32xf32> -> vector<286x32xf32>
    %127 = arith.addf %121, %126 : vector<286x32xf32>
    %c19_97 = arith.constant 19 : index
    %c0_98 = arith.constant 0 : index
    %128 = vector.load %arg8[%c19_97, %c0_98] : memref<324x32xf32, #tpu.memory_space<vmem>>, vector<286x32xf32>
    %129 = arith.truncf %128 : vector<286x32xf32> to vector<286x32xbf16>
    %c4_99 = arith.constant 4 : index
    %c0_100 = arith.constant 0 : index
    %c0_101 = arith.constant 0 : index
    %130 = vector.load %arg4[%c4_99, %c0_100, %c0_101] : memref<9x32x32xbf16, #tpu.memory_space<vmem>>, vector<1x32x32xbf16>
    %131 = vector.shape_cast %130 : vector<1x32x32xbf16> to vector<32x32xbf16>
    %cst_102 = arith.constant dense<0.000000e+00> : vector<286x32xf32>
    %132 = tpu.matmul %129, %131, %cst_102 {dimension_numbers = #tpu.dot_dimension_numbers<[1], [0], [0], [1], [0, 0, 1, 1], [], []>} : vector<286x32xbf16>, vector<32x32xbf16>, vector<286x32xf32> -> vector<286x32xf32>
    %133 = arith.addf %127, %132 : vector<286x32xf32>
    %c20_103 = arith.constant 20 : index
    %c0_104 = arith.constant 0 : index
    %134 = vector.load %arg8[%c20_103, %c0_104] : memref<324x32xf32, #tpu.memory_space<vmem>>, vector<286x32xf32>
    %135 = arith.truncf %134 : vector<286x32xf32> to vector<286x32xbf16>
    %c5_105 = arith.constant 5 : index
    %c0_106 = arith.constant 0 : index
    %c0_107 = arith.constant 0 : index
    %136 = vector.load %arg4[%c5_105, %c0_106, %c0_107] : memref<9x32x32xbf16, #tpu.memory_space<vmem>>, vector<1x32x32xbf16>
    %137 = vector.shape_cast %136 : vector<1x32x32xbf16> to vector<32x32xbf16>
    %cst_108 = arith.constant dense<0.000000e+00> : vector<286x32xf32>
    %138 = tpu.matmul %135, %137, %cst_108 {dimension_numbers = #tpu.dot_dimension_numbers<[1], [0], [0], [1], [0, 0, 1, 1], [], []>} : vector<286x32xbf16>, vector<32x32xbf16>, vector<286x32xf32> -> vector<286x32xf32>
    %139 = arith.addf %133, %138 : vector<286x32xf32>
    %c36_109 = arith.constant 36 : index
    %c0_110 = arith.constant 0 : index
    %140 = vector.load %arg8[%c36_109, %c0_110] : memref<324x32xf32, #tpu.memory_space<vmem>>, vector<286x32xf32>
    %141 = arith.truncf %140 : vector<286x32xf32> to vector<286x32xbf16>
    %c6_111 = arith.constant 6 : index
    %c0_112 = arith.constant 0 : index
    %c0_113 = arith.constant 0 : index
    %142 = vector.load %arg4[%c6_111, %c0_112, %c0_113] : memref<9x32x32xbf16, #tpu.memory_space<vmem>>, vector<1x32x32xbf16>
    %143 = vector.shape_cast %142 : vector<1x32x32xbf16> to vector<32x32xbf16>
    %cst_114 = arith.constant dense<0.000000e+00> : vector<286x32xf32>
    %144 = tpu.matmul %141, %143, %cst_114 {dimension_numbers = #tpu.dot_dimension_numbers<[1], [0], [0], [1], [0, 0, 1, 1], [], []>} : vector<286x32xbf16>, vector<32x32xbf16>, vector<286x32xf32> -> vector<286x32xf32>
    %145 = arith.addf %139, %144 : vector<286x32xf32>
    %c37_115 = arith.constant 37 : index
    %c0_116 = arith.constant 0 : index
    %146 = vector.load %arg8[%c37_115, %c0_116] : memref<324x32xf32, #tpu.memory_space<vmem>>, vector<286x32xf32>
    %147 = arith.truncf %146 : vector<286x32xf32> to vector<286x32xbf16>
    %c7_117 = arith.constant 7 : index
    %c0_118 = arith.constant 0 : index
    %c0_119 = arith.constant 0 : index
    %148 = vector.load %arg4[%c7_117, %c0_118, %c0_119] : memref<9x32x32xbf16, #tpu.memory_space<vmem>>, vector<1x32x32xbf16>
    %149 = vector.shape_cast %148 : vector<1x32x32xbf16> to vector<32x32xbf16>
    %cst_120 = arith.constant dense<0.000000e+00> : vector<286x32xf32>
    %150 = tpu.matmul %147, %149, %cst_120 {dimension_numbers = #tpu.dot_dimension_numbers<[1], [0], [0], [1], [0, 0, 1, 1], [], []>} : vector<286x32xbf16>, vector<32x32xbf16>, vector<286x32xf32> -> vector<286x32xf32>
    %151 = arith.addf %145, %150 : vector<286x32xf32>
    %c38_121 = arith.constant 38 : index
    %c0_122 = arith.constant 0 : index
    %152 = vector.load %arg8[%c38_121, %c0_122] : memref<324x32xf32, #tpu.memory_space<vmem>>, vector<286x32xf32>
    %153 = arith.truncf %152 : vector<286x32xf32> to vector<286x32xbf16>
    %c8_123 = arith.constant 8 : index
    %c0_124 = arith.constant 0 : index
    %c0_125 = arith.constant 0 : index
    %154 = vector.load %arg4[%c8_123, %c0_124, %c0_125] : memref<9x32x32xbf16, #tpu.memory_space<vmem>>, vector<1x32x32xbf16>
    %155 = vector.shape_cast %154 : vector<1x32x32xbf16> to vector<32x32xbf16>
    %cst_126 = arith.constant dense<0.000000e+00> : vector<286x32xf32>
    %156 = tpu.matmul %153, %155, %cst_126 {dimension_numbers = #tpu.dot_dimension_numbers<[1], [0], [0], [1], [0, 0, 1, 1], [], []>} : vector<286x32xbf16>, vector<32x32xbf16>, vector<286x32xf32> -> vector<286x32xf32>
    %157 = arith.addf %151, %156 : vector<286x32xf32>
    %c0_127 = arith.constant 0 : index
    %c0_128 = arith.constant 0 : index
    %158 = vector.load %arg5[%c0_127, %c0_128] : memref<1x32xf32, #tpu.memory_space<vmem>>, vector<1x32xf32>
    %159 = vector.broadcast %158 : vector<1x32xf32> to vector<286x32xf32>
    %160 = arith.addf %157, %159 : vector<286x32xf32>
    %cst_129 = arith.constant 0.000000e+00 : f32
    %161 = vector.broadcast %cst_129 : f32 to vector<286x32xf32>
    %162 = arith.maximumf %160, %161 : vector<286x32xf32>
    %163 = vector.extract_strided_slice %162 {offsets = [0, 0], sizes = [267, 32], strides = [1, 1]} : vector<286x32xf32> to vector<267x32xf32>
    %164 = vector.extract_strided_slice %162 {offsets = [1, 0], sizes = [267, 32], strides = [1, 1]} : vector<286x32xf32> to vector<267x32xf32>
    %165 = arith.maximumf %163, %164 : vector<267x32xf32>
    %166 = vector.extract_strided_slice %162 {offsets = [18, 0], sizes = [267, 32], strides = [1, 1]} : vector<286x32xf32> to vector<267x32xf32>
    %167 = vector.extract_strided_slice %162 {offsets = [19, 0], sizes = [267, 32], strides = [1, 1]} : vector<286x32xf32> to vector<267x32xf32>
    %168 = arith.maximumf %166, %167 : vector<267x32xf32>
    %169 = arith.maximumf %165, %168 : vector<267x32xf32>
    %170 = tpu.iota {dimensions = array<i32: 0>} : vector<64x267xi32>
    %171 = tpu.iota {dimensions = array<i32: 1>} : vector<64x267xi32>
    %c3_i32 = arith.constant 3 : i32
    %172 = vector.broadcast %c3_i32 : i32 to vector<64x267xi32>
    %173 = arith.shrsi %170, %172 : vector<64x267xi32>
    %c36_i32 = arith.constant 36 : i32
    %174 = vector.broadcast %c36_i32 : i32 to vector<64x267xi32>
    %175 = arith.muli %174, %173 : vector<64x267xi32>
    %c7_i32 = arith.constant 7 : i32
    %176 = vector.broadcast %c7_i32 : i32 to vector<64x267xi32>
    %177 = arith.andi %170, %176 : vector<64x267xi32>
    %c2_i32 = arith.constant 2 : i32
    %178 = vector.broadcast %c2_i32 : i32 to vector<64x267xi32>
    %179 = arith.muli %178, %177 : vector<64x267xi32>
    %180 = arith.addi %175, %179 : vector<64x267xi32>
    %181 = arith.cmpi eq, %171, %180 : vector<64x267xi32>
    %182 = arith.extui %181 : vector<64x267xi1> to vector<64x267xi32>
    %183 = arith.sitofp %182 : vector<64x267xi32> to vector<64x267xf32>
    %cst_130 = arith.constant dense<0.000000e+00> : vector<64x32xf32>
    %184 = tpu.matmul %183, %169, %cst_130 {dimension_numbers = #tpu.dot_dimension_numbers<[1], [0], [0], [1], [0, 0, 1, 1], [], []>} : vector<64x267xf32>, vector<267x32xf32>, vector<64x32xf32> -> vector<64x32xf32>
    %c0_131 = arith.constant 0 : index
    %c0_132 = arith.constant 0 : index
    %c0_133 = arith.constant 0 : index
    %185 = vector.load %arg6[%c0_131, %c0_132, %c0_133] : memref<1x64x32xf32, #tpu.memory_space<vmem>>, vector<1x64x32xf32>
    %186 = vector.shape_cast %185 : vector<1x64x32xf32> to vector<64x32xf32>
    %187 = vector.shape_cast %184 : vector<64x32xf32> to vector<1x64x32xf32>
    tpu.vector_store %arg6[%c0_131, %c0_132, %c0_133], %187 {strides = array<i32>} : memref<1x64x32xf32, #tpu.memory_space<vmem>>, vector<1x64x32xf32>,
    %cst_134 = arith.constant 0.000000e+00 : f32
    %188 = vector.broadcast %cst_134 : f32 to vector<1x100x32xf32>
    %c0_135 = arith.constant 0 : index
    %c0_136 = arith.constant 0 : index
    %c0_137 = arith.constant 0 : index
    %189 = vector.load %arg7[%c0_135, %c0_136, %c0_137] : memref<1x100x32xf32, #tpu.memory_space<vmem>>, vector<1x100x32xf32>
    tpu.vector_store %arg7[%c0_135, %c0_136, %c0_137], %188 {strides = array<i32>} : memref<1x100x32xf32, #tpu.memory_space<vmem>>, vector<1x100x32xf32>,
    %190 = vector.extract_strided_slice %184 {offsets = [0, 0], sizes = [8, 32], strides = [1, 1]} : vector<64x32xf32> to vector<8x32xf32>
    %c0_138 = arith.constant 0 : index
    %c11 = arith.constant 11 : index
    %c0_139 = arith.constant 0 : index
    %191 = vector.load %arg7[%c0_138, %c11, %c0_139] : memref<1x100x32xf32, #tpu.memory_space<vmem>>, vector<1x8x32xf32>
    %192 = vector.shape_cast %191 : vector<1x8x32xf32> to vector<8x32xf32>
    %193 = vector.shape_cast %190 : vector<8x32xf32> to vector<1x8x32xf32>
    tpu.vector_store %arg7[%c0_138, %c11, %c0_139], %193 {strides = array<i32>} : memref<1x100x32xf32, #tpu.memory_space<vmem>>, vector<1x8x32xf32>,
    %194 = vector.extract_strided_slice %184 {offsets = [8, 0], sizes = [8, 32], strides = [1, 1]} : vector<64x32xf32> to vector<8x32xf32>
    %c0_140 = arith.constant 0 : index
    %c21 = arith.constant 21 : index
    %c0_141 = arith.constant 0 : index
    %195 = vector.load %arg7[%c0_140, %c21, %c0_141] : memref<1x100x32xf32, #tpu.memory_space<vmem>>, vector<1x8x32xf32>
    %196 = vector.shape_cast %195 : vector<1x8x32xf32> to vector<8x32xf32>
    %197 = vector.shape_cast %194 : vector<8x32xf32> to vector<1x8x32xf32>
    tpu.vector_store %arg7[%c0_140, %c21, %c0_141], %197 {strides = array<i32>} : memref<1x100x32xf32, #tpu.memory_space<vmem>>, vector<1x8x32xf32>,
    %198 = vector.extract_strided_slice %184 {offsets = [16, 0], sizes = [8, 32], strides = [1, 1]} : vector<64x32xf32> to vector<8x32xf32>
    %c0_142 = arith.constant 0 : index
    %c31 = arith.constant 31 : index
    %c0_143 = arith.constant 0 : index
    %199 = vector.load %arg7[%c0_142, %c31, %c0_143] : memref<1x100x32xf32, #tpu.memory_space<vmem>>, vector<1x8x32xf32>
    %200 = vector.shape_cast %199 : vector<1x8x32xf32> to vector<8x32xf32>
    %201 = vector.shape_cast %198 : vector<8x32xf32> to vector<1x8x32xf32>
    tpu.vector_store %arg7[%c0_142, %c31, %c0_143], %201 {strides = array<i32>} : memref<1x100x32xf32, #tpu.memory_space<vmem>>, vector<1x8x32xf32>,
    %202 = vector.extract_strided_slice %184 {offsets = [24, 0], sizes = [8, 32], strides = [1, 1]} : vector<64x32xf32> to vector<8x32xf32>
    %c0_144 = arith.constant 0 : index
    %c41 = arith.constant 41 : index
    %c0_145 = arith.constant 0 : index
    %203 = vector.load %arg7[%c0_144, %c41, %c0_145] : memref<1x100x32xf32, #tpu.memory_space<vmem>>, vector<1x8x32xf32>
    %204 = vector.shape_cast %203 : vector<1x8x32xf32> to vector<8x32xf32>
    %205 = vector.shape_cast %202 : vector<8x32xf32> to vector<1x8x32xf32>
    tpu.vector_store %arg7[%c0_144, %c41, %c0_145], %205 {strides = array<i32>} : memref<1x100x32xf32, #tpu.memory_space<vmem>>, vector<1x8x32xf32>,
    %206 = vector.extract_strided_slice %184 {offsets = [32, 0], sizes = [8, 32], strides = [1, 1]} : vector<64x32xf32> to vector<8x32xf32>
    %c0_146 = arith.constant 0 : index
    %c51 = arith.constant 51 : index
    %c0_147 = arith.constant 0 : index
    %207 = vector.load %arg7[%c0_146, %c51, %c0_147] : memref<1x100x32xf32, #tpu.memory_space<vmem>>, vector<1x8x32xf32>
    %208 = vector.shape_cast %207 : vector<1x8x32xf32> to vector<8x32xf32>
    %209 = vector.shape_cast %206 : vector<8x32xf32> to vector<1x8x32xf32>
    tpu.vector_store %arg7[%c0_146, %c51, %c0_147], %209 {strides = array<i32>} : memref<1x100x32xf32, #tpu.memory_space<vmem>>, vector<1x8x32xf32>,
    %210 = vector.extract_strided_slice %184 {offsets = [40, 0], sizes = [8, 32], strides = [1, 1]} : vector<64x32xf32> to vector<8x32xf32>
    %c0_148 = arith.constant 0 : index
    %c61 = arith.constant 61 : index
    %c0_149 = arith.constant 0 : index
    %211 = vector.load %arg7[%c0_148, %c61, %c0_149] : memref<1x100x32xf32, #tpu.memory_space<vmem>>, vector<1x8x32xf32>
    %212 = vector.shape_cast %211 : vector<1x8x32xf32> to vector<8x32xf32>
    %213 = vector.shape_cast %210 : vector<8x32xf32> to vector<1x8x32xf32>
    tpu.vector_store %arg7[%c0_148, %c61, %c0_149], %213 {strides = array<i32>} : memref<1x100x32xf32, #tpu.memory_space<vmem>>, vector<1x8x32xf32>,
    %214 = vector.extract_strided_slice %184 {offsets = [48, 0], sizes = [8, 32], strides = [1, 1]} : vector<64x32xf32> to vector<8x32xf32>
    %c0_150 = arith.constant 0 : index
    %c71 = arith.constant 71 : index
    %c0_151 = arith.constant 0 : index
    %215 = vector.load %arg7[%c0_150, %c71, %c0_151] : memref<1x100x32xf32, #tpu.memory_space<vmem>>, vector<1x8x32xf32>
    %216 = vector.shape_cast %215 : vector<1x8x32xf32> to vector<8x32xf32>
    %217 = vector.shape_cast %214 : vector<8x32xf32> to vector<1x8x32xf32>
    tpu.vector_store %arg7[%c0_150, %c71, %c0_151], %217 {strides = array<i32>} : memref<1x100x32xf32, #tpu.memory_space<vmem>>, vector<1x8x32xf32>,
    %218 = vector.extract_strided_slice %184 {offsets = [56, 0], sizes = [8, 32], strides = [1, 1]} : vector<64x32xf32> to vector<8x32xf32>
    %c0_152 = arith.constant 0 : index
    %c81 = arith.constant 81 : index
    %c0_153 = arith.constant 0 : index
    %219 = vector.load %arg7[%c0_152, %c81, %c0_153] : memref<1x100x32xf32, #tpu.memory_space<vmem>>, vector<1x8x32xf32>
    %220 = vector.shape_cast %219 : vector<1x8x32xf32> to vector<8x32xf32>
    %221 = vector.shape_cast %218 : vector<8x32xf32> to vector<1x8x32xf32>
    tpu.vector_store %arg7[%c0_152, %c81, %c0_153], %221 {strides = array<i32>} : memref<1x100x32xf32, #tpu.memory_space<vmem>>, vector<1x8x32xf32>,
    return
  }
  func.func @transform_0(%arg0: i32) -> (i32, i32, i32) {
    %c0_i32 = arith.constant 0 : i32
    %c0_i32_0 = arith.constant 0 : i32
    %c0_i32_1 = arith.constant 0 : i32
    return %arg0, %c0_i32, %c0_i32_0 : i32, i32, i32
  }
  func.func @transform_1(%arg0: i32) -> (i32, i32, i32) {
    %c0_i32 = arith.constant 0 : i32
    %c0_i32_0 = arith.constant 0 : i32
    %c0_i32_1 = arith.constant 0 : i32
    %c0_i32_2 = arith.constant 0 : i32
    return %c0_i32, %c0_i32_0, %c0_i32_1 : i32, i32, i32
  }
  func.func @transform_2(%arg0: i32) -> (i32, i32) {
    %c0_i32 = arith.constant 0 : i32
    %c0_i32_0 = arith.constant 0 : i32
    %c0_i32_1 = arith.constant 0 : i32
    return %c0_i32, %c0_i32_0 : i32, i32
  }
  func.func @transform_3(%arg0: i32) -> (i32, i32, i32) {
    %c0_i32 = arith.constant 0 : i32
    %c0_i32_0 = arith.constant 0 : i32
    %c0_i32_1 = arith.constant 0 : i32
    %c0_i32_2 = arith.constant 0 : i32
    return %c0_i32, %c0_i32_0, %c0_i32_1 : i32, i32, i32
  }
  func.func @transform_4(%arg0: i32) -> (i32, i32) {
    %c0_i32 = arith.constant 0 : i32
    %c0_i32_0 = arith.constant 0 : i32
    %c0_i32_1 = arith.constant 0 : i32
    return %c0_i32, %c0_i32_0 : i32, i32
  }
  func.func @transform_5(%arg0: i32) -> (i32, i32, i32) {
    %c0_i32 = arith.constant 0 : i32
    %c0_i32_0 = arith.constant 0 : i32
    %c0_i32_1 = arith.constant 0 : i32
    return %arg0, %c0_i32, %c0_i32_0 : i32, i32, i32
  }
  func.func @transform_6(%arg0: i32) -> (i32, i32, i32) {
    %c0_i32 = arith.constant 0 : i32
    %c0_i32_0 = arith.constant 0 : i32
    %c0_i32_1 = arith.constant 0 : i32
    return %arg0, %c0_i32, %c0_i32_0 : i32, i32, i32
  }
}

module attributes {stable_mosaic.version = 11 : i64} {
  func.func @_block_head_kernel(%arg0: i32, %arg1: memref<1x36x64xf32, #tpu.memory_space<vmem>>, %arg2: memref<9x64x128xbf16, #tpu.memory_space<vmem>>, %arg3: memref<1x128xf32, #tpu.memory_space<vmem>>, %arg4: memref<9x128x128xbf16, #tpu.memory_space<vmem>>, %arg5: memref<1x128xf32, #tpu.memory_space<vmem>>, %arg6: memref<128x10xf32, #tpu.memory_space<vmem>>, %arg7: memref<1x10xf32, #tpu.memory_space<vmem>>, %arg8: memref<1x4x128xf32, #tpu.memory_space<vmem>>, %arg9: memref<1x1x10xf32, #tpu.memory_space<vmem>>, %arg10: memref<36x128xf32, #tpu.memory_space<vmem>>) attributes {dimension_semantics = [#tpu.dimension_semantics<parallel>], iteration_bounds = array<i64: 2>, scalar_prefetch = 0 : i64, scratch_operands = 1 : i64, tpu.core_type = #tpu.core_type<tc>, window_params = [{transform_indices = @transform_0, window_bounds = array<i64: 1, 36, 64>}, {pipeline_mode = #tpu.pipeline_mode<synchronous>, transform_indices = @transform_1, window_bounds = array<i64: 9, 64, 128>}, {pipeline_mode = #tpu.pipeline_mode<synchronous>, transform_indices = @transform_2, window_bounds = array<i64: 1, 128>}, {pipeline_mode = #tpu.pipeline_mode<synchronous>, transform_indices = @transform_3, window_bounds = array<i64: 9, 128, 128>}, {pipeline_mode = #tpu.pipeline_mode<synchronous>, transform_indices = @transform_4, window_bounds = array<i64: 1, 128>}, {pipeline_mode = #tpu.pipeline_mode<synchronous>, transform_indices = @transform_5, window_bounds = array<i64: 128, 10>}, {pipeline_mode = #tpu.pipeline_mode<synchronous>, transform_indices = @transform_6, window_bounds = array<i64: 1, 10>}, {transform_indices = @transform_7, window_bounds = array<i64: 1, 4, 128>}, {transform_indices = @transform_8, window_bounds = array<i64: 1, 1, 10>}]} {
    %cst = arith.constant 0.000000e+00 : f32
    %0 = vector.broadcast %cst : f32 to vector<22x128xf32>
    %c0 = arith.constant 0 : index
    %c0_0 = arith.constant 0 : index
    %c0_1 = arith.constant 0 : index
    %1 = vector.load %arg1[%c0, %c0_0, %c0_1] : memref<1x36x64xf32, #tpu.memory_space<vmem>>, vector<1x22x64xf32>
    %2 = vector.shape_cast %1 : vector<1x22x64xf32> to vector<22x64xf32>
    %3 = arith.truncf %2 : vector<22x64xf32> to vector<22x64xbf16>
    %c0_2 = arith.constant 0 : index
    %c0_3 = arith.constant 0 : index
    %c0_4 = arith.constant 0 : index
    %4 = vector.load %arg2[%c0_2, %c0_3, %c0_4] : memref<9x64x128xbf16, #tpu.memory_space<vmem>>, vector<1x64x128xbf16>
    %5 = vector.shape_cast %4 : vector<1x64x128xbf16> to vector<64x128xbf16>
    %cst_5 = arith.constant dense<0.000000e+00> : vector<22x128xf32>
    %6 = tpu.matmul %3, %5, %cst_5 {dimension_numbers = #tpu.dot_dimension_numbers<[1], [0], [0], [1], [0, 0, 1, 1], [], []>} : vector<22x64xbf16>, vector<64x128xbf16>, vector<22x128xf32> -> vector<22x128xf32>
    %7 = arith.addf %0, %6 : vector<22x128xf32>
    %c0_6 = arith.constant 0 : index
    %c1 = arith.constant 1 : index
    %c0_7 = arith.constant 0 : index
    %8 = vector.load %arg1[%c0_6, %c1, %c0_7] : memref<1x36x64xf32, #tpu.memory_space<vmem>>, vector<1x22x64xf32>
    %9 = vector.shape_cast %8 : vector<1x22x64xf32> to vector<22x64xf32>
    %10 = arith.truncf %9 : vector<22x64xf32> to vector<22x64xbf16>
    %c1_8 = arith.constant 1 : index
    %c0_9 = arith.constant 0 : index
    %c0_10 = arith.constant 0 : index
    %11 = vector.load %arg2[%c1_8, %c0_9, %c0_10] : memref<9x64x128xbf16, #tpu.memory_space<vmem>>, vector<1x64x128xbf16>
    %12 = vector.shape_cast %11 : vector<1x64x128xbf16> to vector<64x128xbf16>
    %cst_11 = arith.constant dense<0.000000e+00> : vector<22x128xf32>
    %13 = tpu.matmul %10, %12, %cst_11 {dimension_numbers = #tpu.dot_dimension_numbers<[1], [0], [0], [1], [0, 0, 1, 1], [], []>} : vector<22x64xbf16>, vector<64x128xbf16>, vector<22x128xf32> -> vector<22x128xf32>
    %14 = arith.addf %7, %13 : vector<22x128xf32>
    %c0_12 = arith.constant 0 : index
    %c2 = arith.constant 2 : index
    %c0_13 = arith.constant 0 : index
    %15 = vector.load %arg1[%c0_12, %c2, %c0_13] : memref<1x36x64xf32, #tpu.memory_space<vmem>>, vector<1x22x64xf32>
    %16 = vector.shape_cast %15 : vector<1x22x64xf32> to vector<22x64xf32>
    %17 = arith.truncf %16 : vector<22x64xf32> to vector<22x64xbf16>
    %c2_14 = arith.constant 2 : index
    %c0_15 = arith.constant 0 : index
    %c0_16 = arith.constant 0 : index
    %18 = vector.load %arg2[%c2_14, %c0_15, %c0_16] : memref<9x64x128xbf16, #tpu.memory_space<vmem>>, vector<1x64x128xbf16>
    %19 = vector.shape_cast %18 : vector<1x64x128xbf16> to vector<64x128xbf16>
    %cst_17 = arith.constant dense<0.000000e+00> : vector<22x128xf32>
    %20 = tpu.matmul %17, %19, %cst_17 {dimension_numbers = #tpu.dot_dimension_numbers<[1], [0], [0], [1], [0, 0, 1, 1], [], []>} : vector<22x64xbf16>, vector<64x128xbf16>, vector<22x128xf32> -> vector<22x128xf32>
    %21 = arith.addf %14, %20 : vector<22x128xf32>
    %c0_18 = arith.constant 0 : index
    %c6 = arith.constant 6 : index
    %c0_19 = arith.constant 0 : index
    %22 = vector.load %arg1[%c0_18, %c6, %c0_19] : memref<1x36x64xf32, #tpu.memory_space<vmem>>, vector<1x22x64xf32>
    %23 = vector.shape_cast %22 : vector<1x22x64xf32> to vector<22x64xf32>
    %24 = arith.truncf %23 : vector<22x64xf32> to vector<22x64xbf16>
    %c3 = arith.constant 3 : index
    %c0_20 = arith.constant 0 : index
    %c0_21 = arith.constant 0 : index
    %25 = vector.load %arg2[%c3, %c0_20, %c0_21] : memref<9x64x128xbf16, #tpu.memory_space<vmem>>, vector<1x64x128xbf16>
    %26 = vector.shape_cast %25 : vector<1x64x128xbf16> to vector<64x128xbf16>
    %cst_22 = arith.constant dense<0.000000e+00> : vector<22x128xf32>
    %27 = tpu.matmul %24, %26, %cst_22 {dimension_numbers = #tpu.dot_dimension_numbers<[1], [0], [0], [1], [0, 0, 1, 1], [], []>} : vector<22x64xbf16>, vector<64x128xbf16>, vector<22x128xf32> -> vector<22x128xf32>
    %28 = arith.addf %21, %27 : vector<22x128xf32>
    %c0_23 = arith.constant 0 : index
    %c7 = arith.constant 7 : index
    %c0_24 = arith.constant 0 : index
    %29 = vector.load %arg1[%c0_23, %c7, %c0_24] : memref<1x36x64xf32, #tpu.memory_space<vmem>>, vector<1x22x64xf32>
    %30 = vector.shape_cast %29 : vector<1x22x64xf32> to vector<22x64xf32>
    %31 = arith.truncf %30 : vector<22x64xf32> to vector<22x64xbf16>
    %c4 = arith.constant 4 : index
    %c0_25 = arith.constant 0 : index
    %c0_26 = arith.constant 0 : index
    %32 = vector.load %arg2[%c4, %c0_25, %c0_26] : memref<9x64x128xbf16, #tpu.memory_space<vmem>>, vector<1x64x128xbf16>
    %33 = vector.shape_cast %32 : vector<1x64x128xbf16> to vector<64x128xbf16>
    %cst_27 = arith.constant dense<0.000000e+00> : vector<22x128xf32>
    %34 = tpu.matmul %31, %33, %cst_27 {dimension_numbers = #tpu.dot_dimension_numbers<[1], [0], [0], [1], [0, 0, 1, 1], [], []>} : vector<22x64xbf16>, vector<64x128xbf16>, vector<22x128xf32> -> vector<22x128xf32>
    %35 = arith.addf %28, %34 : vector<22x128xf32>
    %c0_28 = arith.constant 0 : index
    %c8 = arith.constant 8 : index
    %c0_29 = arith.constant 0 : index
    %36 = vector.load %arg1[%c0_28, %c8, %c0_29] : memref<1x36x64xf32, #tpu.memory_space<vmem>>, vector<1x22x64xf32>
    %37 = vector.shape_cast %36 : vector<1x22x64xf32> to vector<22x64xf32>
    %38 = arith.truncf %37 : vector<22x64xf32> to vector<22x64xbf16>
    %c5 = arith.constant 5 : index
    %c0_30 = arith.constant 0 : index
    %c0_31 = arith.constant 0 : index
    %39 = vector.load %arg2[%c5, %c0_30, %c0_31] : memref<9x64x128xbf16, #tpu.memory_space<vmem>>, vector<1x64x128xbf16>
    %40 = vector.shape_cast %39 : vector<1x64x128xbf16> to vector<64x128xbf16>
    %cst_32 = arith.constant dense<0.000000e+00> : vector<22x128xf32>
    %41 = tpu.matmul %38, %40, %cst_32 {dimension_numbers = #tpu.dot_dimension_numbers<[1], [0], [0], [1], [0, 0, 1, 1], [], []>} : vector<22x64xbf16>, vector<64x128xbf16>, vector<22x128xf32> -> vector<22x128xf32>
    %42 = arith.addf %35, %41 : vector<22x128xf32>
    %c0_33 = arith.constant 0 : index
    %c12 = arith.constant 12 : index
    %c0_34 = arith.constant 0 : index
    %43 = vector.load %arg1[%c0_33, %c12, %c0_34] : memref<1x36x64xf32, #tpu.memory_space<vmem>>, vector<1x22x64xf32>
    %44 = vector.shape_cast %43 : vector<1x22x64xf32> to vector<22x64xf32>
    %45 = arith.truncf %44 : vector<22x64xf32> to vector<22x64xbf16>
    %c6_35 = arith.constant 6 : index
    %c0_36 = arith.constant 0 : index
    %c0_37 = arith.constant 0 : index
    %46 = vector.load %arg2[%c6_35, %c0_36, %c0_37] : memref<9x64x128xbf16, #tpu.memory_space<vmem>>, vector<1x64x128xbf16>
    %47 = vector.shape_cast %46 : vector<1x64x128xbf16> to vector<64x128xbf16>
    %cst_38 = arith.constant dense<0.000000e+00> : vector<22x128xf32>
    %48 = tpu.matmul %45, %47, %cst_38 {dimension_numbers = #tpu.dot_dimension_numbers<[1], [0], [0], [1], [0, 0, 1, 1], [], []>} : vector<22x64xbf16>, vector<64x128xbf16>, vector<22x128xf32> -> vector<22x128xf32>
    %49 = arith.addf %42, %48 : vector<22x128xf32>
    %c0_39 = arith.constant 0 : index
    %c13 = arith.constant 13 : index
    %c0_40 = arith.constant 0 : index
    %50 = vector.load %arg1[%c0_39, %c13, %c0_40] : memref<1x36x64xf32, #tpu.memory_space<vmem>>, vector<1x22x64xf32>
    %51 = vector.shape_cast %50 : vector<1x22x64xf32> to vector<22x64xf32>
    %52 = arith.truncf %51 : vector<22x64xf32> to vector<22x64xbf16>
    %c7_41 = arith.constant 7 : index
    %c0_42 = arith.constant 0 : index
    %c0_43 = arith.constant 0 : index
    %53 = vector.load %arg2[%c7_41, %c0_42, %c0_43] : memref<9x64x128xbf16, #tpu.memory_space<vmem>>, vector<1x64x128xbf16>
    %54 = vector.shape_cast %53 : vector<1x64x128xbf16> to vector<64x128xbf16>
    %cst_44 = arith.constant dense<0.000000e+00> : vector<22x128xf32>
    %55 = tpu.matmul %52, %54, %cst_44 {dimension_numbers = #tpu.dot_dimension_numbers<[1], [0], [0], [1], [0, 0, 1, 1], [], []>} : vector<22x64xbf16>, vector<64x128xbf16>, vector<22x128xf32> -> vector<22x128xf32>
    %56 = arith.addf %49, %55 : vector<22x128xf32>
    %c0_45 = arith.constant 0 : index
    %c14 = arith.constant 14 : index
    %c0_46 = arith.constant 0 : index
    %57 = vector.load %arg1[%c0_45, %c14, %c0_46] : memref<1x36x64xf32, #tpu.memory_space<vmem>>, vector<1x22x64xf32>
    %58 = vector.shape_cast %57 : vector<1x22x64xf32> to vector<22x64xf32>
    %59 = arith.truncf %58 : vector<22x64xf32> to vector<22x64xbf16>
    %c8_47 = arith.constant 8 : index
    %c0_48 = arith.constant 0 : index
    %c0_49 = arith.constant 0 : index
    %60 = vector.load %arg2[%c8_47, %c0_48, %c0_49] : memref<9x64x128xbf16, #tpu.memory_space<vmem>>, vector<1x64x128xbf16>
    %61 = vector.shape_cast %60 : vector<1x64x128xbf16> to vector<64x128xbf16>
    %cst_50 = arith.constant dense<0.000000e+00> : vector<22x128xf32>
    %62 = tpu.matmul %59, %61, %cst_50 {dimension_numbers = #tpu.dot_dimension_numbers<[1], [0], [0], [1], [0, 0, 1, 1], [], []>} : vector<22x64xbf16>, vector<64x128xbf16>, vector<22x128xf32> -> vector<22x128xf32>
    %63 = arith.addf %56, %62 : vector<22x128xf32>
    %c0_51 = arith.constant 0 : index
    %c0_52 = arith.constant 0 : index
    %64 = vector.load %arg3[%c0_51, %c0_52] : memref<1x128xf32, #tpu.memory_space<vmem>>, vector<1x128xf32>
    %65 = vector.broadcast %64 : vector<1x128xf32> to vector<22x128xf32>
    %66 = arith.addf %63, %65 : vector<22x128xf32>
    %cst_53 = arith.constant 0.000000e+00 : f32
    %67 = vector.broadcast %cst_53 : f32 to vector<22x128xf32>
    %68 = arith.maximumf %66, %67 : vector<22x128xf32>
    %cst_54 = arith.constant 0.000000e+00 : f32
    %69 = vector.broadcast %cst_54 : f32 to vector<36x128xf32>
    %c0_55 = arith.constant 0 : index
    %c0_56 = arith.constant 0 : index
    %70 = vector.load %arg10[%c0_55, %c0_56] : memref<36x128xf32, #tpu.memory_space<vmem>>, vector<36x128xf32>
    tpu.vector_store %arg10[%c0_55, %c0_56], %69 {strides = array<i32>} : memref<36x128xf32, #tpu.memory_space<vmem>>, vector<36x128xf32>,
    %71 = vector.extract_strided_slice %68 {offsets = [0, 0], sizes = [4, 128], strides = [1, 1]} : vector<22x128xf32> to vector<4x128xf32>
    %c7_57 = arith.constant 7 : index
    %c0_58 = arith.constant 0 : index
    %72 = vector.load %arg10[%c7_57, %c0_58] : memref<36x128xf32, #tpu.memory_space<vmem>>, vector<4x128xf32>
    tpu.vector_store %arg10[%c7_57, %c0_58], %71 {strides = array<i32>} : memref<36x128xf32, #tpu.memory_space<vmem>>, vector<4x128xf32>,
    %73 = vector.extract_strided_slice %68 {offsets = [6, 0], sizes = [4, 128], strides = [1, 1]} : vector<22x128xf32> to vector<4x128xf32>
    %c13_59 = arith.constant 13 : index
    %c0_60 = arith.constant 0 : index
    %74 = vector.load %arg10[%c13_59, %c0_60] : memref<36x128xf32, #tpu.memory_space<vmem>>, vector<4x128xf32>
    tpu.vector_store %arg10[%c13_59, %c0_60], %73 {strides = array<i32>} : memref<36x128xf32, #tpu.memory_space<vmem>>, vector<4x128xf32>,
    %75 = vector.extract_strided_slice %68 {offsets = [12, 0], sizes = [4, 128], strides = [1, 1]} : vector<22x128xf32> to vector<4x128xf32>
    %c19 = arith.constant 19 : index
    %c0_61 = arith.constant 0 : index
    %76 = vector.load %arg10[%c19, %c0_61] : memref<36x128xf32, #tpu.memory_space<vmem>>, vector<4x128xf32>
    tpu.vector_store %arg10[%c19, %c0_61], %75 {strides = array<i32>} : memref<36x128xf32, #tpu.memory_space<vmem>>, vector<4x128xf32>,
    %77 = vector.extract_strided_slice %68 {offsets = [18, 0], sizes = [4, 128], strides = [1, 1]} : vector<22x128xf32> to vector<4x128xf32>
    %c25 = arith.constant 25 : index
    %c0_62 = arith.constant 0 : index
    %78 = vector.load %arg10[%c25, %c0_62] : memref<36x128xf32, #tpu.memory_space<vmem>>, vector<4x128xf32>
    tpu.vector_store %arg10[%c25, %c0_62], %77 {strides = array<i32>} : memref<36x128xf32, #tpu.memory_space<vmem>>, vector<4x128xf32>,
    %cst_63 = arith.constant 0.000000e+00 : f32
    %79 = vector.broadcast %cst_63 : f32 to vector<22x128xf32>
    %c0_64 = arith.constant 0 : index
    %c0_65 = arith.constant 0 : index
    %80 = vector.load %arg10[%c0_64, %c0_65] : memref<36x128xf32, #tpu.memory_space<vmem>>, vector<22x128xf32>
    %81 = arith.truncf %80 : vector<22x128xf32> to vector<22x128xbf16>
    %c0_66 = arith.constant 0 : index
    %c0_67 = arith.constant 0 : index
    %c0_68 = arith.constant 0 : index
    %82 = vector.load %arg4[%c0_66, %c0_67, %c0_68] : memref<9x128x128xbf16, #tpu.memory_space<vmem>>, vector<1x128x128xbf16>
    %83 = vector.shape_cast %82 : vector<1x128x128xbf16> to vector<128x128xbf16>
    %cst_69 = arith.constant dense<0.000000e+00> : vector<22x128xf32>
    %84 = tpu.matmul %81, %83, %cst_69 {dimension_numbers = #tpu.dot_dimension_numbers<[1], [0], [0], [1], [0, 0, 1, 1], [], []>} : vector<22x128xbf16>, vector<128x128xbf16>, vector<22x128xf32> -> vector<22x128xf32>
    %85 = arith.addf %79, %84 : vector<22x128xf32>
    %c1_70 = arith.constant 1 : index
    %c0_71 = arith.constant 0 : index
    %86 = vector.load %arg10[%c1_70, %c0_71] : memref<36x128xf32, #tpu.memory_space<vmem>>, vector<22x128xf32>
    %87 = arith.truncf %86 : vector<22x128xf32> to vector<22x128xbf16>
    %c1_72 = arith.constant 1 : index
    %c0_73 = arith.constant 0 : index
    %c0_74 = arith.constant 0 : index
    %88 = vector.load %arg4[%c1_72, %c0_73, %c0_74] : memref<9x128x128xbf16, #tpu.memory_space<vmem>>, vector<1x128x128xbf16>
    %89 = vector.shape_cast %88 : vector<1x128x128xbf16> to vector<128x128xbf16>
    %cst_75 = arith.constant dense<0.000000e+00> : vector<22x128xf32>
    %90 = tpu.matmul %87, %89, %cst_75 {dimension_numbers = #tpu.dot_dimension_numbers<[1], [0], [0], [1], [0, 0, 1, 1], [], []>} : vector<22x128xbf16>, vector<128x128xbf16>, vector<22x128xf32> -> vector<22x128xf32>
    %91 = arith.addf %85, %90 : vector<22x128xf32>
    %c2_76 = arith.constant 2 : index
    %c0_77 = arith.constant 0 : index
    %92 = vector.load %arg10[%c2_76, %c0_77] : memref<36x128xf32, #tpu.memory_space<vmem>>, vector<22x128xf32>
    %93 = arith.truncf %92 : vector<22x128xf32> to vector<22x128xbf16>
    %c2_78 = arith.constant 2 : index
    %c0_79 = arith.constant 0 : index
    %c0_80 = arith.constant 0 : index
    %94 = vector.load %arg4[%c2_78, %c0_79, %c0_80] : memref<9x128x128xbf16, #tpu.memory_space<vmem>>, vector<1x128x128xbf16>
    %95 = vector.shape_cast %94 : vector<1x128x128xbf16> to vector<128x128xbf16>
    %cst_81 = arith.constant dense<0.000000e+00> : vector<22x128xf32>
    %96 = tpu.matmul %93, %95, %cst_81 {dimension_numbers = #tpu.dot_dimension_numbers<[1], [0], [0], [1], [0, 0, 1, 1], [], []>} : vector<22x128xbf16>, vector<128x128xbf16>, vector<22x128xf32> -> vector<22x128xf32>
    %97 = arith.addf %91, %96 : vector<22x128xf32>
    %c6_82 = arith.constant 6 : index
    %c0_83 = arith.constant 0 : index
    %98 = vector.load %arg10[%c6_82, %c0_83] : memref<36x128xf32, #tpu.memory_space<vmem>>, vector<22x128xf32>
    %99 = arith.truncf %98 : vector<22x128xf32> to vector<22x128xbf16>
    %c3_84 = arith.constant 3 : index
    %c0_85 = arith.constant 0 : index
    %c0_86 = arith.constant 0 : index
    %100 = vector.load %arg4[%c3_84, %c0_85, %c0_86] : memref<9x128x128xbf16, #tpu.memory_space<vmem>>, vector<1x128x128xbf16>
    %101 = vector.shape_cast %100 : vector<1x128x128xbf16> to vector<128x128xbf16>
    %cst_87 = arith.constant dense<0.000000e+00> : vector<22x128xf32>
    %102 = tpu.matmul %99, %101, %cst_87 {dimension_numbers = #tpu.dot_dimension_numbers<[1], [0], [0], [1], [0, 0, 1, 1], [], []>} : vector<22x128xbf16>, vector<128x128xbf16>, vector<22x128xf32> -> vector<22x128xf32>
    %103 = arith.addf %97, %102 : vector<22x128xf32>
    %c7_88 = arith.constant 7 : index
    %c0_89 = arith.constant 0 : index
    %104 = vector.load %arg10[%c7_88, %c0_89] : memref<36x128xf32, #tpu.memory_space<vmem>>, vector<22x128xf32>
    %105 = arith.truncf %104 : vector<22x128xf32> to vector<22x128xbf16>
    %c4_90 = arith.constant 4 : index
    %c0_91 = arith.constant 0 : index
    %c0_92 = arith.constant 0 : index
    %106 = vector.load %arg4[%c4_90, %c0_91, %c0_92] : memref<9x128x128xbf16, #tpu.memory_space<vmem>>, vector<1x128x128xbf16>
    %107 = vector.shape_cast %106 : vector<1x128x128xbf16> to vector<128x128xbf16>
    %cst_93 = arith.constant dense<0.000000e+00> : vector<22x128xf32>
    %108 = tpu.matmul %105, %107, %cst_93 {dimension_numbers = #tpu.dot_dimension_numbers<[1], [0], [0], [1], [0, 0, 1, 1], [], []>} : vector<22x128xbf16>, vector<128x128xbf16>, vector<22x128xf32> -> vector<22x128xf32>
    %109 = arith.addf %103, %108 : vector<22x128xf32>
    %c8_94 = arith.constant 8 : index
    %c0_95 = arith.constant 0 : index
    %110 = vector.load %arg10[%c8_94, %c0_95] : memref<36x128xf32, #tpu.memory_space<vmem>>, vector<22x128xf32>
    %111 = arith.truncf %110 : vector<22x128xf32> to vector<22x128xbf16>
    %c5_96 = arith.constant 5 : index
    %c0_97 = arith.constant 0 : index
    %c0_98 = arith.constant 0 : index
    %112 = vector.load %arg4[%c5_96, %c0_97, %c0_98] : memref<9x128x128xbf16, #tpu.memory_space<vmem>>, vector<1x128x128xbf16>
    %113 = vector.shape_cast %112 : vector<1x128x128xbf16> to vector<128x128xbf16>
    %cst_99 = arith.constant dense<0.000000e+00> : vector<22x128xf32>
    %114 = tpu.matmul %111, %113, %cst_99 {dimension_numbers = #tpu.dot_dimension_numbers<[1], [0], [0], [1], [0, 0, 1, 1], [], []>} : vector<22x128xbf16>, vector<128x128xbf16>, vector<22x128xf32> -> vector<22x128xf32>
    %115 = arith.addf %109, %114 : vector<22x128xf32>
    %c12_100 = arith.constant 12 : index
    %c0_101 = arith.constant 0 : index
    %116 = vector.load %arg10[%c12_100, %c0_101] : memref<36x128xf32, #tpu.memory_space<vmem>>, vector<22x128xf32>
    %117 = arith.truncf %116 : vector<22x128xf32> to vector<22x128xbf16>
    %c6_102 = arith.constant 6 : index
    %c0_103 = arith.constant 0 : index
    %c0_104 = arith.constant 0 : index
    %118 = vector.load %arg4[%c6_102, %c0_103, %c0_104] : memref<9x128x128xbf16, #tpu.memory_space<vmem>>, vector<1x128x128xbf16>
    %119 = vector.shape_cast %118 : vector<1x128x128xbf16> to vector<128x128xbf16>
    %cst_105 = arith.constant dense<0.000000e+00> : vector<22x128xf32>
    %120 = tpu.matmul %117, %119, %cst_105 {dimension_numbers = #tpu.dot_dimension_numbers<[1], [0], [0], [1], [0, 0, 1, 1], [], []>} : vector<22x128xbf16>, vector<128x128xbf16>, vector<22x128xf32> -> vector<22x128xf32>
    %121 = arith.addf %115, %120 : vector<22x128xf32>
    %c13_106 = arith.constant 13 : index
    %c0_107 = arith.constant 0 : index
    %122 = vector.load %arg10[%c13_106, %c0_107] : memref<36x128xf32, #tpu.memory_space<vmem>>, vector<22x128xf32>
    %123 = arith.truncf %122 : vector<22x128xf32> to vector<22x128xbf16>
    %c7_108 = arith.constant 7 : index
    %c0_109 = arith.constant 0 : index
    %c0_110 = arith.constant 0 : index
    %124 = vector.load %arg4[%c7_108, %c0_109, %c0_110] : memref<9x128x128xbf16, #tpu.memory_space<vmem>>, vector<1x128x128xbf16>
    %125 = vector.shape_cast %124 : vector<1x128x128xbf16> to vector<128x128xbf16>
    %cst_111 = arith.constant dense<0.000000e+00> : vector<22x128xf32>
    %126 = tpu.matmul %123, %125, %cst_111 {dimension_numbers = #tpu.dot_dimension_numbers<[1], [0], [0], [1], [0, 0, 1, 1], [], []>} : vector<22x128xbf16>, vector<128x128xbf16>, vector<22x128xf32> -> vector<22x128xf32>
    %127 = arith.addf %121, %126 : vector<22x128xf32>
    %c14_112 = arith.constant 14 : index
    %c0_113 = arith.constant 0 : index
    %128 = vector.load %arg10[%c14_112, %c0_113] : memref<36x128xf32, #tpu.memory_space<vmem>>, vector<22x128xf32>
    %129 = arith.truncf %128 : vector<22x128xf32> to vector<22x128xbf16>
    %c8_114 = arith.constant 8 : index
    %c0_115 = arith.constant 0 : index
    %c0_116 = arith.constant 0 : index
    %130 = vector.load %arg4[%c8_114, %c0_115, %c0_116] : memref<9x128x128xbf16, #tpu.memory_space<vmem>>, vector<1x128x128xbf16>
    %131 = vector.shape_cast %130 : vector<1x128x128xbf16> to vector<128x128xbf16>
    %cst_117 = arith.constant dense<0.000000e+00> : vector<22x128xf32>
    %132 = tpu.matmul %129, %131, %cst_117 {dimension_numbers = #tpu.dot_dimension_numbers<[1], [0], [0], [1], [0, 0, 1, 1], [], []>} : vector<22x128xbf16>, vector<128x128xbf16>, vector<22x128xf32> -> vector<22x128xf32>
    %133 = arith.addf %127, %132 : vector<22x128xf32>
    %c0_118 = arith.constant 0 : index
    %c0_119 = arith.constant 0 : index
    %134 = vector.load %arg5[%c0_118, %c0_119] : memref<1x128xf32, #tpu.memory_space<vmem>>, vector<1x128xf32>
    %135 = vector.broadcast %134 : vector<1x128xf32> to vector<22x128xf32>
    %136 = arith.addf %133, %135 : vector<22x128xf32>
    %cst_120 = arith.constant 0.000000e+00 : f32
    %137 = vector.broadcast %cst_120 : f32 to vector<22x128xf32>
    %138 = arith.maximumf %136, %137 : vector<22x128xf32>
    %139 = vector.extract_strided_slice %138 {offsets = [0, 0], sizes = [15, 128], strides = [1, 1]} : vector<22x128xf32> to vector<15x128xf32>
    %140 = vector.extract_strided_slice %138 {offsets = [1, 0], sizes = [15, 128], strides = [1, 1]} : vector<22x128xf32> to vector<15x128xf32>
    %141 = arith.maximumf %139, %140 : vector<15x128xf32>
    %142 = vector.extract_strided_slice %138 {offsets = [6, 0], sizes = [15, 128], strides = [1, 1]} : vector<22x128xf32> to vector<15x128xf32>
    %143 = vector.extract_strided_slice %138 {offsets = [7, 0], sizes = [15, 128], strides = [1, 1]} : vector<22x128xf32> to vector<15x128xf32>
    %144 = arith.maximumf %142, %143 : vector<15x128xf32>
    %145 = arith.maximumf %141, %144 : vector<15x128xf32>
    %146 = tpu.iota {dimensions = array<i32: 0>} : vector<4x15xi32>
    %147 = tpu.iota {dimensions = array<i32: 1>} : vector<4x15xi32>
    %c1_i32 = arith.constant 1 : i32
    %148 = vector.broadcast %c1_i32 : i32 to vector<4x15xi32>
    %149 = arith.shrsi %146, %148 : vector<4x15xi32>
    %c12_i32 = arith.constant 12 : i32
    %150 = vector.broadcast %c12_i32 : i32 to vector<4x15xi32>
    %151 = arith.muli %150, %149 : vector<4x15xi32>
    %c1_i32_121 = arith.constant 1 : i32
    %152 = vector.broadcast %c1_i32_121 : i32 to vector<4x15xi32>
    %153 = arith.andi %146, %152 : vector<4x15xi32>
    %c2_i32 = arith.constant 2 : i32
    %154 = vector.broadcast %c2_i32 : i32 to vector<4x15xi32>
    %155 = arith.muli %154, %153 : vector<4x15xi32>
    %156 = arith.addi %151, %155 : vector<4x15xi32>
    %157 = arith.cmpi eq, %147, %156 : vector<4x15xi32>
    %158 = arith.extui %157 : vector<4x15xi1> to vector<4x15xi32>
    %159 = arith.sitofp %158 : vector<4x15xi32> to vector<4x15xf32>
    %cst_122 = arith.constant dense<0.000000e+00> : vector<4x128xf32>
    %160 = tpu.matmul %159, %145, %cst_122 {dimension_numbers = #tpu.dot_dimension_numbers<[1], [0], [0], [1], [0, 0, 1, 1], [], []>} : vector<4x15xf32>, vector<15x128xf32>, vector<4x128xf32> -> vector<4x128xf32>
    %c0_123 = arith.constant 0 : index
    %c0_124 = arith.constant 0 : index
    %c0_125 = arith.constant 0 : index
    %161 = vector.load %arg8[%c0_123, %c0_124, %c0_125] : memref<1x4x128xf32, #tpu.memory_space<vmem>>, vector<1x4x128xf32>
    %162 = vector.shape_cast %161 : vector<1x4x128xf32> to vector<4x128xf32>
    %163 = vector.shape_cast %160 : vector<4x128xf32> to vector<1x4x128xf32>
    tpu.vector_store %arg8[%c0_123, %c0_124, %c0_125], %163 {strides = array<i32>} : memref<1x4x128xf32, #tpu.memory_space<vmem>>, vector<1x4x128xf32>,
    %cst_126 = arith.constant dense<0.000000e+00> : vector<128xf32>
    %164 = vector.multi_reduction <add>, %160, %cst_126 [0] : vector<4x128xf32> to vector<128xf32>
    %165 = vector.shape_cast %164 : vector<128xf32> to vector<1x128xf32>
    %cst_127 = arith.constant 4.000000e+00 : f32
    %166 = vector.broadcast %cst_127 : f32 to vector<1x128xf32>
    %167 = arith.divf %165, %166 : vector<1x128xf32>
    %c0_128 = arith.constant 0 : index
    %c0_129 = arith.constant 0 : index
    %168 = vector.load %arg6[%c0_128, %c0_129] : memref<128x10xf32, #tpu.memory_space<vmem>>, vector<128x10xf32>
    %cst_130 = arith.constant dense<0.000000e+00> : vector<1x10xf32>
    %169 = tpu.matmul %167, %168, %cst_130 {dimension_numbers = #tpu.dot_dimension_numbers<[1], [0], [0], [1], [0, 0, 1, 1], [], []>} : vector<1x128xf32>, vector<128x10xf32>, vector<1x10xf32> -> vector<1x10xf32>
    %c0_131 = arith.constant 0 : index
    %c0_132 = arith.constant 0 : index
    %170 = vector.load %arg7[%c0_131, %c0_132] : memref<1x10xf32, #tpu.memory_space<vmem>>, vector<1x10xf32>
    %171 = arith.addf %169, %170 : vector<1x10xf32>
    %c0_133 = arith.constant 0 : index
    %c0_134 = arith.constant 0 : index
    %c0_135 = arith.constant 0 : index
    %172 = vector.load %arg9[%c0_133, %c0_134, %c0_135] : memref<1x1x10xf32, #tpu.memory_space<vmem>>, vector<1x1x10xf32>
    %173 = vector.shape_cast %172 : vector<1x1x10xf32> to vector<1x10xf32>
    %174 = vector.shape_cast %171 : vector<1x10xf32> to vector<1x1x10xf32>
    tpu.vector_store %arg9[%c0_133, %c0_134, %c0_135], %174 {strides = array<i32>} : memref<1x1x10xf32, #tpu.memory_space<vmem>>, vector<1x1x10xf32>,
    return
  }
  func.func @transform_0(%arg0: i32) -> (i32, i32, i32) {
    %c0_i32 = arith.constant 0 : i32
    %c0_i32_0 = arith.constant 0 : i32
    %c0_i32_1 = arith.constant 0 : i32
    return %arg0, %c0_i32, %c0_i32_0 : i32, i32, i32
  }
  func.func @transform_1(%arg0: i32) -> (i32, i32, i32) {
    %c0_i32 = arith.constant 0 : i32
    %c0_i32_0 = arith.constant 0 : i32
    %c0_i32_1 = arith.constant 0 : i32
    %c0_i32_2 = arith.constant 0 : i32
    return %c0_i32, %c0_i32_0, %c0_i32_1 : i32, i32, i32
  }
  func.func @transform_2(%arg0: i32) -> (i32, i32) {
    %c0_i32 = arith.constant 0 : i32
    %c0_i32_0 = arith.constant 0 : i32
    %c0_i32_1 = arith.constant 0 : i32
    return %c0_i32, %c0_i32_0 : i32, i32
  }
  func.func @transform_3(%arg0: i32) -> (i32, i32, i32) {
    %c0_i32 = arith.constant 0 : i32
    %c0_i32_0 = arith.constant 0 : i32
    %c0_i32_1 = arith.constant 0 : i32
    %c0_i32_2 = arith.constant 0 : i32
    return %c0_i32, %c0_i32_0, %c0_i32_1 : i32, i32, i32
  }
  func.func @transform_4(%arg0: i32) -> (i32, i32) {
    %c0_i32 = arith.constant 0 : i32
    %c0_i32_0 = arith.constant 0 : i32
    %c0_i32_1 = arith.constant 0 : i32
    return %c0_i32, %c0_i32_0 : i32, i32
  }
  func.func @transform_5(%arg0: i32) -> (i32, i32) {
    %c0_i32 = arith.constant 0 : i32
    %c0_i32_0 = arith.constant 0 : i32
    %c0_i32_1 = arith.constant 0 : i32
    return %c0_i32, %c0_i32_0 : i32, i32
  }
  func.func @transform_6(%arg0: i32) -> (i32, i32) {
    %c0_i32 = arith.constant 0 : i32
    %c0_i32_0 = arith.constant 0 : i32
    %c0_i32_1 = arith.constant 0 : i32
    return %c0_i32, %c0_i32_0 : i32, i32
  }
  func.func @transform_7(%arg0: i32) -> (i32, i32, i32) {
    %c0_i32 = arith.constant 0 : i32
    %c0_i32_0 = arith.constant 0 : i32
    %c0_i32_1 = arith.constant 0 : i32
    return %arg0, %c0_i32, %c0_i32_0 : i32, i32, i32
  }
  func.func @transform_8(%arg0: i32) -> (i32, i32, i32) {
    %c0_i32 = arith.constant 0 : i32
    %c0_i32_0 = arith.constant 0 : i32
    %c0_i32_1 = arith.constant 0 : i32
    return %arg0, %c0_i32, %c0_i32_0 : i32, i32, i32
  }
}

</mosaic_0001>

<bundles_post_ra>
// kernel: mystyle_cnn_forward.4
= control target key start
LH: loop header
LB: loop body
LE: loop exit
PB: predicated region body
PF: predicated region fallthrough
CT: control target
= control target key end

     0   :  { %12 = vsyncpa [#allocation4], 0  ;;  %s5161_s0 = inlined_call_operand.vmem [shape: f32[2,100,32], index: 0, kind: input, shape index: {}]   ;;  %s5162_s1 = inlined_call_operand.vmem [shape: bf16[9,32,64], index: 1, kind: input, shape index: {}]   ;;  %s5163_s2 = inlined_call_operand.vmem [shape: f32[1,64], index: 2, kind: input, shape index: {}]   ;;  %s5164_s3 = inlined_call_operand.vmem [shape: bf16[9,64,64], index: 3, kind: input, shape index: {}]   ;;  %s5165_s4 = inlined_call_operand.vmem [shape: f32[1,64], index: 4, kind: input, shape index: {}]   ;;  %s5166_s5 = inlined_call_operand.hbm [shape: f32[2,16,64], index: 5, kind: output, shape index: {0}]   ;;  %s5167_s6 = inlined_call_operand.vmem [shape: f32[2,36,64], index: 6, kind: output, shape index: {1}]  }
   0x1   :  { %14 = vsyncpa [#allocation4 + $0x1], 0  ;;  %s4242_s21 = smov 0   ;;  %s4244_s22 = smov 0  }
   0x2   :  { %s4246_s23 = smov 0   ;;  %s4248_s24 = smov 0  }
   0x3 LB: > { %s4263_s25 = sadd.s32 4294967295, %s4200_s24   ;;  %s3119_s26 = sadd.s32 4294967294, %s4200_s24   ;;  %s4200_s24 = sphi %s4248_s24, %s5173_s24   ;;  %s4196_s23 = sphi %s4246_s23, %s5172_s23   ;;  %s4192_s22 = sphi %s4244_s22, %s5171_s22   ;;  %s4188_s21 = sphi %s4242_s21, %s5170_s21  }
   0x4   : > { %s4267_s27 = sadd.s32 1, %s4200_s24   ;;  %s137_s28 = sadd.s32 1, %s4196_s23 }
   0x5   : > { %s134_s29 = ssub.s32 %s4200_s24, %s4267_s27  ;;  %p147_p0 = scmp.ne.s32.totalorder %s4196_s23, %s4192_s22 }
   0x6   : > { %p135_p1 = scmp.eq.s32.totalorder %s134_s29, 0  ;;  %p148_p2 = scmp.eq.s32.totalorder %s4263_s25, 1 }
   0x7   : > { %p153_p3 = scmp.ne.s32.totalorder %s4192_s22, %s4188_s21  ;;  %p154_p4 = scmp.eq.s32.totalorder %s3119_s26, 1 }
   0x8   : > { %s4278_s30 = scalar_select %p135_p1, %s4196_s23, %s137_s28  }
   0x9   : > { %p4280_p5 = por %p148_p2, %p147_p0  ;;  %p4284_p6 = por %p154_p4, %p153_p3 }
   0xa   : > { %p3122_p7 = scmp.ge.s32.totalorder %s4200_s24, 1  ;;  %p218_p8 = scmp.lt.s32.totalorder %s4200_s24, 3 }
   0xc   : > { %p219_p9 = pnand %p3122_p7, %p218_p8 }
   0xd   : > { %v4084_v0 = vld [vmem:[%s5162_s1 + $0x10] sm:$0xff] (!%p219_p9)   ;;  %v4202_v1 = vmov (!%p219_p9), 0.0   ;;  %v4085_v2 = vld [vmem:[%s5162_s1] sm:$0xff] (!%p219_p9)   ;;  %v4086_v3 = vld [vmem:[%s5162_s1 + $0x18] sm:$0xff] (!%p219_p9)   ;;  %vm4203_vm0 = vmmov (!%p219_p9), 0   ;;  %p253_p10 = scmp.lt.s32.totalorder (!%p219_p9), %s4263_s25, 1 }
   0xe   : > { %222 = sbr.rel (%p219_p9) target bundleno = 1080 (0x438), region = 40  ;;  %3534 = vmatprep.subr.bf16.mxu0 (!%p219_p9), %v4202_v1  ;;  %3558 = vmatprep.subr.bf16.mxu1 (!%p219_p9), %v4202_v1  ;;  %v4087_v4 = vld [vmem:[%s5162_s1 + $0x8] sm:$0xff] (!%p219_p9)   ;;  %vm315_vm1 = vcmask (!%p219_p9), 261120   ;;  %v4088_v10 = vld [vmem:[%s5162_s1 + $0x20] sm:$0xff] (!%p219_p9)   ;;  %v4090_v12 = vld [vmem:[%s5162_s1 + $0x30] sm:$0xff] (!%p219_p9)   ;;  %vm1441_vm2 = vcmask (!%p219_p9), 523264  }
   0xf   : > { %3535 = vmatpush3.bf16.msra.mxu0 (!%p219_p9), %v4084_v0  ;;  %3538 = vmatprep.mubr.msk.bf16.mxu0 (!%p219_p9), %vm4203_vm0, %v4202_v1  ;;  %v4089_v17 = vld [vmem:[%s5162_s1 + $0x28] sm:$0xff] (!%p219_p9)   ;;  %v4091_v18 = vld [vmem:[%s5162_s1 + $0x38] sm:$0xff] (!%p219_p9)   ;;  %v4092_v43 = vld [vmem:[%s5162_s1 + $0x40] sm:$0xff] (!%p219_p9)   ;;  %1443 = vst.msk [vmem:[#allocation2 + $0x8] sm:$0xff] (!%p219_p9), %vm1441_vm2, %v4202_v1  ;;  %vm1454_vm3 = vcmask (!%p219_p9), 519168   ;;  %vm1457_vm4 = vcmask (!%p219_p9), 523266  }
  0x10   : > { %3559 = vmatpush3.bf16.msra.mxu1 (!%p219_p9), %v4085_v2  ;;  %3536 = vmatprep.subr.bf16.mxu0 (!%p219_p9), %v4202_v1  ;;  %v4094_v45 = vld [vmem:[%s5162_s1 + $0x50] sm:$0xff] (!%p219_p9)   ;;  %v4093_v48 = vld [vmem:[%s5162_s1 + $0x48] sm:$0xff] (!%p219_p9)   ;;  %v4095_v49 = vld [vmem:[%s5162_s1 + $0x58] sm:$0xff] (!%p219_p9)   ;;  %1444 = vst.msk [vmem:[#allocation2 + $0x10] sm:$0xff] (!%p219_p9), %vm1441_vm2, %v4202_v1  ;;  %vm1459_vm5 = vcmask (!%p219_p9), 517120   ;;  %vm1461_vm6 = vcmask (!%p219_p9), 523268  }
  0x11   : > { %3560 = vmatprep.subr.bf16.mxu1 (!%p219_p9), %v4202_v1  ;;  %3562 = vmatprep.mubr.msk.bf16.mxu1 (!%p219_p9), %vm4203_vm0, %v4202_v1  ;;  %1442 = vst.msk [vmem:[#allocation2] sm:$0xff] (!%p219_p9), %vm1441_vm2, %v4202_v1  ;;  %1445 = vst.msk [vmem:[#allocation2 + $0x18] sm:$0xff] (!%p219_p9), %vm1441_vm2, %v4202_v1  ;;  %vm1464_vm7 = vcmask (!%p219_p9), 523270   ;;  %vm1466_vm8 = vcmask (!%p219_p9), 521216   ;;  %vm2913_vm9 = vcmask (!%p219_p9), 547840   ;;  %vm2804_vm12 = vcmask (!%p219_p9), 1046528  }
  0x12   : > { %1446 = vst.msk [vmem:[#allocation2 + $0x20] sm:$0xff] (!%p219_p9), %vm1441_vm2, %v4202_v1  ;;  %1447 = vst.msk [vmem:[#allocation2 + $0x28] sm:$0xff] (!%p219_p9), %vm1441_vm2, %v4202_v1  ;;  %vm2856_vm13 = vcmask (!%p219_p9), 1045504   ;;  %vm2920_vm14 = vcmask (!%p219_p9), 1042432   ;;  %s3378_s29 = sshll.u32 (!%p219_p9), %s4263_s25, 8 }
  0x13   : > { %3537 = vmatpush3.bf16.msra.mxu0 (!%p219_p9), %v4086_v3  ;;  %1448 = vst.msk [vmem:[#allocation2 + $0x30] sm:$0xff] (!%p219_p9), %vm1441_vm2, %v4202_v1  ;;  %1449 = vst.msk [vmem:[#allocation2 + $0x38] sm:$0xff] (!%p219_p9), %vm1441_vm2, %v4202_v1  ;;  %s5108_s10 = scalar_lea.hbm (!%p219_p9), %s5166_s5, %s3378_s29 }
  0x14   : > { %3561 = vmatpush3.bf16.msra.mxu1 (!%p219_p9), %v4087_v4  ;;  %3582 = vmatprep.subr.bf16.mxu0 (!%p219_p9), %v4202_v1  ;;  %1450 = vst.msk [vmem:[#allocation2 + $0x40] sm:$0xff] (!%p219_p9), %vm1441_vm2, %v4202_v1  ;;  %1451 = vst.msk [vmem:[#allocation2 + $0x48] sm:$0xff] (!%p219_p9), %vm1441_vm2, %v4202_v1 }
  0x15   : > { %s4312_s17 = scalar_select %p253_p10, %s4263_s25, 1  ;;  %3606 = vmatprep.subr.bf16.mxu1 %v4202_v1  ;;  %1452 = vst.msk [vmem:[#allocation2 + $0x50] sm:$0xff] %vm1441_vm2, %v4202_v1  ;;  %1453 = vst.msk [vmem:[#allocation2 + $0x58] sm:$0xff] %vm1441_vm2, %v4202_v1 }
  0x16   : > { %1455 = vst.msk [vmem:[#allocation2 + $0x60] sm:$0xf] %vm1454_vm3, %v4202_v1 }
  0x17   : > { %s4039_s18 = smul.u32 104, %s4312_s17 }
  0x18   : > { %s4040_s12 = smul.u32 40, %s4312_s17 }
  0x19   : > { %s4319_s26 = scalar_lea.vmem %s5161_s0, %s4039_s18  ;;  %s243_s18 = sand.u32 1, %s4192_s22  }
  0x1a   : > { %v283_v5 = vld [vmem:[%s4319_s26 + $0x1] sm:$0xff]  ;;  %v284_v6 = vld [vmem:[%s4319_s26 + $0x9] sm:$0xff]  ;;  %v285_v13 = vld [vmem:[%s4319_s26 + $0x11] sm:$0xff]  ;;  %s5021_s15 = scalar_lea.vmem %s5167_s6, %s4040_s12  ;;  %s3123_s19 = sshll.u32 %s243_s18, 4 }
  0x1b   : > { %v264_v7 = vld [vmem:[%s4319_s26] sm:$0xff]  ;;  %v293_v8 = vpack.c.bf16 %v284_v6, %v283_v5  ;;  %v265_v9 = vld [vmem:[%s4319_s26 + $0x8] sm:$0xff]  ;;  %v266_v15 = vld [vmem:[%s4319_s26 + $0x10] sm:$0xff]  ;;  %3003 = vst.msk [vmem:[%s5021_s15 + $0x10] sm:$0xff] %vm1441_vm2, %v4202_v1  ;;  %s245_s20 = scalar_lea.vmem [#allocation3], %s3123_s19  ;;  %s5120_s25 = scalar_lea.sflag [#allocation4], %s243_s18 }
  0x1c   : > { %v274_v11 = vpack.c.bf16 %v265_v9, %v264_v7  ;;  %v286_v14 = vld [vmem:[%s4319_s26 + $0x19] sm:$0xff]  ;;  %v287_v21 = vld [vmem:[%s4319_s26 + $0x21] sm:$0xff]  ;;  %v288_v22 = vld [vmem:[%s4319_s26 + $0x29] sm:$0xff]  ;;  %3004 = vst.msk [vmem:[%s5021_s15 + $0x18] sm:$0xff] %vm1441_vm2, %v4202_v1  ;;  %s3029_s28 = sshll.u32 %s245_s20, 4  ;;  %s4204_s12 = smov [#allocation3]   ;;  %s5103_s28 = int_to_ptr.vmem [resolvable:$true] %s3029_s28 }
  0x1d   : > { %3539 = vmatmul.mubr.msk.bf16.vlgmr.msra.gmra.mrb[0].mxu0 %vm315_vm1, %v293_v8  ;;  %v267_v16 = vld [vmem:[%s4319_s26 + $0x18] sm:$0xff]  ;;  %v294_v19 = vpack.c.bf16 %v286_v14, %v285_v13  ;;  %v268_v23 = vld [vmem:[%s4319_s26 + $0x20] sm:$0xff]  ;;  %v269_v24 = vld [vmem:[%s4319_s26 + $0x28] sm:$0xff]  ;;  %v295_v25 = vpack.c.bf16 %v288_v22, %v287_v21  ;;  %3005 = vst.msk [vmem:[%s5021_s15 + $0x20] sm:$0xf] %vm1454_vm3, %v4202_v1  ;;  %s4138_s11 = scalar_lea.vmem %s5103_s28, 256 }
  0x1e   : > { %3563 = vmatmul.mubr.msk.bf16.vlgmr.msra.gmra.mrb[0].mxu1 %vm315_vm1, %v274_v11  ;;  %3542 = vmatprep.mubr.msk.bf16.mxu0 %vm4203_vm0, %v4202_v1  ;;  %v275_v20 = vpack.c.bf16 %v267_v16, %v266_v15  ;;  %v276_v26 = vpack.c.bf16 %v269_v24, %v268_v23  ;;  %v289_v27 = vld [vmem:[%s4319_s26 + $0x31] sm:$0xff]  ;;  %v290_v28 = vld [vmem:[%s4319_s26 + $0x39] sm:$0xff]  ;;  %v291_v33 = vld [vmem:[%s4319_s26 + $0x41] sm:$0xff]  ;;  %3001 = vst.msk [vmem:[%s5021_s15] sm:$0xff] %vm1441_vm2, %v4202_v1  ;;  %p4139_p11 = scmp.ne.s32.totalorder %s5103_s28, %s4138_s11  ;;  %s4142_s13 = sshll.u32 %s4204_s12, 4  ;;  %s4143_s13 = int_to_ptr.vmem [resolvable:$false] %s4142_s13 }
  0x1f   : > { %3566 = vmatprep.mubr.msk.bf16.mxu1 %vm4203_vm0, %v4202_v1  ;;  %3583 = vmatpush3.bf16.msra.mxu0 %v4088_v10  ;;  %v270_v29 = vld [vmem:[%s4319_s26 + $0x30] sm:$0xff]  ;;  %v271_v30 = vld [vmem:[%s4319_s26 + $0x38] sm:$0xff]  ;;  %v296_v31 = vpack.c.bf16 %v290_v28, %v289_v27  ;;  %v292_v34 = vld [vmem:[%s4319_s26 + $0x49] sm:$0x3f]  ;;  %3002 = vst.msk [vmem:[%s5021_s15 + $0x8] sm:$0xff] %vm1441_vm2, %v4202_v1  ;;  %s4144_s14 = scalar_lea.vmem %s4143_s13, 512  ;;  %p4145_p0 = scmp.lt.s32.totalorder %s5103_s28, %s4143_s13 }
  0x20   : > { %3584 = vmatprep.subr.bf16.mxu0 %v4202_v1  ;;  %3607 = vmatpush3.bf16.msra.mxu1 %v4090_v12  ;;  %v277_v32 = vpack.c.bf16 %v271_v30, %v270_v29  ;;  %v272_v35 = vld [vmem:[%s4319_s26 + $0x40] sm:$0xff]  ;;  %v273_v36 = vld [vmem:[%s4319_s26 + $0x48] sm:$0x3f]  ;;  %v297_v37 = vpack.c.bf16 %v292_v34, %v291_v33  ;;  %v635_v41 = vld [vmem:[%s4319_s26 + $0x12] sm:$0xff]  ;;  %p4140_p12 = pnand %p4139_p11, %p4280_p5  ;;  %p4146_p1 = scmp.lt.s32.totalorder %s4144_s14, %s4138_s11 }
  0x21   : > { %3608 = vmatprep.subr.bf16.mxu1 %v4202_v1  ;;  %v278_v38 = vpack.c.bf16 %v273_v36, %v272_v35  ;;  %v504_v39 = vld [vmem:[%s4319_s26 + $0x2] sm:$0xff]  ;;  %v505_v40 = vld [vmem:[%s4319_s26 + $0xa] sm:$0xff]  ;;  %v507_v46 = vld [vmem:[%s4319_s26 + $0x1a] sm:$0xff] }
  0x22   : > { %v514_v42 = vpack.c.bf16 %v505_v40, %v504_v39  ;;  %v644_v44 = vpack.c.bf16 %v635_v41, %v505_v40  ;;  %v637_v47 = vld [vmem:[%s4319_s26 + $0x22] sm:$0xff]  ;;  %v515_v50 = vpack.c.bf16 %v507_v46, %v635_v41  ;;  %v509_v52 = vld [vmem:[%s4319_s26 + $0x2a] sm:$0xff]  ;;  %v639_v53 = vld [vmem:[%s4319_s26 + $0x32] sm:$0xff]  ;;  %p4141_p13 = pneg %p4140_p12  ;;  %p4147_p2 = por %p4146_p1, %p4145_p0 }
  0x23   : > { %3585 = vmatpush3.bf16.msra.mxu0 %v4089_v17  ;;  %v645_v51 = vpack.c.bf16 %v637_v47, %v507_v46  ;;  %v516_v54 = vpack.c.bf16 %v509_v52, %v637_v47  ;;  %v646_v55 = vpack.c.bf16 %v639_v53, %v509_v52  ;;  %v511_v56 = vld [vmem:[%s4319_s26 + $0x3a] sm:$0xff]  ;;  %v641_v57 = vld [vmem:[%s4319_s26 + $0x42] sm:$0xff]  ;;  %v513_v60 = vld [vmem:[%s4319_s26 + $0x4a] sm:$0x3f] }
  0x24   : > { %3609 = vmatpush3.bf16.msra.mxu1 %v4091_v18  ;;  %3630 = vmatprep.subr.bf16.mxu0 %v4202_v1  ;;  %v517_v58 = vpack.c.bf16 %v511_v56, %v639_v53  ;;  %v647_v59 = vpack.c.bf16 %v641_v57, %v511_v56  ;;  %v642_v61 = vld [vmem:[%s4319_s26 + $0x4a] sm:$0xff]  ;;  %v643_v62 = vld [vmem:[%s4319_s26 + $0x52] sm:$0x3f]  ;;  %v518_v63 = vpack.c.bf16 %v513_v60, %v641_v57  ;;  %v4096_v8 = vld [vmem:[%s5162_s1 + $0x60] sm:$0xff]   ;;  %p4148_p3 = pnand %p4147_p2, %p4141_p13 }
  0x25   : > { %3543 = vmatmul.mubr.msk.bf16.gmra.mrb[4].mxu0 %vm315_vm1, %v294_v19  ;;  %3654 = vmatprep.subr.bf16.mxu1 %v4202_v1  ;;  %v648_v0 = vpack.c.bf16 %v643_v62, %v642_v61  ;;  %v764_v2 = vld [vmem:[%s4319_s26 + $0xb] sm:$0xff]  ;;  %v765_v3 = vld [vmem:[%s4319_s26 + $0x13] sm:$0xff]  ;;  %v766_v10 = vld [vmem:[%s4319_s26 + $0x1b] sm:$0xff] }
  0x26   : > { %3567 = vmatmul.mubr.msk.bf16.gmra.mrb[4].mxu1 %vm315_vm1, %v275_v20  ;;  %3546 = vmatprep.mubr.msk.bf16.mxu0 %vm4203_vm0, %v4202_v1  ;;  %v894_v4 = vld [vmem:[%s4319_s26 + $0xc] sm:$0xff]  ;;  %v4450_v5 = vld [vmem:[%s4319_s26 + $0x14] sm:$0xff]  ;;  %v774_v6 = vpack.c.bf16 %v765_v3, %v764_v2  ;;  %v767_v11 = vld [vmem:[%s4319_s26 + $0x23] sm:$0xff] }
  0x27   : > { %3570 = vmatprep.mubr.msk.bf16.mxu1 %vm4203_vm0, %v4202_v1  ;;  %v904_v7 = vpack.c.bf16 %v4450_v5, %v894_v4  ;;  %v4098_v9 = vld [vmem:[%s5162_s1 + $0x70] sm:$0xff]   ;;  %v896_v12 = vld [vmem:[%s4319_s26 + $0x1c] sm:$0xff]  ;;  %v4469_v13 = vld [vmem:[%s4319_s26 + $0x24] sm:$0xff]  ;;  %v775_v16 = vpack.c.bf16 %v767_v11, %v766_v10 }
  0x28   : > { %v4097_v14 = vld [vmem:[%s5162_s1 + $0x68] sm:$0xff]   ;;  %v4099_v15 = vld [vmem:[%s5162_s1 + $0x78] sm:$0xff]   ;;  %v905_v17 = vpack.c.bf16 %v4469_v13, %v896_v12  ;;  %v4100_v40 = vld [vmem:[%s5162_s1 + $0x80] sm:$0xff]  }
  0x29   : > { %v768_v18 = vld [vmem:[%s4319_s26 + $0x2b] sm:$0xff]  ;;  %v769_v19 = vld [vmem:[%s4319_s26 + $0x33] sm:$0xff]  ;;  %v770_v24 = vld [vmem:[%s4319_s26 + $0x3b] sm:$0xff] }
  0x2a   : > { %v898_v20 = vld [vmem:[%s4319_s26 + $0x2c] sm:$0xff]  ;;  %v899_v21 = vld [vmem:[%s4319_s26 + $0x34] sm:$0xff]  ;;  %v776_v22 = vpack.c.bf16 %v769_v19, %v768_v18  ;;  %v901_v27 = vld [vmem:[%s4319_s26 + $0x44] sm:$0xff] }
  0x2b   : > { %v906_v23 = vpack.c.bf16 %v899_v21, %v898_v20  ;;  %v772_v30 = vld [vmem:[%s4319_s26 + $0x4b] sm:$0xff]  ;;  %v903_v33 = vld [vmem:[%s4319_s26 + $0x54] sm:$0x3f]  ;;  %v1159_v47 = vld [vmem:[%s4319_s26 + $0x3d] sm:$0xff] }
  0x2c   : > { %v1154_v36 = vld [vmem:[%s4319_s26 + $0x15] sm:$0xff]  ;;  %v1156_v41 = vld [vmem:[%s4319_s26 + $0x25] sm:$0xff]  ;;  %v1163_v57 = vld [vmem:[%s4319_s26 + $0x5d] sm:$0x3f] }
  0x2d   : > { %3547 = vmatmul.mubr.msk.bf16.gmra.mrb[8].mxu0 %vm315_vm1, %v295_v25  ;;  %v771_v25 = vld [vmem:[%s4319_s26 + $0x43] sm:$0xff]  ;;  %v1158_v46 = vld [vmem:[%s4319_s26 + $0x35] sm:$0xff] }
  0x2e   : > { %3571 = vmatmul.mubr.msk.bf16.gmra.mrb[8].mxu1 %vm315_vm1, %v276_v26  ;;  %3550 = vmatprep.mubr.msk.bf16.mxu0 %vm4203_vm0, %v4202_v1  ;;  %v900_v26 = vld [vmem:[%s4319_s26 + $0x3c] sm:$0xff]  ;;  %v777_v28 = vpack.c.bf16 %v771_v25, %v770_v24 }
  0x2f   : > { %3574 = vmatprep.mubr.msk.bf16.mxu1 %vm4203_vm0, %v4202_v1  ;;  %v907_v29 = vpack.c.bf16 %v901_v27, %v900_v26  ;;  %v1162_v56 = vld [vmem:[%s4319_s26 + $0x55] sm:$0xff]  ;;  %v1285_v61 = vld [vmem:[%s4319_s26 + $0x1e] sm:$0xff] }
  0x30   : > { %v1284_v60 = vld [vmem:[%s4319_s26 + $0x16] sm:$0xff]  ;;  %v1289_v4 = vld [vmem:[%s4319_s26 + $0x3e] sm:$0xff] }
  0x31   : > { %v1294_v62 = vpack.c.bf16 %v1285_v61, %v1284_v60  ;;  %v1288_v3 = vld [vmem:[%s4319_s26 + $0x36] sm:$0xff]  ;;  %v1293_v10 = vld [vmem:[%s4319_s26 + $0x5e] sm:$0x3f] }
  0x35   : > { %3551 = vmatmul.mubr.msk.bf16.gmra.mrb[12].mxu0 %vm315_vm1, %v296_v31  ;;  %v773_v31 = vld [vmem:[%s4319_s26 + $0x53] sm:$0x3f] }
  0x36   : > { %3575 = vmatmul.mubr.msk.bf16.gmra.mrb[12].mxu1 %vm315_vm1, %v277_v32  ;;  %3554 = vmatprep.mubr.msk.bf16.mxu0 %vm4203_vm0, %v4202_v1  ;;  %v902_v32 = vld [vmem:[%s4319_s26 + $0x4c] sm:$0xff]  ;;  %v778_v34 = vpack.c.bf16 %v773_v31, %v772_v30 }
  0x37   : > { %3578 = vmatprep.mubr.msk.bf16.mxu1 %vm4203_vm0, %v4202_v1  ;;  %v908_v35 = vpack.c.bf16 %v903_v33, %v902_v32  ;;  %v1037_v52 = vpack.c.bf16 %v902_v32, %v901_v27 }
  0x3d   : > { %3555 = vmatmul.mubr.msk.bf16.gmra.mrb[16].mxu0 %vm315_vm1, %v297_v37  ;;  %v1155_v37 = vld [vmem:[%s4319_s26 + $0x1d] sm:$0xff] }
  0x3e   : > { %3579 = vmatmul.mubr.msk.bf16.gmra.mrb[16].mxu1 %vm315_vm1, %v278_v38  ;;  %3586 = vmatprep.mubr.msk.bf16.mxu0 %vm4203_vm0, %v4202_v1  ;;  %v1034_v38 = vpack.c.bf16 %v896_v12, %v4450_v5  ;;  %v1164_v39 = vpack.c.bf16 %v1155_v37, %v1154_v36  ;;  %v1296_v5 = vpack.c.bf16 %v1289_v4, %v1288_v3 }
  0x3f   : > { %3610 = vmatprep.mubr.msk.bf16.mxu1 %vm4203_vm0, %v4202_v1 }
  0x45   : > { %3587 = vmatmul.mubr.msk.bf16.vlgmr.msra.gmra.mrb[20].mxu0 %vm315_vm1, %v514_v42  ;;  %v1157_v42 = vld [vmem:[%s4319_s26 + $0x2d] sm:$0xff] }
  0x46   : > { %3611 = vmatmul.mubr.msk.bf16.vlgmr.msra.gmra.mrb[20].mxu1 %vm315_vm1, %v644_v44  ;;  %3590 = vmatprep.mubr.msk.bf16.mxu0 %vm4203_vm0, %v4202_v1  ;;  %v1035_v44 = vpack.c.bf16 %v898_v20, %v4469_v13 }
  0x47   : > { %3614 = vmatprep.mubr.msk.bf16.mxu1 %vm4203_vm0, %v4202_v1  ;;  %3631 = vmatpush3.bf16.msra.mxu0 %v4092_v43  ;;  %v4101_v43 = vld [vmem:[%s5162_s1 + $0x88] sm:$0xff]  }
  0x48   : > { %3632 = vmatprep.subr.bf16.mxu0 %v4202_v1  ;;  %3655 = vmatpush3.bf16.msra.mxu1 %v4094_v45  ;;  %v1165_v45 = vpack.c.bf16 %v1157_v42, %v1156_v41 }
  0x49   : > { %3656 = vmatprep.subr.bf16.mxu1 %v4202_v1 }
  0x4b   : > { %3633 = vmatpush3.bf16.msra.mxu0 %v4093_v48  ;;  %v1036_v48 = vpack.c.bf16 %v900_v26, %v899_v21 }
  0x4c   : > { %3657 = vmatpush3.bf16.msra.mxu1 %v4095_v49  ;;  %3678 = vmatprep.subr.bf16.mxu0 %v4202_v1  ;;  %v1166_v49 = vpack.c.bf16 %v1159_v47, %v1158_v46 }
  0x4d   : > { %3591 = vmatmul.mubr.msk.bf16.gmra.mrb[24].mxu0 %vm315_vm1, %v515_v50  ;;  %3702 = vmatprep.subr.bf16.mxu1 %v4202_v1  ;;  %v1160_v50 = vld [vmem:[%s4319_s26 + $0x45] sm:$0xff] }
  0x4e   : > { %3615 = vmatmul.mubr.msk.bf16.gmra.mrb[24].mxu1 %vm315_vm1, %v645_v51  ;;  %3594 = vmatprep.mubr.msk.bf16.mxu0 %vm4203_vm0, %v4202_v1  ;;  %v1161_v51 = vld [vmem:[%s4319_s26 + $0x4d] sm:$0xff] }
  0x4f   : > { %3618 = vmatprep.mubr.msk.bf16.mxu1 %vm4203_vm0, %v4202_v1  ;;  %v1167_v53 = vpack.c.bf16 %v1161_v51, %v1160_v50 }
  0x55   : > { %3595 = vmatmul.mubr.msk.bf16.gmra.mrb[28].mxu0 %vm315_vm1, %v516_v54  ;;  %v1032_v54 = vld [vmem:[%s4319_s26 + $0x54] sm:$0xff] }
  0x56   : > { %3619 = vmatmul.mubr.msk.bf16.gmra.mrb[28].mxu1 %vm315_vm1, %v646_v55  ;;  %3598 = vmatprep.mubr.msk.bf16.mxu0 %vm4203_vm0, %v4202_v1  ;;  %v1033_v55 = vld [vmem:[%s4319_s26 + $0x5c] sm:$0x3f] }
  0x57   : > { %3622 = vmatprep.mubr.msk.bf16.mxu1 %vm4203_vm0, %v4202_v1 }
  0x5d   : > { %3599 = vmatmul.mubr.msk.bf16.gmra.mrb[32].mxu0 %vm315_vm1, %v517_v58  ;;  %v1038_v58 = vpack.c.bf16 %v1033_v55, %v1032_v54 }
  0x5e   : > { %3623 = vmatmul.mubr.msk.bf16.gmra.mrb[32].mxu1 %vm315_vm1, %v647_v59  ;;  %3602 = vmatprep.mubr.msk.bf16.mxu0 %vm4203_vm0, %v4202_v1  ;;  %v1168_v59 = vpack.c.bf16 %v1163_v57, %v1162_v56  ;;  %v4104_v56 = vld [vmem:[%s5164_s3] sm:$0xff]  }
  0x5f   : > { %3626 = vmatprep.mubr.msk.bf16.mxu1 %vm4203_vm0, %v4202_v1 }
  0x65   : > { %3603 = vmatmul.mubr.msk.bf16.gmra.mrb[36].mxu0 %vm315_vm1, %v518_v63  ;;  %v1286_v63 = vld [vmem:[%s4319_s26 + $0x26] sm:$0xff] }
  0x66   : > { %3627 = vmatmul.mubr.msk.bf16.gmra.mrb[36].mxu1 %vm315_vm1, %v648_v0  ;;  %3634 = vmatprep.mubr.msk.bf16.mxu0 %vm4203_vm0, %v4202_v1  ;;  %v1287_v0 = vld [vmem:[%s4319_s26 + $0x2e] sm:$0xff] }
  0x67   : > { %3658 = vmatprep.mubr.msk.bf16.mxu1 %vm4203_vm0, %v4202_v1  ;;  %v1295_v2 = vpack.c.bf16 %v1287_v0, %v1286_v63  ;;  %v4103_v0 = vld [vmem:[%s5164_s3 + $0x28] sm:$0xff]  }
  0x6d   : > { %3635 = vmatmul.mubr.msk.bf16.vlgmr.msra.gmra.mrb[40].mxu0 %vm315_vm1, %v774_v6  ;;  %v1290_v6 = vld [vmem:[%s4319_s26 + $0x46] sm:$0xff] }
  0x6e   : > { %3659 = vmatmul.mubr.msk.bf16.vlgmr.msra.gmra.mrb[40].mxu1 %vm315_vm1, %v904_v7  ;;  %3638 = vmatprep.mubr.msk.bf16.mxu0 %vm4203_vm0, %v4202_v1  ;;  %v1291_v7 = vld [vmem:[%s4319_s26 + $0x4e] sm:$0xff] }
  0x6f   : > { %3662 = vmatprep.mubr.msk.bf16.mxu1 %vm4203_vm0, %v4202_v1  ;;  %3679 = vmatpush3.bf16.msra.mxu0 %v4096_v8  ;;  %v1297_v8 = vpack.c.bf16 %v1291_v7, %v1290_v6  ;;  %v4106_v7 = vld [vmem:[%s5164_s3 + $0x30] sm:$0xff]  }
  0x70   : > { %3680 = vmatprep.subr.bf16.mxu0 %v4202_v1  ;;  %3703 = vmatpush3.bf16.msra.mxu1 %v4098_v9  ;;  %v1292_v9 = vld [vmem:[%s4319_s26 + $0x56] sm:$0xff] }
  0x71   : > { %3704 = vmatprep.subr.bf16.mxu1 %v4202_v1  ;;  %v1298_v11 = vpack.c.bf16 %v1293_v10, %v1292_v9 }
  0x73   : > { %3681 = vmatpush3.bf16.msra.mxu0 %v4097_v14 }
  0x74   : > { %3705 = vmatpush3.bf16.msra.mxu1 %v4099_v15  ;;  %3726 = vmatprep.subr.bf16.mxu0 %v4202_v1 }
  0x75   : > { %3639 = vmatmul.mubr.msk.bf16.gmra.mrb[44].mxu0 %vm315_vm1, %v775_v16  ;;  %3750 = vmatprep.subr.bf16.mxu1 %v4202_v1 }
  0x76   : > { %3663 = vmatmul.mubr.msk.bf16.gmra.mrb[44].mxu1 %vm315_vm1, %v905_v17  ;;  %3642 = vmatprep.mubr.msk.bf16.mxu0 %vm4203_vm0, %v4202_v1 }
  0x77   : > { %3666 = vmatprep.mubr.msk.bf16.mxu1 %vm4203_vm0, %v4202_v1 }
  0x7d   : > { %3643 = vmatmul.mubr.msk.bf16.gmra.mrb[48].mxu0 %vm315_vm1, %v776_v22 }
  0x7e   : > { %3667 = vmatmul.mubr.msk.bf16.gmra.mrb[48].mxu1 %vm315_vm1, %v906_v23  ;;  %3646 = vmatprep.mubr.msk.bf16.mxu0 %vm4203_vm0, %v4202_v1 }
  0x7f   : > { %3670 = vmatprep.mubr.msk.bf16.mxu1 %vm4203_vm0, %v4202_v1 }
  0x85   : > { %3647 = vmatmul.mubr.msk.bf16.gmra.mrb[52].mxu0 %vm315_vm1, %v777_v28 }
  0x86   : > { %3671 = vmatmul.mubr.msk.bf16.gmra.mrb[52].mxu1 %vm315_vm1, %v907_v29  ;;  %3650 = vmatprep.mubr.msk.bf16.mxu0 %vm4203_vm0, %v4202_v1 }
  0x87   : > { %3674 = vmatprep.mubr.msk.bf16.mxu1 %vm4203_vm0, %v4202_v1 }
  0x8d   : > { %3651 = vmatmul.mubr.msk.bf16.gmra.mrb[56].mxu0 %vm315_vm1, %v778_v34 }
  0x8e   : > { %3675 = vmatmul.mubr.msk.bf16.gmra.mrb[56].mxu1 %vm315_vm1, %v908_v35  ;;  %3682 = vmatprep.mubr.msk.bf16.mxu0 %vm4203_vm0, %v4202_v1 }
  0x8f   : > { %3706 = vmatprep.mubr.msk.bf16.mxu1 %vm4203_vm0, %v4202_v1 }
  0x95   : > { %3683 = vmatmul.mubr.msk.bf16.vlgmr.msra.gmra.mrb[60].mxu0 %vm315_vm1, %v1034_v38 }
  0x96   : > { %3707 = vmatmul.mubr.msk.bf16.vlgmr.msra.gmra.mrb[60].mxu1 %vm315_vm1, %v1164_v39  ;;  %3686 = vmatprep.mubr.msk.bf16.mxu0 %vm4203_vm0, %v4202_v1 }
  0x97   : > { %3710 = vmatprep.mubr.msk.bf16.mxu1 %vm4203_vm0, %v4202_v1  ;;  %3727 = vmatpush3.bf16.msra.mxu0 %v4100_v40 }
  0x98   : > { %3728 = vmatprep.subr.bf16.mxu0 %v4202_v1 }
  0x9b   : > { %3729 = vmatpush3.bf16.msra.mxu0 %v4101_v43 }
  0x9c   : > { %3778 = vmatprep.subr.bf16.mxu0 %v4202_v1 }
  0x9d   : > { %3687 = vmatmul.mubr.msk.bf16.gmra.mrb[64].mxu0 %vm315_vm1, %v1035_v44 }
  0x9e   : > { %3711 = vmatmul.mubr.msk.bf16.gmra.mrb[64].mxu1 %vm315_vm1, %v1165_v45  ;;  %3690 = vmatprep.mubr.msk.bf16.mxu0 %vm4203_vm0, %v4202_v1  ;;  %v4102_v45 = vld [vmem:[%s5164_s3 + $0x20] sm:$0xff]  }
  0x9f   : > { %3714 = vmatprep.mubr.msk.bf16.mxu1 %vm4203_vm0, %v4202_v1  ;;  %3751 = vmatpush3.bf16.msra.mxu1 %v4102_v45 }
  0xa0   : > { %3752 = vmatprep.subr.bf16.mxu1 %v4202_v1 }
  0xa3   : > { %3753 = vmatpush3.bf16.msra.mxu1 %v4103_v0 }
  0xa4   : > { %3754 = vmatprep.subr.bf16.mxu1 %v4202_v1 }
  0xa5   : > { %3691 = vmatmul.mubr.msk.bf16.gmra.mrb[68].mxu0 %vm315_vm1, %v1036_v48 }
  0xa6   : > { %3715 = vmatmul.mubr.msk.bf16.gmra.mrb[68].mxu1 %vm315_vm1, %v1166_v49  ;;  %3694 = vmatprep.mubr.msk.bf16.mxu0 %vm4203_vm0, %v4202_v1 }
  0xa7   : > { %3718 = vmatprep.mubr.msk.bf16.mxu1 %vm4203_vm0, %v4202_v1  ;;  %3755 = vmatpush3.bf16.msra.mxu1 %v4106_v7 }
  0xa8   : > { %3756 = vmatprep.subr.bf16.mxu1 %v4202_v1 }
  0xad   : > { %3695 = vmatmul.mubr.msk.bf16.gmra.mrb[72].mxu0 %vm315_vm1, %v1037_v52 }
  0xae   : > { %3719 = vmatmul.mubr.msk.bf16.gmra.mrb[72].mxu1 %vm315_vm1, %v1167_v53  ;;  %3698 = vmatprep.mubr.msk.bf16.mxu0 %vm4203_vm0, %v4202_v1 }
  0xaf   : > { %3722 = vmatprep.mubr.msk.bf16.mxu1 %vm4203_vm0, %v4202_v1 }
  0xb5   : > { %3699 = vmatmul.mubr.msk.bf16.gmra.mrb[76].mxu0 %vm315_vm1, %v1038_v58 }
  0xb6   : > { %3723 = vmatmul.mubr.msk.bf16.gmra.mrb[76].mxu1 %vm315_vm1, %v1168_v59  ;;  %3730 = vmatprep.mubr.msk.bf16.mxu0 %vm4203_vm0, %v4202_v1 }
  0xb7   : > { %3758 = vmatprep.mubr.msk.bf16.mxu1 %vm4203_vm0, %v4202_v1 }
  0xbd   : > { %3731 = vmatmul.mubr.msk.bf16.vlgmr.msra.gmra.mrb[80].mxu0 %vm315_vm1, %v1294_v62 }
  0xbe   : > { %3734 = vmatprep.mubr.msk.bf16.mxu0 %vm4203_vm0, %v4202_v1  ;;  %3779 = vmatpush3.bf16.msra.mxu0 %v4104_v56 }
  0xbf   : > { %3780 = vmatprep.subr.bf16.mxu0 %v4202_v1 }
  0xc5   : > { %3735 = vmatmul.mubr.msk.bf16.gmra.mrb[84].mxu0 %vm315_vm1, %v1295_v2  ;;  %v4105_v2 = vld [vmem:[%s5164_s3 + $0x8] sm:$0xff]  }
  0xc6   : > { %3738 = vmatprep.mubr.msk.bf16.mxu0 %vm4203_vm0, %v4202_v1  ;;  %3781 = vmatpush3.bf16.msra.mxu0 %v4105_v2 }
  0xc7   : > { %3782 = vmatprep.subr.bf16.mxu0 %v4202_v1 }
  0xcd   : > { %3739 = vmatmul.mubr.msk.bf16.gmra.mrb[88].mxu0 %vm315_vm1, %v1296_v5 }
  0xce   : > { %3742 = vmatprep.mubr.msk.bf16.mxu0 %vm4203_vm0, %v4202_v1 }
  0xd5   : > { %3743 = vmatmul.mubr.msk.bf16.gmra.mrb[92].mxu0 %vm315_vm1, %v1297_v8  ;;  %v4107_v8 = vld [vmem:[%s5164_s3 + $0x10] sm:$0xff]  }
  0xd6   : > { %3746 = vmatprep.mubr.msk.bf16.mxu0 %vm4203_vm0, %v4202_v1  ;;  %3783 = vmatpush3.bf16.msra.mxu0 %v4107_v8 }
  0xd7   : > { %3784 = vmatprep.subr.bf16.mxu0 %v4202_v1 }
  0xdd   : > { %3747 = vmatmul.mubr.msk.bf16.gmra.mrb[96].mxu0 %vm315_vm1, %v1298_v11 }
  0xde   : > { %3786 = vmatprep.mubr.msk.bf16.mxu0 %vm4203_vm0, %v4202_v1 }
  0xf0   : > { %v365_v12 = vpop.f32.mrb[0].mxu0 }
  0xf1   : > { %v465_v13 = vpop.f32.mrb[0].mxu1  ;;  %v3540_v14 = vpop.f32.mrb[1].mxu0 }
  0xf2   : > { %v4595_v15 = vadd.f32 %v465_v13, %v365_v12  ;;  %v3564_v16 = vpop.f32.mrb[1].mxu1  ;;  %v368_v17 = vpop.f32.mrb[2].mxu0 }
  0xf3   : > { %v468_v18 = vpop.f32.mrb[2].mxu1  ;;  %v3541_v19 = vpop.f32.mrb[3].mxu0 }
  0xf4   : > { %v4597_v20 = vadd.f32 %v468_v18, %v368_v17  ;;  %v3565_v21 = vpop.f32.mrb[3].mxu1  ;;  %v4108_v17 = vld [vmem:[%s5164_s3 + $0x38] sm:$0xff]  }
  0xf5   : > { %v4109_v18 = vld [vmem:[%s5164_s3 + $0x18] sm:$0xff]   ;;  %3757 = vmatpush3.bf16.msra.mxu1 %v4108_v17 }
  0xf6   : > { %3785 = vmatpush3.bf16.msra.mxu0 %v4109_v18  ;;  %3806 = vmatprep.subr.bf16.mxu1 %v4202_v1 }
  0xf7   : > { %3834 = vmatprep.subr.bf16.mxu0 %v4202_v1 }
  0xf8   : > { %v373_v22 = vpop.f32.mrb[4].mxu0 }
  0xf9   : > { %v473_v23 = vpop.f32.mrb[4].mxu1  ;;  %v3544_v24 = vpop.f32.mrb[5].mxu0 }
  0xfa   : > { %v4599_v25 = vadd.f32 %v473_v23, %v373_v22  ;;  %v3568_v26 = vpop.f32.mrb[5].mxu1  ;;  %v376_v27 = vpop.f32.mrb[6].mxu0 }
  0xfb   : > { %v476_v28 = vpop.f32.mrb[6].mxu1  ;;  %v3545_v29 = vpop.f32.mrb[7].mxu0 }
  0xfc   : > { %v4601_v30 = vadd.f32 %v476_v28, %v376_v27  ;;  %v3569_v31 = vpop.f32.mrb[7].mxu1 }
 0x100   : > { %v381_v32 = vpop.f32.mrb[8].mxu0 }
 0x101   : > { %v481_v33 = vpop.f32.mrb[8].mxu1  ;;  %v3548_v34 = vpop.f32.mrb[9].mxu0 }
 0x102   : > { %v4603_v35 = vadd.f32 %v481_v33, %v381_v32  ;;  %v3572_v36 = vpop.f32.mrb[9].mxu1  ;;  %v384_v37 = vpop.f32.mrb[10].mxu0 }
 0x103   : > { %v484_v38 = vpop.f32.mrb[10].mxu1  ;;  %v3549_v39 = vpop.f32.mrb[11].mxu0 }
 0x104   : > { %v4605_v40 = vadd.f32 %v484_v38, %v384_v37  ;;  %v3573_v41 = vpop.f32.mrb[11].mxu1 }
 0x108   : > { %v389_v42 = vpop.f32.mrb[12].mxu0 }
 0x109   : > { %v489_v43 = vpop.f32.mrb[12].mxu1  ;;  %v3552_v44 = vpop.f32.mrb[13].mxu0 }
 0x10a   : > { %v4610_v46 = vadd.f32 %v489_v43, %v389_v42  ;;  %v3576_v47 = vpop.f32.mrb[13].mxu1  ;;  %v392_v48 = vpop.f32.mrb[14].mxu0 }
 0x10b   : > { %v492_v49 = vpop.f32.mrb[14].mxu1  ;;  %v3553_v50 = vpop.f32.mrb[15].mxu0 }
 0x10c   : > { %v4612_v51 = vadd.f32 %v492_v49, %v392_v48  ;;  %v3577_v52 = vpop.f32.mrb[15].mxu1 }
 0x110   : > { %v397_v53 = vpop.f32.mrb[16].mxu0 }
 0x111   : > { %v497_v54 = vpop.f32.mrb[16].mxu1  ;;  %v3556_v55 = vpop.f32.mrb[17].mxu0 }
 0x112   : > { %v4618_v57 = vadd.f32 %v497_v54, %v397_v53  ;;  %v3580_v58 = vpop.f32.mrb[17].mxu1  ;;  %v400_v59 = vpop.f32.mrb[18].mxu0 }
 0x113   : > { %v500_v60 = vpop.f32.mrb[18].mxu1  ;;  %v3557_v61 = vpop.f32.mrb[19].mxu0 }
 0x114   : > { %v4620_v62 = vadd.f32 %v500_v60, %v400_v59  ;;  %v3581_v63 = vpop.f32.mrb[19].mxu1 }
 0x118   : > { %v585_v3 = vpop.f32.mrb[20].mxu0 }
 0x119   : > { %v624_v4 = vadd.f32 %v585_v3, %v4595_v15  ;;  %v3588_v5 = vpop.f32.mrb[21].mxu0  ;;  %v715_v6 = vpop.f32.mrb[20].mxu1 }
 0x11a   : > { %v588_v9 = vpop.f32.mrb[22].mxu0  ;;  %v3612_v10 = vpop.f32.mrb[21].mxu1 }
 0x11b   : > { %v625_v11 = vadd.f32 %v588_v9, %v4597_v20  ;;  %v4663_v12 = vadd.f32 %v715_v6, %v624_v4  ;;  %v3589_v13 = vpop.f32.mrb[23].mxu0  ;;  %v718_v14 = vpop.f32.mrb[22].mxu1 }
 0x11c   : > { %v3613_v15 = vpop.f32.mrb[23].mxu1 }
 0x11d   : > { %v4667_v16 = vadd.f32 %v718_v14, %v625_v11 }
 0x120   : > { %v593_v19 = vpop.f32.mrb[24].mxu0 }
 0x121   : > { %v626_v20 = vadd.f32 %v593_v19, %v4599_v25  ;;  %v3592_v21 = vpop.f32.mrb[25].mxu0  ;;  %v723_v22 = vpop.f32.mrb[24].mxu1 }
 0x122   : > { %v596_v23 = vpop.f32.mrb[26].mxu0  ;;  %v3616_v24 = vpop.f32.mrb[25].mxu1 }
 0x123   : > { %v627_v26 = vadd.f32 %v596_v23, %v4601_v30  ;;  %v756_v27 = vadd.f32 %v723_v22, %v626_v20  ;;  %v3593_v28 = vpop.f32.mrb[27].mxu0  ;;  %v726_v29 = vpop.f32.mrb[26].mxu1 }
 0x124   : > { %v3617_v31 = vpop.f32.mrb[27].mxu1 }
 0x125   : > { %v757_v32 = vadd.f32 %v726_v29, %v627_v26 }
 0x128   : > { %v601_v33 = vpop.f32.mrb[28].mxu0 }
 0x129   : > { %v628_v34 = vadd.f32 %v601_v33, %v4603_v35  ;;  %v3596_v36 = vpop.f32.mrb[29].mxu0  ;;  %v731_v37 = vpop.f32.mrb[28].mxu1 }
 0x12a   : > { %v604_v38 = vpop.f32.mrb[30].mxu0  ;;  %v3620_v39 = vpop.f32.mrb[29].mxu1 }
 0x12b   : > { %v629_v25 = vadd.f32 %v604_v38, %v4605_v40  ;;  %v758_v41 = vadd.f32 %v731_v37, %v628_v34  ;;  %v3597_v42 = vpop.f32.mrb[31].mxu0  ;;  %v734_v43 = vpop.f32.mrb[30].mxu1 }
 0x12c   : > { %v3621_v44 = vpop.f32.mrb[31].mxu1 }
 0x12d   : > { %v759_v45 = vadd.f32 %v734_v43, %v629_v25 }
 0x130   : > { %v609_v30 = vpop.f32.mrb[32].mxu0 }
 0x131   : > { %v630_v47 = vadd.f32 %v609_v30, %v4610_v46  ;;  %v3600_v48 = vpop.f32.mrb[33].mxu0  ;;  %v739_v49 = vpop.f32.mrb[32].mxu1 }
 0x132   : > { %v612_v50 = vpop.f32.mrb[34].mxu0  ;;  %v3624_v52 = vpop.f32.mrb[33].mxu1 }
 0x133   : > { %v631_v35 = vadd.f32 %v612_v50, %v4612_v51  ;;  %v760_v53 = vadd.f32 %v739_v49, %v630_v47  ;;  %v3601_v54 = vpop.f32.mrb[35].mxu0  ;;  %v742_v55 = vpop.f32.mrb[34].mxu1 }
 0x134   : > { %v3625_v56 = vpop.f32.mrb[35].mxu1 }
 0x135   : > { %v761_v58 = vadd.f32 %v742_v55, %v631_v35 }
 0x138   : > { %v617_v40 = vpop.f32.mrb[36].mxu0 }
 0x139   : > { %v632_v59 = vadd.f32 %v617_v40, %v4618_v57  ;;  %v3604_v60 = vpop.f32.mrb[37].mxu0  ;;  %v747_v61 = vpop.f32.mrb[36].mxu1 }
 0x13a   : > { %v620_v63 = vpop.f32.mrb[38].mxu0  ;;  %v3628_v0 = vpop.f32.mrb[37].mxu1 }
 0x13b   : > { %v633_v46 = vadd.f32 %v620_v63, %v4620_v62  ;;  %v762_v2 = vadd.f32 %v747_v61, %v632_v59  ;;  %v3605_v3 = vpop.f32.mrb[39].mxu0  ;;  %v750_v4 = vpop.f32.mrb[38].mxu1 }
 0x13c   : > { %v3629_v5 = vpop.f32.mrb[39].mxu1 }
 0x13d   : > { %v763_v6 = vadd.f32 %v750_v4, %v633_v46 }
 0x140   : > { %v845_v51 = vpop.f32.mrb[40].mxu0 }
 0x141   : > { %v884_v7 = vadd.f32 %v845_v51, %v4663_v12  ;;  %v3636_v8 = vpop.f32.mrb[41].mxu0  ;;  %v975_v9 = vpop.f32.mrb[40].mxu1 }
 0x142   : > { %v848_v10 = vpop.f32.mrb[42].mxu0  ;;  %v3660_v11 = vpop.f32.mrb[41].mxu1 }
 0x143   : > { %v885_v57 = vadd.f32 %v848_v10, %v4667_v16  ;;  %v1014_v13 = vadd.f32 %v975_v9, %v884_v7  ;;  %v3637_v14 = vpop.f32.mrb[43].mxu0  ;;  %v978_v15 = vpop.f32.mrb[42].mxu1 }
 0x144   : > { %v3661_v17 = vpop.f32.mrb[43].mxu1 }
 0x145   : > { %v1015_v18 = vadd.f32 %v978_v15, %v885_v57 }
 0x148   : > { %v853_v62 = vpop.f32.mrb[44].mxu0 }
 0x149   : > { %v886_v19 = vadd.f32 %v853_v62, %v756_v27  ;;  %v3640_v20 = vpop.f32.mrb[45].mxu0  ;;  %v983_v21 = vpop.f32.mrb[44].mxu1 }
 0x14a   : > { %v856_v22 = vpop.f32.mrb[46].mxu0  ;;  %v3664_v23 = vpop.f32.mrb[45].mxu1 }
 0x14b   : > { %v887_v24 = vadd.f32 %v856_v22, %v757_v32  ;;  %v1016_v26 = vadd.f32 %v983_v21, %v886_v19  ;;  %v3641_v12 = vpop.f32.mrb[47].mxu0  ;;  %v986_v28 = vpop.f32.mrb[46].mxu1 }
 0x14c   : > { %v3665_v29 = vpop.f32.mrb[47].mxu1 }
 0x14d   : > { %v1017_v31 = vadd.f32 %v986_v28, %v887_v24 }
 0x150   : > { %v861_v33 = vpop.f32.mrb[48].mxu0 }
 0x151   : > { %v888_v34 = vadd.f32 %v861_v33, %v758_v41  ;;  %v3644_v16 = vpop.f32.mrb[49].mxu0  ;;  %v991_v36 = vpop.f32.mrb[48].mxu1 }
 0x152   : > { %v864_v37 = vpop.f32.mrb[50].mxu0  ;;  %v3668_v38 = vpop.f32.mrb[49].mxu1 }
 0x153   : > { %v889_v39 = vadd.f32 %v864_v37, %v759_v45  ;;  %v1018_v25 = vadd.f32 %v991_v36, %v888_v34  ;;  %v3645_v42 = vpop.f32.mrb[51].mxu0  ;;  %v994_v27 = vpop.f32.mrb[50].mxu1 }
 0x154   : > { %v3669_v43 = vpop.f32.mrb[51].mxu1 }
 0x155   : > { %v1019_v44 = vadd.f32 %v994_v27, %v889_v39 }
 0x158   : > { %v869_v30 = vpop.f32.mrb[52].mxu0 }
 0x159   : > { %v890_v47 = vadd.f32 %v869_v30, %v760_v53  ;;  %v3648_v32 = vpop.f32.mrb[53].mxu0  ;;  %v999_v48 = vpop.f32.mrb[52].mxu1 }
 0x15a   : > { %v872_v49 = vpop.f32.mrb[54].mxu0  ;;  %v3672_v50 = vpop.f32.mrb[53].mxu1 }
 0x15b   : > { %v891_v52 = vadd.f32 %v872_v49, %v761_v58  ;;  %v1020_v35 = vadd.f32 %v999_v48, %v890_v47  ;;  %v3649_v54 = vpop.f32.mrb[55].mxu0  ;;  %v1002_v41 = vpop.f32.mrb[54].mxu1 }
 0x15c   : > { %v3673_v55 = vpop.f32.mrb[55].mxu1 }
 0x15d   : > { %v1021_v56 = vadd.f32 %v1002_v41, %v891_v52 }
 0x160   : > { %v877_v40 = vpop.f32.mrb[56].mxu0 }
 0x161   : > { %v892_v59 = vadd.f32 %v877_v40, %v762_v2  ;;  %v3652_v45 = vpop.f32.mrb[57].mxu0  ;;  %v1007_v60 = vpop.f32.mrb[56].mxu1 }
 0x162   : > { %v880_v61 = vpop.f32.mrb[58].mxu0  ;;  %v3676_v63 = vpop.f32.mrb[57].mxu1 }
 0x163   : > { %v893_v0 = vadd.f32 %v880_v61, %v763_v6  ;;  %v1022_v46 = vadd.f32 %v1007_v60, %v892_v59  ;;  %v3653_v3 = vpop.f32.mrb[59].mxu0  ;;  %v1010_v53 = vpop.f32.mrb[58].mxu1 }
 0x164   : > { %v3677_v4 = vpop.f32.mrb[59].mxu1 }
 0x165   : > { %v1023_v5 = vadd.f32 %v1010_v53, %v893_v0 }
 0x168   : > { %v1105_v51 = vpop.f32.mrb[60].mxu0 }
 0x169   : > { %v1144_v7 = vadd.f32 %v1105_v51, %v1014_v13  ;;  %v3684_v58 = vpop.f32.mrb[61].mxu0  ;;  %v1235_v8 = vpop.f32.mrb[60].mxu1  ;;  %v4704_v51 = vld [vmem:[%s5163_s2] ss:$0 sm:$0xff] }
 0x16a   : > { %v1108_v9 = vpop.f32.mrb[62].mxu0  ;;  %v3708_v10 = vpop.f32.mrb[61].mxu1 }
 0x16b   : > { %v1145_v11 = vadd.f32 %v1108_v9, %v1015_v18  ;;  %v1274_v57 = vadd.f32 %v1235_v8, %v1144_v7  ;;  %v3685_v14 = vpop.f32.mrb[63].mxu0  ;;  %v1238_v2 = vpop.f32.mrb[62].mxu1 }
 0x16c   : > { %v3709_v15 = vpop.f32.mrb[63].mxu1 }
 0x16d   : > { %v1275_v17 = vadd.f32 %v1238_v2, %v1145_v11 }
 0x170   : > { %v1113_v62 = vpop.f32.mrb[64].mxu0 }
 0x171   : > { %v1146_v19 = vadd.f32 %v1113_v62, %v1016_v26  ;;  %v3688_v6 = vpop.f32.mrb[65].mxu0  ;;  %v1243_v20 = vpop.f32.mrb[64].mxu1 }
 0x172   : > { %v1116_v21 = vpop.f32.mrb[66].mxu0  ;;  %v3712_v22 = vpop.f32.mrb[65].mxu1 }
 0x173   : > { %v1147_v23 = vadd.f32 %v1116_v21, %v1017_v31  ;;  %v1276_v24 = vadd.f32 %v1243_v20, %v1146_v19  ;;  %v3689_v12 = vpop.f32.mrb[67].mxu0  ;;  %v1246_v13 = vpop.f32.mrb[66].mxu1  ;;  %v1475_v21 = vld [vmem:[#allocation2] sm:$0xff] }
 0x174   : > { %v3713_v28 = vpop.f32.mrb[67].mxu1 }
 0x175   : > { %v1277_v29 = vadd.f32 %v1246_v13, %v1147_v23 }
 0x178   : > { %v1121_v33 = vpop.f32.mrb[68].mxu0 }
 0x179   : > { %v1148_v34 = vadd.f32 %v1121_v33, %v1018_v25  ;;  %v3692_v18 = vpop.f32.mrb[69].mxu0  ;;  %v1251_v16 = vpop.f32.mrb[68].mxu1 }
 0x17a   : > { %v1124_v36 = vpop.f32.mrb[70].mxu0  ;;  %v3716_v37 = vpop.f32.mrb[69].mxu1 }
 0x17b   : > { %v1149_v38 = vadd.f32 %v1124_v36, %v1019_v44  ;;  %v4689_v39 = vadd.f32 %v1251_v16, %v1148_v34  ;;  %v3693_v26 = vpop.f32.mrb[71].mxu0  ;;  %v1254_v42 = vpop.f32.mrb[70].mxu1  ;;  %v4112_v34 = vld [vmem:[%s5164_s3 + $0x60] sm:$0xff]  }
 0x17c   : > { %v3717_v27 = vpop.f32.mrb[71].mxu1 }
 0x17d   : > { %v4691_v43 = vadd.f32 %v1254_v42, %v1149_v38  ;;  %v4113_v27 = vld [vmem:[%s5164_s3 + $0x68] sm:$0xff]  }
 0x180   : > { %v1129_v31 = vpop.f32.mrb[72].mxu0 }
 0x181   : > { %v1150_v30 = vadd.f32 %v1129_v31, %v1020_v35  ;;  %v3696_v47 = vpop.f32.mrb[73].mxu0  ;;  %v1259_v32 = vpop.f32.mrb[72].mxu1 }
 0x182   : > { %v1132_v48 = vpop.f32.mrb[74].mxu0  ;;  %v3720_v49 = vpop.f32.mrb[73].mxu1 }
 0x183   : > { %v1151_v50 = vadd.f32 %v1132_v48, %v1021_v56  ;;  %v4693_v25 = vadd.f32 %v1259_v32, %v1150_v30  ;;  %v3697_v52 = vpop.f32.mrb[75].mxu0  ;;  %v1262_v54 = vpop.f32.mrb[74].mxu1 }
 0x184   : > { %v3721_v41 = vpop.f32.mrb[75].mxu1 }
 0x185   : > { %v4695_v44 = vadd.f32 %v1262_v54, %v1151_v50  ;;  %v4114_v54 = vld [vmem:[%s5164_s3 + $0x50] sm:$0xff]  }
 0x186   : > { %v4115_v41 = vld [vmem:[%s5164_s3 + $0x70] sm:$0xff]  }
 0x188   : > { %v1137_v55 = vpop.f32.mrb[76].mxu0 }
 0x189   : > { %v1152_v40 = vadd.f32 %v1137_v55, %v1022_v46  ;;  %v3700_v59 = vpop.f32.mrb[77].mxu0  ;;  %v1267_v45 = vpop.f32.mrb[76].mxu1 }
 0x18a   : > { %v1140_v60 = vpop.f32.mrb[78].mxu0  ;;  %v3724_v61 = vpop.f32.mrb[77].mxu1 }
 0x18b   : > { %v1153_v63 = vadd.f32 %v1140_v60, %v1023_v5  ;;  %v4697_v35 = vadd.f32 %v1267_v45, %v1152_v40  ;;  %v3701_v0 = vpop.f32.mrb[79].mxu0  ;;  %v1270_v3 = vpop.f32.mrb[78].mxu1 }
 0x18c   : > { %v3725_v53 = vpop.f32.mrb[79].mxu1  ;;  %v4117_v0 = vld [vmem:[%s5164_s3 + $0x78] sm:$0xff]  }
 0x18d   : > { %v4699_v56 = vadd.f32 %v1270_v3, %v1153_v63 }
 0x190   : > { %v1365_v4 = vpop.f32.mrb[80].mxu0 }
 0x191   : > { %v1404_v7 = vadd.f32 %v1365_v4, %v1274_v57  ;;  %v3732_v46 = vpop.f32.mrb[81].mxu0 }
 0x192   : > { %v1368_v58 = vpop.f32.mrb[82].mxu0 }
 0x193   : > { %v1421_v8 = vadd.f32 %v4704_v51, %v1404_v7  ;;  %v1405_v9 = vadd.f32 %v1368_v58, %v1275_v17  ;;  %v3733_v5 = vpop.f32.mrb[83].mxu0  ;;  %v1498_v17 = vld [vmem:[#allocation2 + $0x1] sm:$0xff] }
 0x195   : > { %v1431_v10 = vmax.f32 %v1421_v8, 0.0  ;;  %v1422_v11 = vadd.f32 %v4704_v51, %v1405_v9 }
 0x197   : > { %1456 = vst.msk [vmem:[#allocation2 + $0xb] sm:$0xff] %vm1441_vm2, %v1431_v10  ;;  %v1432_v14 = vmax.f32 %v1422_v11, 0.0 }
 0x198   : > { %v1373_v2 = vpop.f32.mrb[84].mxu0 }
 0x199   : > { %1458 = vst.msk [vmem:[#allocation2 + $0x13] sm:$0xfc] %vm1457_vm4, %v1432_v14  ;;  %v1406_v15 = vadd.f32 %v1373_v2, %v1276_v24  ;;  %v3736_v62 = vpop.f32.mrb[85].mxu0 }
 0x19a   : > { %v1376_v19 = vpop.f32.mrb[86].mxu0 }
 0x19b   : > { %v1423_v57 = vadd.f32 %v4704_v51, %v1406_v15  ;;  %v1407_v6 = vadd.f32 %v1376_v19, %v1277_v29  ;;  %v3737_v20 = vpop.f32.mrb[87].mxu0  ;;  %v4110_v29 = vld [vmem:[%s5164_s3 + $0x40] sm:$0xff]  }
 0x19d   : > { %v1433_v22 = vmax.f32 %v1423_v57, 0.0  ;;  %v1424_v23 = vadd.f32 %v4704_v51, %v1407_v6 }
 0x19e   : > { %v1499_v12 = vld [vmem:[#allocation2 + $0x9] sm:$0xff] }
 0x19f   : > { %v1476_v13 = vld [vmem:[#allocation2 + $0x8] sm:$0xff]  ;;  %1460 = vst.msk [vmem:[#allocation2 + $0x1b] sm:$0x3] %vm1459_vm5, %v1433_v22  ;;  %v1434_v24 = vmax.f32 %v1424_v23, 0.0  ;;  %v1508_v28 = vpack.c.bf16 %v1499_v12, %v1498_v17 }
 0x1a0   : > { %1462 = vst.msk [vmem:[#allocation2 + $0x1b] sm:$0xf0] %vm1461_vm6, %v1433_v22  ;;  %v1485_v33 = vpack.c.bf16 %v1476_v13, %v1475_v21  ;;  %v1381_v18 = vpop.f32.mrb[88].mxu0  ;;  %v1477_v32 = vld [vmem:[#allocation2 + $0x10] sm:$0xff] }
 0x1a1   : > { %1463 = vst.msk [vmem:[#allocation2 + $0x23] sm:$0xf] %vm1454_vm3, %v1434_v24  ;;  %v1408_v16 = vadd.f32 %v1381_v18, %v4689_v39  ;;  %v3740_v36 = vpop.f32.mrb[89].mxu0  ;;  %3759 = vmatmul.mubr.msk.bf16.vlgmr.msra.gmra.mrb[80].mxu1 %vm1441_vm2, %v1508_v28  ;;  %v4111_v39 = vld [vmem:[%s5164_s3 + $0x48] sm:$0xff]  }
 0x1a2   : > { %1465 = vst.msk [vmem:[#allocation2 + $0x23] sm:$0xc0] %vm1464_vm7, %v1434_v24  ;;  %3787 = vmatmul.mubr.msk.bf16.vlgmr.msra.gmra.mrb[100].mxu0 %vm1441_vm2, %v1485_v33  ;;  %v1384_v37 = vpop.f32.mrb[90].mxu0  ;;  %3762 = vmatprep.mubr.msk.bf16.mxu1 %vm4203_vm0, %v4202_v1  ;;  %v1746_v33 = vld [vmem:[#allocation2 + $0x2] sm:$0xff] }
 0x1a3   : > { %3790 = vmatprep.mubr.msk.bf16.mxu0 %vm4203_vm0, %v4202_v1  ;;  %v1425_v38 = vadd.f32 %v4704_v51, %v1408_v16  ;;  %v1409_v26 = vadd.f32 %v1384_v37, %v4691_v43  ;;  %v3741_v42 = vpop.f32.mrb[91].mxu0  ;;  %3807 = vmatpush3.bf16.msra.mxu1 %v4110_v29  ;;  %v1500_v43 = vld [vmem:[#allocation2 + $0x11] sm:$0xff]  ;;  %v4118_v36 = vld [vmem:[%s5164_s3 + $0x80] sm:$0xff]  }
 0x1a4   : > { %3835 = vmatpush3.bf16.msra.mxu0 %v4112_v34  ;;  %3808 = vmatprep.subr.bf16.mxu1 %v4202_v1  ;;  %v1747_v29 = vld [vmem:[#allocation2 + $0xa] sm:$0xff]  ;;  %v1893_v34 = vld [vmem:[#allocation2 + $0x12] sm:$0xff]  ;;  %v4120_v37 = vld [vmem:[%s5164_s3 + $0xa0] sm:$0xff]  }
 0x1a5   : > { %3836 = vmatprep.subr.bf16.mxu0 %v4202_v1  ;;  %v1435_v31 = vmax.f32 %v1425_v38, 0.0  ;;  %v1426_v30 = vadd.f32 %v4704_v51, %v1409_v26  ;;  %v1756_v18 = vpack.c.bf16 %v1747_v29, %v1746_v33  ;;  %v1902_v16 = vpack.c.bf16 %v1893_v34, %v1747_v29  ;;  %v4119_v38 = vld [vmem:[%s5164_s3 + $0x88] sm:$0xff]  }
 0x1a6   : > { %v4121_v26 = vld [vmem:[%s5164_s3 + $0xa8] sm:$0xff]  }
 0x1a7   : > { %v1501_v47 = vld [vmem:[#allocation2 + $0x19] sm:$0xff]  ;;  %1467 = vst.msk [vmem:[#allocation2 + $0x2b] sm:$0x3f] %vm1466_vm8, %v1435_v31  ;;  %v1436_v49 = vmax.f32 %v1426_v30, 0.0  ;;  %3809 = vmatpush3.bf16.msra.mxu1 %v4111_v39  ;;  %v4122_v30 = vld [vmem:[%s5164_s3 + $0x90] sm:$0xff]  }
 0x1a8   : > { %v1478_v48 = vld [vmem:[#allocation2 + $0x18] sm:$0xff]  ;;  %v1509_v50 = vpack.c.bf16 %v1501_v47, %v1500_v43  ;;  %3837 = vmatpush3.bf16.msra.mxu0 %v4113_v27  ;;  %v1389_v55 = vpop.f32.mrb[92].mxu0  ;;  %3810 = vmatprep.subr.bf16.mxu1 %v4202_v1  ;;  %v1502_v4 = vld [vmem:[#allocation2 + $0x21] sm:$0xff]  ;;  %v4123_v43 = vld [vmem:[%s5164_s3 + $0xb0] sm:$0xff]  }
 0x1a9   : > { %v1486_v52 = vpack.c.bf16 %v1478_v48, %v1477_v32  ;;  %3838 = vmatprep.subr.bf16.mxu0 %v4202_v1  ;;  %1468 = vst.msk [vmem:[#allocation2 + $0x33] sm:$0xff] %vm1441_vm2, %v1436_v49  ;;  %v1410_v40 = vadd.f32 %v1389_v55, %v4693_v25  ;;  %v3744_v59 = vpop.f32.mrb[93].mxu0  ;;  %v4116_v25 = vld [vmem:[%s5164_s3 + $0x58] sm:$0xff]   ;;  %v1479_v7 = vld [vmem:[#allocation2 + $0x20] sm:$0xff] }
 0x1aa   : > { %3763 = vmatmul.mubr.msk.bf16.gmra.mrb[84].mxu1 %vm1441_vm2, %v1509_v50  ;;  %v1392_v45 = vpop.f32.mrb[94].mxu0  ;;  %v1749_v42 = vld [vmem:[#allocation2 + $0x1a] sm:$0xff]  ;;  %v1895_v39 = vld [vmem:[#allocation2 + $0x22] sm:$0xff] }
 0x1ab   : > { %3791 = vmatmul.mubr.msk.bf16.gmra.mrb[104].mxu0 %vm1441_vm2, %v1486_v52  ;;  %3766 = vmatprep.mubr.msk.bf16.mxu1 %vm4203_vm0, %v4202_v1  ;;  %v1427_v60 = vadd.f32 %v4704_v51, %v1410_v40  ;;  %v1411_v61 = vadd.f32 %v1392_v45, %v4695_v44  ;;  %v3745_v63 = vpop.f32.mrb[95].mxu0  ;;  %v1757_v27 = vpack.c.bf16 %v1749_v42, %v1893_v34  ;;  %v4124_v47 = vld [vmem:[%s5164_s3 + $0x98] sm:$0xff]  }
 0x1ac   : > { %3794 = vmatprep.mubr.msk.bf16.mxu0 %vm4203_vm0, %v4202_v1  ;;  %3811 = vmatpush3.bf16.msra.mxu1 %v4114_v54  ;;  %v1903_v31 = vpack.c.bf16 %v1895_v39, %v1749_v42  ;;  %v4125_v32 = vld [vmem:[%s5164_s3 + $0xb8] sm:$0xff]   ;;  %v4134_v42 = vld [vmem:[%s5164_s3 + $0x100] sm:$0xff]  }
 0x1ad   : > { %3839 = vmatpush3.bf16.msra.mxu0 %v4115_v41  ;;  %3812 = vmatprep.subr.bf16.mxu1 %v4202_v1  ;;  %v1437_v3 = vmax.f32 %v1427_v60, 0.0  ;;  %v1428_v53 = vadd.f32 %v4704_v51, %v1411_v61 }
 0x1ae   : > { %3840 = vmatprep.subr.bf16.mxu0 %v4202_v1  ;;  %v1503_v44 = vld [vmem:[#allocation2 + $0x29] sm:$0xff] }
 0x1af   : > { %v1480_v46 = vld [vmem:[#allocation2 + $0x28] sm:$0xff]  ;;  %1469 = vst.msk [vmem:[#allocation2 + $0x3b] sm:$0xfc] %vm1457_vm4, %v1437_v3  ;;  %v1438_v58 = vmax.f32 %v1428_v53, 0.0  ;;  %v1510_v8 = vpack.c.bf16 %v1503_v44, %v1502_v4 }
 0x1b0   : > { %v1487_v9 = vpack.c.bf16 %v1480_v46, %v1479_v7  ;;  %3813 = vmatpush3.bf16.msra.mxu1 %v4116_v25  ;;  %v1397_v5 = vpop.f32.mrb[96].mxu0  ;;  %v1504_v57 = vld [vmem:[#allocation2 + $0x31] sm:$0xff]  ;;  %v4126_v7 = vld [vmem:[%s5164_s3 + $0xc0] sm:$0xff]  }
 0x1b1   : > { %3841 = vmatpush3.bf16.msra.mxu0 %v4117_v0  ;;  %3862 = vmatprep.subr.bf16.mxu1 %v4202_v1  ;;  %1470 = vst.msk [vmem:[#allocation2 + $0x43] sm:$0x3] %vm1459_vm5, %v1438_v58  ;;  %v1412_v10 = vadd.f32 %v1397_v5, %v4697_v35  ;;  %v3748_v11 = vpop.f32.mrb[97].mxu0  ;;  %v1481_v20 = vld [vmem:[#allocation2 + $0x30] sm:$0xff]  ;;  %v4128_v46 = vld [vmem:[%s5164_s3 + $0xe0] sm:$0xff]  }
 0x1b2   : > { %3890 = vmatprep.subr.bf16.mxu0 %v4202_v1  ;;  %1471 = vst.msk [vmem:[#allocation2 + $0x43] sm:$0xf0] %vm1461_vm6, %v1438_v58  ;;  %3767 = vmatmul.mubr.msk.bf16.gmra.mrb[88].mxu1 %vm1441_vm2, %v1510_v8  ;;  %v1400_v14 = vpop.f32.mrb[98].mxu0  ;;  %v1751_v48 = vld [vmem:[#allocation2 + $0x2a] sm:$0xff]  ;;  %v1897_v49 = vld [vmem:[#allocation2 + $0x32] sm:$0xff]  ;;  %v2186_v11 = vld [vmem:[#allocation2 + $0x1c] sm:$0xff] }
 0x1b3   : > { %3795 = vmatmul.mubr.msk.bf16.gmra.mrb[108].mxu0 %vm1441_vm2, %v1487_v9  ;;  %3770 = vmatprep.mubr.msk.bf16.mxu1 %vm4203_vm0, %v4202_v1  ;;  %v1429_v2 = vadd.f32 %v4704_v51, %v1412_v10  ;;  %v1413_v15 = vadd.f32 %v1400_v14, %v4699_v56  ;;  %v3749_v62 = vpop.f32.mrb[99].mxu0  ;;  %v1758_v50 = vpack.c.bf16 %v1751_v48, %v1895_v39  ;;  %v2039_v25 = vld [vmem:[#allocation2 + $0x13] sm:$0xff]  ;;  %v2038_v3 = vld [vmem:[#allocation2 + $0xb] sm:$0xff]  ;;  %v2041_v9 = vld [vmem:[#allocation2 + $0x23] sm:$0xff] }
 0x1b4   : > { %3798 = vmatprep.mubr.msk.bf16.mxu0 %vm4203_vm0, %v4202_v1  ;;  %v1904_v52 = vpack.c.bf16 %v1897_v49, %v1751_v48  ;;  %v4860_v0 = vld [vmem:[#allocation2 + $0x14] sm:$0xff]  ;;  %v2184_v53 = vld [vmem:[#allocation2 + $0xc] sm:$0xff]  ;;  %v2048_v4 = vpack.c.bf16 %v2039_v25, %v2038_v3  ;;  %v4881_v5 = vld [vmem:[#allocation2 + $0x24] sm:$0xff] }
 0x1b5   : > { %v1439_v19 = vmax.f32 %v1429_v2, 0.0  ;;  %v1430_v35 = vadd.f32 %v4704_v51, %v1413_v15  ;;  %v2194_v44 = vpack.c.bf16 %v4860_v0, %v2184_v53  ;;  %v4127_v58 = vld [vmem:[%s5164_s3 + $0xc8] sm:$0xff]   ;;  %v2040_v10 = vld [vmem:[#allocation2 + $0x1b] sm:$0xff]  ;;  %v2195_v2 = vpack.c.bf16 %v4881_v5, %v2186_v11  ;;  %v4130_v15 = vld [vmem:[%s5164_s3 + $0xd0] sm:$0xff]  }
 0x1b6   : > { %v1505_v6 = vld [vmem:[#allocation2 + $0x39] sm:$0xff]  ;;  %v4129_v8 = vld [vmem:[%s5164_s3 + $0xe8] sm:$0xff]   ;;  %v2049_v14 = vpack.c.bf16 %v2041_v9, %v2040_v10  ;;  %v4131_v62 = vld [vmem:[%s5164_s3 + $0xf0] sm:$0xff]  }
 0x1b7   : > { %v1482_v17 = vld [vmem:[#allocation2 + $0x38] sm:$0xff]  ;;  %1472 = vst.msk [vmem:[#allocation2 + $0x4b] sm:$0xf] %vm1454_vm3, %v1439_v19  ;;  %v1440_v21 = vmax.f32 %v1430_v35, 0.0  ;;  %v1511_v22 = vpack.c.bf16 %v1505_v6, %v1504_v57  ;;  %v2188_v6 = vld [vmem:[#allocation2 + $0x2c] sm:$0xff] }
 0x1b8   : > { %1473 = vst.msk [vmem:[#allocation2 + $0x4b] sm:$0xc0] %vm1464_vm7, %v1439_v19  ;;  %v1488_v23 = vpack.c.bf16 %v1482_v17, %v1481_v20  ;;  %v1753_v54 = vld [vmem:[#allocation2 + $0x3a] sm:$0xff]  ;;  %v2042_v17 = vld [vmem:[#allocation2 + $0x2b] sm:$0xff] }
 0x1b9   : > { %1474 = vst.msk [vmem:[#allocation2 + $0x53] sm:$0x3f] %vm1466_vm8, %v1440_v21  ;;  %v1506_v56 = vld [vmem:[#allocation2 + $0x41] sm:$0xff]  ;;  %v1759_v55 = vpack.c.bf16 %v1753_v54, %v1897_v49  ;;  %v4132_v19 = vld [vmem:[%s5164_s3 + $0xd8] sm:$0xff]  }
 0x1ba   : > { %3771 = vmatmul.mubr.msk.bf16.gmra.mrb[92].mxu1 %vm1441_vm2, %v1511_v22  ;;  %v1483_v12 = vld [vmem:[#allocation2 + $0x40] sm:$0xff]  ;;  %v4133_v35 = vld [vmem:[%s5164_s3 + $0xf8] sm:$0xff]   ;;  %v4135_v39 = vld [vmem:[%s5164_s3 + $0x108] sm:$0xff]  }
 0x1bb   : > { %3799 = vmatmul.mubr.msk.bf16.gmra.mrb[112].mxu0 %vm1441_vm2, %v1488_v23  ;;  %3774 = vmatprep.mubr.msk.bf16.mxu1 %vm4203_vm0, %v4202_v1  ;;  %v1899_v41 = vld [vmem:[#allocation2 + $0x42] sm:$0xff]  ;;  %v2043_v57 = vld [vmem:[#allocation2 + $0x33] sm:$0xff] }
 0x1bc   : > { %3802 = vmatprep.mubr.msk.bf16.mxu0 %vm4203_vm0, %v4202_v1  ;;  %v1905_v40 = vpack.c.bf16 %v1899_v41, %v1753_v54  ;;  %v4906_v20 = vld [vmem:[#allocation2 + $0x34] sm:$0xff]  ;;  %v2050_v21 = vpack.c.bf16 %v2043_v57, %v2042_v17  ;;  %v2045_v23 = vld [vmem:[#allocation2 + $0x43] sm:$0xff] }
 0x1bd   : > { %v2196_v22 = vpack.c.bf16 %v4906_v20, %v2188_v6  ;;  %v2481_v48 = vld [vmem:[#allocation2 + $0x3d] sm:$0xff]  ;;  %v2480_v49 = vld [vmem:[#allocation2 + $0x35] sm:$0xff] }
 0x1be   : > { %v1507_v51 = vld [vmem:[#allocation2 + $0x49] sm:$0x3f]  ;;  %v2622_v3 = vld [vmem:[#allocation2 + $0x16] sm:$0xff] }
 0x1bf   : > { %v1484_v13 = vld [vmem:[#allocation2 + $0x48] sm:$0x3f]  ;;  %v1512_v24 = vpack.c.bf16 %v1507_v51, %v1506_v56  ;;  %v2044_v51 = vld [vmem:[#allocation2 + $0x3b] sm:$0xff] }
 0x1c0   : > { %v1489_v28 = vpack.c.bf16 %v1484_v13, %v1483_v12  ;;  %v1755_v59 = vld [vmem:[#allocation2 + $0x4a] sm:$0x3f]  ;;  %v1901_v45 = vld [vmem:[#allocation2 + $0x52] sm:$0x3f]  ;;  %v2190_v12 = vld [vmem:[#allocation2 + $0x3c] sm:$0xff]  ;;  %v2051_v13 = vpack.c.bf16 %v2045_v23, %v2044_v51 }
 0x1c1   : > { %v1900_v60 = vld [vmem:[#allocation2 + $0x4a] sm:$0xff]  ;;  %v1760_v61 = vpack.c.bf16 %v1755_v59, %v1899_v41  ;;  %v2193_v29 = vld [vmem:[#allocation2 + $0x54] sm:$0x3f]  ;;  %v2339_v59 = vld [vmem:[#allocation2 + $0x5c] sm:$0x3f] }
 0x1c2   : > { %3775 = vmatmul.mubr.msk.bf16.gmra.mrb[96].mxu1 %vm1441_vm2, %v1512_v24  ;;  %v1906_v63 = vpack.c.bf16 %v1901_v45, %v1900_v60  ;;  %v2191_v56 = vld [vmem:[#allocation2 + $0x44] sm:$0xff]  ;;  %v2192_v33 = vld [vmem:[#allocation2 + $0x4c] sm:$0xff]  ;;  %v2338_v45 = vld [vmem:[#allocation2 + $0x54] sm:$0xff] }
 0x1c3   : > { %3803 = vmatmul.mubr.msk.bf16.gmra.mrb[116].mxu0 %vm1441_vm2, %v1489_v28  ;;  %3814 = vmatprep.mubr.msk.bf16.mxu1 %vm4203_vm0, %v4202_v1  ;;  %v2197_v24 = vpack.c.bf16 %v2191_v56, %v2190_v12  ;;  %v2047_v28 = vld [vmem:[#allocation2 + $0x53] sm:$0x3f]  ;;  %v2046_v34 = vld [vmem:[#allocation2 + $0x4b] sm:$0xff] }
 0x1c4   : > { %3842 = vmatprep.mubr.msk.bf16.mxu0 %vm4203_vm0, %v4202_v1  ;;  %v2483_v54 = vld [vmem:[#allocation2 + $0x4d] sm:$0xff]  ;;  %v2482_v41 = vld [vmem:[#allocation2 + $0x45] sm:$0xff]  ;;  %v2484_v60 = vld [vmem:[#allocation2 + $0x55] sm:$0xff] }
 0x1c5   : > { %v2629_v9 = vld [vmem:[#allocation2 + $0x4e] sm:$0xff] }
 0x1ca   : > { %3815 = vmatmul.mubr.msk.bf16.vlgmr.msra.gmra.mrb[100].mxu1 %vm1441_vm2, %v1756_v18  ;;  %v2052_v18 = vpack.c.bf16 %v2047_v28, %v2046_v34 }
 0x1cb   : > { %3843 = vmatmul.mubr.msk.bf16.vlgmr.msra.gmra.mrb[120].mxu0 %vm1441_vm2, %v1902_v16  ;;  %3818 = vmatprep.mubr.msk.bf16.mxu1 %vm4203_vm0, %v4202_v1  ;;  %v2198_v16 = vpack.c.bf16 %v2193_v29, %v2192_v33 }
 0x1cc   : > { %3846 = vmatprep.mubr.msk.bf16.mxu0 %vm4203_vm0, %v4202_v1  ;;  %3863 = vmatpush3.bf16.msra.mxu1 %v4118_v36  ;;  %v2477_v36 = vld [vmem:[#allocation2 + $0x1d] sm:$0xff] }
 0x1cd   : > { %3891 = vmatpush3.bf16.msra.mxu0 %v4120_v37  ;;  %3864 = vmatprep.subr.bf16.mxu1 %v4202_v1  ;;  %v2476_v37 = vld [vmem:[#allocation2 + $0x15] sm:$0xff] }
 0x1ce   : > { %3892 = vmatprep.subr.bf16.mxu0 %v4202_v1 }
 0x1d0   : > { %3865 = vmatpush3.bf16.msra.mxu1 %v4119_v38  ;;  %v2340_v38 = vpack.c.bf16 %v2186_v11, %v4860_v0  ;;  %v2623_v0 = vld [vmem:[#allocation2 + $0x1e] sm:$0xff]  ;;  %v2630_v11 = vld [vmem:[#allocation2 + $0x56] sm:$0xff] }
 0x1d1   : > { %3893 = vmatpush3.bf16.msra.mxu0 %v4121_v26  ;;  %3866 = vmatprep.subr.bf16.mxu1 %v4202_v1  ;;  %v2486_v26 = vpack.c.bf16 %v2477_v36, %v2476_v37  ;;  %v2632_v53 = vpack.c.bf16 %v2623_v0, %v2622_v3 }
 0x1d2   : > { %3894 = vmatprep.subr.bf16.mxu0 %v4202_v1  ;;  %3819 = vmatmul.mubr.msk.bf16.gmra.mrb[104].mxu1 %vm1441_vm2, %v1757_v27  ;;  %v2479_v27 = vld [vmem:[#allocation2 + $0x2d] sm:$0xff] }
 0x1d3   : > { %3847 = vmatmul.mubr.msk.bf16.gmra.mrb[124].mxu0 %vm1441_vm2, %v1903_v31  ;;  %3822 = vmatprep.mubr.msk.bf16.mxu1 %vm4203_vm0, %v4202_v1  ;;  %v2478_v31 = vld [vmem:[#allocation2 + $0x25] sm:$0xff] }
 0x1d4   : > { %3850 = vmatprep.mubr.msk.bf16.mxu0 %vm4203_vm0, %v4202_v1  ;;  %3867 = vmatpush3.bf16.msra.mxu1 %v4122_v30  ;;  %v2341_v30 = vpack.c.bf16 %v2188_v6, %v4881_v5  ;;  %v2628_v5 = vld [vmem:[#allocation2 + $0x46] sm:$0xff] }
 0x1d5   : > { %3895 = vmatpush3.bf16.msra.mxu0 %v4123_v43  ;;  %3868 = vmatprep.subr.bf16.mxu1 %v4202_v1  ;;  %v2487_v43 = vpack.c.bf16 %v2479_v27, %v2478_v31  ;;  %v2635_v10 = vpack.c.bf16 %v2629_v9, %v2628_v5 }
 0x1d6   : > { %3896 = vmatprep.subr.bf16.mxu0 %v4202_v1 }
 0x1d8   : > { %3869 = vmatpush3.bf16.msra.mxu1 %v4124_v47  ;;  %v4136_v47 = vld [vmem:[%s5164_s3 + $0x110] sm:$0xff]  }
 0x1d9   : > { %3897 = vmatpush3.bf16.msra.mxu0 %v4125_v32  ;;  %3918 = vmatprep.subr.bf16.mxu1 %v4202_v1  ;;  %v4137_v32 = vld [vmem:[%s5164_s3 + $0x118] sm:$0xff]  }
 0x1da   : > { %3946 = vmatprep.subr.bf16.mxu0 %v4202_v1  ;;  %3823 = vmatmul.mubr.msk.bf16.gmra.mrb[108].mxu1 %vm1441_vm2, %v1758_v50  ;;  %v2342_v50 = vpack.c.bf16 %v2190_v12, %v4906_v20 }
 0x1db   : > { %3851 = vmatmul.mubr.msk.bf16.gmra.mrb[128].mxu0 %vm1441_vm2, %v1904_v52  ;;  %3826 = vmatprep.mubr.msk.bf16.mxu1 %vm4203_vm0, %v4202_v1  ;;  %v2488_v52 = vpack.c.bf16 %v2481_v48, %v2480_v49 }
 0x1dc   : > { %3854 = vmatprep.mubr.msk.bf16.mxu0 %vm4203_vm0, %v4202_v1 }
 0x1e2   : > { %3827 = vmatmul.mubr.msk.bf16.gmra.mrb[112].mxu1 %vm1441_vm2, %v1759_v55  ;;  %v2343_v55 = vpack.c.bf16 %v2192_v33, %v2191_v56 }
 0x1e3   : > { %3855 = vmatmul.mubr.msk.bf16.gmra.mrb[132].mxu0 %vm1441_vm2, %v1905_v40  ;;  %3830 = vmatprep.mubr.msk.bf16.mxu1 %vm4203_vm0, %v4202_v1  ;;  %v2489_v40 = vpack.c.bf16 %v2483_v54, %v2482_v41 }
 0x1e4   : > { %3858 = vmatprep.mubr.msk.bf16.mxu0 %vm4203_vm0, %v4202_v1 }
 0x1ea   : > { %3831 = vmatmul.mubr.msk.bf16.gmra.mrb[116].mxu1 %vm1441_vm2, %v1760_v61  ;;  %v2485_v61 = vld [vmem:[#allocation2 + $0x5d] sm:$0x3f] }
 0x1eb   : > { %3859 = vmatmul.mubr.msk.bf16.gmra.mrb[136].mxu0 %vm1441_vm2, %v1906_v63  ;;  %3870 = vmatprep.mubr.msk.bf16.mxu1 %vm4203_vm0, %v4202_v1  ;;  %v2344_v63 = vpack.c.bf16 %v2339_v59, %v2338_v45  ;;  %v2490_v25 = vpack.c.bf16 %v2485_v61, %v2484_v60 }
 0x1ec   : > { %3898 = vmatprep.mubr.msk.bf16.mxu0 %vm4203_vm0, %v4202_v1 }
 0x1f2   : > { %3871 = vmatmul.mubr.msk.bf16.vlgmr.msra.gmra.mrb[120].mxu1 %vm1441_vm2, %v2048_v4  ;;  %v2625_v4 = vld [vmem:[#allocation2 + $0x2e] sm:$0xff] }
 0x1f3   : > { %3899 = vmatmul.mubr.msk.bf16.vlgmr.msra.gmra.mrb[140].mxu0 %vm1441_vm2, %v2194_v44  ;;  %3874 = vmatprep.mubr.msk.bf16.mxu1 %vm4203_vm0, %v4202_v1  ;;  %v2624_v44 = vld [vmem:[#allocation2 + $0x26] sm:$0xff] }
 0x1f4   : > { %3902 = vmatprep.mubr.msk.bf16.mxu0 %vm4203_vm0, %v4202_v1  ;;  %3919 = vmatpush3.bf16.msra.mxu1 %v4126_v7  ;;  %v2633_v7 = vpack.c.bf16 %v2625_v4, %v2624_v44 }
 0x1f5   : > { %3947 = vmatpush3.bf16.msra.mxu0 %v4128_v46  ;;  %3920 = vmatprep.subr.bf16.mxu1 %v4202_v1  ;;  %v2627_v46 = vld [vmem:[#allocation2 + $0x3e] sm:$0xff] }
 0x1f6   : > { %3948 = vmatprep.subr.bf16.mxu0 %v4202_v1 }
 0x1f8   : > { %3921 = vmatpush3.bf16.msra.mxu1 %v4127_v58  ;;  %v2626_v58 = vld [vmem:[#allocation2 + $0x36] sm:$0xff] }
 0x1f9   : > { %3949 = vmatpush3.bf16.msra.mxu0 %v4129_v8  ;;  %3922 = vmatprep.subr.bf16.mxu1 %v4202_v1  ;;  %v2634_v8 = vpack.c.bf16 %v2627_v46, %v2626_v58 }
 0x1fa   : > { %3950 = vmatprep.subr.bf16.mxu0 %v4202_v1  ;;  %3875 = vmatmul.mubr.msk.bf16.gmra.mrb[124].mxu1 %vm1441_vm2, %v2049_v14  ;;  %v2631_v14 = vld [vmem:[#allocation2 + $0x5e] sm:$0x3f] }
 0x1fb   : > { %3903 = vmatmul.mubr.msk.bf16.gmra.mrb[144].mxu0 %vm1441_vm2, %v2195_v2  ;;  %3878 = vmatprep.mubr.msk.bf16.mxu1 %vm4203_vm0, %v4202_v1  ;;  %v2636_v2 = vpack.c.bf16 %v2631_v14, %v2630_v11 }
 0x1fc   : > { %3906 = vmatprep.mubr.msk.bf16.mxu0 %vm4203_vm0, %v4202_v1  ;;  %3923 = vmatpush3.bf16.msra.mxu1 %v4130_v15 }
 0x1fd   : > { %3951 = vmatpush3.bf16.msra.mxu0 %v4131_v62  ;;  %3924 = vmatprep.subr.bf16.mxu1 %v4202_v1 }
 0x1fe   : > { %3952 = vmatprep.subr.bf16.mxu0 %v4202_v1 }
 0x200   : > { %3925 = vmatpush3.bf16.msra.mxu1 %v4132_v19 }
 0x201   : > { %3953 = vmatpush3.bf16.msra.mxu0 %v4133_v35  ;;  %3974 = vmatprep.subr.bf16.mxu1 %v4202_v1 }
 0x202   : > { %3879 = vmatmul.mubr.msk.bf16.gmra.mrb[128].mxu1 %vm1441_vm2, %v2050_v21 }
 0x203   : > { %3907 = vmatmul.mubr.msk.bf16.gmra.mrb[148].mxu0 %vm1441_vm2, %v2196_v22  ;;  %3882 = vmatprep.mubr.msk.bf16.mxu1 %vm4203_vm0, %v4202_v1 }
 0x204   : > { %3910 = vmatprep.mubr.msk.bf16.mxu0 %vm4203_vm0, %v4202_v1 }
 0x20a   : > { %3883 = vmatmul.mubr.msk.bf16.gmra.mrb[132].mxu1 %vm1441_vm2, %v2051_v13 }
 0x20b   : > { %3911 = vmatmul.mubr.msk.bf16.gmra.mrb[152].mxu0 %vm1441_vm2, %v2197_v24  ;;  %3886 = vmatprep.mubr.msk.bf16.mxu1 %vm4203_vm0, %v4202_v1 }
 0x20c   : > { %3914 = vmatprep.mubr.msk.bf16.mxu0 %vm4203_vm0, %v4202_v1 }
 0x212   : > { %3887 = vmatmul.mubr.msk.bf16.gmra.mrb[136].mxu1 %vm1441_vm2, %v2052_v18 }
 0x213   : > { %3915 = vmatmul.mubr.msk.bf16.gmra.mrb[156].mxu0 %vm1441_vm2, %v2198_v16  ;;  %3926 = vmatprep.mubr.msk.bf16.mxu1 %vm4203_vm0, %v4202_v1 }
 0x214   : > { %3954 = vmatprep.mubr.msk.bf16.mxu0 %vm4203_vm0, %v4202_v1 }
 0x21a   : > { %3927 = vmatmul.mubr.msk.bf16.vlgmr.msra.gmra.mrb[140].mxu1 %vm1441_vm2, %v2340_v38 }
 0x21b   : > { %3955 = vmatmul.mubr.msk.bf16.vlgmr.msra.gmra.mrb[160].mxu0 %vm1441_vm2, %v2486_v26  ;;  %3930 = vmatprep.mubr.msk.bf16.mxu1 %vm4203_vm0, %v4202_v1 }
 0x21c   : > { %3958 = vmatprep.mubr.msk.bf16.mxu0 %vm4203_vm0, %v4202_v1  ;;  %3975 = vmatpush3.bf16.msra.mxu1 %v4134_v42 }
 0x21d   : > { %3976 = vmatprep.subr.bf16.mxu1 %v4202_v1 }
 0x220   : > { %3977 = vmatpush3.bf16.msra.mxu1 %v4135_v39 }
 0x221   : > { %3978 = vmatprep.subr.bf16.mxu1 %v4202_v1 }
 0x222   : > { %3931 = vmatmul.mubr.msk.bf16.gmra.mrb[144].mxu1 %vm1441_vm2, %v2341_v30 }
 0x223   : > { %3959 = vmatmul.mubr.msk.bf16.gmra.mrb[164].mxu0 %vm1441_vm2, %v2487_v43  ;;  %3934 = vmatprep.mubr.msk.bf16.mxu1 %vm4203_vm0, %v4202_v1 }
 0x224   : > { %3962 = vmatprep.mubr.msk.bf16.mxu0 %vm4203_vm0, %v4202_v1  ;;  %3979 = vmatpush3.bf16.msra.mxu1 %v4136_v47 }
 0x225   : > { %3980 = vmatprep.subr.bf16.mxu1 %v4202_v1 }
 0x228   : > { %3981 = vmatpush3.bf16.msra.mxu1 %v4137_v32 }
 0x22a   : > { %3935 = vmatmul.mubr.msk.bf16.gmra.mrb[148].mxu1 %vm1441_vm2, %v2342_v50 }
 0x22b   : > { %3963 = vmatmul.mubr.msk.bf16.gmra.mrb[168].mxu0 %vm1441_vm2, %v2488_v52  ;;  %3938 = vmatprep.mubr.msk.bf16.mxu1 %vm4203_vm0, %v4202_v1 }
 0x22c   : > { %3966 = vmatprep.mubr.msk.bf16.mxu0 %vm4203_vm0, %v4202_v1 }
 0x232   : > { %3939 = vmatmul.mubr.msk.bf16.gmra.mrb[152].mxu1 %vm1441_vm2, %v2343_v55 }
 0x233   : > { %3967 = vmatmul.mubr.msk.bf16.gmra.mrb[172].mxu0 %vm1441_vm2, %v2489_v40  ;;  %3942 = vmatprep.mubr.msk.bf16.mxu1 %vm4203_vm0, %v4202_v1 }
 0x234   : > { %3970 = vmatprep.mubr.msk.bf16.mxu0 %vm4203_vm0, %v4202_v1 }
 0x23a   : > { %3943 = vmatmul.mubr.msk.bf16.gmra.mrb[156].mxu1 %vm1441_vm2, %v2344_v63 }
 0x23b   : > { %3971 = vmatmul.mubr.msk.bf16.gmra.mrb[176].mxu0 %vm1441_vm2, %v2490_v25  ;;  %3982 = vmatprep.mubr.msk.bf16.mxu1 %vm4203_vm0, %v4202_v1 }
 0x242   : > { %3983 = vmatmul.mubr.msk.bf16.vlgmr.msra.gmra.mrb[160].mxu1 %vm1441_vm2, %v2632_v53 }
 0x243   : > { %3986 = vmatprep.mubr.msk.bf16.mxu1 %vm4203_vm0, %v4202_v1 }
 0x24a   : > { %3987 = vmatmul.mubr.msk.bf16.gmra.mrb[164].mxu1 %vm1441_vm2, %v2633_v7 }
 0x24b   : > { %3990 = vmatprep.mubr.msk.bf16.mxu1 %vm4203_vm0, %v4202_v1 }
 0x252   : > { %3991 = vmatmul.mubr.msk.bf16.gmra.mrb[168].mxu1 %vm1441_vm2, %v2634_v8 }
 0x253   : > { %3994 = vmatprep.mubr.msk.bf16.mxu1 %vm4203_vm0, %v4202_v1 }
 0x25a   : > { %3995 = vmatmul.mubr.msk.bf16.gmra.mrb[172].mxu1 %vm1441_vm2, %v2635_v10 }
 0x25b   : > { %3998 = vmatprep.mubr.msk.bf16.mxu1 %vm4203_vm0, %v4202_v1 }
 0x262   : > { %3999 = vmatmul.mubr.msk.bf16.gmra.mrb[176].mxu1 %vm1441_vm2, %v2636_v2 }
 0x274   : > { %v1595_v15 = vpop.f32.mrb[80].mxu1 }
 0x275   : > { %v1707_v62 = vpop.f32.mrb[100].mxu0  ;;  %v3760_v35 = vpop.f32.mrb[81].mxu1 }
 0x276   : > { %v1708_v19 = vadd.f32 %v1707_v62, %v1595_v15  ;;  %v3788_v57 = vpop.f32.mrb[101].mxu0  ;;  %v1598_v6 = vpop.f32.mrb[82].mxu1 }
 0x277   : > { %v1710_v20 = vpop.f32.mrb[102].mxu0  ;;  %v3761_v21 = vpop.f32.mrb[83].mxu1 }
 0x278   : > { %v1711_v17 = vadd.f32 %v1710_v20, %v1598_v6  ;;  %v3789_v22 = vpop.f32.mrb[103].mxu0 }
 0x27d   : > { %v1603_v23 = vpop.f32.mrb[84].mxu1 }
 0x27e   : > { %v1715_v56 = vpop.f32.mrb[104].mxu0  ;;  %v3764_v12 = vpop.f32.mrb[85].mxu1 }
 0x27f   : > { %v1716_v51 = vadd.f32 %v1715_v56, %v1603_v23  ;;  %v3792_v13 = vpop.f32.mrb[105].mxu0  ;;  %v1606_v24 = vpop.f32.mrb[86].mxu1 }
 0x280   : > { %v1718_v28 = vpop.f32.mrb[106].mxu0  ;;  %v3765_v29 = vpop.f32.mrb[87].mxu1 }
 0x281   : > { %v1719_v33 = vadd.f32 %v1718_v28, %v1606_v24  ;;  %v3793_v34 = vpop.f32.mrb[107].mxu0 }
 0x285   : > { %v1611_v18 = vpop.f32.mrb[88].mxu1 }
 0x286   : > { %v1723_v16 = vpop.f32.mrb[108].mxu0  ;;  %v3768_v37 = vpop.f32.mrb[89].mxu1 }
 0x287   : > { %v1724_v36 = vadd.f32 %v1723_v16, %v1611_v18  ;;  %v3796_v38 = vpop.f32.mrb[109].mxu0  ;;  %v1614_v26 = vpop.f32.mrb[90].mxu1 }
 0x288   : > { %v1726_v42 = vpop.f32.mrb[110].mxu0  ;;  %v3769_v27 = vpop.f32.mrb[91].mxu1 }
 0x289   : > { %v1727_v39 = vadd.f32 %v1726_v42, %v1614_v26  ;;  %v3797_v31 = vpop.f32.mrb[111].mxu0 }
 0x28d   : > { %v1619_v30 = vpop.f32.mrb[92].mxu1 }
 0x28e   : > { %v1731_v43 = vpop.f32.mrb[112].mxu0  ;;  %v3772_v32 = vpop.f32.mrb[93].mxu1 }
 0x28f   : > { %v1732_v47 = vadd.f32 %v1731_v43, %v1619_v30  ;;  %v3800_v48 = vpop.f32.mrb[113].mxu0  ;;  %v1622_v49 = vpop.f32.mrb[94].mxu1 }
 0x290   : > { %v1734_v50 = vpop.f32.mrb[114].mxu0  ;;  %v3773_v54 = vpop.f32.mrb[95].mxu1 }
 0x291   : > { %v1735_v52 = vadd.f32 %v1734_v50, %v1622_v49  ;;  %v3801_v41 = vpop.f32.mrb[115].mxu0 }
 0x295   : > { %v1627_v55 = vpop.f32.mrb[96].mxu1 }
 0x296   : > { %v1739_v40 = vpop.f32.mrb[116].mxu0  ;;  %v3776_v45 = vpop.f32.mrb[97].mxu1 }
 0x297   : > { %v1740_v59 = vadd.f32 %v1739_v40, %v1627_v55  ;;  %v3804_v60 = vpop.f32.mrb[117].mxu0  ;;  %v1630_v61 = vpop.f32.mrb[98].mxu1 }
 0x298   : > { %v1742_v63 = vpop.f32.mrb[118].mxu0  ;;  %v3777_v0 = vpop.f32.mrb[99].mxu1 }
 0x299   : > { %v1743_v25 = vadd.f32 %v1742_v63, %v1630_v61  ;;  %v3805_v3 = vpop.f32.mrb[119].mxu0 }
 0x29d   : > { %v1843_v53 = vpop.f32.mrb[100].mxu1 }
 0x29e   : > { %v1989_v4 = vpop.f32.mrb[120].mxu0  ;;  %v1882_v44 = vadd.f32 %v1843_v53, %v1708_v19  ;;  %v3816_v7 = vpop.f32.mrb[101].mxu1 }
 0x29f   : > { %v3844_v46 = vpop.f32.mrb[121].mxu0  ;;  %v1846_v58 = vpop.f32.mrb[102].mxu1 }
 0x2a0   : > { %v1992_v8 = vpop.f32.mrb[122].mxu0  ;;  %v2028_v9 = vadd.f32 %v1989_v4, %v1882_v44  ;;  %v1883_v5 = vadd.f32 %v1846_v58, %v1711_v17  ;;  %v3817_v10 = vpop.f32.mrb[103].mxu1 }
 0x2a1   : > { %v3845_v11 = vpop.f32.mrb[123].mxu0 }
 0x2a2   : > { %v2029_v14 = vadd.f32 %v1992_v8, %v1883_v5  ;;  %v2892_v11 = vlaneseq }
 0x2a5   : > { %v1851_v2 = vpop.f32.mrb[104].mxu1 }
 0x2a6   : > { %v1997_v15 = vpop.f32.mrb[124].mxu0  ;;  %v1884_v62 = vadd.f32 %v1851_v2, %v1716_v51  ;;  %v3820_v35 = vpop.f32.mrb[105].mxu1 }
 0x2a7   : > { %v3848_v57 = vpop.f32.mrb[125].mxu0  ;;  %v1854_v6 = vpop.f32.mrb[106].mxu1 }
 0x2a8   : > { %v2000_v20 = vpop.f32.mrb[126].mxu0  ;;  %v2030_v21 = vadd.f32 %v1997_v15, %v1884_v62  ;;  %v1885_v22 = vadd.f32 %v1854_v6, %v1719_v33  ;;  %v3821_v23 = vpop.f32.mrb[107].mxu1 }
 0x2a9   : > { %v3849_v19 = vpop.f32.mrb[127].mxu0 }
 0x2aa   : > { %v4989_v56 = vadd.f32 %v2000_v20, %v1885_v22 }
 0x2ad   : > { %v1859_v12 = vpop.f32.mrb[108].mxu1 }
 0x2ae   : > { %v2005_v13 = vpop.f32.mrb[128].mxu0  ;;  %v1886_v24 = vadd.f32 %v1859_v12, %v1724_v36  ;;  %v3824_v17 = vpop.f32.mrb[109].mxu1 }
 0x2af   : > { %v3852_v28 = vpop.f32.mrb[129].mxu0  ;;  %v1862_v29 = vpop.f32.mrb[110].mxu1 }
 0x2b0   : > { %v2008_v34 = vpop.f32.mrb[130].mxu0  ;;  %v4991_v18 = vadd.f32 %v2005_v13, %v1886_v24  ;;  %v1887_v51 = vadd.f32 %v1862_v29, %v1727_v39  ;;  %v3825_v16 = vpop.f32.mrb[111].mxu1 }
 0x2b1   : > { %v3853_v37 = vpop.f32.mrb[131].mxu0 }
 0x2b2   : > { %v4993_v38 = vadd.f32 %v2008_v34, %v1887_v51  ;;  %v5010_v51 = vand.u32 127, %v2892_v11 }
 0x2b5   : > { %v1867_v26 = vpop.f32.mrb[112].mxu1 }
 0x2b6   : > { %v2013_v33 = vpop.f32.mrb[132].mxu0  ;;  %v1888_v42 = vadd.f32 %v1867_v26, %v1732_v47  ;;  %v3828_v27 = vpop.f32.mrb[113].mxu1 }
 0x2b7   : > { %v3856_v31 = vpop.f32.mrb[133].mxu0  ;;  %v1870_v30 = vpop.f32.mrb[114].mxu1 }
 0x2b8   : > { %v2016_v43 = vpop.f32.mrb[134].mxu0  ;;  %v4995_v32 = vadd.f32 %v2013_v33, %v1888_v42  ;;  %v1889_v36 = vadd.f32 %v1870_v30, %v1735_v52  ;;  %v3829_v48 = vpop.f32.mrb[115].mxu1 }
 0x2b9   : > { %v3857_v49 = vpop.f32.mrb[135].mxu0 }
 0x2ba   : > { %v4997_v50 = vadd.f32 %v2016_v43, %v1889_v36 }
 0x2bd   : > { %v1875_v54 = vpop.f32.mrb[116].mxu1 }
 0x2be   : > { %v2021_v39 = vpop.f32.mrb[136].mxu0  ;;  %v1890_v41 = vadd.f32 %v1875_v54, %v1740_v59  ;;  %v3832_v55 = vpop.f32.mrb[117].mxu1 }
 0x2bf   : > { %v3860_v40 = vpop.f32.mrb[137].mxu0  ;;  %v1878_v45 = vpop.f32.mrb[118].mxu1 }
 0x2c0   : > { %v2024_v60 = vpop.f32.mrb[138].mxu0  ;;  %v4999_v61 = vadd.f32 %v2021_v39, %v1890_v41  ;;  %v1891_v47 = vadd.f32 %v1878_v45, %v1743_v25  ;;  %v3833_v63 = vpop.f32.mrb[119].mxu1  ;;  %v2893_v25 = vshrl.u32 %v2892_v11, 7 }
 0x2c1   : > { %v3861_v0 = vpop.f32.mrb[139].mxu0 }
 0x2c2   : > { %v5001_v3 = vadd.f32 %v2024_v60, %v1891_v47  ;;  %v2894_v35 = vadd.s32 8, %v2893_v25  ;;  %v2901_v22 = vand.u32 3, %v2893_v25 }
 0x2c4   : > { %v2898_v12 = vshra.s32 %v2894_v35, 2  ;;  %v2902_v13 = vand.u32 3, %v2894_v35  ;;  %v2903_v34 = vmul.u32 2, %v2901_v22 }
 0x2c5   : > { %v2135_v53 = vpop.f32.mrb[120].mxu1 }
 0x2c6   : > { %v2281_v52 = vpop.f32.mrb[140].mxu0  ;;  %v2174_v4 = vadd.f32 %v2135_v53, %v2028_v9  ;;  %v3872_v44 = vpop.f32.mrb[121].mxu1  ;;  %v2897_v9 = vshra.s32 %v2893_v25, 2  ;;  %v2904_v16 = vmul.u32 2, %v2902_v13 }
 0x2c7   : > { %v3900_v7 = vpop.f32.mrb[141].mxu0  ;;  %v2138_v46 = vpop.f32.mrb[122].mxu1 }
 0x2c8   : > { %v2284_v58 = vpop.f32.mrb[142].mxu0  ;;  %v5003_v8 = vadd.f32 %v2281_v52, %v2174_v4  ;;  %v2175_v59 = vadd.f32 %v2138_v46, %v2029_v14  ;;  %v3873_v5 = vpop.f32.mrb[123].mxu1  ;;  %v2899_v29 = vmul.u32 20, %v2897_v9 }
 0x2c9   : > { %v3901_v10 = vpop.f32.mrb[143].mxu0 }
 0x2ca   : > { %v5005_v2 = vadd.f32 %v2284_v58, %v2175_v59  ;;  %v2905_v26 = vadd.s32 %v2903_v34, %v2899_v29 }
 0x2cc   : > { %vm2907_vm10 = vcmp.eq.s32.totalorder %v5010_v51, %v2905_v26 }
 0x2cd   : > { %v2143_v15 = vpop.f32.mrb[124].mxu1  ;;  %v3368_v27 = vsel %vm2907_vm10, 1.0, %v4202_v1 }
 0x2ce   : > { %v2289_v62 = vpop.f32.mrb[144].mxu0  ;;  %v2176_v57 = vadd.f32 %v2143_v15, %v2030_v21  ;;  %v3876_v6 = vpop.f32.mrb[125].mxu1  ;;  %v2900_v21 = vmul.u32 20, %v2898_v12  ;;  %4020 = vmatprep.mubr.msk.f32.mxu0 %vm2913_vm9, %v3368_v27 }
 0x2cf   : > { %v3904_v20 = vpop.f32.mrb[145].mxu0  ;;  %v2146_v23 = vpop.f32.mrb[126].mxu1 }
 0x2d0   : > { %v2292_v19 = vpop.f32.mrb[146].mxu0  ;;  %v5007_v14 = vadd.f32 %v2289_v62, %v2176_v57  ;;  %v2177_v24 = vadd.f32 %v2146_v23, %v4989_v56  ;;  %v3877_v17 = vpop.f32.mrb[127].mxu1  ;;  %v5015_v33 = vadd.s32 %v2904_v16, %v2900_v21 }
 0x2d1   : > { %v3905_v28 = vpop.f32.mrb[147].mxu0 }
 0x2d2   : > { %v5012_v37 = vadd.f32 %v2292_v19, %v2177_v24  ;;  %vm2908_vm11 = vcmp.eq.s32.totalorder %v5010_v51, %v5015_v33 }
 0x2d5   : > { %v2151_v56 = vpop.f32.mrb[128].mxu1 }
 0x2d6   : > { %v2297_v42 = vpop.f32.mrb[148].mxu0  ;;  %v2178_v31 = vadd.f32 %v2151_v56, %v4991_v18  ;;  %v3880_v30 = vpop.f32.mrb[129].mxu1 }
 0x2d7   : > { %v3908_v43 = vpop.f32.mrb[149].mxu0  ;;  %v2154_v36 = vpop.f32.mrb[130].mxu1 }
 0x2d8   : > { %v2300_v48 = vpop.f32.mrb[150].mxu0  ;;  %v2324_v49 = vadd.f32 %v2297_v42, %v2178_v31  ;;  %v2179_v54 = vadd.f32 %v2154_v36, %v4993_v38  ;;  %v3881_v39 = vpop.f32.mrb[131].mxu1 }
 0x2d9   : > { %v3909_v41 = vpop.f32.mrb[151].mxu0 }
 0x2da   : > { %v2325_v55 = vadd.f32 %v2300_v48, %v2179_v54 }
 0x2dd   : > { %v2159_v40 = vpop.f32.mrb[132].mxu1 }
 0x2de   : > { %v2305_v45 = vpop.f32.mrb[152].mxu0  ;;  %v2180_v60 = vadd.f32 %v2159_v40, %v4995_v32  ;;  %v3884_v47 = vpop.f32.mrb[133].mxu1 }
 0x2df   : > { %v3912_v63 = vpop.f32.mrb[153].mxu0  ;;  %v2162_v0 = vpop.f32.mrb[134].mxu1 }
 0x2e0   : > { %v2308_v18 = vpop.f32.mrb[154].mxu0  ;;  %v2326_v53 = vadd.f32 %v2305_v45, %v2180_v60  ;;  %v2181_v52 = vadd.f32 %v2162_v0, %v4997_v50  ;;  %v3885_v4 = vpop.f32.mrb[135].mxu1 }
 0x2e1   : > { %v3913_v44 = vpop.f32.mrb[155].mxu0 }
 0x2e2   : > { %v2327_v7 = vadd.f32 %v2308_v18, %v2181_v52 }
 0x2e5   : > { %v2167_v46 = vpop.f32.mrb[136].mxu1 }
 0x2e6   : > { %v2313_v58 = vpop.f32.mrb[156].mxu0  ;;  %v2182_v38 = vadd.f32 %v2167_v46, %v4999_v61  ;;  %v3888_v59 = vpop.f32.mrb[137].mxu1 }
 0x2e7   : > { %v3916_v5 = vpop.f32.mrb[157].mxu0  ;;  %v2170_v10 = vpop.f32.mrb[138].mxu1 }
 0x2e8   : > { %v2316_v11 = vpop.f32.mrb[158].mxu0  ;;  %v2328_v25 = vadd.f32 %v2313_v58, %v2182_v38  ;;  %v2183_v32 = vadd.f32 %v2170_v10, %v5001_v3  ;;  %v3889_v15 = vpop.f32.mrb[139].mxu1 }
 0x2e9   : > { %v3917_v62 = vpop.f32.mrb[159].mxu0 }
 0x2ea   : > { %v2329_v35 = vadd.f32 %v2316_v11, %v2183_v32 }
 0x2ed   : > { %v2427_v57 = vpop.f32.mrb[140].mxu1 }
 0x2ee   : > { %v2573_v6 = vpop.f32.mrb[160].mxu0  ;;  %v2466_v50 = vadd.f32 %v2427_v57, %v5003_v8  ;;  %v3928_v20 = vpop.f32.mrb[141].mxu1 }
 0x2ef   : > { %v3956_v9 = vpop.f32.mrb[161].mxu0  ;;  %v2430_v22 = vpop.f32.mrb[142].mxu1 }
 0x2f0   : > { %v2576_v23 = vpop.f32.mrb[162].mxu0  ;;  %v2612_v19 = vadd.f32 %v2573_v6, %v2466_v50  ;;  %v2467_v61 = vadd.f32 %v2430_v22, %v5005_v2  ;;  %v3929_v12 = vpop.f32.mrb[143].mxu1 }
 0x2f1   : > { %v3957_v13 = vpop.f32.mrb[163].mxu0 }
 0x2f2   : > { %v2613_v24 = vadd.f32 %v2576_v23, %v2467_v61 }
 0x2f5   : > { %v2435_v17 = vpop.f32.mrb[144].mxu1 }
 0x2f6   : > { %v2581_v28 = vpop.f32.mrb[164].mxu0  ;;  %v2468_v3 = vadd.f32 %v2435_v17, %v5007_v14  ;;  %v3932_v29 = vpop.f32.mrb[145].mxu1 }
 0x2f7   : > { %v3960_v34 = vpop.f32.mrb[165].mxu0  ;;  %v2438_v21 = vpop.f32.mrb[146].mxu1 }
 0x2f8   : > { %v2584_v16 = vpop.f32.mrb[166].mxu0  ;;  %v2614_v26 = vadd.f32 %v2581_v28, %v2468_v3  ;;  %v2469_v8 = vadd.f32 %v2438_v21, %v5012_v37  ;;  %v3933_v56 = vpop.f32.mrb[147].mxu1 }
 0x2f9   : > { %v3961_v42 = vpop.f32.mrb[167].mxu0 }
 0x2fa   : > { %v2615_v27 = vadd.f32 %v2584_v16, %v2469_v8 }
 0x2fd   : > { %v2443_v31 = vpop.f32.mrb[148].mxu1 }
 0x2fe   : > { %v2589_v30 = vpop.f32.mrb[168].mxu0  ;;  %v2470_v2 = vadd.f32 %v2443_v31, %v2324_v49  ;;  %v3936_v43 = vpop.f32.mrb[149].mxu1 }
 0x2ff   : > { %v3964_v36 = vpop.f32.mrb[169].mxu0  ;;  %v2446_v48 = vpop.f32.mrb[150].mxu1 }
 0x300   : > { %v2592_v54 = vpop.f32.mrb[170].mxu0  ;;  %v2616_v39 = vadd.f32 %v2589_v30, %v2470_v2  ;;  %v2471_v41 = vadd.f32 %v2446_v48, %v2325_v55  ;;  %v3937_v14 = vpop.f32.mrb[151].mxu1 }
 0x301   : > { %v3965_v40 = vpop.f32.mrb[171].mxu0 }
 0x302   : > { %v2617_v45 = vadd.f32 %v2592_v54, %v2471_v41 }
 0x305   : > { %v2451_v60 = vpop.f32.mrb[152].mxu1 }
 0x306   : > { %v2597_v47 = vpop.f32.mrb[172].mxu0  ;;  %v2472_v63 = vadd.f32 %v2451_v60, %v2326_v53  ;;  %v3940_v0 = vpop.f32.mrb[153].mxu1 }
 0x307   : > { %v3968_v37 = vpop.f32.mrb[173].mxu0  ;;  %v2454_v18 = vpop.f32.mrb[154].mxu1 }
 0x308   : > { %v2600_v52 = vpop.f32.mrb[174].mxu0  ;;  %v5052_v4 = vadd.f32 %v2597_v47, %v2472_v63  ;;  %v2473_v44 = vadd.f32 %v2454_v18, %v2327_v7  ;;  %v3941_v49 = vpop.f32.mrb[155].mxu1  ;;  %v5063_v7 = vld [vmem:[%s5165_s4] ss:$0 sm:$0xff] }
 0x309   : > { %v3969_v46 = vpop.f32.mrb[175].mxu0 }
 0x30a   : > { %v5054_v58 = vadd.f32 %v2600_v52, %v2473_v44 }
 0x30d   : > { %v2459_v38 = vpop.f32.mrb[156].mxu1 }
 0x30e   : > { %v2605_v59 = vpop.f32.mrb[176].mxu0  ;;  %v2474_v55 = vadd.f32 %v2459_v38, %v2328_v25  ;;  %v3944_v5 = vpop.f32.mrb[157].mxu1 }
 0x30f   : > { %v3972_v10 = vpop.f32.mrb[177].mxu0  ;;  %v2462_v11 = vpop.f32.mrb[158].mxu1 }
 0x310   : > { %v2608_v32 = vpop.f32.mrb[178].mxu0  ;;  %v5056_v15 = vadd.f32 %v2605_v59, %v2474_v55  ;;  %v2475_v53 = vadd.f32 %v2462_v11, %v2329_v35  ;;  %v3945_v62 = vpop.f32.mrb[159].mxu1 }
 0x311   : > { %v3973_v57 = vpop.f32.mrb[179].mxu0 }
 0x312   : > { %v5058_v6 = vadd.f32 %v2608_v32, %v2475_v53 }
 0x315   : > { %v2719_v50 = vpop.f32.mrb[160].mxu1 }
 0x316   : > { %v2758_v20 = vadd.f32 %v2719_v50, %v2612_v19  ;;  %v3984_v9 = vpop.f32.mrb[161].mxu1 }
 0x317   : > { %v2722_v25 = vpop.f32.mrb[162].mxu1 }
 0x318   : > { %v2775_v22 = vadd.f32 %v5063_v7, %v2758_v20  ;;  %v2759_v23 = vadd.f32 %v2722_v25, %v2613_v24  ;;  %v3985_v61 = vpop.f32.mrb[163].mxu1 }
 0x31a   : > { %v2785_v12 = vmax.f32 %v2775_v22, 0.0  ;;  %v2776_v35 = vadd.f32 %v5063_v7, %v2759_v23 }
 0x31c   : > { %v2786_v13 = vmax.f32 %v2776_v35, 0.0  ;;  %v2805_v28 = vrot.slane %v2785_v12, 1 }
 0x31d   : > { %v2727_v17 = vpop.f32.mrb[164].mxu1 }
 0x31e   : > { %v2806_v3 = vrot.slane %v2786_v13, 1  ;;  %v2760_v29 = vadd.f32 %v2727_v17, %v2614_v26  ;;  %v3988_v34 = vpop.f32.mrb[165].mxu1 }
 0x31f   : > { %v2730_v21 = vpop.f32.mrb[166].mxu1 }
 0x320   : > { %v2777_v16 = vadd.f32 %v5063_v7, %v2760_v29  ;;  %v2761_v19 = vadd.f32 %v2730_v21, %v2615_v27  ;;  %v3989_v8 = vpop.f32.mrb[167].mxu1  ;;  %v2807_v56 = vsel %vm2804_vm12, %v2805_v28, %v2806_v3 }
 0x321   : > { %v2831_v42 = vmax.f32 %v2785_v12, %v2807_v56 }
 0x322   : > { %v2787_v24 = vmax.f32 %v2777_v16, 0.0  ;;  %v2778_v31 = vadd.f32 %v5063_v7, %v2761_v19 }
 0x324   : > { %v2808_v30 = vrot.slane %v2787_v24, 1  ;;  %v2788_v2 = vmax.f32 %v2778_v31, 0.0 }
 0x325   : > { %v2735_v43 = vpop.f32.mrb[168].mxu1 }
 0x326   : > { %v2810_v36 = vrot.slane %v2788_v2, 1  ;;  %v2762_v48 = vadd.f32 %v2735_v43, %v2616_v39  ;;  %v3992_v54 = vpop.f32.mrb[169].mxu1  ;;  %v2809_v26 = vsel %vm2804_vm12, %v2806_v3, %v2808_v30 }
 0x327   : > { %v2738_v41 = vpop.f32.mrb[170].mxu1  ;;  %v2832_v14 = vmax.f32 %v2786_v13, %v2809_v26 }
 0x328   : > { %v2811_v40 = vsel %vm2804_vm12, %v2808_v30, %v2810_v36  ;;  %v2779_v27 = vadd.f32 %v5063_v7, %v2762_v48  ;;  %v2763_v60 = vadd.f32 %v2738_v41, %v2617_v45  ;;  %v3993_v47 = vpop.f32.mrb[171].mxu1 }
 0x329   : > { %v2833_v63 = vmax.f32 %v2787_v24, %v2811_v40  ;;  %v2857_v18 = vrot.slane %v2832_v14, 2 }
 0x32a   : > { %v2789_v0 = vmax.f32 %v2779_v27, 0.0  ;;  %v2780_v37 = vadd.f32 %v5063_v7, %v2763_v60 }
 0x32b   : > { %v2858_v52 = vrot.slane %v2833_v63, 2 }
 0x32c   : > { %v2812_v44 = vrot.slane %v2789_v0, 1  ;;  %v2790_v39 = vmax.f32 %v2780_v37, 0.0 }
 0x32d   : > { %v2743_v49 = vpop.f32.mrb[172].mxu1  ;;  %v2859_v46 = vsel %vm2856_vm13, %v2857_v18, %v2858_v52 }
 0x32e   : > { %v2813_v38 = vsel %vm2804_vm12, %v2810_v36, %v2812_v44  ;;  %v2814_v59 = vrot.slane %v2790_v39, 1  ;;  %v2764_v55 = vadd.f32 %v2743_v49, %v5052_v4  ;;  %v3996_v5 = vpop.f32.mrb[173].mxu1  ;;  %v2883_v45 = vmax.f32 %v2831_v42, %v2859_v46 }
 0x32f   : > { %v2834_v10 = vmax.f32 %v2788_v2, %v2813_v38  ;;  %v2746_v11 = vpop.f32.mrb[174].mxu1 }
 0x330   : > { %v2815_v32 = vsel %vm2804_vm12, %v2812_v44, %v2814_v59  ;;  %v2781_v53 = vadd.f32 %v5063_v7, %v2764_v55  ;;  %v2765_v62 = vadd.f32 %v2746_v11, %v5054_v58  ;;  %v3997_v57 = vpop.f32.mrb[175].mxu1 }
 0x331   : > { %v2835_v50 = vmax.f32 %v2789_v0, %v2815_v32  ;;  %v2860_v20 = vrot.slane %v2834_v10, 2 }
 0x332   : > { %v2791_v9 = vmax.f32 %v2781_v53, 0.0  ;;  %v2782_v25 = vadd.f32 %v5063_v7, %v2765_v62 }
 0x333   : > { %v2861_v22 = vsel %vm2856_vm13, %v2858_v52, %v2860_v20  ;;  %v2862_v23 = vrot.slane %v2835_v50, 2 }
 0x334   : > { %v2816_v4 = vrot.slane %v2791_v9, 1  ;;  %v2792_v61 = vmax.f32 %v2782_v25, 0.0  ;;  %v2884_v12 = vmax.f32 %v2832_v14, %v2861_v22 }
 0x335   : > { %v2751_v35 = vpop.f32.mrb[176].mxu1  ;;  %v2863_v13 = vsel %vm2856_vm13, %v2860_v20, %v2862_v23 }
 0x336   : > { %v2817_v17 = vsel %vm2804_vm12, %v2814_v59, %v2816_v4  ;;  %v2818_v28 = vrot.slane %v2792_v61, 1  ;;  %v2766_v58 = vadd.f32 %v2751_v35, %v5056_v15  ;;  %v4000_v3 = vpop.f32.mrb[177].mxu1  ;;  %v4023_v29 = vpack.c.bf16 %v2884_v12, %v2883_v45 }
 0x337   : > { %v2836_v34 = vmax.f32 %v2790_v39, %v2817_v17  ;;  %v2754_v21 = vpop.f32.mrb[178].mxu1  ;;  %v2885_v16 = vmax.f32 %v2833_v63, %v2863_v13  ;;  %v3369_v45 = vsel %vm2908_vm11, 1.0, %v4202_v1 }
 0x338   : > { %v2819_v19 = vsel %vm2804_vm12, %v2816_v4, %v2818_v28  ;;  %v2783_v8 = vadd.f32 %v5063_v7, %v2766_v58  ;;  %v2767_v56 = vadd.f32 %v2754_v21, %v5058_v6  ;;  %v4001_v42 = vpop.f32.mrb[179].mxu1  ;;  %4024 = vmatprep.subr.bf16.mxu0 %v4023_v29 }
 0x339   : > { %v2837_v24 = vmax.f32 %v2791_v9, %v2819_v19  ;;  %4026 = vmatpush3.bf16.msra.mxu0 %v4023_v29  ;;  %v2864_v31 = vrot.slane %v2836_v34, 2 }
 0x33a   : > { %v2793_v30 = vmax.f32 %v2783_v8, 0.0  ;;  %v2784_v2 = vadd.f32 %v5063_v7, %v2767_v56 }
 0x33b   : > { %v2865_v15 = vsel %vm2856_vm13, %v2862_v23, %v2864_v31  ;;  %v2866_v43 = vrot.slane %v2837_v24, 2 }
 0x33c   : > { %v2820_v36 = vrot.slane %v2793_v30, 1  ;;  %v2794_v48 = vmax.f32 %v2784_v2, 0.0  ;;  %v2886_v54 = vmax.f32 %v2834_v10, %v2865_v15 }
 0x33d   : > { %v2867_v26 = vsel %vm2856_vm13, %v2864_v31, %v2866_v43 }
 0x33e   : > { %v2821_v41 = vsel %vm2804_vm12, %v2818_v28, %v2820_v36  ;;  %v2841_v14 = vrot.slane %v2794_v48, 1  ;;  %v4027_v6 = vpack.c.bf16 %v2886_v54, %v2885_v16  ;;  %v2887_v27 = vmax.f32 %v2835_v50, %v2867_v26 }
 0x33f   : > { %v2838_v40 = vmax.f32 %v2792_v61, %v2821_v41  ;;  %v2839_v0 = vmax.f32 %v2793_v30, %v2820_v36 }
 0x340   : > { %v2842_v60 = vsel %vm2804_vm12, %v2820_v36, %v2841_v14  ;;  %v2846_v47 = vmax.f32 %v2794_v48, %v2841_v14  ;;  %4028 = vmatprep.subr.bf16.mxu0 %v4027_v6 }
 0x341   : > { %v2845_v63 = vmax.f32 %v2793_v30, %v2842_v60  ;;  %4030 = vmatpush3.bf16.msra.mxu0 %v4027_v6  ;;  %v2868_v7 = vrot.slane %v2838_v40, 2 }
 0x342   : > { %v2872_v37 = vrot.slane %v2846_v47, 2 }
 0x343   : > { %v2870_v18 = vrot.slane %v2845_v63, 2  ;;  %v2869_v52 = vsel %vm2856_vm13, %v2866_v43, %v2868_v7 }
 0x344   : > { %v2888_v44 = vmax.f32 %v2836_v34, %v2869_v52  ;;  %v2891_v39 = vmax.f32 %v2839_v0, %v2872_v37 }
 0x345   : > { %v2871_v49 = vsel %vm2856_vm13, %v2868_v7, %v2870_v18  ;;  %v2873_v46 = vsel %vm2856_vm13, %v2870_v18, %v2872_v37 }
 0x346   : > { %v4031_v38 = vpack.c.bf16 %v2888_v44, %v2887_v27  ;;  %v2889_v59 = vmax.f32 %v2837_v24, %v2871_v49  ;;  %v2890_v55 = vmax.f32 %v2838_v40, %v2873_v46 }
 0x348   : > { %4032 = vmatprep.subr.bf16.mxu0 %v4031_v38  ;;  %v4035_v5 = vpack.c.bf16 %v2890_v55, %v2889_v59 }
 0x349   : > { %4034 = vmatpush3.bf16.msra.mxu0 %v4031_v38 }
 0x34a   : > { %4036 = vmatprep.subr.bf16.mxu0 %v4035_v5 }
 0x34d   : > { %4038 = vmatpush3.bf16.msra.mxu0 %v4035_v5 }
 0x34e   : > { %4018 = vmatprep.subr.msk.mxu0 %vm2920_vm14, %v2891_v39 }
 0x351   : > { %4019 = vmatpush3.msk.msra.mxu0 %vm2920_vm14, %v2891_v39 }
 0x352   : > { %4021 = vmatmul.mubr.msk.f32.vlgmr.msra.gmra.mrb[180].mxu0 %vm2913_vm9, %v3369_v45 }
 0x425   : > { %v4022_v1 = vpop.f32.mrb[180].mxu0 }
 0x426   : > { %3000 = vst.msk [vmem:[%s245_s20 + $0x8] sm:$0xff] %vm1441_vm2, %v4022_v1  ;;  %v2990_v51 = vpop.f32.mrb[181].mxu0 }
 0x427   : > { %3008 = vst.msk [vmem:[%s5021_s15 + $0x13] sm:$0xf] %vm1454_vm3, %v4022_v1  ;;  %3006 = vst.msk [vmem:[%s5021_s15 + $0x7] sm:$0xf] %vm1454_vm3, %v2990_v51 }
 0x428   : > { %3009 = vst.msk [vmem:[%s5021_s15 + $0x15] sm:$0xf0] %vm1461_vm6, %v4022_v1  ;;  %3007 = vst.msk [vmem:[%s5021_s15 + $0x9] sm:$0xf0] %vm1461_vm6, %v2990_v51 }
 0x429   : > { %2999 = vst.msk [vmem:[%s245_s20] sm:$0xff] %vm1441_vm2, %v2990_v51 }
 0x42a   : > { %4151 = shalt.err (!%p4148_p3)
}
 0x42b   : > { %s4152_s15 = scalar_lea.hbm %s5108_s10, 256  ;;  %s4156_s18 = scalar_lea.hbm %s5166_s5, 512 }
 0x42c   : > { %p4153_p4 = scmp.ne.s32.totalorder %s5108_s10, %s4152_s15  ;;  %p4157_p9 = scmp.lt.u32.totalorder %s5108_s10, %s5166_s5 }
 0x42d   : > { %p4158_p10 = scmp.lt.u32.totalorder %s4156_s18, %s4152_s15  ;;  %p4160_p12 = scmp.lt.u32.totalorder %s4152_s15, %s5108_s10 }
 0x42e   : > { %p4154_p7 = pnand %p4153_p4, %p4280_p5 }
 0x42f   : > { %p4159_p11 = por %p4158_p10, %p4157_p9 }
 0x430   : > { %p4155_p8 = pneg %p4154_p7 }
 0x431   : > { %p4161_p13 = por %p4160_p12, %p4159_p11 }
 0x433   : > { %p4162_p0 = pnand %p4161_p13, %p4155_p8 }
 0x435   : > { %4165 = shalt.err (!%p4162_p0)
}
 0x436   : > { %s4205_s29 = smov 128   ;;  %s4206_s26 = smov 8  }
 0x437   : > { %4041 = dma.vmem_to_hbm [thread:$0]  (%p4280_p5), %s5103_s28, 256, %s5108_s10, %s5120_s25, %s4205_s29, %s4205_s29, %s4206_s26  }
 0x438 PF: > { %p4047_p1 = scmp.ge.s32.totalorder %s4200_s24, 2  ;;  %s3047_s9 = sand.u32 1, %s4188_s21  }
 0x439   : > { %s3048_s11 = scalar_lea.sflag [#allocation4], %s3047_s9 }
 0x43a   : > { %p4044_p2 = pnand %p4047_p1, %p4284_p6 }
 0x43c   : > { %4183 = dma.done.wait (!%p4044_p2), %s3048_s11, 256  }
 0x43d   : > { %4185 = vsyncadd (!%p4044_p2), %s3048_s11, 4294967040  ;;  %p17_p3 = scmp.ge.s32.totalorder %s4267_s27, 4   ;;  %s5170_s21 = smov %s4192_s22 }
 0x43e   : > { %s5171_s22 = smov %s4196_s23  ;;  %s5172_s23 = smov %s4278_s30 }
 0x43f   : > { %s5173_s24 = smov %s4267_s27  ;;  %19 = sbr.rel (!%p17_p3) target bundleno = 3 (0x3), region = 103 }
 0x446   :  { %3061 = vsyncpa [#allocation4], 1 }
 0x447   :  { %3063 = vsyncpa [#allocation4 + $0x1], 1 }

// kernel: mystyle_cnn_forward.5
= control target key start
LH: loop header
LB: loop body
LE: loop exit
PB: predicated region body
PF: predicated region fallthrough
CT: control target
= control target key end

     0   :  { %14 = vsyncpa [#allocation4], 0  ;;  %s4378_s0 = inlined_call_operand.vmem [shape: f32[2,36,64], index: 0, kind: input, shape index: {}]   ;;  %s4379_s1 = inlined_call_operand.vmem [shape: bf16[9,64,128], index: 1, kind: input, shape index: {}]   ;;  %s4380_s2 = inlined_call_operand.vmem [shape: f32[1,128], index: 2, kind: input, shape index: {}]   ;;  %s4381_s3 = inlined_call_operand.vmem [shape: bf16[9,128,128], index: 3, kind: input, shape index: {}]   ;;  %s4382_s4 = inlined_call_operand.vmem [shape: f32[1,128], index: 4, kind: input, shape index: {}]   ;;  %s4383_s5 = inlined_call_operand.vmem [shape: f32[128,10], index: 5, kind: input, shape index: {}]   ;;  %s4384_s6 = inlined_call_operand.vmem [shape: f32[1,10], index: 6, kind: input, shape index: {}]   ;;  %s4385_s7 = inlined_call_operand.hbm [shape: f32[2,4,128], index: 7, kind: output, shape index: {0}]   ;;  %s4386_s8 = inlined_call_operand.hbm [shape: f32[2,1,10], index: 8, kind: output, shape index: {1}]  }
   0x1   :  { %16 = vsyncpa [#allocation4 + $0x1], 0 }
   0x2   :  { %17 = vsyncpa [#allocation6], 0 }
   0x3   :  { %19 = vsyncpa [#allocation6 + $0x1], 0  ;;  %s3779_s27 = smov 0   ;;  %s3781_s28 = smov 0  }
   0x4   :  { %s3783_s29 = smov 0   ;;  %s3785_s30 = smov 0  }
   0x5 LB: > { %s3800_s9 = sadd.s32 4294967295, %s3726_s30   ;;  %s2619_s10 = sadd.s32 4294967294, %s3726_s30   ;;  %s3726_s30 = sphi %s3785_s30, %s4392_s30   ;;  %s3722_s29 = sphi %s3783_s29, %s4391_s29   ;;  %s3718_s28 = sphi %s3781_s28, %s4390_s28   ;;  %s3714_s27 = sphi %s3779_s27, %s4389_s27  }
   0x6   : > { %s3804_s11 = sadd.s32 1, %s3726_s30   ;;  %s184_s12 = sadd.s32 1, %s3722_s29 }
   0x7   : > { %s181_s13 = ssub.s32 %s3726_s30, %s3804_s11  ;;  %p194_p0 = scmp.ne.s32.totalorder %s3722_s29, %s3718_s28 }
   0x8   : > { %p182_p1 = scmp.eq.s32.totalorder %s181_s13, 0  ;;  %p195_p2 = scmp.eq.s32.totalorder %s3800_s9, 1 }
   0x9   : > { %p200_p3 = scmp.ne.s32.totalorder %s3718_s28, %s3714_s27  ;;  %p201_p4 = scmp.eq.s32.totalorder %s2619_s10, 1 }
   0xa   : > { %s3815_s14 = scalar_select %p182_p1, %s3722_s29, %s184_s12  }
   0xb   : > { %p3817_p5 = por %p195_p2, %p194_p0  ;;  %p3821_p6 = por %p201_p4, %p200_p3 }
   0xc   : > { %p2622_p7 = scmp.ge.s32.totalorder %s3726_s30, 1  ;;  %p271_p8 = scmp.lt.s32.totalorder %s3726_s30, 3 }
   0xe   : > { %p272_p9 = pnand %p2622_p7, %p271_p8 }
   0xf   : > { %v3524_v0 = vld [vmem:[%s4379_s1 + $0x20] sm:$0xff] (!%p272_p9)   ;;  %p309_p10 = scmp.lt.s32.totalorder (!%p272_p9), %s3800_s9, 1  ;;  %v3526_v2 = vld [vmem:[%s4379_s1 + $0x28] sm:$0xff] (!%p272_p9)   ;;  %v3528_v4 = vld [vmem:[%s4379_s1 + $0x30] sm:$0xff] (!%p272_p9)   ;;  %vm366_vm0 = vcmask (!%p272_p9), 523264   ;;  %vm3730_vm1 = vmmov (!%p272_p9), 0  }
  0x10   : > { %275 = sbr.rel (%p272_p9) target bundleno = 1147 (0x47b), region = 48  ;;  %v3525_v1 = vld [vmem:[%s4379_s1] sm:$0xff] (!%p272_p9)   ;;  %3117 = vmatprep.subr.bf16.mxu0 (!%p272_p9), %v3524_v0  ;;  %v3527_v3 = vld [vmem:[%s4379_s1 + $0x8] sm:$0xff] (!%p272_p9)   ;;  %v3529_v5 = vld [vmem:[%s4379_s1 + $0x10] sm:$0xff] (!%p272_p9)   ;;  %vm2284_vm2 = vcmask (!%p272_p9), 1046528   ;;  %vm2302_vm3 = vcmask (!%p272_p9), 1041408  }
  0x11   : > { %3129 = vmatprep.subr.bf16.mxu1 (!%p272_p9), %v3525_v1  ;;  %3118 = vmatpush3.bf16.msra.mxu0 (!%p272_p9), %v3524_v0  ;;  %v3530_v6 = vld [vmem:[%s4379_s1 + $0x38] sm:$0xff] (!%p272_p9)   ;;  %v3532_v16 = vld [vmem:[%s4379_s1 + $0x40] sm:$0xff] (!%p272_p9)   ;;  %v3534_v20 = vld [vmem:[%s4379_s1 + $0x48] sm:$0xff] (!%p272_p9)   ;;  %vm3731_vm4 = vmmov (!%p272_p9), 1   ;;  %vm2324_vm7 = vcmask (!%p272_p9), 121856   ;;  %s4300_s18 = sand.u32 (!%p272_p9), 1, %s3718_s28  }
  0x12   : > { %3130 = vmatpush3.bf16.msra.mxu1 (!%p272_p9), %v3525_v1  ;;  %3119 = vmatprep.subr.bf16.mxu0 (!%p272_p9), %v3526_v2  ;;  %v3531_v10 = vld [vmem:[%s4379_s1 + $0x18] sm:$0xff] (!%p272_p9)   ;;  %v3533_v17 = vld [vmem:[%s4379_s1 + $0x60] sm:$0xff] (!%p272_p9)   ;;  %v3535_v21 = vld [vmem:[%s4379_s1 + $0x68] sm:$0xff] (!%p272_p9)   ;;  %s2623_s19 = sshll.u32 (!%p272_p9), %s4300_s18, 2  ;;  %vm2402_vm8 = vcmask (!%p272_p9), 1043456   ;;  %s2949_s22 = sshll.u32 (!%p272_p9), %s3800_s9, 6 }
  0x13   : > { %3131 = vmatprep.subr.bf16.mxu1 (!%p272_p9), %v3527_v3  ;;  %v3536_v25 = vld [vmem:[%s4379_s1 + $0x50] sm:$0xff] (!%p272_p9)   ;;  %v3538_v30 = vld [vmem:[%s4379_s1 + $0x58] sm:$0xff] (!%p272_p9)   ;;  %v3540_v33 = vld [vmem:[%s4379_s1 + $0x80] sm:$0xff] (!%p272_p9)   ;;  %s302_s21 = scalar_lea.vmem (!%p272_p9), [#allocation3], %s2623_s19  ;;  %s4307_s25 = scalar_lea.hbm (!%p272_p9), %s4385_s7, %s2949_s22 }
  0x14   : > { %v3537_v28 = vld [vmem:[%s4379_s1 + $0x70] sm:$0xff] (!%p272_p9)   ;;  %v3539_v31 = vld [vmem:[%s4379_s1 + $0x78] sm:$0xff] (!%p272_p9)   ;;  %v3541_v35 = vld [vmem:[%s4379_s1 + $0xa0] sm:$0xff] (!%p272_p9)   ;;  %s2502_s26 = scalar_lea.sflag (!%p272_p9), [#allocation4], %s4300_s18 }
  0x15   : > { %3120 = vmatpush3.bf16.msra.mxu0 (!%p272_p9), %v3526_v2  ;;  %v3542_v41 = vld [vmem:[%s4379_s1 + $0x88] sm:$0xff] (!%p272_p9)   ;;  %v3544_v45 = vld [vmem:[%s4379_s1 + $0x90] sm:$0xff] (!%p272_p9)   ;;  %v3546_v47 = vld [vmem:[%s4379_s1 + $0x98] sm:$0xff] (!%p272_p9)  }
  0x16   : > { %3132 = vmatpush3.bf16.msra.mxu1 (!%p272_p9), %v3527_v3  ;;  %3121 = vmatprep.subr.bf16.mxu0 (!%p272_p9), %v3528_v4  ;;  %v3543_v42 = vld [vmem:[%s4379_s1 + $0xa8] sm:$0xff] (!%p272_p9)   ;;  %v3545_v46 = vld [vmem:[%s4379_s1 + $0xb0] sm:$0xff] (!%p272_p9)   ;;  %v3547_v48 = vld [vmem:[%s4379_s1 + $0xb8] sm:$0xff] (!%p272_p9)  }
  0x17   : > { %s310_s23 = scalar_select %p309_p10, %s3800_s9, 1  ;;  %3133 = vmatprep.subr.bf16.mxu1 %v3529_v5  ;;  %v3548_v50 = vld [vmem:[%s4379_s1 + $0xc0] sm:$0xff]   ;;  %v3550_v58 = vld [vmem:[%s4379_s1 + $0xc8] sm:$0xff]   ;;  %v3552_v62 = vld [vmem:[%s4379_s1 + $0xd0] sm:$0xff]  }
  0x18   : > { %v3549_v52 = vld [vmem:[%s4379_s1 + $0xe0] sm:$0xff]   ;;  %v3551_v60 = vld [vmem:[%s4379_s1 + $0xe8] sm:$0xff]   ;;  %v3553_v0 = vld [vmem:[%s4379_s1 + $0xf0] sm:$0xff]  }
  0x19   : > { %s3475_s12 = smul.u32 40, %s310_s23  ;;  %3122 = vmatpush3.bf16.msra.mxu0 %v3528_v4  ;;  %v3554_v1 = vld [vmem:[%s4379_s1 + $0xd8] sm:$0xff]   ;;  %v3556_v4 = vld [vmem:[%s4379_s1 + $0x100] sm:$0xff]   ;;  %vm3449_vm5 = vmpackc.low %vm2284_vm2, %vm3731_vm4 }
  0x1a   : > { %3134 = vmatpush3.bf16.msra.mxu1 %v3529_v5  ;;  %3123 = vmatprep.subr.bf16.mxu0 %v3530_v6  ;;  %v3555_v2 = vld [vmem:[%s4379_s1 + $0xf8] sm:$0xff]  }
  0x1b   : > { %s3850_s20 = scalar_lea.vmem %s4378_s0, %s3475_s12  ;;  %3135 = vmatprep.subr.bf16.mxu1 %v3531_v10  ;;  %s3732_s12 = smov [#allocation3]  }
  0x1c   : > { %v328_v7 = vld [vmem:[%s3850_s20 + $0x1] sm:$0xff]  ;;  %v329_v8 = vld [vmem:[%s3850_s20 + $0x9] sm:$0xff]  ;;  %v330_v14 = vld [vmem:[%s3850_s20 + $0x11] sm:$0x3f]  ;;  %s3636_s13 = sshll.u32 %s3732_s12, 4  ;;  %s3637_s13 = int_to_ptr.vmem [resolvable:$false] %s3636_s13 }
  0x1d   : > { %v315_v9 = vld [vmem:[%s3850_s20] sm:$0xff]  ;;  %v331_v11 = vpack.c.bf16 %v329_v8, %v328_v7  ;;  %v3862_v12 = vld [vmem:[%s3850_s20 + $0x8] sm:$0xff]  ;;  %v317_v15 = vld [vmem:[%s3850_s20 + $0x10] sm:$0x3f]  ;;  %v332_v18 = vpack.c.bf16 %v330_v14, %v330_v14  ;;  %3124 = vmatpush3.bf16.msra.mxu0 %v3530_v6  ;;  %s3638_s17 = scalar_lea.vmem %s3637_s13, 128 }
  0x1e   : > { %v318_v13 = vpack.c.bf16 %v3862_v12, %v315_v9  ;;  %v319_v19 = vpack.c.bf16 %v317_v15, %v317_v15  ;;  %3136 = vmatpush3.bf16.msra.mxu1 %v3531_v10  ;;  %3141 = vmatprep.subr.bf16.mxu0 %v3532_v16  ;;  %v499_v22 = vld [vmem:[%s3850_s20 + $0x2] sm:$0xff]  ;;  %v500_v23 = vld [vmem:[%s3850_s20 + $0xa] sm:$0xff]  ;;  %v501_v32 = vld [vmem:[%s3850_s20 + $0x12] sm:$0x3f] }
  0x1f   : > { %3125 = vmatprep.mubr.msk.bf16.mxu0 %vm366_vm0, %v331_v11  ;;  %3153 = vmatprep.subr.bf16.mxu1 %v3533_v17  ;;  %v502_v24 = vpack.c.bf16 %v500_v23, %v499_v22  ;;  %v594_v26 = vld [vmem:[%s3850_s20 + $0x6] sm:$0xff]  ;;  %v3890_v27 = vld [vmem:[%s3850_s20 + $0xe] sm:$0xff]  ;;  %v596_v34 = vld [vmem:[%s3850_s20 + $0x16] sm:$0x3f]  ;;  %v503_v36 = vpack.c.bf16 %v501_v32, %v501_v32 }
  0x20   : > { %3137 = vmatprep.mubr.msk.bf16.mxu1 %vm366_vm0, %v318_v13  ;;  %3126 = vmatmul.mubr.msk.bf16.vlgmr.msra.gmra.mrb[0].mxu0 %vm366_vm0, %v332_v18  ;;  %v597_v29 = vpack.c.bf16 %v3890_v27, %v594_v26  ;;  %v689_v37 = vld [vmem:[%s3850_s20 + $0x7] sm:$0xff]  ;;  %v690_v38 = vld [vmem:[%s3850_s20 + $0xf] sm:$0xff]  ;;  %v598_v39 = vpack.c.bf16 %v596_v34, %v596_v34  ;;  %v691_v49 = vld [vmem:[%s3850_s20 + $0x17] sm:$0x3f] }
  0x21   : > { %3138 = vmatmul.mubr.msk.bf16.vlgmr.msra.gmra.mrb[0].mxu1 %vm366_vm0, %v319_v19  ;;  %3142 = vmatpush3.bf16.msra.mxu0 %v3532_v16  ;;  %v785_v40 = vld [vmem:[%s3850_s20 + $0x10] sm:$0xff]  ;;  %v692_v43 = vpack.c.bf16 %v690_v38, %v689_v37  ;;  %v786_v51 = vld [vmem:[%s3850_s20 + $0x18] sm:$0x3f]  ;;  %v693_v57 = vpack.c.bf16 %v691_v49, %v691_v49  ;;  %v3557_v8 = vld [vmem:[%s4379_s1 + $0x108] sm:$0xff]  }
  0x22   : > { %3154 = vmatpush3.bf16.msra.mxu1 %v3533_v17  ;;  %3143 = vmatprep.subr.bf16.mxu0 %v3534_v20  ;;  %v787_v44 = vpack.c.bf16 %v785_v40, %v3862_v12  ;;  %v879_v53 = vld [vmem:[%s3850_s20 + $0xc] sm:$0xff]  ;;  %v880_v54 = vld [vmem:[%s3850_s20 + $0x14] sm:$0xff]  ;;  %v788_v59 = vpack.c.bf16 %v786_v51, %v786_v51  ;;  %v881_v3 = vld [vmem:[%s3850_s20 + $0x1c] sm:$0x3f] }
  0x23   : > { %3155 = vmatprep.subr.bf16.mxu1 %v3535_v21  ;;  %3149 = vmatprep.mubr.msk.bf16.mxu0 %vm366_vm0, %v502_v24  ;;  %v974_v55 = vld [vmem:[%s3850_s20 + $0xd] sm:$0xff]  ;;  %v975_v56 = vld [vmem:[%s3850_s20 + $0x15] sm:$0xff]  ;;  %v882_v61 = vpack.c.bf16 %v880_v54, %v879_v53  ;;  %v976_v5 = vld [vmem:[%s3850_s20 + $0x1d] sm:$0x3f]  ;;  %v883_v7 = vpack.c.bf16 %v881_v3, %v881_v3 }
  0x24   : > { %3161 = vmatprep.mubr.msk.bf16.mxu1 %vm366_vm0, %v597_v29  ;;  %v977_v63 = vpack.c.bf16 %v975_v56, %v974_v55  ;;  %v1070_v6 = vld [vmem:[%s3850_s20 + $0x16] sm:$0xff]  ;;  %v978_v9 = vpack.c.bf16 %v976_v5, %v976_v5  ;;  %v1071_v13 = vld [vmem:[%s3850_s20 + $0x1e] sm:$0x3f]  ;;  %v3562_v17 = vld [vmem:[%s4381_s3 + $0x48] sm:$0xff]   ;;  %s2519_s20 = sshll.u32 %s302_s21, 4  ;;  %s2520_s20 = int_to_ptr.vmem [resolvable:$true] %s2519_s20 }
  0x25   : > { %3144 = vmatpush3.bf16.msra.mxu0 %v3534_v20  ;;  %v1072_v10 = vpack.c.bf16 %v1070_v6, %v3890_v27  ;;  %v3558_v11 = vld [vmem:[%s4379_s1 + $0x110] sm:$0xff]   ;;  %v3559_v12 = vld [vmem:[%s4379_s1 + $0x118] sm:$0xff]   ;;  %v1073_v14 = vpack.c.bf16 %v1071_v13, %v1071_v13  ;;  %v3560_v15 = vld [vmem:[%s4381_s3 + $0x40] sm:$0xff]   ;;  %s3632_s10 = scalar_lea.vmem %s2520_s20, 64  ;;  %p3639_p0 = scmp.lt.s32.totalorder %s2520_s20, %s3637_s13 }
  0x26   : > { %3156 = vmatpush3.bf16.msra.mxu1 %v3535_v21  ;;  %3145 = vmatprep.subr.bf16.mxu0 %v3536_v25  ;;  %v3561_v16 = vld [vmem:[%s4381_s3] sm:$0xff]   ;;  %v3563_v18 = vld [vmem:[%s4381_s3 + $0x8] sm:$0xff]   ;;  %v3564_v19 = vld [vmem:[%s4381_s3 + $0x50] sm:$0xff]   ;;  %p3633_p11 = scmp.ne.s32.totalorder %s2520_s20, %s3632_s10  ;;  %p3640_p1 = scmp.lt.s32.totalorder %s3638_s17, %s3632_s10 }
  0x27   : > { %3157 = vmatprep.subr.bf16.mxu1 %v3537_v28  ;;  %v3565_v20 = vld [vmem:[%s4381_s3 + $0x10] sm:$0xff]   ;;  %v3566_v21 = vld [vmem:[%s4381_s3 + $0x58] sm:$0xff]   ;;  %v3568_v23 = vld [vmem:[%s4381_s3 + $0x60] sm:$0xff]  }
  0x28   : > { %v3567_v22 = vld [vmem:[%s4381_s3 + $0x18] sm:$0xff]   ;;  %v3569_v24 = vld [vmem:[%s4381_s3 + $0x20] sm:$0xff]   ;;  %v3570_v26 = vld [vmem:[%s4381_s3 + $0x68] sm:$0xff]   ;;  %p3634_p12 = pnand %p3633_p11, %p3817_p5  ;;  %p3641_p2 = por %p3640_p1, %p3639_p0 }
  0x29   : > { %3146 = vmatpush3.bf16.msra.mxu0 %v3536_v25  ;;  %v3728_v25 = vmov 0.0   ;;  %v3571_v27 = vld [vmem:[%s4381_s3 + $0x28] sm:$0xff]   ;;  %v3573_v29 = vld [vmem:[%s4381_s3 + $0x30] sm:$0xff]   ;;  %v4049_v32 = vld [vmem:[%s4381_s3 + $0x80] sm:$0xff]  }
  0x2a   : > { %3158 = vmatpush3.bf16.msra.mxu1 %v3537_v28  ;;  %3147 = vmatprep.subr.bf16.mxu0 %v3538_v30  ;;  %1179 = vst [vmem:[#allocation2 + $0x10] sm:$0xff] %v3728_v25  ;;  %1180 = vst [vmem:[#allocation2 + $0x18] sm:$0xff] %v3728_v25  ;;  %v3572_v28 = vld [vmem:[%s4381_s3 + $0x70] sm:$0xff]   ;;  %p3635_p13 = pneg %p3634_p12 }
  0x2b   : > { %3159 = vmatprep.subr.bf16.mxu1 %v3539_v31  ;;  %1177 = vst [vmem:[#allocation2] sm:$0xff] %v3728_v25  ;;  %1178 = vst [vmem:[#allocation2 + $0x8] sm:$0xff] %v3728_v25 }
  0x2c   : > { %1181 = vst [vmem:[#allocation2 + $0x20] sm:$0xf] %v3728_v25  ;;  %p3642_p3 = pnand %p3641_p2, %p3635_p13 }
  0x2d   : > { %3148 = vmatpush3.bf16.msra.mxu0 %v3538_v30  ;;  %v3574_v30 = vld [vmem:[%s4381_s3 + $0x78] sm:$0xff]  }
  0x2e   : > { %3160 = vmatpush3.bf16.msra.mxu1 %v3539_v31  ;;  %3165 = vmatprep.subr.bf16.mxu0 %v3540_v33  ;;  %v3575_v31 = vld [vmem:[%s4381_s3 + $0x38] sm:$0xff]  }
  0x2f   : > { %3177 = vmatprep.subr.bf16.mxu1 %v3541_v35 }
  0x30   : > { %3150 = vmatmul.mubr.msk.bf16.vlgmr.msra.gmra.mrb[4].mxu0 %vm366_vm0, %v503_v36 }
  0x31   : > { %3166 = vmatpush3.bf16.msra.mxu0 %v3540_v33  ;;  %3162 = vmatmul.mubr.msk.bf16.vlgmr.msra.gmra.mrb[4].mxu1 %vm366_vm0, %v598_v39  ;;  %v4054_v33 = vld [vmem:[%s4381_s3 + $0xc0] sm:$0xff]  }
  0x32   : > { %3178 = vmatpush3.bf16.msra.mxu1 %v3541_v35  ;;  %3167 = vmatprep.subr.bf16.mxu0 %v3542_v41 }
  0x33   : > { %3179 = vmatprep.subr.bf16.mxu1 %v3543_v42  ;;  %3173 = vmatprep.mubr.msk.bf16.mxu0 %vm366_vm0, %v692_v43 }
  0x34   : > { %3185 = vmatprep.mubr.msk.bf16.mxu1 %vm366_vm0, %v787_v44 }
  0x35   : > { %3168 = vmatpush3.bf16.msra.mxu0 %v3542_v41 }
  0x36   : > { %3180 = vmatpush3.bf16.msra.mxu1 %v3543_v42  ;;  %3169 = vmatprep.subr.bf16.mxu0 %v3544_v45 }
  0x37   : > { %3181 = vmatprep.subr.bf16.mxu1 %v3545_v46 }
  0x39   : > { %3170 = vmatpush3.bf16.msra.mxu0 %v3544_v45 }
  0x3a   : > { %3182 = vmatpush3.bf16.msra.mxu1 %v3545_v46  ;;  %3171 = vmatprep.subr.bf16.mxu0 %v3546_v47 }
  0x3b   : > { %3183 = vmatprep.subr.bf16.mxu1 %v3547_v48 }
  0x3d   : > { %3172 = vmatpush3.bf16.msra.mxu0 %v3546_v47 }
  0x3e   : > { %3184 = vmatpush3.bf16.msra.mxu1 %v3547_v48  ;;  %3189 = vmatprep.subr.bf16.mxu0 %v3548_v50 }
  0x3f   : > { %3201 = vmatprep.subr.bf16.mxu1 %v3549_v52 }
  0x40   : > { %3174 = vmatmul.mubr.msk.bf16.vlgmr.msra.gmra.mrb[8].mxu0 %vm366_vm0, %v693_v57 }
  0x41   : > { %3190 = vmatpush3.bf16.msra.mxu0 %v3548_v50  ;;  %3186 = vmatmul.mubr.msk.bf16.vlgmr.msra.gmra.mrb[8].mxu1 %vm366_vm0, %v788_v59 }
  0x42   : > { %3202 = vmatpush3.bf16.msra.mxu1 %v3549_v52  ;;  %3191 = vmatprep.subr.bf16.mxu0 %v3550_v58 }
  0x43   : > { %3203 = vmatprep.subr.bf16.mxu1 %v3551_v60  ;;  %3197 = vmatprep.mubr.msk.bf16.mxu0 %vm366_vm0, %v882_v61 }
  0x44   : > { %3209 = vmatprep.mubr.msk.bf16.mxu1 %vm366_vm0, %v977_v63 }
  0x45   : > { %3192 = vmatpush3.bf16.msra.mxu0 %v3550_v58 }
  0x46   : > { %3204 = vmatpush3.bf16.msra.mxu1 %v3551_v60  ;;  %3193 = vmatprep.subr.bf16.mxu0 %v3552_v62 }
  0x47   : > { %3205 = vmatprep.subr.bf16.mxu1 %v3553_v0 }
  0x49   : > { %3194 = vmatpush3.bf16.msra.mxu0 %v3552_v62 }
  0x4a   : > { %3206 = vmatpush3.bf16.msra.mxu1 %v3553_v0  ;;  %3195 = vmatprep.subr.bf16.mxu0 %v3554_v1 }
  0x4b   : > { %3207 = vmatprep.subr.bf16.mxu1 %v3555_v2 }
  0x4d   : > { %3196 = vmatpush3.bf16.msra.mxu0 %v3554_v1 }
  0x4e   : > { %3208 = vmatpush3.bf16.msra.mxu1 %v3555_v2  ;;  %3213 = vmatprep.subr.bf16.mxu0 %v3556_v4 }
  0x4f   : > { %3225 = vmatprep.subr.bf16.mxu1 %v3560_v15 }
  0x50   : > { %3198 = vmatmul.mubr.msk.bf16.vlgmr.msra.gmra.mrb[12].mxu0 %vm366_vm0, %v883_v7 }
  0x51   : > { %3214 = vmatpush3.bf16.msra.mxu0 %v3556_v4  ;;  %3210 = vmatmul.mubr.msk.bf16.vlgmr.msra.gmra.mrb[12].mxu1 %vm366_vm0, %v978_v9 }
  0x52   : > { %3215 = vmatprep.subr.bf16.mxu0 %v3557_v8  ;;  %3221 = vmatprep.mubr.msk.bf16.mxu0 %vm366_vm0, %v1072_v10 }
  0x53   : > { %3226 = vmatpush3.bf16.msra.mxu1 %v3560_v15 }
  0x54   : > { %3227 = vmatprep.subr.bf16.mxu1 %v3562_v17 }
  0x55   : > { %3216 = vmatpush3.bf16.msra.mxu0 %v3557_v8 }
  0x56   : > { %3217 = vmatprep.subr.bf16.mxu0 %v3558_v11 }
  0x57   : > { %3228 = vmatpush3.bf16.msra.mxu1 %v3562_v17 }
  0x58   : > { %3229 = vmatprep.subr.bf16.mxu1 %v3564_v19 }
  0x59   : > { %3218 = vmatpush3.bf16.msra.mxu0 %v3558_v11 }
  0x5a   : > { %3219 = vmatprep.subr.bf16.mxu0 %v3559_v12 }
  0x5b   : > { %3230 = vmatpush3.bf16.msra.mxu1 %v3564_v19 }
  0x5c   : > { %3231 = vmatprep.subr.bf16.mxu1 %v3566_v21 }
  0x5d   : > { %3220 = vmatpush3.bf16.msra.mxu0 %v3559_v12 }
  0x5e   : > { %3245 = vmatprep.subr.bf16.mxu0 %v3561_v16 }
  0x5f   : > { %3232 = vmatpush3.bf16.msra.mxu1 %v3566_v21 }
  0x60   : > { %3222 = vmatmul.mubr.msk.bf16.vlgmr.msra.gmra.mrb[16].mxu0 %vm366_vm0, %v1073_v14  ;;  %3233 = vmatprep.subr.bf16.mxu1 %v3568_v23 }
  0x61   : > { %3246 = vmatpush3.bf16.msra.mxu0 %v3561_v16 }
  0x62   : > { %3247 = vmatprep.subr.bf16.mxu0 %v3563_v18 }
  0x63   : > { %3234 = vmatpush3.bf16.msra.mxu1 %v3568_v23 }
  0x64   : > { %3235 = vmatprep.subr.bf16.mxu1 %v3570_v26 }
  0x65   : > { %3248 = vmatpush3.bf16.msra.mxu0 %v3563_v18 }
  0x66   : > { %3249 = vmatprep.subr.bf16.mxu0 %v3565_v20 }
  0x67   : > { %3236 = vmatpush3.bf16.msra.mxu1 %v3570_v26 }
  0x68   : > { %3237 = vmatprep.subr.bf16.mxu1 %v3572_v28 }
  0x69   : > { %3250 = vmatpush3.bf16.msra.mxu0 %v3565_v20 }
  0x6a   : > { %3251 = vmatprep.subr.bf16.mxu0 %v3567_v22 }
  0x6b   : > { %3238 = vmatpush3.bf16.msra.mxu1 %v3572_v28 }
  0x6c   : > { %3239 = vmatprep.subr.bf16.mxu1 %v3574_v30 }
  0x6d   : > { %3252 = vmatpush3.bf16.msra.mxu0 %v3567_v22 }
  0x6e   : > { %3253 = vmatprep.subr.bf16.mxu0 %v3569_v24 }
  0x6f   : > { %3240 = vmatpush3.bf16.msra.mxu1 %v3574_v30 }
  0x70   : > { %3265 = vmatprep.subr.bf16.mxu1 %v4049_v32 }
  0x71   : > { %3254 = vmatpush3.bf16.msra.mxu0 %v3569_v24  ;;  %v2743_v24 = vld [vmem:[%s4380_s2] ss:$0 sm:$0xff] }
  0x72   : > { %3255 = vmatprep.subr.bf16.mxu0 %v3571_v27 }
  0x75   : > { %3256 = vmatpush3.bf16.msra.mxu0 %v3571_v27 }
  0x76   : > { %3257 = vmatprep.subr.bf16.mxu0 %v3573_v29 }
  0x79   : > { %3258 = vmatpush3.bf16.msra.mxu0 %v3573_v29 }
  0x7a   : > { %3259 = vmatprep.subr.bf16.mxu0 %v3575_v31 }
  0x7d   : > { %3260 = vmatpush3.bf16.msra.mxu0 %v3575_v31 }
  0x7e   : > { %3285 = vmatprep.subr.bf16.mxu0 %v4054_v33 }
  0xf3   : > { %v3127_v34 = vpop.f32.mrb[0].mxu0 }
  0xf4   : > { %v3139_v35 = vpop.f32.mrb[0].mxu1  ;;  %v407_v36 = vpop.f32.mrb[1].mxu0 }
  0xf5   : > { %v494_v37 = vadd.f32 %v3139_v35, %v3127_v34  ;;  %v485_v38 = vpop.f32.mrb[1].mxu1  ;;  %v3128_v39 = vpop.f32.mrb[2].mxu0 }
  0xf6   : > { %v486_v40 = vadd.f32 %v485_v38, %v407_v36  ;;  %v3140_v41 = vpop.f32.mrb[2].mxu1  ;;  %v410_v42 = vpop.f32.mrb[3].mxu0 }
  0xf7   : > { %v488_v43 = vpop.f32.mrb[3].mxu1 }
  0xf8   : > { %v489_v44 = vadd.f32 %v488_v43, %v410_v42 }
 0x103   : > { %v3151_v45 = vpop.f32.mrb[4].mxu0 }
 0x104   : > { %v593_v46 = vadd.f32 %v3151_v45, %v494_v37  ;;  %v577_v47 = vpop.f32.mrb[5].mxu0  ;;  %v3163_v48 = vpop.f32.mrb[4].mxu1 }
 0x105   : > { %v591_v49 = vadd.f32 %v577_v47, %v486_v40  ;;  %v3152_v50 = vpop.f32.mrb[6].mxu0  ;;  %v672_v51 = vpop.f32.mrb[5].mxu1 }
 0x106   : > { %v688_v52 = vadd.f32 %v3163_v48, %v593_v46  ;;  %v580_v53 = vpop.f32.mrb[7].mxu0  ;;  %v3164_v54 = vpop.f32.mrb[6].mxu1 }
 0x107   : > { %v592_v55 = vadd.f32 %v580_v53, %v489_v44  ;;  %v686_v56 = vadd.f32 %v672_v51, %v591_v49  ;;  %v675_v57 = vpop.f32.mrb[7].mxu1 }
 0x109   : > { %v687_v58 = vadd.f32 %v675_v57, %v592_v55  ;;  %v3579_v55 = vld [vmem:[%s4381_s3 + $0xc8] sm:$0xff]  }
 0x113   : > { %v3175_v59 = vpop.f32.mrb[8].mxu0 }
 0x114   : > { %v783_v60 = vadd.f32 %v3175_v59, %v688_v52  ;;  %v767_v61 = vpop.f32.mrb[9].mxu0  ;;  %v3187_v62 = vpop.f32.mrb[8].mxu1  ;;  %v3578_v52 = vld [vmem:[%s4381_s3 + $0x88] sm:$0xff]   ;;  %v3581_v59 = vld [vmem:[%s4381_s3 + $0xd0] sm:$0xff]  }
 0x115   : > { %v781_v63 = vadd.f32 %v767_v61, %v686_v56  ;;  %v3176_v0 = vpop.f32.mrb[10].mxu0  ;;  %v862_v1 = vpop.f32.mrb[9].mxu1  ;;  %v3585_v61 = vld [vmem:[%s4381_s3 + $0xe0] sm:$0xff]  }
 0x116   : > { %v878_v2 = vadd.f32 %v3187_v62, %v783_v60  ;;  %v770_v3 = vpop.f32.mrb[11].mxu0  ;;  %v3188_v4 = vpop.f32.mrb[10].mxu1  ;;  %v3584_v60 = vld [vmem:[%s4381_s3 + $0xa0] sm:$0xff]   ;;  %v3586_v62 = vld [vmem:[%s4381_s3 + $0xa8] sm:$0xff]   ;;  %v3588_v0 = vld [vmem:[%s4381_s3 + $0xb0] sm:$0xff]  }
 0x117   : > { %v782_v5 = vadd.f32 %v770_v3, %v687_v58  ;;  %v876_v6 = vadd.f32 %v862_v1, %v781_v63  ;;  %v865_v7 = vpop.f32.mrb[11].mxu1  ;;  %v3580_v58 = vld [vmem:[%s4381_s3 + $0x90] sm:$0xff]   ;;  %v3587_v63 = vld [vmem:[%s4381_s3 + $0xe8] sm:$0xff]   ;;  %v3591_v3 = vld [vmem:[%s4381_s3 + $0xf8] sm:$0xff]  }
 0x118   : > { %v3589_v1 = vld [vmem:[%s4381_s3 + $0xf0] sm:$0xff]   ;;  %v3592_v4 = vld [vmem:[%s4381_s3 + $0x100] sm:$0xff]  }
 0x119   : > { %v877_v8 = vadd.f32 %v865_v7, %v782_v5  ;;  %v3593_v5 = vld [vmem:[%s4381_s3 + $0x140] sm:$0xff]  }
 0x123   : > { %v3199_v9 = vpop.f32.mrb[12].mxu0 }
 0x124   : > { %v973_v10 = vadd.f32 %v3199_v9, %v878_v2  ;;  %v957_v11 = vpop.f32.mrb[13].mxu0  ;;  %v3211_v12 = vpop.f32.mrb[12].mxu1  ;;  %v3590_v2 = vld [vmem:[%s4381_s3 + $0xb8] sm:$0xff]  }
 0x125   : > { %v971_v13 = vadd.f32 %v957_v11, %v876_v6  ;;  %v3200_v14 = vpop.f32.mrb[14].mxu0  ;;  %v1052_v15 = vpop.f32.mrb[13].mxu1 }
 0x126   : > { %v1068_v16 = vadd.f32 %v3211_v12, %v973_v10  ;;  %v960_v17 = vpop.f32.mrb[15].mxu0  ;;  %v3212_v18 = vpop.f32.mrb[14].mxu1  ;;  %v3594_v14 = vld [vmem:[%s4381_s3 + $0x108] sm:$0xff]  }
 0x127   : > { %v972_v19 = vadd.f32 %v960_v17, %v877_v8  ;;  %v1066_v20 = vadd.f32 %v1052_v15, %v971_v13  ;;  %v1055_v21 = vpop.f32.mrb[15].mxu1  ;;  %v3595_v15 = vld [vmem:[%s4381_s3 + $0x148] sm:$0xff]   ;;  %v3596_v17 = vld [vmem:[%s4381_s3 + $0x110] sm:$0xff]  }
 0x128   : > { %v3597_v18 = vld [vmem:[%s4381_s3 + $0x150] sm:$0xff]  }
 0x129   : > { %v1067_v22 = vadd.f32 %v1055_v21, %v972_v19  ;;  %v3598_v19 = vld [vmem:[%s4381_s3 + $0x118] sm:$0xff]   ;;  %v3600_v21 = vld [vmem:[%s4381_s3 + $0x120] sm:$0xff]  }
 0x133   : > { %v3223_v23 = vpop.f32.mrb[16].mxu0 }
 0x134   : > { %v1163_v26 = vadd.f32 %v3223_v23, %v1068_v16  ;;  %v1147_v27 = vpop.f32.mrb[17].mxu0  ;;  %v3602_v23 = vld [vmem:[%s4381_s3 + $0x128] sm:$0xff]  }
 0x135   : > { %v1161_v28 = vadd.f32 %v1147_v27, %v1066_v20  ;;  %v3224_v29 = vpop.f32.mrb[18].mxu0  ;;  %v3599_v20 = vld [vmem:[%s4381_s3 + $0x158] sm:$0xff]   ;;  %v3605_v27 = vld [vmem:[%s4381_s3 + $0x170] sm:$0xff]  }
 0x136   : > { %v1173_v30 = vadd.f32 %v2743_v24, %v1163_v26  ;;  %v1150_v31 = vpop.f32.mrb[19].mxu0  ;;  %v3604_v26 = vld [vmem:[%s4381_s3 + $0x130] sm:$0xff]   ;;  %v3607_v29 = vld [vmem:[%s4381_s3 + $0x178] sm:$0xff]  }
 0x137   : > { %v1171_v34 = vadd.f32 %v2743_v24, %v1161_v28  ;;  %v1162_v35 = vadd.f32 %v1150_v31, %v1067_v22  ;;  %v3601_v22 = vld [vmem:[%s4381_s3 + $0x160] sm:$0xff]   ;;  %v3606_v28 = vld [vmem:[%s4381_s3 + $0x138] sm:$0xff]  }
 0x138   : > { %v1176_v36 = vmax.f32 %v1173_v30, 0.0  ;;  %v3608_v30 = vld [vmem:[%s4381_s3 + $0x180] sm:$0xff]  }
 0x139   : > { %v1174_v37 = vmax.f32 %v1171_v34, 0.0  ;;  %v1172_v38 = vadd.f32 %v2743_v24, %v1162_v35  ;;  %v3603_v24 = vld [vmem:[%s4381_s3 + $0x168] sm:$0xff]   ;;  %v3609_v34 = vld [vmem:[%s4381_s3 + $0x1c0] sm:$0xff]  }
 0x13a   : > { %1186 = vst [vmem:[#allocation2 + $0x17] sm:$0x3c] %v1176_v36 }
 0x13b   : > { %1182 = vst [vmem:[#allocation2 + $0x7] sm:$0xcf] %v1174_v37   ;;  %v1175_v39 = vmax.f32 %v1172_v38, 0.0 }
 0x13d   : > { %1184 = vst [vmem:[#allocation2 + $0xf] sm:$0xf3] %v1175_v39  }
 0x141   : > { %v1666_v31 = vld [vmem:[#allocation2 + $0x17] sm:$0x3f] }
 0x142   : > { %v1208_v40 = vld [vmem:[#allocation2 + $0x1] sm:$0xff]  ;;  %v1787_v35 = vld [vmem:[#allocation2 + $0x18] sm:$0x3f] }
 0x143   : > { %v1187_v41 = vld [vmem:[#allocation2] sm:$0xff] }
 0x144   : > { %v1209_v42 = vld [vmem:[#allocation2 + $0x9] sm:$0xff]  ;;  %v1210_v44 = vld [vmem:[#allocation2 + $0x11] sm:$0x3f] }
 0x145   : > { %v4061_v43 = vld [vmem:[#allocation2 + $0x8] sm:$0xff]  ;;  %v1211_v45 = vpack.c.bf16 %v1209_v42, %v1208_v40  ;;  %v1212_v47 = vpack.c.bf16 %v1210_v44, %v1210_v44  ;;  %v1189_v48 = vld [vmem:[#allocation2 + $0x10] sm:$0x3f]  ;;  %v1545_v7 = vld [vmem:[#allocation2 + $0x16] sm:$0x3f]  ;;  %v1668_v40 = vpack.c.bf16 %v1666_v31, %v1666_v31 }
 0x146   : > { %v1190_v46 = vpack.c.bf16 %v4061_v43, %v1187_v41  ;;  %v1423_v49 = vld [vmem:[#allocation2 + $0xa] sm:$0xff]  ;;  %v1191_v51 = vpack.c.bf16 %v1189_v48, %v1189_v48  ;;  %v1422_v53 = vld [vmem:[#allocation2 + $0x2] sm:$0xff]  ;;  %v1424_v6 = vld [vmem:[#allocation2 + $0x12] sm:$0x3f]  ;;  %v1547_v11 = vpack.c.bf16 %v1545_v7, %v1545_v7  ;;  %v1789_v41 = vpack.c.bf16 %v1787_v35, %v1787_v35 }
 0x147   : > { %v4064_v50 = vld [vmem:[#allocation2 + $0xe] sm:$0xff]  ;;  %3241 = vmatprep.mubr.bf16.mxu1 %v1211_v45  ;;  %v1543_v54 = vld [vmem:[#allocation2 + $0x6] sm:$0xff]  ;;  %v1425_v56 = vpack.c.bf16 %v1423_v49, %v1422_v53  ;;  %v1426_v10 = vpack.c.bf16 %v1424_v6, %v1424_v6  ;;  %v3614_v48 = vld [vmem:[%s4381_s3 + $0x198] sm:$0xff]  }
 0x148   : > { %3261 = vmatprep.mubr.bf16.mxu0 %v1190_v46  ;;  %3242 = vmatmul.mubr.bf16.vlgmr.msra.gmra.mrb[16].mxu1 %v1212_v47  ;;  %v1546_v57 = vpack.c.bf16 %v4064_v50, %v1543_v54  ;;  %v1665_v8 = vld [vmem:[#allocation2 + $0xf] sm:$0xff]  ;;  %v1664_v12 = vld [vmem:[#allocation2 + $0x7] sm:$0xff]  ;;  %v3615_v49 = vld [vmem:[%s4381_s3 + $0x1d8] sm:$0xff]  }
 0x149   : > { %3262 = vmatmul.mubr.bf16.vlgmr.msra.gmra.mrb[20].mxu0 %v1191_v51  ;;  %3266 = vmatpush3.bf16.msra.mxu1 %v4049_v32  ;;  %v3582_v32 = vld [vmem:[%s4381_s3 + $0x98] sm:$0xff]   ;;  %v1786_v9 = vld [vmem:[#allocation2 + $0x10] sm:$0xff]  ;;  %v1667_v13 = vpack.c.bf16 %v1665_v8, %v1664_v12  ;;  %v3610_v42 = vld [vmem:[%s4381_s3 + $0x188] sm:$0xff]  }
 0x14a   : > { %3286 = vmatpush3.bf16.msra.mxu0 %v4054_v33  ;;  %3281 = vmatprep.mubr.bf16.mxu1 %v1425_v56  ;;  %v3583_v33 = vld [vmem:[%s4381_s3 + $0xd8] sm:$0xff]   ;;  %v1788_v16 = vpack.c.bf16 %v1786_v9, %v4061_v43  ;;  %v1906_v36 = vld [vmem:[#allocation2 + $0xc] sm:$0xff]  ;;  %v3616_v51 = vld [vmem:[%s4381_s3 + $0x1a0] sm:$0xff]  }
 0x14b   : > { %3301 = vmatprep.mubr.bf16.mxu0 %v1546_v57  ;;  %3267 = vmatprep.subr.bf16.mxu1 %v3578_v52  ;;  %v1907_v37 = vld [vmem:[#allocation2 + $0x14] sm:$0xff]  ;;  %v3611_v45 = vld [vmem:[%s4381_s3 + $0x1c8] sm:$0xff]   ;;  %v2150_v6 = vld [vmem:[#allocation2 + $0x1e] sm:$0x3f] }
 0x14c   : > { %3287 = vmatprep.subr.bf16.mxu0 %v3579_v55  ;;  %v2027_v38 = vld [vmem:[#allocation2 + $0xd] sm:$0xff]  ;;  %v2028_v39 = vld [vmem:[#allocation2 + $0x15] sm:$0xff]  ;;  %v1909_v43 = vpack.c.bf16 %v1907_v37, %v1906_v36  ;;  %v2152_v7 = vpack.c.bf16 %v2150_v6, %v2150_v6 }
 0x14d   : > { %3268 = vmatpush3.bf16.msra.mxu1 %v3578_v52  ;;  %v2030_v44 = vpack.c.bf16 %v2028_v39, %v2027_v38  ;;  %v3612_v46 = vld [vmem:[%s4381_s3 + $0x190] sm:$0xff]   ;;  %v3617_v52 = vld [vmem:[%s4381_s3 + $0x1e0] sm:$0xff]   ;;  %v3618_v53 = vld [vmem:[%s4381_s3 + $0x1a8] sm:$0xff]  }
 0x14e   : > { %3288 = vmatpush3.bf16.msra.mxu0 %v3579_v55  ;;  %3269 = vmatprep.subr.bf16.mxu1 %v3580_v58  ;;  %v3613_v47 = vld [vmem:[%s4381_s3 + $0x1d0] sm:$0xff]   ;;  %v3619_v54 = vld [vmem:[%s4381_s3 + $0x1e8] sm:$0xff]   ;;  %v3622_v57 = vld [vmem:[%s4381_s3 + $0x1b8] sm:$0xff]  }
 0x14f   : > { %3289 = vmatprep.subr.bf16.mxu0 %v3581_v59  ;;  %v3620_v55 = vld [vmem:[%s4381_s3 + $0x1b0] sm:$0xff]   ;;  %v2419_v38 = vld [vmem:[%s4383_s5 + $0x38] sm:$0xff] }
 0x150   : > { %v3621_v56 = vld [vmem:[%s4381_s3 + $0x1f0] sm:$0xff]  }
 0x151   : > { %3270 = vmatpush3.bf16.msra.mxu1 %v3580_v58  ;;  %v3623_v58 = vld [vmem:[%s4381_s3 + $0x1f8] sm:$0xff]   ;;  %v2418_v37 = vld [vmem:[%s4383_s5 + $0x30] sm:$0xff] }
 0x152   : > { %3290 = vmatpush3.bf16.msra.mxu0 %v3581_v59  ;;  %3271 = vmatprep.subr.bf16.mxu1 %v3582_v32  ;;  %v3624_v59 = vld [vmem:[%s4381_s3 + $0x200] sm:$0xff]  }
 0x153   : > { %3291 = vmatprep.subr.bf16.mxu0 %v3583_v33 }
 0x155   : > { %3272 = vmatpush3.bf16.msra.mxu1 %v3582_v32  ;;  %v1908_v32 = vld [vmem:[#allocation2 + $0x1c] sm:$0x3f] }
 0x156   : > { %3292 = vmatpush3.bf16.msra.mxu0 %v3583_v33  ;;  %3273 = vmatprep.subr.bf16.mxu1 %v3584_v60  ;;  %v2029_v33 = vld [vmem:[#allocation2 + $0x1d] sm:$0x3f] }
 0x157   : > { %3293 = vmatprep.subr.bf16.mxu0 %v3585_v61 }
 0x159   : > { %3274 = vmatpush3.bf16.msra.mxu1 %v3584_v60  ;;  %v2149_v60 = vld [vmem:[#allocation2 + $0x16] sm:$0xff] }
 0x15a   : > { %3294 = vmatpush3.bf16.msra.mxu0 %v3585_v61  ;;  %3275 = vmatprep.subr.bf16.mxu1 %v3586_v62  ;;  %v1910_v61 = vpack.c.bf16 %v1908_v32, %v1908_v32 }
 0x15b   : > { %3295 = vmatprep.subr.bf16.mxu0 %v3587_v63 }
 0x15d   : > { %3276 = vmatpush3.bf16.msra.mxu1 %v3586_v62  ;;  %v2031_v62 = vpack.c.bf16 %v2029_v33, %v2029_v33 }
 0x15e   : > { %3296 = vmatpush3.bf16.msra.mxu0 %v3587_v63  ;;  %3277 = vmatprep.subr.bf16.mxu1 %v3588_v0  ;;  %v3625_v63 = vld [vmem:[%s4381_s3 + $0x208] sm:$0xff]  }
 0x15f   : > { %3297 = vmatprep.subr.bf16.mxu0 %v3589_v1 }
 0x161   : > { %3278 = vmatpush3.bf16.msra.mxu1 %v3588_v0  ;;  %v2151_v0 = vpack.c.bf16 %v2149_v60, %v4064_v50  ;;  %v3628_v50 = vld [vmem:[%s4381_s3 + $0x220] sm:$0xff]  }
 0x162   : > { %3298 = vmatpush3.bf16.msra.mxu0 %v3589_v1  ;;  %3279 = vmatprep.subr.bf16.mxu1 %v3590_v2  ;;  %v3626_v1 = vld [vmem:[%s4381_s3 + $0x210] sm:$0xff]  }
 0x163   : > { %3299 = vmatprep.subr.bf16.mxu0 %v3591_v3 }
 0x165   : > { %3280 = vmatpush3.bf16.msra.mxu1 %v3590_v2  ;;  %v3627_v2 = vld [vmem:[%s4381_s3 + $0x218] sm:$0xff]  }
 0x166   : > { %3300 = vmatpush3.bf16.msra.mxu0 %v3591_v3  ;;  %3305 = vmatprep.subr.bf16.mxu1 %v3592_v4  ;;  %v3629_v3 = vld [vmem:[%s4381_s3 + $0x228] sm:$0xff]  }
 0x167   : > { %3325 = vmatprep.subr.bf16.mxu0 %v3593_v5 }
 0x168   : > { %3282 = vmatmul.mubr.bf16.vlgmr.msra.gmra.mrb[20].mxu1 %v1426_v10 }
 0x169   : > { %3302 = vmatmul.mubr.bf16.vlgmr.msra.gmra.mrb[24].mxu0 %v1547_v11  ;;  %3306 = vmatpush3.bf16.msra.mxu1 %v3592_v4  ;;  %v3630_v4 = vld [vmem:[%s4381_s3 + $0x230] sm:$0xff]  }
 0x16a   : > { %3321 = vmatprep.mubr.bf16.mxu1 %v1667_v13  ;;  %3326 = vmatpush3.bf16.msra.mxu0 %v3593_v5  ;;  %v3631_v5 = vld [vmem:[%s4381_s3 + $0x238] sm:$0xff]  }
 0x16b   : > { %3341 = vmatprep.mubr.bf16.mxu0 %v1788_v16  ;;  %3307 = vmatprep.subr.bf16.mxu1 %v3594_v14 }
 0x16c   : > { %3327 = vmatprep.subr.bf16.mxu0 %v3595_v15 }
 0x16d   : > { %3308 = vmatpush3.bf16.msra.mxu1 %v3594_v14 }
 0x16e   : > { %3328 = vmatpush3.bf16.msra.mxu0 %v3595_v15  ;;  %3309 = vmatprep.subr.bf16.mxu1 %v3596_v17 }
 0x16f   : > { %3329 = vmatprep.subr.bf16.mxu0 %v3597_v18 }
 0x171   : > { %3310 = vmatpush3.bf16.msra.mxu1 %v3596_v17 }
 0x172   : > { %3330 = vmatpush3.bf16.msra.mxu0 %v3597_v18  ;;  %3311 = vmatprep.subr.bf16.mxu1 %v3598_v19 }
 0x173   : > { %3331 = vmatprep.subr.bf16.mxu0 %v3599_v20 }
 0x175   : > { %3312 = vmatpush3.bf16.msra.mxu1 %v3598_v19  ;;  %v3729_v19 = vmov 0.0|0.0  }
 0x176   : > { %3332 = vmatpush3.bf16.msra.mxu0 %v3599_v20  ;;  %3313 = vmatprep.subr.bf16.mxu1 %v3600_v21  ;;  %v2412_v20 = vld [vmem:[%s4383_s5] sm:$0xff] }
 0x177   : > { %3333 = vmatprep.subr.bf16.mxu0 %v3601_v22 }
 0x179   : > { %3314 = vmatpush3.bf16.msra.mxu1 %v3600_v21  ;;  %v2413_v21 = vld [vmem:[%s4383_s5 + $0x8] sm:$0xff] }
 0x17a   : > { %3334 = vmatpush3.bf16.msra.mxu0 %v3601_v22  ;;  %3315 = vmatprep.subr.bf16.mxu1 %v3602_v23  ;;  %v2414_v22 = vld [vmem:[%s4383_s5 + $0x10] sm:$0xff] }
 0x17b   : > { %3335 = vmatprep.subr.bf16.mxu0 %v3603_v24 }
 0x17d   : > { %3316 = vmatpush3.bf16.msra.mxu1 %v3602_v23  ;;  %v3452_v23 = vpack.c.bf16 %v2413_v21, %v2412_v20 }
 0x17e   : > { %3336 = vmatpush3.bf16.msra.mxu0 %v3603_v24  ;;  %3317 = vmatprep.subr.bf16.mxu1 %v3604_v26  ;;  %v2415_v24 = vld [vmem:[%s4383_s5 + $0x18] sm:$0xff] }
 0x17f   : > { %3337 = vmatprep.subr.bf16.mxu0 %v3605_v27 }
 0x181   : > { %3318 = vmatpush3.bf16.msra.mxu1 %v3604_v26  ;;  %v3455_v26 = vpack.c.bf16 %v2415_v24, %v2414_v22 }
 0x182   : > { %3338 = vmatpush3.bf16.msra.mxu0 %v3605_v27  ;;  %3319 = vmatprep.subr.bf16.mxu1 %v3606_v28  ;;  %v2416_v27 = vld [vmem:[%s4383_s5 + $0x20] sm:$0xff] }
 0x183   : > { %3339 = vmatprep.subr.bf16.mxu0 %v3607_v29 }
 0x185   : > { %3320 = vmatpush3.bf16.msra.mxu1 %v3606_v28  ;;  %v2417_v28 = vld [vmem:[%s4383_s5 + $0x28] sm:$0xff] }
 0x186   : > { %3340 = vmatpush3.bf16.msra.mxu0 %v3607_v29  ;;  %3345 = vmatprep.subr.bf16.mxu1 %v3608_v30  ;;  %v3458_v31 = vpack.c.bf16 %v2417_v28, %v2416_v27 }
 0x187   : > { %3365 = vmatprep.subr.bf16.mxu0 %v3609_v34 }
 0x188   : > { %3322 = vmatmul.mubr.bf16.vlgmr.msra.gmra.mrb[24].mxu1 %v1668_v40 }
 0x189   : > { %3342 = vmatmul.mubr.bf16.vlgmr.msra.gmra.mrb[28].mxu0 %v1789_v41  ;;  %3346 = vmatpush3.bf16.msra.mxu1 %v3608_v30 }
 0x18a   : > { %3361 = vmatprep.mubr.bf16.mxu1 %v1909_v43  ;;  %3381 = vmatprep.mubr.bf16.mxu0 %v2030_v44 }
 0x18b   : > { %3366 = vmatpush3.bf16.msra.mxu0 %v3609_v34  ;;  %3347 = vmatprep.subr.bf16.mxu1 %v3610_v42 }
 0x18c   : > { %3367 = vmatprep.subr.bf16.mxu0 %v3611_v45 }
 0x18d   : > { %3348 = vmatpush3.bf16.msra.mxu1 %v3610_v42 }
 0x18e   : > { %3349 = vmatprep.subr.bf16.mxu1 %v3612_v46 }
 0x18f   : > { %3368 = vmatpush3.bf16.msra.mxu0 %v3611_v45 }
 0x190   : > { %3369 = vmatprep.subr.bf16.mxu0 %v3613_v47 }
 0x191   : > { %3350 = vmatpush3.bf16.msra.mxu1 %v3612_v46 }
 0x192   : > { %3351 = vmatprep.subr.bf16.mxu1 %v3614_v48 }
 0x193   : > { %3370 = vmatpush3.bf16.msra.mxu0 %v3613_v47  ;;  %v3461_v47 = vpack.c.bf16 %v2419_v38, %v2418_v37 }
 0x194   : > { %3371 = vmatprep.subr.bf16.mxu0 %v3615_v49 }
 0x195   : > { %3352 = vmatpush3.bf16.msra.mxu1 %v3614_v48 }
 0x196   : > { %3353 = vmatprep.subr.bf16.mxu1 %v3616_v51 }
 0x197   : > { %3372 = vmatpush3.bf16.msra.mxu0 %v3615_v49 }
 0x198   : > { %3373 = vmatprep.subr.bf16.mxu0 %v3617_v52 }
 0x199   : > { %3354 = vmatpush3.bf16.msra.mxu1 %v3616_v51 }
 0x19a   : > { %3355 = vmatprep.subr.bf16.mxu1 %v3618_v53 }
 0x19b   : > { %3374 = vmatpush3.bf16.msra.mxu0 %v3617_v52 }
 0x19c   : > { %3375 = vmatprep.subr.bf16.mxu0 %v3619_v54 }
 0x19d   : > { %3356 = vmatpush3.bf16.msra.mxu1 %v3618_v53 }
 0x19e   : > { %3357 = vmatprep.subr.bf16.mxu1 %v3620_v55 }
 0x19f   : > { %3376 = vmatpush3.bf16.msra.mxu0 %v3619_v54 }
 0x1a0   : > { %3377 = vmatprep.subr.bf16.mxu0 %v3621_v56 }
 0x1a1   : > { %3358 = vmatpush3.bf16.msra.mxu1 %v3620_v55 }
 0x1a2   : > { %3359 = vmatprep.subr.bf16.mxu1 %v3622_v57 }
 0x1a3   : > { %3378 = vmatpush3.bf16.msra.mxu0 %v3621_v56 }
 0x1a4   : > { %3379 = vmatprep.subr.bf16.mxu0 %v3623_v58 }
 0x1a5   : > { %3360 = vmatpush3.bf16.msra.mxu1 %v3622_v57 }
 0x1a6   : > { %3385 = vmatprep.subr.bf16.mxu1 %v3624_v59 }
 0x1a7   : > { %3380 = vmatpush3.bf16.msra.mxu0 %v3623_v58 }
 0x1a8   : > { %3362 = vmatmul.mubr.bf16.vlgmr.msra.gmra.mrb[28].mxu1 %v1910_v61  ;;  %3451 = vmatprep.subr.bf16.mxu0 %v3729_v19 }
 0x1a9   : > { %3386 = vmatpush3.bf16.msra.mxu1 %v3624_v59  ;;  %3401 = vmatprep.mubr.bf16.mxu1 %v2151_v0 }
 0x1aa   : > { %3382 = vmatmul.mubr.bf16.vlgmr.msra.gmra.mrb[32].mxu0 %v2031_v62  ;;  %3387 = vmatprep.subr.bf16.mxu1 %v3625_v63 }
 0x1ab   : > { %3444 = vmatprep.mubr.msk.f32.mxu0 %vm3730_vm1, %v3728_v25  ;;  %3453 = vmatpush3.bf16.msra.mxu0 %v3452_v23 }
 0x1ac   : > { %3454 = vmatprep.subr.bf16.mxu0 %v3729_v19 }
 0x1ad   : > { %3388 = vmatpush3.bf16.msra.mxu1 %v3625_v63 }
 0x1ae   : > { %3389 = vmatprep.subr.bf16.mxu1 %v3626_v1 }
 0x1af   : > { %3456 = vmatpush3.bf16.msra.mxu0 %v3455_v26 }
 0x1b0   : > { %3457 = vmatprep.subr.bf16.mxu0 %v3729_v19 }
 0x1b1   : > { %3390 = vmatpush3.bf16.msra.mxu1 %v3626_v1 }
 0x1b2   : > { %3391 = vmatprep.subr.bf16.mxu1 %v3627_v2 }
 0x1b3   : > { %3459 = vmatpush3.bf16.msra.mxu0 %v3458_v31 }
 0x1b4   : > { %3460 = vmatprep.subr.bf16.mxu0 %v3729_v19 }
 0x1b5   : > { %3392 = vmatpush3.bf16.msra.mxu1 %v3627_v2 }
 0x1b6   : > { %3393 = vmatprep.subr.bf16.mxu1 %v3628_v50 }
 0x1b7   : > { %3462 = vmatpush3.bf16.msra.mxu0 %v3461_v47 }
 0x1b8   : > { %3463 = vmatprep.subr.bf16.mxu0 %v3729_v19 }
 0x1b9   : > { %3394 = vmatpush3.bf16.msra.mxu1 %v3628_v50 }
 0x1ba   : > { %3395 = vmatprep.subr.bf16.mxu1 %v3629_v3 }
 0x1bd   : > { %3396 = vmatpush3.bf16.msra.mxu1 %v3629_v3 }
 0x1be   : > { %3397 = vmatprep.subr.bf16.mxu1 %v3630_v4 }
 0x1c1   : > { %3398 = vmatpush3.bf16.msra.mxu1 %v3630_v4 }
 0x1c2   : > { %3399 = vmatprep.subr.bf16.mxu1 %v3631_v5 }
 0x1c5   : > { %3400 = vmatpush3.bf16.msra.mxu1 %v3631_v5 }
 0x1c6   : > { %3447 = vmatprep.subr.bf16.mxu1 %v3729_v19 }
 0x1c8   : > { %3402 = vmatmul.mubr.bf16.vlgmr.msra.gmra.mrb[32].mxu1 %v2152_v7 }
 0x1c9   : > { %3409 = vmatprep.mubr.msk.f32.mxu1 %vm3730_vm1, %v3728_v25 }
 0x21b   : > { %v3243_v8 = vpop.f32.mrb[16].mxu1 }
 0x21c   : > { %v3263_v9 = vpop.f32.mrb[20].mxu0  ;;  %v1312_v11 = vpop.f32.mrb[17].mxu1 }
 0x21d   : > { %v1417_v10 = vadd.f32 %v3263_v9, %v3243_v8  ;;  %v1408_v12 = vpop.f32.mrb[21].mxu0  ;;  %v3244_v14 = vpop.f32.mrb[18].mxu1 }
 0x21e   : > { %v1409_v13 = vadd.f32 %v1408_v12, %v1312_v11  ;;  %v3264_v15 = vpop.f32.mrb[22].mxu0  ;;  %v1315_v16 = vpop.f32.mrb[19].mxu1  ;;  %v2312_v11 = vlaneseq }
 0x21f   : > { %v1411_v17 = vpop.f32.mrb[23].mxu0 }
 0x220   : > { %v1412_v18 = vadd.f32 %v1411_v17, %v1315_v16  ;;  %v2313_v21 = vshrl.u32 %v2312_v11, 7 }
 0x23b   : > { %v3283_v29 = vpop.f32.mrb[20].mxu1 }
 0x23c   : > { %v3303_v30 = vpop.f32.mrb[24].mxu0  ;;  %v1542_v34 = vadd.f32 %v3283_v29, %v1417_v10  ;;  %v1526_v35 = vpop.f32.mrb[21].mxu1  ;;  %v2316_v29 = vshra.s32 %v2313_v21, 1 }
 0x23d   : > { %v1647_v36 = vpop.f32.mrb[25].mxu0  ;;  %v1540_v39 = vadd.f32 %v1526_v35, %v1409_v13  ;;  %v3284_v40 = vpop.f32.mrb[22].mxu1  ;;  %v2944_v13 = vld [vmem:[%s4382_s4] ss:$0 sm:$0xff] }
 0x23e   : > { %v3304_v41 = vpop.f32.mrb[26].mxu0  ;;  %v1663_v42 = vadd.f32 %v3303_v30, %v1542_v34  ;;  %v1529_v43 = vpop.f32.mrb[23].mxu1  ;;  %v2318_v30 = vand.u32 1, %v2313_v21  ;;  %v2317_v37 = vmul.u32 12, %v2316_v29 }
 0x23f   : > { %v1650_v44 = vpop.f32.mrb[27].mxu0  ;;  %v1661_v45 = vadd.f32 %v1647_v36, %v1540_v39  ;;  %v1541_v46 = vadd.f32 %v1529_v43, %v1412_v18  ;;  %v2315_v43 = vand.u32 127, %v2312_v11 }
 0x240   : > { %v2319_v38 = vmul.u32 2, %v2318_v30 }
 0x241   : > { %v1662_v48 = vadd.f32 %v1650_v44, %v1541_v46 }
 0x242   : > { %v2320_v47 = vadd.s32 %v2319_v38, %v2317_v37 }
 0x244   : > { %vm2321_vm6 = vcmp.eq.s32.totalorder %v2315_v43, %v2320_v47 }
 0x25b   : > { %v3323_v49 = vpop.f32.mrb[24].mxu1 }
 0x25c   : > { %v1784_v51 = vadd.f32 %v3323_v49, %v1663_v42  ;;  %v3343_v52 = vpop.f32.mrb[28].mxu0  ;;  %v1768_v53 = vpop.f32.mrb[25].mxu1 }
 0x25d   : > { %v1782_v54 = vadd.f32 %v1768_v53, %v1661_v45  ;;  %v1889_v55 = vpop.f32.mrb[29].mxu0  ;;  %v3324_v56 = vpop.f32.mrb[26].mxu1 }
 0x25e   : > { %v1905_v57 = vadd.f32 %v3343_v52, %v1784_v51  ;;  %v3344_v58 = vpop.f32.mrb[30].mxu0  ;;  %v1771_v59 = vpop.f32.mrb[27].mxu1  ;;  %v2420_v56 = vld [vmem:[%s4383_s5 + $0x40] sm:$0xff] }
 0x25f   : > { %v1903_v32 = vadd.f32 %v1889_v55, %v1782_v54  ;;  %v1783_v33 = vadd.f32 %v1771_v59, %v1662_v48  ;;  %v1892_v60 = vpop.f32.mrb[31].mxu0  ;;  %v2945_v55 = vsel %vm2321_vm6, 1.0, %v3728_v25  ;;  %v2422_v59 = vld [vmem:[%s4383_s5 + $0x50] sm:$0xff]  ;;  %v2423_v25 = vld [vmem:[%s4383_s5 + $0x58] sm:$0xff] }
 0x261   : > { %v1904_v61 = vadd.f32 %v1892_v60, %v1783_v33  ;;  %v2424_v33 = vld [vmem:[%s4383_s5 + $0x60] sm:$0xff]  ;;  %v2425_v60 = vld [vmem:[%s4383_s5 + $0x68] sm:$0xff] }
 0x27b   : > { %v3363_v62 = vpop.f32.mrb[28].mxu1 }
 0x27c   : > { %v2026_v63 = vadd.f32 %v3363_v62, %v1905_v57  ;;  %v2010_v0 = vpop.f32.mrb[29].mxu1  ;;  %v2421_v57 = vld [vmem:[%s4383_s5 + $0x48] sm:$0xff]  ;;  %v2426_v62 = vld [vmem:[%s4383_s5 + $0x70] sm:$0xff] }
 0x27d   : > { %v2024_v1 = vadd.f32 %v2010_v0, %v1903_v32  ;;  %v3364_v2 = vpop.f32.mrb[30].mxu1  ;;  %v3383_v50 = vpop.f32.mrb[32].mxu0  ;;  %v3464_v58 = vpack.c.bf16 %v2421_v57, %v2420_v56  ;;  %v3467_v32 = vpack.c.bf16 %v2423_v25, %v2422_v59 }
 0x27e   : > { %v2147_v3 = vadd.f32 %v3383_v50, %v2026_v63  ;;  %v2013_v4 = vpop.f32.mrb[31].mxu1  ;;  %v2131_v5 = vpop.f32.mrb[33].mxu0  ;;  %v2427_v63 = vld [vmem:[%s4383_s5 + $0x78] sm:$0xff] }
 0x27f   : > { %v2025_v6 = vadd.f32 %v2013_v4, %v1904_v61  ;;  %v2145_v7 = vadd.f32 %v2131_v5, %v2024_v1  ;;  %v3384_v8 = vpop.f32.mrb[34].mxu0  ;;  %3465 = vmatpush3.bf16.msra.mxu0 %v3464_v58  ;;  %v3470_v61 = vpack.c.bf16 %v2425_v60, %v2424_v33  ;;  %v3473_v0 = vpack.c.bf16 %v2427_v63, %v2426_v62 }
 0x280   : > { %v2134_v9 = vpop.f32.mrb[35].mxu0  ;;  %3466 = vmatprep.subr.bf16.mxu0 %v3729_v19 }
 0x281   : > { %v2146_v10 = vadd.f32 %v2134_v9, %v2025_v6 }
 0x283   : > { %3468 = vmatpush3.bf16.msra.mxu0 %v3467_v32 }
 0x284   : > { %3469 = vmatprep.subr.bf16.mxu0 %v3729_v19 }
 0x287   : > { %3471 = vmatpush3.bf16.msra.mxu0 %v3470_v61 }
 0x288   : > { %3472 = vmatprep.subr.bf16.mxu0 %v3729_v19 }
 0x28b   : > { %3474 = vmatpush3.bf16.msra.mxu0 %v3473_v0 }
 0x29b   : > { %v3403_v12 = vpop.f32.mrb[32].mxu1 }
 0x29c   : > { %v2268_v14 = vadd.f32 %v3403_v12, %v2147_v3  ;;  %v2252_v15 = vpop.f32.mrb[33].mxu1 }
 0x29d   : > { %v2266_v16 = vadd.f32 %v2252_v15, %v2145_v7  ;;  %v3404_v17 = vpop.f32.mrb[34].mxu1 }
 0x29e   : > { %v2278_v18 = vadd.f32 %v2944_v13, %v2268_v14  ;;  %v2255_v20 = vpop.f32.mrb[35].mxu1 }
 0x29f   : > { %v2276_v22 = vadd.f32 %v2944_v13, %v2266_v16  ;;  %v2267_v23 = vadd.f32 %v2255_v20, %v2146_v10 }
 0x2a0   : > { %v2281_v24 = vmax.f32 %v2278_v18, 0.0 }
 0x2a1   : > { %v2279_v26 = vmax.f32 %v2276_v22, 0.0  ;;  %v2277_v27 = vadd.f32 %v2944_v13, %v2267_v23 }
 0x2a2   : > { %v2293_v28 = vrot.slane %v2281_v24, 1 }
 0x2a3   : > { %v2280_v31 = vmax.f32 %v2277_v27, 0.0  ;;  %v2285_v34 = vrot.slane %v2279_v26, 1 }
 0x2a4   : > { %v2298_v36 = vmax.f32 %v2281_v24, %v2293_v28 }
 0x2a5   : > { %v2286_v35 = vrot.slane %v2280_v31, 1 }
 0x2a6   : > { %v2306_v44 = vrot.slane %v2298_v36, 6 }
 0x2a7   : > { %v2287_v39 = vsel %vm2284_vm2, %v2285_v34, %v2286_v35  ;;  %v2294_v40 = vsel %vm2284_vm2, %v2286_v35, %v2293_v28  ;;  %v2291_v48 = vmax.f32 %v2280_v31, %v2286_v35 }
 0x2a8   : > { %v2290_v41 = vmax.f32 %v2279_v26, %v2287_v39  ;;  %v2297_v42 = vmax.f32 %v2280_v31, %v2294_v40 }
 0x2aa   : > { %v2303_v45 = vrot.slane %v2290_v41, 6  ;;  %v2304_v46 = vrot.slane %v2297_v42, 6 }
 0x2ac   : > { %v2305_v49 = vsel %vm2302_vm3, %v2303_v45, %v2304_v46  ;;  %v2307_v51 = vsel %vm2302_vm3, %v2304_v46, %v2306_v44 }
 0x2ad   : > { %v2310_v52 = vmax.f32 %v2290_v41, %v2305_v49  ;;  %v2311_v53 = vmax.f32 %v2291_v48, %v2307_v51 }
 0x2af   : > { %v3448_v54 = vpack.c.bf16 %v2311_v53, %v2310_v52 }
 0x2b1   : > { %3450 = vmatpush3.bf16.msk.msra.mxu1 %vm3449_vm5, %v3448_v54 }
 0x2b4   : > { %3410 = vmatmul.mubr.msk.f32.vlgmr.msra.gmra.mrb[36].mxu1 %vm2324_vm7, %v2945_v55 }
 0x387   : > { %v2397_v1 = vpop.f32.mrb[36].mxu1 }
 0x388   : > { %2401 = vst [vmem:[%s302_s21] sm:$0xf] %v2397_v1  ;;  %v2403_v19 = vsel %vm2402_vm8, %v2397_v1, 0.0  ;;  %v3411_v2 = vpop.f32.mrb[37].mxu1 }
 0x389   : > { %v2404_v50 = vrot.slane %v2403_v19, 4 }
 0x38b   : > { %v2405_v3 = vadd.f32 %v2404_v50, %v2403_v19 }
 0x38d   : > { %v2406_v4 = vrot.slane %v2405_v3, 2 }
 0x38f   : > { %v2407_v5 = vadd.f32 %v2406_v4, %v2405_v3 }
 0x391   : > { %v2408_v6 = vrot.slane %v2407_v5, 1 }
 0x393   : > { %v2409_v7 = vadd.f32 %v2408_v6, %v2407_v5 }
 0x395   : > { %v2411_v8 = vmul.f32 0.25, %v2409_v7 }
 0x397   : > { %3445 = vmatmul.mubr.f32.vlgmr.msra.gmra.mrb[36].mxu0 %v2411_v8 }
 0x398   : > { %3645 = shalt.err (!%p3642_p3)
}
 0x399   : > { %s3646_s19 = scalar_lea.hbm %s4307_s25, 64  ;;  %s3650_s23 = scalar_lea.hbm %s4385_s7, 128 }
 0x39a   : > { %p3647_p4 = scmp.ne.s32.totalorder %s4307_s25, %s3646_s19  ;;  %p3651_p9 = scmp.lt.u32.totalorder %s4307_s25, %s4385_s7 }
 0x39b   : > { %p3652_p10 = scmp.lt.u32.totalorder %s3650_s23, %s3646_s19  ;;  %p3654_p12 = scmp.lt.u32.totalorder %s3646_s19, %s4307_s25 }
 0x39c   : > { %p3648_p7 = pnand %p3647_p4, %p3817_p5 }
 0x39d   : > { %p3653_p11 = por %p3652_p10, %p3651_p9 }
 0x39e   : > { %p3649_p8 = pneg %p3648_p7 }
 0x39f   : > { %p3655_p13 = por %p3654_p12, %p3653_p11 }
 0x3a1   : > { %p3656_p0 = pnand %p3655_p13, %p3649_p8 }
 0x3a3   : > { %3659 = shalt.err (!%p3656_p0)
}
 0x3a4   : > { %3476 = dma.vmem_to_hbm [thread:$0]  (%p3817_p5), %s2520_s20, 64, %s4307_s25, %s2502_s26   ;;  %v2428_v9 = vld [vmem:[%s4384_s6] sm:$0x1]  ;;  %vm2499_vm9 = vcmask 73728  }
 0x3a5   : > { %s2950_s17 = sshll.u32 %s3800_s9, 4  ;;  %s308_s21 = scalar_lea.vmem [#allocation5], %s4300_s18 }
 0x3a6   : > { %s2532_s22 = sshll.u32 %s308_s21, 4  ;;  %s4335_s24 = scalar_lea.hbm %s4386_s8, %s2950_s17  ;;  %s4337_s22 = int_to_ptr.vmem [resolvable:$true] %s2532_s22 }
 0x3a7   : > { %s2507_s25 = scalar_lea.sflag [#allocation6], %s4300_s18  ;;  %s3660_s20 = scalar_lea.vmem %s4337_s22, 16 }
 0x3a8   : > { %p3661_p1 = scmp.ne.s32.totalorder %s4337_s22, %s3660_s20  ;;  %s3733_s9 = smov [#allocation5]  }
 0x3a9   : > { %s3664_s26 = sshll.u32 %s3733_s9, 4  ;;  %s3665_s26 = int_to_ptr.vmem [resolvable:$false] %s3664_s26 }
 0x3aa   : > { %p3662_p2 = pnand %p3661_p1, %p3817_p5  ;;  %s3666_s12 = scalar_lea.vmem %s3665_s26, 32 }
 0x3ab   : > { %p3667_p4 = scmp.lt.s32.totalorder %s4337_s22, %s3665_s26  ;;  %p3668_p7 = scmp.lt.s32.totalorder %s3666_s12, %s3660_s20 }
 0x3ac   : > { %p3663_p3 = pneg %p3662_p2 }
 0x3ad   : > { %p3669_p8 = por %p3668_p7, %p3667_p4 }
 0x3af   : > { %p3670_p9 = pnand %p3669_p8, %p3663_p3 }
 0x46a   : > { %v2495_v10 = vpop.f32.mrb[36].mxu0 }
 0x46b   : > { %v2496_v11 = vadd.f32 %v2495_v10, %v2428_v9  ;;  %v3446_v12 = vpop.f32.mrb[37].mxu0 }
 0x46d   : > { %2500 = vst.msk [vmem:[%s308_s21] sm:$0x1] %vm2499_vm9, %v2496_v11 }
 0x46e   : > { %3673 = shalt.err (!%p3670_p9)
}
 0x46f   : > { %s3674_s18 = scalar_lea.hbm %s4335_s24, 16  ;;  %s3678_s17 = scalar_lea.hbm %s4386_s8, 32 }
 0x470   : > { %p3675_p10 = scmp.ne.s32.totalorder %s4335_s24, %s3674_s18  ;;  %p3679_p13 = scmp.lt.u32.totalorder %s4335_s24, %s4386_s8 }
 0x471   : > { %p3680_p0 = scmp.lt.u32.totalorder %s3678_s17, %s3674_s18  ;;  %p3682_p2 = scmp.lt.u32.totalorder %s3674_s18, %s4335_s24 }
 0x472   : > { %p3676_p11 = pnand %p3675_p10, %p3817_p5 }
 0x473   : > { %p3681_p1 = por %p3680_p0, %p3679_p13 }
 0x474   : > { %p3677_p12 = pneg %p3676_p11 }
 0x475   : > { %p3683_p3 = por %p3682_p2, %p3681_p1 }
 0x477   : > { %p3684_p4 = pnand %p3683_p3, %p3677_p12 }
 0x479   : > { %3687 = shalt.err (!%p3684_p4)
}
 0x47a   : > { %3477 = dma.vmem_to_hbm [thread:$0]  (%p3817_p5), %s4337_s22, 16, %s4335_s24, %s2507_s25  }
 0x47b PF: > { %p3487_p7 = scmp.ge.s32.totalorder %s3726_s30, 2  ;;  %s2544_s23 = sand.u32 1, %s3714_s27  }
 0x47c   : > { %s2545_s20 = scalar_lea.sflag [#allocation4], %s2544_s23 }
 0x47d   : > { %p3481_p8 = pnand %p3487_p7, %p3821_p6 }
 0x47f   : > { %3705 = dma.done.wait (!%p3481_p8), %s2545_s20, 64  }
 0x480   : > { %3707 = vsyncadd (!%p3481_p8), %s2545_s20, 4294967232  ;;  %s2554_s9 = scalar_lea.sflag [#allocation6], %s2544_s23 }
 0x481   : > { %3709 = dma.done.wait (!%p3481_p8), %s2554_s9, 16  }
 0x482   : > { %3711 = vsyncadd (!%p3481_p8), %s2554_s9, 4294967280  ;;  %p22_p5 = scmp.ge.s32.totalorder %s3804_s11, 4   ;;  %s4389_s27 = smov %s3718_s28 }
 0x483   : > { %s4390_s28 = smov %s3722_s29  ;;  %s4391_s29 = smov %s3815_s14 }
 0x484   : > { %s4392_s30 = smov %s3804_s11  ;;  %24 = sbr.rel (!%p22_p5) target bundleno = 5 (0x5), region = 116 }
 0x48b   :  { %2558 = vsyncpa [#allocation4], 1 }
 0x48c   :  { %2560 = vsyncpa [#allocation4 + $0x1], 1 }
 0x48d   :  { %2561 = vsyncpa [#allocation6], 1 }
 0x48e   :  { %2563 = vsyncpa [#allocation6 + $0x1], 1 }

// kernel: mystyle_cnn_forward.3
= control target key start
LH: loop header
LB: loop body
LE: loop exit
PB: predicated region body
PF: predicated region fallthrough
CT: control target
= control target key end

     0   :  { %12 = vsyncpa [#allocation4], 0  ;;  %s11134_s0 = inlined_call_operand.vmem [shape: f32[2,324,3], index: 0, kind: input, shape index: {}]   ;;  %s11135_s1 = inlined_call_operand.vmem [shape: bf16[9,3,32], index: 1, kind: input, shape index: {}]   ;;  %s11136_s2 = inlined_call_operand.vmem [shape: f32[1,32], index: 2, kind: input, shape index: {}]   ;;  %s11137_s3 = inlined_call_operand.vmem [shape: bf16[9,32,32], index: 3, kind: input, shape index: {}]   ;;  %s11138_s4 = inlined_call_operand.vmem [shape: f32[1,32], index: 4, kind: input, shape index: {}]   ;;  %s11139_s5 = inlined_call_operand.hbm [shape: f32[2,64,32], index: 5, kind: output, shape index: {0}]   ;;  %s11140_s6 = inlined_call_operand.vmem [shape: f32[2,100,32], index: 6, kind: output, shape index: {1}]  }
   0x1   :  { %14 = vsyncpa [#allocation4 + $0x1], 0  ;;  %s9571_s21 = smov 0   ;;  %s9573_s22 = smov 0  }
   0x2   :  { %s9575_s23 = smov 0   ;;  %s9577_s24 = smov 0  }
   0x3 LB: > { %s9592_s25 = sadd.s32 4294967295, %s9527_s24   ;;  %s7203_s26 = sadd.s32 4294967294, %s9527_s24   ;;  %s9527_s24 = sphi %s9577_s24, %s11180_s24   ;;  %s9523_s23 = sphi %s9575_s23, %s11179_s23   ;;  %s9519_s22 = sphi %s9573_s22, %s11178_s22   ;;  %s9515_s21 = sphi %s9571_s21, %s11177_s21  }
   0x4   : > { %s9596_s27 = sadd.s32 1, %s9527_s24   ;;  %s137_s28 = sadd.s32 1, %s9523_s23 }
   0x5   : > { %s134_s29 = ssub.s32 %s9527_s24, %s9596_s27  ;;  %p147_p0 = scmp.ne.s32.totalorder %s9523_s23, %s9519_s22 }
   0x6   : > { %p135_p1 = scmp.eq.s32.totalorder %s134_s29, 0  ;;  %p148_p2 = scmp.eq.s32.totalorder %s9592_s25, 1 }
   0x7   : > { %p153_p3 = scmp.ne.s32.totalorder %s9519_s22, %s9515_s21  ;;  %p154_p4 = scmp.eq.s32.totalorder %s7203_s26, 1 }
   0x8   : > { %s9607_s30 = scalar_select %p135_p1, %s9523_s23, %s137_s28  }
   0x9   : > { %p9609_p5 = por %p148_p2, %p147_p0  ;;  %p9613_p6 = por %p154_p4, %p153_p3 }
   0xa   : > { %p7206_p7 = scmp.ge.s32.totalorder %s9527_s24, 1  ;;  %p218_p8 = scmp.lt.s32.totalorder %s9527_s24, 3 }
   0xc   : > { %p219_p9 = pnand %p7206_p7, %p218_p8 }
   0xd   : > { %v7210_v0 = vld [vmem:[%s11135_s1 + $0x2] sm:$0x3] (!%p219_p9)  ;;  %vm430_vm0 = vcmask (!%p219_p9), 1040384   ;;  %vm431_vm1 = vcmask (!%p219_p9), 1041408   ;;  %p253_p10 = scmp.lt.s32.totalorder (!%p219_p9), %s9592_s25, 1  ;;  %v9529_v1 = vmov (!%p219_p9), 65535  }
   0xe   : > { %222 = sbr.rel (%p219_p9) target bundleno = 1972 (0x7b4), region = 40  ;;  %v432_v2 = vsel (!%p219_p9), %vm430_vm0, 4294967295, %v9529_v1  ;;  %v318_v3 = vld [vmem:[%s11135_s1] sm:$0x3] (!%p219_p9)  ;;  %v7247_v7 = vld [vmem:[%s11135_s1 + $0x4] sm:$0x3] (!%p219_p9) }
   0xf   : > { %v9626_v4 = vsel (!%p219_p9), %vm431_vm1, %v432_v2, 0  ;;  %vm375_vm2 = vcmask (!%p219_p9), 23552   ;;  %vm11141_vm3 = vcmask (!%p219_p9), 261120   ;;  %vm3250_vm4 = vcmask (!%p219_p9), 257024   ;;  %s7648_s28 = sshll.u32 (!%p219_p9), %s9592_s25, 10 }
  0x10   : > { %v435_v5 = vand.u32 (!%p219_p9), %v7210_v0, %v9626_v4  ;;  %v669_v6 = vand.u32 (!%p219_p9), %v9626_v4, %v318_v3  ;;  %v9649_v17 = vand.u32 (!%p219_p9), %v7247_v7, %v9626_v4  ;;  %v7266_v0 = vld [vmem:[%s11135_s1 + $0x6] sm:$0x3] (!%p219_p9)  ;;  %vm3254_vm5 = vcmask (!%p219_p9), 261122   ;;  %s11083_s11 = scalar_lea.hbm (!%p219_p9), %s11139_s5, %s7648_s28 }
  0x11   : > { %v9705_v3 = vand.u32 (!%p219_p9), %v7266_v0, %v9626_v4  ;;  %vm3263_vm6 = vcmask (!%p219_p9), 261126   ;;  %vm3257_vm7 = vcmask (!%p219_p9), 254976   ;;  %vm3259_vm8 = vcmask (!%p219_p9), 261124  }
  0x12   : > { %8066 = vmatprep.subr.bf16.mxu0 (!%p219_p9), %v435_v5  ;;  %8822 = vmatprep.subr.bf16.mxu1 (!%p219_p9), %v435_v5  ;;  %vm3266_vm9 = vcmask (!%p219_p9), 259072   ;;  %vm6826_vm10 = vcmask (!%p219_p9), 89088  }
  0x13   : > { %8067 = vmatpush3.bf16.msra.mxu0 (!%p219_p9), %v435_v5  ;;  %8823 = vmatpush3.bf16.msra.mxu1 (!%p219_p9), %v435_v5 }
  0x14   : > { %8104 = vmatprep.subr.bf16.mxu0 (!%p219_p9), %v669_v6 }
  0x15   : > { %s9629_s13 = scalar_select %p253_p10, %s9592_s25, 1 }
  0x17   : > { %s9400_s14 = smul.u32 328, %s9629_s13 }
  0x18   : > { %s9401_s18 = smul.u32 104, %s9629_s13 }
  0x19   : > { %s9640_s19 = scalar_lea.vmem %s11134_s0, %s9400_s14  ;;  %s9533_s14 = smov [#allocation3]  }
  0x1a   : > { %v319_v8 = vld [vmem:[%s9640_s19 + $0x1] sm:$0xff]  ;;  %v320_v9 = vld [vmem:[%s9640_s19 + $0x9] sm:$0xff]  ;;  %v321_v10 = vld [vmem:[%s9640_s19 + $0x11] sm:$0xff]  ;;  %s10210_s29 = scalar_lea.vmem %s11140_s6, %s9401_s18  ;;  %s9469_s15 = sshll.u32 %s9533_s14, 4  ;;  %s9470_s15 = int_to_ptr.vmem [resolvable:$false] %s9469_s15 }
  0x1b   : > { %v355_v11 = vpack.c.bf16 %v320_v9, %v319_v8  ;;  %v322_v12 = vld [vmem:[%s9640_s19 + $0x19] sm:$0xff]  ;;  %v323_v13 = vld [vmem:[%s9640_s19 + $0x21] sm:$0xff]  ;;  %v324_v14 = vld [vmem:[%s9640_s19 + $0x29] sm:$0xff]  ;;  %s9471_s16 = scalar_lea.vmem %s9470_s15, 2048 }
  0x1c   : > { %v356_v15 = vpack.c.bf16 %v322_v12, %v321_v10  ;;  %v357_v16 = vpack.c.bf16 %v324_v14, %v323_v13  ;;  %v325_v18 = vld [vmem:[%s9640_s19 + $0x31] sm:$0xff]  ;;  %v326_v19 = vld [vmem:[%s9640_s19 + $0x39] sm:$0xff]  ;;  %v327_v20 = vld [vmem:[%s9640_s19 + $0x41] sm:$0xff] }
  0x1d   : > { %8068 = vmatprep.mubr.msk.bf16.mxu0 %vm375_vm2, %v355_v11  ;;  %v328_v21 = vld [vmem:[%s9640_s19 + $0x49] sm:$0xff]  ;;  %v358_v22 = vpack.c.bf16 %v326_v19, %v325_v18  ;;  %v329_v24 = vld [vmem:[%s9640_s19 + $0x51] sm:$0xff]  ;;  %v330_v25 = vld [vmem:[%s9640_s19 + $0x59] sm:$0xff] }
  0x1e   : > { %8069 = vmatmul.mubr.msk.bf16.vlgmr.msra.gmra.mrb[0].mxu0 %vm375_vm2, %v356_v15  ;;  %v359_v23 = vpack.c.bf16 %v328_v21, %v327_v20  ;;  %v331_v26 = vld [vmem:[%s9640_s19 + $0x61] sm:$0xff]  ;;  %v332_v27 = vld [vmem:[%s9640_s19 + $0x69] sm:$0xff]  ;;  %v360_v28 = vpack.c.bf16 %v330_v25, %v329_v24  ;;  %v333_v30 = vld [vmem:[%s9640_s19 + $0x71] sm:$0xff] }
  0x1f   : > { %8072 = vmatprep.mubr.msk.bf16.mxu0 %vm375_vm2, %v357_v16  ;;  %8105 = vmatpush3.bf16.msra.mxu0 %v669_v6  ;;  %v361_v29 = vpack.c.bf16 %v332_v27, %v331_v26  ;;  %v334_v31 = vld [vmem:[%s9640_s19 + $0x79] sm:$0xff]  ;;  %v335_v32 = vld [vmem:[%s9640_s19 + $0x81] sm:$0xff]  ;;  %v336_v33 = vld [vmem:[%s9640_s19 + $0x89] sm:$0xff] }
  0x20   : > { %8142 = vmatprep.subr.bf16.mxu0 %v9649_v17  ;;  %v362_v34 = vpack.c.bf16 %v334_v31, %v333_v30  ;;  %v363_v35 = vpack.c.bf16 %v336_v33, %v335_v32  ;;  %v337_v36 = vld [vmem:[%s9640_s19 + $0x91] sm:$0xff]  ;;  %v338_v37 = vld [vmem:[%s9640_s19 + $0x99] sm:$0xff]  ;;  %v339_v38 = vld [vmem:[%s9640_s19 + $0xa1] sm:$0xff] }
  0x21   : > { %v340_v39 = vld [vmem:[%s9640_s19 + $0xa9] sm:$0xff]  ;;  %v364_v40 = vpack.c.bf16 %v338_v37, %v337_v36  ;;  %v341_v42 = vld [vmem:[%s9640_s19 + $0xb1] sm:$0xff]  ;;  %v342_v43 = vld [vmem:[%s9640_s19 + $0xb9] sm:$0xff] }
  0x22   : > { %v365_v41 = vpack.c.bf16 %v340_v39, %v339_v38  ;;  %v343_v44 = vld [vmem:[%s9640_s19 + $0xc1] sm:$0xff]  ;;  %v344_v45 = vld [vmem:[%s9640_s19 + $0xc9] sm:$0xff]  ;;  %v366_v46 = vpack.c.bf16 %v342_v43, %v341_v42  ;;  %v345_v48 = vld [vmem:[%s9640_s19 + $0xd1] sm:$0xff] }
  0x23   : > { %v367_v47 = vpack.c.bf16 %v344_v45, %v343_v44  ;;  %v346_v49 = vld [vmem:[%s9640_s19 + $0xd9] sm:$0xff]  ;;  %v347_v50 = vld [vmem:[%s9640_s19 + $0xe1] sm:$0xff]  ;;  %v348_v51 = vld [vmem:[%s9640_s19 + $0xe9] sm:$0xff] }
  0x24   : > { %v368_v52 = vpack.c.bf16 %v346_v49, %v345_v48  ;;  %v369_v53 = vpack.c.bf16 %v348_v51, %v347_v50  ;;  %v349_v54 = vld [vmem:[%s9640_s19 + $0xf1] sm:$0xff]  ;;  %v350_v55 = vld [vmem:[%s9640_s19 + $0xf9] sm:$0xff]  ;;  %v265_v57 = vld [vmem:[%s9640_s19 + $0x8] sm:$0xff] }
  0x25   : > { %v264_v56 = vld [vmem:[%s9640_s19] sm:$0xff]  ;;  %v370_v58 = vpack.c.bf16 %v350_v55, %v349_v54  ;;  %v266_v60 = vld [vmem:[%s9640_s19 + $0x10] sm:$0xff]  ;;  %v267_v61 = vld [vmem:[%s9640_s19 + $0x18] sm:$0xff] }
  0x26   : > { %8073 = vmatmul.mubr.msk.bf16.gmra.mrb[4].mxu0 %vm375_vm2, %v358_v22  ;;  %v300_v59 = vpack.c.bf16 %v265_v57, %v264_v56  ;;  %v268_v62 = vld [vmem:[%s9640_s19 + $0x20] sm:$0xff]  ;;  %v269_v63 = vld [vmem:[%s9640_s19 + $0x28] sm:$0xff]  ;;  %v301_v1 = vpack.c.bf16 %v267_v61, %v266_v60  ;;  %v270_v5 = vld [vmem:[%s9640_s19 + $0x30] sm:$0xff] }
  0x27   : > { %8076 = vmatprep.mubr.msk.bf16.mxu0 %vm375_vm2, %v359_v23  ;;  %v302_v2 = vpack.c.bf16 %v269_v63, %v268_v62  ;;  %v271_v6 = vld [vmem:[%s9640_s19 + $0x38] sm:$0xff]  ;;  %v272_v7 = vld [vmem:[%s9640_s19 + $0x40] sm:$0xff]  ;;  %v273_v8 = vld [vmem:[%s9640_s19 + $0x48] sm:$0xff] }
  0x28   : > { %v303_v9 = vpack.c.bf16 %v271_v6, %v270_v5  ;;  %v304_v10 = vpack.c.bf16 %v273_v8, %v272_v7  ;;  %v274_v11 = vld [vmem:[%s9640_s19 + $0x50] sm:$0xff]  ;;  %v275_v12 = vld [vmem:[%s9640_s19 + $0x58] sm:$0xff]  ;;  %v276_v13 = vld [vmem:[%s9640_s19 + $0x60] sm:$0xff] }
  0x29   : > { %v277_v14 = vld [vmem:[%s9640_s19 + $0x68] sm:$0xff]  ;;  %v305_v15 = vpack.c.bf16 %v275_v12, %v274_v11  ;;  %v279_v18 = vld [vmem:[%s9640_s19 + $0x78] sm:$0xff]  ;;  %v280_v19 = vld [vmem:[%s9640_s19 + $0x80] sm:$0xff] }
  0x2a   : > { %v306_v16 = vpack.c.bf16 %v277_v14, %v276_v13  ;;  %v281_v20 = vld [vmem:[%s9640_s19 + $0x88] sm:$0xff]  ;;  %v282_v23 = vld [vmem:[%s9640_s19 + $0x90] sm:$0xff]  ;;  %v283_v24 = vld [vmem:[%s9640_s19 + $0x98] sm:$0xff] }
  0x2b   : > { %v308_v22 = vpack.c.bf16 %v281_v20, %v280_v19  ;;  %v284_v25 = vld [vmem:[%s9640_s19 + $0xa0] sm:$0xff]  ;;  %v285_v26 = vld [vmem:[%s9640_s19 + $0xa8] sm:$0xff]  ;;  %v309_v27 = vpack.c.bf16 %v283_v24, %v282_v23  ;;  %v287_v30 = vld [vmem:[%s9640_s19 + $0xb8] sm:$0xff] }
  0x2c   : > { %v288_v31 = vld [vmem:[%s9640_s19 + $0xc0] sm:$0xff]  ;;  %v289_v32 = vld [vmem:[%s9640_s19 + $0xc8] sm:$0xff]  ;;  %v291_v36 = vld [vmem:[%s9640_s19 + $0xd8] sm:$0xff] }
  0x2d   : > { %v292_v37 = vld [vmem:[%s9640_s19 + $0xe0] sm:$0xff]  ;;  %v293_v38 = vld [vmem:[%s9640_s19 + $0xe8] sm:$0xff]  ;;  %v295_v42 = vld [vmem:[%s9640_s19 + $0xf8] sm:$0xff] }
  0x2e   : > { %8077 = vmatmul.mubr.msk.bf16.gmra.mrb[8].mxu0 %vm375_vm2, %v360_v28  ;;  %v310_v28 = vpack.c.bf16 %v285_v26, %v284_v25  ;;  %v296_v43 = vld [vmem:[%s9640_s19 + $0x100] sm:$0xff]  ;;  %v297_v44 = vld [vmem:[%s9640_s19 + $0x108] sm:$0xff]  ;;  %v299_v48 = vld [vmem:[%s9640_s19 + $0x118] sm:$0x3f] }
  0x2f   : > { %8080 = vmatprep.mubr.msk.bf16.mxu0 %vm375_vm2, %v361_v29  ;;  %v286_v29 = vld [vmem:[%s9640_s19 + $0xb0] sm:$0xff]  ;;  %v848_v49 = vld [vmem:[%s9640_s19 + $0x2] sm:$0xff]  ;;  %v851_v54 = vld [vmem:[%s9640_s19 + $0x1a] sm:$0xff] }
  0x30   : > { %v311_v33 = vpack.c.bf16 %v287_v30, %v286_v29  ;;  %v849_v50 = vld [vmem:[%s9640_s19 + $0xa] sm:$0xff]  ;;  %v852_v55 = vld [vmem:[%s9640_s19 + $0x22] sm:$0xff]  ;;  %v854_v61 = vld [vmem:[%s9640_s19 + $0x32] sm:$0xff] }
  0x31   : > { %v853_v56 = vld [vmem:[%s9640_s19 + $0x2a] sm:$0xff]  ;;  %v7285_v57 = vld [vmem:[%s11135_s1 + $0x8] sm:$0x3]  ;;  %v855_v62 = vld [vmem:[%s9640_s19 + $0x3a] sm:$0xff] }
  0x32   : > { %v9771_v60 = vand.u32 %v7285_v57, %v9626_v4  ;;  %v856_v63 = vld [vmem:[%s9640_s19 + $0x42] sm:$0xff]  ;;  %v857_v0 = vld [vmem:[%s9640_s19 + $0x4a] sm:$0xff]  ;;  %v858_v5 = vld [vmem:[%s9640_s19 + $0x52] sm:$0xff] }
  0x33   : > { %v859_v6 = vld [vmem:[%s9640_s19 + $0x5a] sm:$0xff]  ;;  %v860_v7 = vld [vmem:[%s9640_s19 + $0x62] sm:$0xff]  ;;  %v865_v13 = vld [vmem:[%s9640_s19 + $0x8a] sm:$0xff] }
  0x34   : > { %v889_v8 = vpack.c.bf16 %v859_v6, %v858_v5  ;;  %v863_v11 = vld [vmem:[%s9640_s19 + $0x7a] sm:$0xff]  ;;  %v864_v12 = vld [vmem:[%s9640_s19 + $0x82] sm:$0xff]  ;;  %v869_v19 = vld [vmem:[%s9640_s19 + $0xaa] sm:$0xff] }
  0x35   : > { %v871_v23 = vld [vmem:[%s9640_s19 + $0xba] sm:$0xff]  ;;  %v872_v24 = vld [vmem:[%s9640_s19 + $0xc2] sm:$0xff]  ;;  %v873_v25 = vld [vmem:[%s9640_s19 + $0xca] sm:$0xff] }
  0x36   : > { %8081 = vmatmul.mubr.msk.bf16.gmra.mrb[12].mxu0 %vm375_vm2, %v362_v34  ;;  %v312_v34 = vpack.c.bf16 %v289_v32, %v288_v31  ;;  %v875_v29 = vld [vmem:[%s9640_s19 + $0xda] sm:$0xff]  ;;  %v876_v30 = vld [vmem:[%s9640_s19 + $0xe2] sm:$0xff]  ;;  %v877_v31 = vld [vmem:[%s9640_s19 + $0xea] sm:$0xff] }
  0x37   : > { %8084 = vmatprep.mubr.msk.bf16.mxu0 %vm375_vm2, %v363_v35  ;;  %v290_v35 = vld [vmem:[%s9640_s19 + $0xd0] sm:$0xff]  ;;  %v7323_v57 = vld [vmem:[%s11135_s1 + $0xc] sm:$0x3]  ;;  %v1510_v5 = vld [vmem:[%s9640_s19 + $0x63] sm:$0xff] }
  0x38   : > { %v313_v39 = vpack.c.bf16 %v291_v36, %v290_v35  ;;  %v879_v35 = vld [vmem:[%s9640_s19 + $0xfa] sm:$0xff]  ;;  %v880_v36 = vld [vmem:[%s9640_s19 + $0x102] sm:$0xff]  ;;  %v1511_v6 = vld [vmem:[%s9640_s19 + $0x6b] sm:$0xff] }
  0x3e   : > { %8085 = vmatmul.mubr.msk.bf16.gmra.mrb[16].mxu0 %vm375_vm2, %v364_v40  ;;  %v314_v40 = vpack.c.bf16 %v293_v38, %v292_v37  ;;  %v881_v37 = vld [vmem:[%s9640_s19 + $0x10a] sm:$0xff] }
  0x3f   : > { %8088 = vmatprep.mubr.msk.bf16.mxu0 %vm375_vm2, %v365_v41  ;;  %v294_v41 = vld [vmem:[%s9640_s19 + $0xf0] sm:$0xff] }
  0x40   : > { %v315_v45 = vpack.c.bf16 %v295_v42, %v294_v41  ;;  %v883_v41 = vld [vmem:[%s9640_s19 + $0x11a] sm:$0x3f] }
  0x46   : > { %8089 = vmatmul.mubr.msk.bf16.gmra.mrb[20].mxu0 %vm375_vm2, %v366_v46  ;;  %v316_v46 = vpack.c.bf16 %v297_v44, %v296_v43  ;;  %v7304_v43 = vld [vmem:[%s11135_s1 + $0xa] sm:$0x3] }
  0x47   : > { %8092 = vmatprep.mubr.msk.bf16.mxu0 %vm375_vm2, %v367_v47  ;;  %v298_v47 = vld [vmem:[%s9640_s19 + $0x110] sm:$0xff]  ;;  %v1937_v44 = vand.u32 %v7304_v43, %v9626_v4  ;;  %v1827_v43 = vld [vmem:[%s9640_s19 + $0x1c] sm:$0xff] }
  0x48   : > { %v317_v51 = vpack.c.bf16 %v299_v48, %v298_v47  ;;  %v1208_v47 = vld [vmem:[%s9640_s19 + $0x122] sm:$0xff]  ;;  %v1209_v48 = vld [vmem:[%s9640_s19 + $0x12a] sm:$0x3f] }
  0x4e   : > { %8093 = vmatmul.mubr.msk.bf16.gmra.mrb[24].mxu0 %vm375_vm2, %v368_v52  ;;  %v884_v52 = vpack.c.bf16 %v849_v50, %v848_v49  ;;  %v1500_v49 = vld [vmem:[%s9640_s19 + $0x13] sm:$0xff]  ;;  %v1501_v50 = vld [vmem:[%s9640_s19 + $0x1b] sm:$0xff] }
  0x4f   : > { %8096 = vmatprep.mubr.msk.bf16.mxu0 %vm375_vm2, %v369_v53  ;;  %v850_v53 = vld [vmem:[%s9640_s19 + $0x12] sm:$0xff] }
  0x56   : > { %8097 = vmatmul.mubr.msk.bf16.gmra.mrb[28].mxu0 %vm375_vm2, %v370_v58  ;;  %v9766_v58 = vpack.c.bf16 %v851_v54, %v850_v53  ;;  %v1502_v53 = vld [vmem:[%s9640_s19 + $0x23] sm:$0xff]  ;;  %v1503_v54 = vld [vmem:[%s9640_s19 + $0x2b] sm:$0xff] }
  0x57   : > { %8106 = vmatprep.mubr.msk.bf16.mxu0 %vm375_vm2, %v300_v59  ;;  %v9768_v59 = vpack.c.bf16 %v853_v56, %v852_v55  ;;  %v1504_v55 = vld [vmem:[%s9640_s19 + $0x33] sm:$0xff]  ;;  %v1505_v56 = vld [vmem:[%s9640_s19 + $0x3b] sm:$0xff] }
  0x5e   : > { %8107 = vmatmul.mubr.msk.bf16.vlgmr.msra.gmra.mrb[0].mxu0 %vm375_vm2, %v301_v1  ;;  %v887_v1 = vpack.c.bf16 %v855_v62, %v854_v61  ;;  %v1506_v61 = vld [vmem:[%s9640_s19 + $0x43] sm:$0xff]  ;;  %v1507_v62 = vld [vmem:[%s9640_s19 + $0x4b] sm:$0xff] }
  0x5f   : > { %8110 = vmatprep.mubr.msk.bf16.mxu0 %vm375_vm2, %v302_v2  ;;  %8143 = vmatpush3.bf16.msra.mxu0 %v9649_v17  ;;  %v278_v17 = vld [vmem:[%s9640_s19 + $0x70] sm:$0xff]  ;;  %v888_v2 = vpack.c.bf16 %v857_v0, %v856_v63  ;;  %v1509_v0 = vld [vmem:[%s9640_s19 + $0x5b] sm:$0xff] }
  0x60   : > { %8180 = vmatprep.subr.bf16.mxu0 %v9705_v3  ;;  %v307_v21 = vpack.c.bf16 %v279_v18, %v278_v17  ;;  %v867_v17 = vld [vmem:[%s9640_s19 + $0x9a] sm:$0xff]  ;;  %v868_v18 = vld [vmem:[%s9640_s19 + $0xa2] sm:$0xff] }
  0x61   : > { %v1508_v63 = vld [vmem:[%s9640_s19 + $0x53] sm:$0xff] }
  0x66   : > { %8111 = vmatmul.mubr.msk.bf16.gmra.mrb[4].mxu0 %vm375_vm2, %v303_v9 }
  0x67   : > { %8114 = vmatprep.mubr.msk.bf16.mxu0 %vm375_vm2, %v304_v10  ;;  %v862_v10 = vld [vmem:[%s9640_s19 + $0x72] sm:$0xff] }
  0x68   : > { %v891_v14 = vpack.c.bf16 %v863_v11, %v862_v10  ;;  %v1514_v10 = vld [vmem:[%s9640_s19 + $0x83] sm:$0xff]  ;;  %v1515_v11 = vld [vmem:[%s9640_s19 + $0x8b] sm:$0xff] }
  0x6e   : > { %8115 = vmatmul.mubr.msk.bf16.gmra.mrb[8].mxu0 %vm375_vm2, %v305_v15  ;;  %v892_v15 = vpack.c.bf16 %v865_v13, %v864_v12  ;;  %v1516_v12 = vld [vmem:[%s9640_s19 + $0x93] sm:$0xff]  ;;  %v1517_v13 = vld [vmem:[%s9640_s19 + $0x9b] sm:$0xff] }
  0x6f   : > { %8118 = vmatprep.mubr.msk.bf16.mxu0 %vm375_vm2, %v306_v16  ;;  %v866_v16 = vld [vmem:[%s9640_s19 + $0x92] sm:$0xff] }
  0x70   : > { %v893_v20 = vpack.c.bf16 %v867_v17, %v866_v16  ;;  %v1518_v16 = vld [vmem:[%s9640_s19 + $0xa3] sm:$0xff]  ;;  %v1519_v17 = vld [vmem:[%s9640_s19 + $0xab] sm:$0xff] }
  0x76   : > { %8119 = vmatmul.mubr.msk.bf16.gmra.mrb[12].mxu0 %vm375_vm2, %v307_v21  ;;  %v894_v21 = vpack.c.bf16 %v869_v19, %v868_v18  ;;  %v1520_v18 = vld [vmem:[%s9640_s19 + $0xb3] sm:$0xff]  ;;  %v1521_v19 = vld [vmem:[%s9640_s19 + $0xbb] sm:$0xff] }
  0x77   : > { %8122 = vmatprep.mubr.msk.bf16.mxu0 %vm375_vm2, %v308_v22  ;;  %v870_v22 = vld [vmem:[%s9640_s19 + $0xb2] sm:$0xff] }
  0x78   : > { %v895_v26 = vpack.c.bf16 %v871_v23, %v870_v22  ;;  %v1522_v22 = vld [vmem:[%s9640_s19 + $0xc3] sm:$0xff]  ;;  %v1523_v23 = vld [vmem:[%s9640_s19 + $0xcb] sm:$0xff] }
  0x7e   : > { %8123 = vmatmul.mubr.msk.bf16.gmra.mrb[16].mxu0 %vm375_vm2, %v309_v27  ;;  %v896_v27 = vpack.c.bf16 %v873_v25, %v872_v24  ;;  %v1524_v24 = vld [vmem:[%s9640_s19 + $0xd3] sm:$0xff]  ;;  %v1525_v25 = vld [vmem:[%s9640_s19 + $0xdb] sm:$0xff] }
  0x7f   : > { %8126 = vmatprep.mubr.msk.bf16.mxu0 %vm375_vm2, %v310_v28  ;;  %v874_v28 = vld [vmem:[%s9640_s19 + $0xd2] sm:$0xff] }
  0x80   : > { %v897_v32 = vpack.c.bf16 %v875_v29, %v874_v28  ;;  %v1526_v28 = vld [vmem:[%s9640_s19 + $0xe3] sm:$0xff]  ;;  %v1527_v29 = vld [vmem:[%s9640_s19 + $0xeb] sm:$0xff] }
  0x86   : > { %8127 = vmatmul.mubr.msk.bf16.gmra.mrb[20].mxu0 %vm375_vm2, %v311_v33  ;;  %v898_v33 = vpack.c.bf16 %v877_v31, %v876_v30  ;;  %v1528_v30 = vld [vmem:[%s9640_s19 + $0xf3] sm:$0xff]  ;;  %v1529_v31 = vld [vmem:[%s9640_s19 + $0xfb] sm:$0xff] }
  0x87   : > { %8130 = vmatprep.mubr.msk.bf16.mxu0 %vm375_vm2, %v312_v34  ;;  %v878_v34 = vld [vmem:[%s9640_s19 + $0xf2] sm:$0xff] }
  0x88   : > { %v899_v38 = vpack.c.bf16 %v879_v35, %v878_v34  ;;  %v1530_v34 = vld [vmem:[%s9640_s19 + $0x103] sm:$0xff]  ;;  %v1531_v35 = vld [vmem:[%s9640_s19 + $0x10b] sm:$0xff] }
  0x8e   : > { %8131 = vmatmul.mubr.msk.bf16.gmra.mrb[24].mxu0 %vm375_vm2, %v313_v39  ;;  %v900_v39 = vpack.c.bf16 %v881_v37, %v880_v36  ;;  %v1532_v36 = vld [vmem:[%s9640_s19 + $0x113] sm:$0xff]  ;;  %v1533_v37 = vld [vmem:[%s9640_s19 + $0x11b] sm:$0xff] }
  0x8f   : > { %8134 = vmatprep.mubr.msk.bf16.mxu0 %vm375_vm2, %v314_v40  ;;  %v882_v40 = vld [vmem:[%s9640_s19 + $0x112] sm:$0xff] }
  0x90   : > { %v901_v42 = vpack.c.bf16 %v883_v41, %v882_v40  ;;  %v1535_v41 = vld [vmem:[%s9640_s19 + $0x12b] sm:$0x3f] }
  0x96   : > { %8135 = vmatmul.mubr.msk.bf16.gmra.mrb[28].mxu0 %vm375_vm2, %v315_v45  ;;  %v1207_v45 = vld [vmem:[%s9640_s19 + $0x11a] sm:$0xff] }
  0x97   : > { %8138 = vmatprep.mubr.msk.bf16.mxu0 %vm375_vm2, %v316_v46  ;;  %v1226_v46 = vpack.c.bf16 %v1207_v45, %v882_v40  ;;  %v1534_v40 = vld [vmem:[%s9640_s19 + $0x123] sm:$0xff] }
  0x9e   : > { %8139 = vmatmul.mubr.msk.bf16.gmra.mrb[32].mxu0 %vm375_vm2, %v317_v51  ;;  %v1227_v51 = vpack.c.bf16 %v1209_v48, %v1208_v47  ;;  %v1829_v47 = vld [vmem:[%s9640_s19 + $0x2c] sm:$0xff]  ;;  %v1830_v48 = vld [vmem:[%s9640_s19 + $0x34] sm:$0xff] }
  0x9f   : > { %8144 = vmatprep.mubr.msk.bf16.mxu0 %vm375_vm2, %v884_v52  ;;  %v1536_v52 = vpack.c.bf16 %v1501_v50, %v1500_v49  ;;  %v1831_v49 = vld [vmem:[%s9640_s19 + $0x3c] sm:$0xff]  ;;  %v7342_v50 = vld [vmem:[%s11135_s1 + $0xe] sm:$0x3] }
  0xa6   : > { %8145 = vmatmul.mubr.msk.bf16.vlgmr.msra.gmra.mrb[0].mxu0 %vm375_vm2, %v9766_v58 }
  0xa7   : > { %8148 = vmatprep.mubr.msk.bf16.mxu0 %vm375_vm2, %v9768_v59  ;;  %8181 = vmatpush3.bf16.msra.mxu0 %v9705_v3  ;;  %v861_v3 = vld [vmem:[%s9640_s19 + $0x6a] sm:$0xff] }
  0xa8   : > { %8218 = vmatprep.subr.bf16.mxu0 %v9771_v60  ;;  %v890_v9 = vpack.c.bf16 %v861_v3, %v860_v7  ;;  %v1512_v7 = vld [vmem:[%s9640_s19 + $0x73] sm:$0xff]  ;;  %v1513_v3 = vld [vmem:[%s9640_s19 + $0x7b] sm:$0xff] }
  0xae   : > { %8149 = vmatmul.mubr.msk.bf16.gmra.mrb[4].mxu0 %vm375_vm2, %v887_v1 }
  0xaf   : > { %8152 = vmatprep.mubr.msk.bf16.mxu0 %vm375_vm2, %v888_v2 }
  0xb6   : > { %8153 = vmatmul.mubr.msk.bf16.gmra.mrb[8].mxu0 %vm375_vm2, %v889_v8 }
  0xb7   : > { %8156 = vmatprep.mubr.msk.bf16.mxu0 %vm375_vm2, %v890_v9 }
  0xbe   : > { %8157 = vmatmul.mubr.msk.bf16.gmra.mrb[12].mxu0 %vm375_vm2, %v891_v14 }
  0xbf   : > { %8160 = vmatprep.mubr.msk.bf16.mxu0 %vm375_vm2, %v892_v15 }
  0xc6   : > { %8161 = vmatmul.mubr.msk.bf16.gmra.mrb[16].mxu0 %vm375_vm2, %v893_v20 }
  0xc7   : > { %8164 = vmatprep.mubr.msk.bf16.mxu0 %vm375_vm2, %v894_v21 }
  0xce   : > { %8165 = vmatmul.mubr.msk.bf16.gmra.mrb[20].mxu0 %vm375_vm2, %v895_v26 }
  0xcf   : > { %8168 = vmatprep.mubr.msk.bf16.mxu0 %vm375_vm2, %v896_v27 }
  0xd6   : > { %8169 = vmatmul.mubr.msk.bf16.gmra.mrb[24].mxu0 %vm375_vm2, %v897_v32 }
  0xd7   : > { %8172 = vmatprep.mubr.msk.bf16.mxu0 %vm375_vm2, %v898_v33 }
  0xde   : > { %8173 = vmatmul.mubr.msk.bf16.gmra.mrb[28].mxu0 %vm375_vm2, %v899_v38 }
  0xdf   : > { %8176 = vmatprep.mubr.msk.bf16.mxu0 %vm375_vm2, %v900_v39 }
  0xe6   : > { %8177 = vmatmul.mubr.msk.bf16.gmra.mrb[32].mxu0 %vm375_vm2, %v901_v42  ;;  %v1826_v42 = vld [vmem:[%s9640_s19 + $0x14] sm:$0xff] }
  0xe7   : > { %8182 = vmatprep.mubr.msk.bf16.mxu0 %vm375_vm2, %v9766_v58  ;;  %v1537_v58 = vpack.c.bf16 %v1503_v54, %v1502_v53  ;;  %v1862_v45 = vpack.c.bf16 %v1827_v43, %v1826_v42  ;;  %v9928_v53 = vand.u32 %v7342_v50, %v9626_v4  ;;  %v1832_v54 = vld [vmem:[%s9640_s19 + $0x44] sm:$0xff]  ;;  %v2479_v42 = vld [vmem:[%s9640_s19 + $0x2d] sm:$0xff] }
  0xee   : > { %8183 = vmatmul.mubr.msk.bf16.vlgmr.msra.gmra.mrb[0].mxu0 %vm375_vm2, %v9768_v59  ;;  %v1538_v59 = vpack.c.bf16 %v1505_v56, %v1504_v55  ;;  %v1833_v55 = vld [vmem:[%s9640_s19 + $0x4c] sm:$0xff]  ;;  %v1834_v56 = vld [vmem:[%s9640_s19 + $0x54] sm:$0xff] }
  0xef   : > { %8186 = vmatprep.mubr.msk.bf16.mxu0 %vm375_vm2, %v887_v1  ;;  %8219 = vmatpush3.bf16.msra.mxu0 %v9771_v60  ;;  %v9863_v60 = vand.u32 %v7323_v57, %v9626_v4  ;;  %v1539_v1 = vpack.c.bf16 %v1507_v62, %v1506_v61  ;;  %v1835_v57 = vld [vmem:[%s9640_s19 + $0x5c] sm:$0xff]  ;;  %v1836_v61 = vld [vmem:[%s9640_s19 + $0x64] sm:$0xff]  ;;  %v1837_v62 = vld [vmem:[%s9640_s19 + $0x6c] sm:$0xff] }
  0xf0   : > { %8256 = vmatprep.subr.bf16.mxu0 %v1937_v44 }
  0xf6   : > { %8187 = vmatmul.mubr.msk.bf16.gmra.mrb[4].mxu0 %vm375_vm2, %v888_v2  ;;  %v1540_v2 = vpack.c.bf16 %v1509_v0, %v1508_v63  ;;  %v1838_v63 = vld [vmem:[%s9640_s19 + $0x74] sm:$0xff]  ;;  %v1867_v0 = vpack.c.bf16 %v1837_v62, %v1836_v61 }
  0xf7   : > { %8190 = vmatprep.mubr.msk.bf16.mxu0 %vm375_vm2, %v889_v8  ;;  %v1541_v8 = vpack.c.bf16 %v1511_v6, %v1510_v5  ;;  %v1841_v5 = vld [vmem:[%s9640_s19 + $0x8c] sm:$0xff]  ;;  %v1842_v6 = vld [vmem:[%s9640_s19 + $0x94] sm:$0xff] }
  0xfe   : > { %8191 = vmatmul.mubr.msk.bf16.gmra.mrb[8].mxu0 %vm375_vm2, %v890_v9  ;;  %v1542_v9 = vpack.c.bf16 %v1513_v3, %v1512_v7  ;;  %v1843_v7 = vld [vmem:[%s9640_s19 + $0x9c] sm:$0xff] }
  0xff   : > { %8194 = vmatprep.mubr.msk.bf16.mxu0 %vm375_vm2, %v891_v14  ;;  %v1543_v14 = vpack.c.bf16 %v1515_v11, %v1514_v10  ;;  %v1845_v10 = vld [vmem:[%s9640_s19 + $0xac] sm:$0xff]  ;;  %v1846_v11 = vld [vmem:[%s9640_s19 + $0xb4] sm:$0xff] }
 0x106   : > { %8195 = vmatmul.mubr.msk.bf16.gmra.mrb[12].mxu0 %vm375_vm2, %v892_v15  ;;  %v1544_v15 = vpack.c.bf16 %v1517_v13, %v1516_v12  ;;  %v1847_v12 = vld [vmem:[%s9640_s19 + $0xbc] sm:$0xff] }
 0x107   : > { %8198 = vmatprep.mubr.msk.bf16.mxu0 %vm375_vm2, %v893_v20  ;;  %v1545_v20 = vpack.c.bf16 %v1519_v17, %v1518_v16  ;;  %v1849_v16 = vld [vmem:[%s9640_s19 + $0xcc] sm:$0xff]  ;;  %v1850_v17 = vld [vmem:[%s9640_s19 + $0xd4] sm:$0xff] }
 0x10e   : > { %8199 = vmatmul.mubr.msk.bf16.gmra.mrb[16].mxu0 %vm375_vm2, %v894_v21  ;;  %v1546_v21 = vpack.c.bf16 %v1521_v19, %v1520_v18  ;;  %v1851_v18 = vld [vmem:[%s9640_s19 + $0xdc] sm:$0xff] }
 0x10f   : > { %8202 = vmatprep.mubr.msk.bf16.mxu0 %vm375_vm2, %v895_v26  ;;  %v1547_v26 = vpack.c.bf16 %v1523_v23, %v1522_v22  ;;  %v1853_v22 = vld [vmem:[%s9640_s19 + $0xec] sm:$0xff]  ;;  %v1854_v23 = vld [vmem:[%s9640_s19 + $0xf4] sm:$0xff] }
 0x116   : > { %8203 = vmatmul.mubr.msk.bf16.gmra.mrb[20].mxu0 %vm375_vm2, %v896_v27  ;;  %v1548_v27 = vpack.c.bf16 %v1525_v25, %v1524_v24  ;;  %v1855_v24 = vld [vmem:[%s9640_s19 + $0xfc] sm:$0xff] }
 0x117   : > { %8206 = vmatprep.mubr.msk.bf16.mxu0 %vm375_vm2, %v897_v32  ;;  %v1549_v32 = vpack.c.bf16 %v1527_v29, %v1526_v28  ;;  %v1857_v28 = vld [vmem:[%s9640_s19 + $0x10c] sm:$0xff]  ;;  %v1858_v29 = vld [vmem:[%s9640_s19 + $0x114] sm:$0xff] }
 0x11e   : > { %8207 = vmatmul.mubr.msk.bf16.gmra.mrb[24].mxu0 %vm375_vm2, %v898_v33  ;;  %v1550_v33 = vpack.c.bf16 %v1529_v31, %v1528_v30  ;;  %v1859_v30 = vld [vmem:[%s9640_s19 + $0x11c] sm:$0xff] }
 0x11f   : > { %8210 = vmatprep.mubr.msk.bf16.mxu0 %vm375_vm2, %v899_v38  ;;  %v1551_v38 = vpack.c.bf16 %v1531_v35, %v1530_v34  ;;  %v1861_v34 = vld [vmem:[%s9640_s19 + $0x12c] sm:$0x3f] }
 0x126   : > { %8211 = vmatmul.mubr.msk.bf16.gmra.mrb[28].mxu0 %vm375_vm2, %v900_v39  ;;  %v1552_v39 = vpack.c.bf16 %v1533_v37, %v1532_v36  ;;  %v7361_v36 = vld [vmem:[%s11135_s1 + $0x10] sm:$0x3] }
 0x127   : > { %8214 = vmatprep.mubr.msk.bf16.mxu0 %vm375_vm2, %v1226_v46  ;;  %v1828_v46 = vld [vmem:[%s9640_s19 + $0x24] sm:$0xff]  ;;  %v2915_v37 = vand.u32 %v7361_v36, %v9626_v4  ;;  %v2185_v4 = vld [vmem:[%s9640_s19 + $0x12c] sm:$0xff]  ;;  %v2512_v36 = vld [vmem:[%s9640_s19 + $0x135] sm:$0xff] }
 0x12e   : > { %8215 = vmatmul.mubr.msk.bf16.gmra.mrb[32].mxu0 %vm375_vm2, %v1227_v51  ;;  %v9923_v51 = vpack.c.bf16 %v1829_v47, %v1828_v46  ;;  %v2481_v46 = vld [vmem:[%s9640_s19 + $0x3d] sm:$0xff]  ;;  %v2482_v47 = vld [vmem:[%s9640_s19 + $0x45] sm:$0xff] }
 0x12f   : > { %8220 = vmatprep.mubr.msk.bf16.mxu0 %vm375_vm2, %v1536_v52  ;;  %v9925_v52 = vpack.c.bf16 %v1831_v49, %v1830_v48  ;;  %v2483_v48 = vld [vmem:[%s9640_s19 + $0x4d] sm:$0xff] }
 0x130   : > { %v2516_v50 = vpack.c.bf16 %v2483_v48, %v2482_v47  ;;  %v2810_v47 = vld [vmem:[%s9640_s19 + $0x56] sm:$0xff]  ;;  %v2811_v48 = vld [vmem:[%s9640_s19 + $0x5e] sm:$0xff] }
 0x136   : > { %8221 = vmatmul.mubr.msk.bf16.vlgmr.msra.gmra.mrb[0].mxu0 %vm375_vm2, %v1537_v58  ;;  %v1865_v58 = vpack.c.bf16 %v1833_v55, %v1832_v54  ;;  %v2484_v54 = vld [vmem:[%s9640_s19 + $0x55] sm:$0xff]  ;;  %v2485_v55 = vld [vmem:[%s9640_s19 + $0x5d] sm:$0xff] }
 0x137   : > { %8224 = vmatprep.mubr.msk.bf16.mxu0 %vm375_vm2, %v1538_v59  ;;  %8257 = vmatpush3.bf16.msra.mxu0 %v1937_v44  ;;  %v1553_v44 = vpack.c.bf16 %v1535_v41, %v1534_v40  ;;  %v1866_v59 = vpack.c.bf16 %v1835_v57, %v1834_v56  ;;  %v2187_v40 = vld [vmem:[%s9640_s19 + $0x13c] sm:$0x3f]  ;;  %v2478_v41 = vld [vmem:[%s9640_s19 + $0x25] sm:$0xff]  ;;  %v2517_v62 = vpack.c.bf16 %v2485_v55, %v2484_v54 }
 0x138   : > { %8294 = vmatprep.subr.bf16.mxu0 %v9863_v60  ;;  %v354_v57 = vld [vmem:[%s9640_s19 + $0x119] sm:$0x3f]  ;;  %v2816_v55 = vld [vmem:[%s9640_s19 + $0x86] sm:$0xff] }
 0x139   : > { %v2815_v54 = vld [vmem:[%s9640_s19 + $0x7e] sm:$0xff] }
 0x13e   : > { %8225 = vmatmul.mubr.msk.bf16.gmra.mrb[4].mxu0 %vm375_vm2, %v1539_v1 }
 0x13f   : > { %8228 = vmatprep.mubr.msk.bf16.mxu0 %vm375_vm2, %v1540_v2  ;;  %v1840_v2 = vld [vmem:[%s9640_s19 + $0x84] sm:$0xff] }
 0x140   : > { %v1869_v3 = vpack.c.bf16 %v1841_v5, %v1840_v2  ;;  %v2491_v2 = vld [vmem:[%s9640_s19 + $0x8d] sm:$0xff] }
 0x146   : > { %8229 = vmatmul.mubr.msk.bf16.gmra.mrb[8].mxu0 %vm375_vm2, %v1541_v8  ;;  %v1870_v8 = vpack.c.bf16 %v1843_v7, %v1842_v6  ;;  %v2492_v7 = vld [vmem:[%s9640_s19 + $0x95] sm:$0xff] }
 0x147   : > { %8232 = vmatprep.mubr.msk.bf16.mxu0 %vm375_vm2, %v1542_v9  ;;  %v1844_v9 = vld [vmem:[%s9640_s19 + $0xa4] sm:$0xff] }
 0x148   : > { %v1871_v13 = vpack.c.bf16 %v1845_v10, %v1844_v9  ;;  %v2495_v9 = vld [vmem:[%s9640_s19 + $0xad] sm:$0xff] }
 0x14e   : > { %8233 = vmatmul.mubr.msk.bf16.gmra.mrb[12].mxu0 %vm375_vm2, %v1543_v14  ;;  %v1872_v14 = vpack.c.bf16 %v1847_v12, %v1846_v11  ;;  %v2496_v12 = vld [vmem:[%s9640_s19 + $0xb5] sm:$0xff] }
 0x14f   : > { %8236 = vmatprep.mubr.msk.bf16.mxu0 %vm375_vm2, %v1544_v15  ;;  %v1848_v15 = vld [vmem:[%s9640_s19 + $0xc4] sm:$0xff] }
 0x150   : > { %v1873_v19 = vpack.c.bf16 %v1849_v16, %v1848_v15  ;;  %v2499_v15 = vld [vmem:[%s9640_s19 + $0xcd] sm:$0xff] }
 0x156   : > { %8237 = vmatmul.mubr.msk.bf16.gmra.mrb[16].mxu0 %vm375_vm2, %v1545_v20  ;;  %v1874_v20 = vpack.c.bf16 %v1851_v18, %v1850_v17  ;;  %v2500_v18 = vld [vmem:[%s9640_s19 + $0xd5] sm:$0xff] }
 0x157   : > { %8240 = vmatprep.mubr.msk.bf16.mxu0 %vm375_vm2, %v1546_v21  ;;  %v1852_v21 = vld [vmem:[%s9640_s19 + $0xe4] sm:$0xff] }
 0x158   : > { %v1875_v25 = vpack.c.bf16 %v1853_v22, %v1852_v21  ;;  %v2503_v21 = vld [vmem:[%s9640_s19 + $0xed] sm:$0xff] }
 0x15e   : > { %8241 = vmatmul.mubr.msk.bf16.gmra.mrb[20].mxu0 %vm375_vm2, %v1547_v26  ;;  %v1876_v26 = vpack.c.bf16 %v1855_v24, %v1854_v23  ;;  %v2504_v24 = vld [vmem:[%s9640_s19 + $0xf5] sm:$0xff] }
 0x15f   : > { %8244 = vmatprep.mubr.msk.bf16.mxu0 %vm375_vm2, %v1548_v27  ;;  %v1856_v27 = vld [vmem:[%s9640_s19 + $0x104] sm:$0xff] }
 0x160   : > { %v1877_v31 = vpack.c.bf16 %v1857_v28, %v1856_v27  ;;  %v2507_v27 = vld [vmem:[%s9640_s19 + $0x10d] sm:$0xff] }
 0x166   : > { %8245 = vmatmul.mubr.msk.bf16.gmra.mrb[24].mxu0 %vm375_vm2, %v1549_v32  ;;  %v1878_v32 = vpack.c.bf16 %v1859_v30, %v1858_v29  ;;  %v2508_v30 = vld [vmem:[%s9640_s19 + $0x115] sm:$0xff] }
 0x167   : > { %8248 = vmatprep.mubr.msk.bf16.mxu0 %vm375_vm2, %v1550_v33  ;;  %v1860_v33 = vld [vmem:[%s9640_s19 + $0x124] sm:$0xff] }
 0x168   : > { %v1879_v35 = vpack.c.bf16 %v1861_v34, %v1860_v33 }
 0x16e   : > { %8249 = vmatmul.mubr.msk.bf16.gmra.mrb[28].mxu0 %vm375_vm2, %v1551_v38  ;;  %v2204_v38 = vpack.c.bf16 %v2185_v4, %v1860_v33  ;;  %v2511_v33 = vld [vmem:[%s9640_s19 + $0x12d] sm:$0xff] }
 0x16f   : > { %8252 = vmatprep.mubr.msk.bf16.mxu0 %vm375_vm2, %v1552_v39  ;;  %v2186_v39 = vld [vmem:[%s9640_s19 + $0x134] sm:$0xff]  ;;  %v2804_v4 = vld [vmem:[%s9640_s19 + $0x26] sm:$0xff] }
 0x170   : > { %v2205_v43 = vpack.c.bf16 %v2187_v40, %v2186_v39 }
 0x176   : > { %8253 = vmatmul.mubr.msk.bf16.gmra.mrb[32].mxu0 %vm375_vm2, %v1553_v44  ;;  %v2514_v44 = vpack.c.bf16 %v2479_v42, %v2478_v41  ;;  %v2806_v41 = vld [vmem:[%s9640_s19 + $0x36] sm:$0xff]  ;;  %v2807_v42 = vld [vmem:[%s9640_s19 + $0x3e] sm:$0xff] }
 0x177   : > { %8258 = vmatprep.mubr.msk.bf16.mxu0 %vm375_vm2, %v1862_v45  ;;  %v2480_v45 = vld [vmem:[%s9640_s19 + $0x35] sm:$0xff] }
 0x178   : > { %v2515_v49 = vpack.c.bf16 %v2481_v46, %v2480_v45  ;;  %v2841_v45 = vpack.c.bf16 %v2807_v42, %v2806_v41 }
 0x17e   : > { %8259 = vmatmul.mubr.msk.bf16.vlgmr.msra.gmra.mrb[0].mxu0 %vm375_vm2, %v9923_v51 }
 0x17f   : > { %8262 = vmatprep.mubr.msk.bf16.mxu0 %vm375_vm2, %v9925_v52  ;;  %8295 = vmatpush3.bf16.msra.mxu0 %v9863_v60  ;;  %v1839_v60 = vld [vmem:[%s9640_s19 + $0x7c] sm:$0xff] }
 0x180   : > { %8332 = vmatprep.subr.bf16.mxu0 %v9928_v53  ;;  %v1868_v1 = vpack.c.bf16 %v1839_v60, %v1838_v63  ;;  %v2488_v60 = vld [vmem:[%s9640_s19 + $0x75] sm:$0xff] }
 0x186   : > { %8263 = vmatmul.mubr.msk.bf16.gmra.mrb[4].mxu0 %vm375_vm2, %v1865_v58 }
 0x187   : > { %8266 = vmatprep.mubr.msk.bf16.mxu0 %vm375_vm2, %v1866_v59 }
 0x18e   : > { %8267 = vmatmul.mubr.msk.bf16.gmra.mrb[8].mxu0 %vm375_vm2, %v1867_v0 }
 0x18f   : > { %8270 = vmatprep.mubr.msk.bf16.mxu0 %vm375_vm2, %v1868_v1 }
 0x196   : > { %8271 = vmatmul.mubr.msk.bf16.gmra.mrb[12].mxu0 %vm375_vm2, %v1869_v3 }
 0x197   : > { %8274 = vmatprep.mubr.msk.bf16.mxu0 %vm375_vm2, %v1870_v8 }
 0x19e   : > { %8275 = vmatmul.mubr.msk.bf16.gmra.mrb[16].mxu0 %vm375_vm2, %v1871_v13 }
 0x19f   : > { %8278 = vmatprep.mubr.msk.bf16.mxu0 %vm375_vm2, %v1872_v14 }
 0x1a6   : > { %8279 = vmatmul.mubr.msk.bf16.gmra.mrb[20].mxu0 %vm375_vm2, %v1873_v19 }
 0x1a7   : > { %8282 = vmatprep.mubr.msk.bf16.mxu0 %vm375_vm2, %v1874_v20 }
 0x1ae   : > { %8283 = vmatmul.mubr.msk.bf16.gmra.mrb[24].mxu0 %vm375_vm2, %v1875_v25 }
 0x1af   : > { %8286 = vmatprep.mubr.msk.bf16.mxu0 %vm375_vm2, %v1876_v26 }
 0x1b6   : > { %8287 = vmatmul.mubr.msk.bf16.gmra.mrb[28].mxu0 %vm375_vm2, %v1877_v31 }
 0x1b7   : > { %8290 = vmatprep.mubr.msk.bf16.mxu0 %vm375_vm2, %v1878_v32 }
 0x1be   : > { %8291 = vmatmul.mubr.msk.bf16.gmra.mrb[32].mxu0 %vm375_vm2, %v1879_v35 }
 0x1bf   : > { %8296 = vmatprep.mubr.msk.bf16.mxu0 %vm375_vm2, %v9923_v51  ;;  %v351_v51 = vld [vmem:[%s9640_s19 + $0x101] sm:$0xff] }
 0x1c6   : > { %8297 = vmatmul.mubr.msk.bf16.vlgmr.msra.gmra.mrb[0].mxu0 %vm375_vm2, %v9925_v52  ;;  %v352_v52 = vld [vmem:[%s9640_s19 + $0x109] sm:$0xff] }
 0x1c7   : > { %8300 = vmatprep.mubr.msk.bf16.mxu0 %vm375_vm2, %v1865_v58  ;;  %8333 = vmatpush3.bf16.msra.mxu0 %v9928_v53  ;;  %v353_v53 = vld [vmem:[%s9640_s19 + $0x111] sm:$0xff]  ;;  %v371_v56 = vpack.c.bf16 %v352_v52, %v351_v51  ;;  %v2486_v58 = vld [vmem:[%s9640_s19 + $0x65] sm:$0xff]  ;;  %v2843_v51 = vpack.c.bf16 %v2811_v48, %v2810_v47 }
 0x1c8   : > { %8370 = vmatprep.subr.bf16.mxu0 %v2915_v37  ;;  %v372_v61 = vpack.c.bf16 %v354_v57, %v353_v53  ;;  %v2814_v53 = vld [vmem:[%s9640_s19 + $0x76] sm:$0xff] }
 0x1c9   : > { %8100 = vmatprep.mubr.msk.bf16.mxu1 %vm375_vm2, %v371_v56  ;;  %v2817_v56 = vld [vmem:[%s9640_s19 + $0x8e] sm:$0xff]  ;;  %v2845_v57 = vpack.c.bf16 %v2815_v54, %v2814_v53 }
 0x1ca   : > { %8101 = vmatmul.mubr.msk.bf16.vlgmr.msra.gmra.mrb[0].mxu1 %vm375_vm2, %v372_v61  ;;  %v2819_v61 = vld [vmem:[%s9640_s19 + $0x9e] sm:$0xff] }
 0x1ce   : > { %8301 = vmatmul.mubr.msk.bf16.gmra.mrb[4].mxu0 %vm375_vm2, %v1866_v59  ;;  %v2487_v59 = vld [vmem:[%s9640_s19 + $0x6d] sm:$0xff] }
 0x1cf   : > { %8304 = vmatprep.mubr.msk.bf16.mxu0 %vm375_vm2, %v1867_v0  ;;  %v2518_v63 = vpack.c.bf16 %v2487_v59, %v2486_v58  ;;  %v2489_v0 = vld [vmem:[%s9640_s19 + $0x7d] sm:$0xff]  ;;  %v2846_v58 = vpack.c.bf16 %v2817_v56, %v2816_v55 }
 0x1d0   : > { %v2519_v5 = vpack.c.bf16 %v2489_v0, %v2488_v60  ;;  %v2818_v59 = vld [vmem:[%s9640_s19 + $0x96] sm:$0xff] }
 0x1d1   : > { %v2847_v60 = vpack.c.bf16 %v2819_v61, %v2818_v59 }
 0x1d6   : > { %8305 = vmatmul.mubr.msk.bf16.gmra.mrb[8].mxu0 %vm375_vm2, %v1868_v1  ;;  %v2490_v1 = vld [vmem:[%s9640_s19 + $0x85] sm:$0xff] }
 0x1d7   : > { %8308 = vmatprep.mubr.msk.bf16.mxu0 %vm375_vm2, %v1869_v3  ;;  %v2520_v6 = vpack.c.bf16 %v2491_v2, %v2490_v1  ;;  %v2493_v3 = vld [vmem:[%s9640_s19 + $0x9d] sm:$0xff] }
 0x1d8   : > { %v2521_v10 = vpack.c.bf16 %v2493_v3, %v2492_v7  ;;  %v2822_v1 = vld [vmem:[%s9640_s19 + $0xb6] sm:$0xff]  ;;  %v2823_v2 = vld [vmem:[%s9640_s19 + $0xbe] sm:$0xff] }
 0x1d9   : > { %v2849_v7 = vpack.c.bf16 %v2823_v2, %v2822_v1 }
 0x1de   : > { %8309 = vmatmul.mubr.msk.bf16.gmra.mrb[12].mxu0 %vm375_vm2, %v1870_v8  ;;  %v2494_v8 = vld [vmem:[%s9640_s19 + $0xa5] sm:$0xff] }
 0x1df   : > { %8312 = vmatprep.mubr.msk.bf16.mxu0 %vm375_vm2, %v1871_v13  ;;  %v2522_v11 = vpack.c.bf16 %v2495_v9, %v2494_v8  ;;  %v2497_v13 = vld [vmem:[%s9640_s19 + $0xbd] sm:$0xff] }
 0x1e0   : > { %v2523_v16 = vpack.c.bf16 %v2497_v13, %v2496_v12  ;;  %v2826_v8 = vld [vmem:[%s9640_s19 + $0xd6] sm:$0xff]  ;;  %v2827_v9 = vld [vmem:[%s9640_s19 + $0xde] sm:$0xff] }
 0x1e1   : > { %v2851_v12 = vpack.c.bf16 %v2827_v9, %v2826_v8  ;;  %v9450_v8 = vld [vmem:[%s11137_s3 + $0x8] sm:$0xff]  }
 0x1e6   : > { %8313 = vmatmul.mubr.msk.bf16.gmra.mrb[16].mxu0 %vm375_vm2, %v1872_v14  ;;  %v2498_v14 = vld [vmem:[%s9640_s19 + $0xc5] sm:$0xff] }
 0x1e7   : > { %8316 = vmatprep.mubr.msk.bf16.mxu0 %vm375_vm2, %v1873_v19  ;;  %v2524_v17 = vpack.c.bf16 %v2499_v15, %v2498_v14  ;;  %v2501_v19 = vld [vmem:[%s9640_s19 + $0xdd] sm:$0xff] }
 0x1e8   : > { %v2525_v22 = vpack.c.bf16 %v2501_v19, %v2500_v18  ;;  %v2830_v14 = vld [vmem:[%s9640_s19 + $0xf6] sm:$0xff]  ;;  %v2831_v15 = vld [vmem:[%s9640_s19 + $0xfe] sm:$0xff] }
 0x1e9   : > { %v2853_v18 = vpack.c.bf16 %v2831_v15, %v2830_v14 }
 0x1ee   : > { %8317 = vmatmul.mubr.msk.bf16.gmra.mrb[20].mxu0 %vm375_vm2, %v1874_v20  ;;  %v2502_v20 = vld [vmem:[%s9640_s19 + $0xe5] sm:$0xff] }
 0x1ef   : > { %8320 = vmatprep.mubr.msk.bf16.mxu0 %vm375_vm2, %v1875_v25  ;;  %v2526_v23 = vpack.c.bf16 %v2503_v21, %v2502_v20  ;;  %v2505_v25 = vld [vmem:[%s9640_s19 + $0xfd] sm:$0xff] }
 0x1f0   : > { %v2527_v28 = vpack.c.bf16 %v2505_v25, %v2504_v24  ;;  %v2834_v20 = vld [vmem:[%s9640_s19 + $0x116] sm:$0xff]  ;;  %v2835_v21 = vld [vmem:[%s9640_s19 + $0x11e] sm:$0xff] }
 0x1f1   : > { %v2855_v24 = vpack.c.bf16 %v2835_v21, %v2834_v20 }
 0x1f6   : > { %8321 = vmatmul.mubr.msk.bf16.gmra.mrb[24].mxu0 %vm375_vm2, %v1876_v26  ;;  %v2506_v26 = vld [vmem:[%s9640_s19 + $0x105] sm:$0xff] }
 0x1f7   : > { %8324 = vmatprep.mubr.msk.bf16.mxu0 %vm375_vm2, %v1877_v31  ;;  %v2528_v29 = vpack.c.bf16 %v2507_v27, %v2506_v26  ;;  %v2509_v31 = vld [vmem:[%s9640_s19 + $0x11d] sm:$0xff] }
 0x1f8   : > { %v2529_v34 = vpack.c.bf16 %v2509_v31, %v2508_v30  ;;  %v2838_v26 = vld [vmem:[%s9640_s19 + $0x136] sm:$0xff]  ;;  %v2839_v27 = vld [vmem:[%s9640_s19 + $0x13e] sm:$0x3f] }
 0x1f9   : > { %v9447_v30 = vld [vmem:[%s11137_s3 + $0x10] sm:$0xff]   ;;  %v9448_v31 = vld [vmem:[%s11137_s3 + $0x18] sm:$0xff]  }
 0x1fa   : > { %8408 = vmatprep.subr.bf16.mxu1 %v9447_v30 }
 0x1fb   : > { %8409 = vmatpush3.bf16.msra.mxu1 %v9447_v30 }
 0x1fc   : > { %8410 = vmatprep.subr.bf16.mxu1 %v9448_v31 }
 0x1fe   : > { %8325 = vmatmul.mubr.msk.bf16.gmra.mrb[28].mxu0 %vm375_vm2, %v1878_v32  ;;  %v2510_v32 = vld [vmem:[%s9640_s19 + $0x125] sm:$0xff] }
 0x1ff   : > { %8328 = vmatprep.mubr.msk.bf16.mxu0 %vm375_vm2, %v2204_v38  ;;  %v2530_v35 = vpack.c.bf16 %v2511_v33, %v2510_v32  ;;  %v2805_v38 = vld [vmem:[%s9640_s19 + $0x2e] sm:$0xff]  ;;  %8411 = vmatpush3.bf16.msra.mxu1 %v9448_v31 }
 0x200   : > { %v2840_v40 = vpack.c.bf16 %v2805_v38, %v2804_v4  ;;  %v9449_v38 = vld [vmem:[%s11137_s3] sm:$0xff]  }
 0x201   : > { %8448 = vmatprep.subr.bf16.mxu1 %v9449_v38 }
 0x206   : > { %8329 = vmatmul.mubr.msk.bf16.gmra.mrb[32].mxu0 %vm375_vm2, %v2205_v43  ;;  %v2808_v43 = vld [vmem:[%s9640_s19 + $0x46] sm:$0xff] }
 0x207   : > { %8334 = vmatprep.mubr.msk.bf16.mxu0 %vm375_vm2, %v2514_v44  ;;  %v2809_v44 = vld [vmem:[%s9640_s19 + $0x4e] sm:$0xff] }
 0x208   : > { %v2842_v46 = vpack.c.bf16 %v2809_v44, %v2808_v43 }
 0x20e   : > { %8335 = vmatmul.mubr.msk.bf16.vlgmr.msra.gmra.mrb[0].mxu0 %vm375_vm2, %v2515_v49  ;;  %v2812_v49 = vld [vmem:[%s9640_s19 + $0x66] sm:$0xff] }
 0x20f   : > { %8338 = vmatprep.mubr.msk.bf16.mxu0 %vm375_vm2, %v2516_v50  ;;  %8371 = vmatpush3.bf16.msra.mxu0 %v2915_v37  ;;  %v2513_v37 = vld [vmem:[%s9640_s19 + $0x13d] sm:$0x3f]  ;;  %v2813_v50 = vld [vmem:[%s9640_s19 + $0x6e] sm:$0xff] }
 0x210   : > { %v2531_v39 = vpack.c.bf16 %v2513_v37, %v2512_v36  ;;  %v2844_v52 = vpack.c.bf16 %v2813_v50, %v2812_v49 }
 0x216   : > { %8339 = vmatmul.mubr.msk.bf16.gmra.mrb[4].mxu0 %vm375_vm2, %v2517_v62  ;;  %v2820_v62 = vld [vmem:[%s9640_s19 + $0xa6] sm:$0xff] }
 0x217   : > { %8342 = vmatprep.mubr.msk.bf16.mxu0 %vm375_vm2, %v2518_v63  ;;  %v2821_v63 = vld [vmem:[%s9640_s19 + $0xae] sm:$0xff] }
 0x218   : > { %v2848_v0 = vpack.c.bf16 %v2821_v63, %v2820_v62 }
 0x21e   : > { %8343 = vmatmul.mubr.msk.bf16.gmra.mrb[8].mxu0 %vm375_vm2, %v2519_v5  ;;  %v2824_v5 = vld [vmem:[%s9640_s19 + $0xc6] sm:$0xff] }
 0x21f   : > { %8346 = vmatprep.mubr.msk.bf16.mxu0 %vm375_vm2, %v2520_v6  ;;  %v2825_v6 = vld [vmem:[%s9640_s19 + $0xce] sm:$0xff] }
 0x220   : > { %v2850_v3 = vpack.c.bf16 %v2825_v6, %v2824_v5 }
 0x226   : > { %8347 = vmatmul.mubr.msk.bf16.gmra.mrb[12].mxu0 %vm375_vm2, %v2521_v10  ;;  %v2828_v10 = vld [vmem:[%s9640_s19 + $0xe6] sm:$0xff] }
 0x227   : > { %8350 = vmatprep.mubr.msk.bf16.mxu0 %vm375_vm2, %v2522_v11  ;;  %v2829_v11 = vld [vmem:[%s9640_s19 + $0xee] sm:$0xff] }
 0x228   : > { %v2852_v13 = vpack.c.bf16 %v2829_v11, %v2828_v10 }
 0x22e   : > { %8351 = vmatmul.mubr.msk.bf16.gmra.mrb[16].mxu0 %vm375_vm2, %v2523_v16  ;;  %v2832_v16 = vld [vmem:[%s9640_s19 + $0x106] sm:$0xff] }
 0x22f   : > { %8354 = vmatprep.mubr.msk.bf16.mxu0 %vm375_vm2, %v2524_v17  ;;  %v2833_v17 = vld [vmem:[%s9640_s19 + $0x10e] sm:$0xff] }
 0x230   : > { %v2854_v19 = vpack.c.bf16 %v2833_v17, %v2832_v16 }
 0x236   : > { %8355 = vmatmul.mubr.msk.bf16.gmra.mrb[20].mxu0 %vm375_vm2, %v2525_v22  ;;  %v2836_v22 = vld [vmem:[%s9640_s19 + $0x126] sm:$0xff] }
 0x237   : > { %8358 = vmatprep.mubr.msk.bf16.mxu0 %vm375_vm2, %v2526_v23  ;;  %v2837_v23 = vld [vmem:[%s9640_s19 + $0x12e] sm:$0xff]  ;;  %s243_s19 = sand.u32 1, %s9519_s22  }
 0x238   : > { %v2856_v25 = vpack.c.bf16 %v2837_v23, %v2836_v22  ;;  %s7207_s20 = sshll.u32 %s243_s19, 6  ;;  %s11093_s25 = scalar_lea.sflag [#allocation4], %s243_s19 }
 0x239   : > { %s11048_s26 = scalar_lea.vmem [#allocation3], %s7207_s20 }
 0x23a   : > { %s7113_s13 = sshll.u32 %s11048_s26, 4  ;;  %s11085_s13 = int_to_ptr.vmem [resolvable:$true] %s7113_s13 }
 0x23b   : > { %s9465_s12 = scalar_lea.vmem %s11085_s13, 1024  ;;  %p9472_p0 = scmp.lt.s32.totalorder %s11085_s13, %s9470_s15 }
 0x23c   : > { %p9466_p11 = scmp.ne.s32.totalorder %s11085_s13, %s9465_s12  ;;  %p9473_p1 = scmp.lt.s32.totalorder %s9471_s16, %s9465_s12 }
 0x23e   : > { %8359 = vmatmul.mubr.msk.bf16.gmra.mrb[24].mxu0 %vm375_vm2, %v2527_v28  ;;  %v2857_v28 = vpack.c.bf16 %v2839_v27, %v2838_v26  ;;  %p9467_p12 = pnand %p9466_p11, %p9609_p5  ;;  %p9474_p2 = por %p9473_p1, %p9472_p0 }
 0x23f   : > { %8362 = vmatprep.mubr.msk.bf16.mxu0 %vm375_vm2, %v2528_v29  ;;  %v11144_v29 = vmov 0.0  }
 0x240   : > { %3214 = vst.msk [vmem:[#allocation2 + $0x20] sm:$0xff] %vm11141_vm3, %v11144_v29  ;;  %3215 = vst.msk [vmem:[#allocation2 + $0x28] sm:$0xff] %vm11141_vm3, %v11144_v29  ;;  %p9468_p13 = pneg %p9467_p12 }
 0x241   : > { %3210 = vst.msk [vmem:[#allocation2] sm:$0xff] %vm11141_vm3, %v11144_v29  ;;  %3211 = vst.msk [vmem:[#allocation2 + $0x8] sm:$0xff] %vm11141_vm3, %v11144_v29 }
 0x242   : > { %3212 = vst.msk [vmem:[#allocation2 + $0x10] sm:$0xff] %vm11141_vm3, %v11144_v29  ;;  %3213 = vst.msk [vmem:[#allocation2 + $0x18] sm:$0xff] %vm11141_vm3, %v11144_v29  ;;  %p9475_p3 = pnand %p9474_p2, %p9468_p13 }
 0x243   : > { %3216 = vst.msk [vmem:[#allocation2 + $0x30] sm:$0xff] %vm11141_vm3, %v11144_v29  ;;  %3217 = vst.msk [vmem:[#allocation2 + $0x38] sm:$0xff] %vm11141_vm3, %v11144_v29 }
 0x244   : > { %3218 = vst.msk [vmem:[#allocation2 + $0x40] sm:$0xff] %vm11141_vm3, %v11144_v29  ;;  %3219 = vst.msk [vmem:[#allocation2 + $0x48] sm:$0xff] %vm11141_vm3, %v11144_v29 }
 0x245   : > { %3220 = vst.msk [vmem:[#allocation2 + $0x50] sm:$0xff] %vm11141_vm3, %v11144_v29  ;;  %3221 = vst.msk [vmem:[#allocation2 + $0x58] sm:$0xff] %vm11141_vm3, %v11144_v29 }
 0x246   : > { %8363 = vmatmul.mubr.msk.bf16.gmra.mrb[28].mxu0 %vm375_vm2, %v2529_v34  ;;  %3222 = vst.msk [vmem:[#allocation2 + $0x60] sm:$0xff] %vm11141_vm3, %v11144_v29  ;;  %3223 = vst.msk [vmem:[#allocation2 + $0x68] sm:$0xff] %vm11141_vm3, %v11144_v29 }
 0x247   : > { %8366 = vmatprep.mubr.msk.bf16.mxu0 %vm375_vm2, %v2530_v35  ;;  %3224 = vst.msk [vmem:[#allocation2 + $0x70] sm:$0xff] %vm11141_vm3, %v11144_v29  ;;  %3225 = vst.msk [vmem:[#allocation2 + $0x78] sm:$0xff] %vm11141_vm3, %v11144_v29 }
 0x248   : > { %3226 = vst.msk [vmem:[#allocation2 + $0x80] sm:$0xff] %vm11141_vm3, %v11144_v29  ;;  %3227 = vst.msk [vmem:[#allocation2 + $0x88] sm:$0xff] %vm11141_vm3, %v11144_v29  ;;  %v3359_v32 = vld [vmem:[#allocation2 + $0x1] sm:$0xff] }
 0x249   : > { %3228 = vst.msk [vmem:[#allocation2 + $0x90] sm:$0xff] %vm11141_vm3, %v11144_v29  ;;  %3229 = vst.msk [vmem:[#allocation2 + $0x98] sm:$0xff] %vm11141_vm3, %v11144_v29  ;;  %v3360_v33 = vld [vmem:[#allocation2 + $0x9] sm:$0xff] }
 0x24a   : > { %3230 = vst.msk [vmem:[#allocation2 + $0xa0] sm:$0xff] %vm11141_vm3, %v11144_v29  ;;  %3231 = vst.msk [vmem:[#allocation2 + $0xa8] sm:$0xff] %vm11141_vm3, %v11144_v29  ;;  %v3395_v34 = vpack.c.bf16 %v3360_v33, %v3359_v32 }
 0x24b   : > { %3232 = vst.msk [vmem:[#allocation2 + $0xb0] sm:$0xff] %vm11141_vm3, %v11144_v29  ;;  %3233 = vst.msk [vmem:[#allocation2 + $0xb8] sm:$0xff] %vm11141_vm3, %v11144_v29 }
 0x24c   : > { %3234 = vst.msk [vmem:[#allocation2 + $0xc0] sm:$0xff] %vm11141_vm3, %v11144_v29  ;;  %3235 = vst.msk [vmem:[#allocation2 + $0xc8] sm:$0xff] %vm11141_vm3, %v11144_v29  ;;  %8412 = vmatprep.mubr.msk.bf16.mxu1 %vm11141_vm3, %v3395_v34 }
 0x24d   : > { %3236 = vst.msk [vmem:[#allocation2 + $0xd0] sm:$0xff] %vm11141_vm3, %v11144_v29  ;;  %3237 = vst.msk [vmem:[#allocation2 + $0xd8] sm:$0xff] %vm11141_vm3, %v11144_v29 }
 0x24e   : > { %8367 = vmatmul.mubr.msk.bf16.gmra.mrb[32].mxu0 %vm375_vm2, %v2531_v39  ;;  %3238 = vst.msk [vmem:[#allocation2 + $0xe0] sm:$0xff] %vm11141_vm3, %v11144_v29  ;;  %3239 = vst.msk [vmem:[#allocation2 + $0xe8] sm:$0xff] %vm11141_vm3, %v11144_v29  ;;  %v10271_v39 = vld [vmem:[%s11136_s2] ss:$0 sm:$0xff] }
 0x24f   : > { %8372 = vmatprep.mubr.msk.bf16.mxu0 %vm375_vm2, %v2840_v40  ;;  %3240 = vst.msk [vmem:[#allocation2 + $0xf0] sm:$0xff] %vm11141_vm3, %v11144_v29  ;;  %3241 = vst.msk [vmem:[#allocation2 + $0xf8] sm:$0xff] %vm11141_vm3, %v11144_v29 }
 0x250   : > { %3242 = vst.msk [vmem:[#allocation2 + $0x100] sm:$0xff] %vm11141_vm3, %v11144_v29  ;;  %3243 = vst.msk [vmem:[#allocation2 + $0x108] sm:$0xff] %vm11141_vm3, %v11144_v29 }
 0x251   : > { %3244 = vst.msk [vmem:[#allocation2 + $0x110] sm:$0xff] %vm11141_vm3, %v11144_v29  ;;  %3245 = vst.msk [vmem:[#allocation2 + $0x118] sm:$0xff] %vm11141_vm3, %v11144_v29 }
 0x252   : > { %3246 = vst.msk [vmem:[#allocation2 + $0x120] sm:$0xff] %vm11141_vm3, %v11144_v29  ;;  %3247 = vst.msk [vmem:[#allocation2 + $0x128] sm:$0xff] %vm11141_vm3, %v11144_v29 }
 0x253   : > { %3248 = vst.msk [vmem:[#allocation2 + $0x130] sm:$0xff] %vm11141_vm3, %v11144_v29  ;;  %3249 = vst.msk [vmem:[#allocation2 + $0x138] sm:$0xff] %vm11141_vm3, %v11144_v29 }
 0x254   : > { %7073 = vst.msk [vmem:[%s10210_s29] sm:$0xff] %vm11141_vm3, %v11144_v29  ;;  %7074 = vst.msk [vmem:[%s10210_s29 + $0x8] sm:$0xff] %vm11141_vm3, %v11144_v29 }
 0x255   : > { %7075 = vst.msk [vmem:[%s10210_s29 + $0x10] sm:$0xff] %vm11141_vm3, %v11144_v29  ;;  %7076 = vst.msk [vmem:[%s10210_s29 + $0x18] sm:$0xff] %vm11141_vm3, %v11144_v29 }
 0x256   : > { %8373 = vmatmul.mubr.msk.bf16.vlgmr.msra.gmra.mrb[0].mxu0 %vm375_vm2, %v2841_v45  ;;  %7077 = vst.msk [vmem:[%s10210_s29 + $0x20] sm:$0xff] %vm11141_vm3, %v11144_v29  ;;  %7078 = vst.msk [vmem:[%s10210_s29 + $0x28] sm:$0xff] %vm11141_vm3, %v11144_v29 }
 0x257   : > { %8376 = vmatprep.mubr.msk.bf16.mxu0 %vm375_vm2, %v2842_v46  ;;  %7079 = vst.msk [vmem:[%s10210_s29 + $0x30] sm:$0xff] %vm11141_vm3, %v11144_v29  ;;  %7080 = vst.msk [vmem:[%s10210_s29 + $0x38] sm:$0xff] %vm11141_vm3, %v11144_v29 }
 0x258   : > { %7081 = vst.msk [vmem:[%s10210_s29 + $0x40] sm:$0xff] %vm11141_vm3, %v11144_v29  ;;  %7082 = vst.msk [vmem:[%s10210_s29 + $0x48] sm:$0xff] %vm11141_vm3, %v11144_v29 }
 0x259   : > { %7083 = vst.msk [vmem:[%s10210_s29 + $0x50] sm:$0xff] %vm11141_vm3, %v11144_v29  ;;  %7084 = vst.msk [vmem:[%s10210_s29 + $0x58] sm:$0xff] %vm11141_vm3, %v11144_v29 }
 0x25a   : > { %3251 = vst.msk [vmem:[#allocation2 + $0x140] sm:$0xf] %vm3250_vm4, %v11144_v29  ;;  %7085 = vst.msk [vmem:[%s10210_s29 + $0x60] sm:$0xf] %vm3250_vm4, %v11144_v29 }
 0x25e   : > { %8377 = vmatmul.mubr.msk.bf16.gmra.mrb[4].mxu0 %vm375_vm2, %v2843_v51 }
 0x25f   : > { %8380 = vmatprep.mubr.msk.bf16.mxu0 %vm375_vm2, %v2844_v52 }
 0x266   : > { %8381 = vmatmul.mubr.msk.bf16.gmra.mrb[8].mxu0 %vm375_vm2, %v2845_v57 }
 0x267   : > { %8384 = vmatprep.mubr.msk.bf16.mxu0 %vm375_vm2, %v2846_v58 }
 0x26e   : > { %8385 = vmatmul.mubr.msk.bf16.gmra.mrb[12].mxu0 %vm375_vm2, %v2847_v60 }
 0x26f   : > { %8388 = vmatprep.mubr.msk.bf16.mxu0 %vm375_vm2, %v2848_v0 }
 0x276   : > { %8389 = vmatmul.mubr.msk.bf16.gmra.mrb[16].mxu0 %vm375_vm2, %v2849_v7 }
 0x277   : > { %8392 = vmatprep.mubr.msk.bf16.mxu0 %vm375_vm2, %v2850_v3 }
 0x27e   : > { %8393 = vmatmul.mubr.msk.bf16.gmra.mrb[20].mxu0 %vm375_vm2, %v2851_v12 }
 0x27f   : > { %8396 = vmatprep.mubr.msk.bf16.mxu0 %vm375_vm2, %v2852_v13 }
 0x286   : > { %8397 = vmatmul.mubr.msk.bf16.gmra.mrb[24].mxu0 %vm375_vm2, %v2853_v18  ;;  %v10303_v18 = vld [vmem:[%s11137_s3 + $0x20] sm:$0xff]  }
 0x287   : > { %8400 = vmatprep.mubr.msk.bf16.mxu0 %vm375_vm2, %v2854_v19 }
 0x28e   : > { %8401 = vmatmul.mubr.msk.bf16.gmra.mrb[28].mxu0 %vm375_vm2, %v2855_v24 }
 0x28f   : > { %8404 = vmatprep.mubr.msk.bf16.mxu0 %vm375_vm2, %v2856_v25 }
 0x296   : > { %8405 = vmatmul.mubr.msk.bf16.gmra.mrb[32].mxu0 %vm375_vm2, %v2857_v28 }
 0x29d   : > { %v10257_v35 = vpop.f32.mrb[0].mxu1 }
 0x29e   : > { %v10259_v36 = vpop.f32.mrb[1].mxu1 }
 0x29f   : > { %v10261_v37 = vpop.f32.mrb[2].mxu1 }
 0x2a0   : > { %v10263_v4 = vpop.f32.mrb[3].mxu1 }
 0x329   : > { %v8374_v40 = vpop.f32.mrb[0].mxu0 }
 0x32a   : > { %v3139_v41 = vadd.f32 %v8374_v40, %v10271_v39  ;;  %v2951_v42 = vpop.f32.mrb[1].mxu0 }
 0x32b   : > { %v3137_v43 = vadd.f32 %v10271_v39, %v2951_v42  ;;  %v8375_v44 = vpop.f32.mrb[2].mxu0 }
 0x32c   : > { %v3175_v45 = vmax.f32 %v3139_v41, 0.0  ;;  %v3140_v46 = vadd.f32 %v8375_v44, %v10271_v39  ;;  %v2954_v47 = vpop.f32.mrb[3].mxu0 }
 0x32d   : > { %v3173_v48 = vmax.f32 %v3137_v43, 0.0  ;;  %v3138_v49 = vadd.f32 %v10271_v39, %v2954_v47 }
 0x32e   : > { %3255 = vst.msk [vmem:[#allocation2 + $0x23] sm:$0xfc] %vm3254_vm5, %v3175_v45  ;;  %v3176_v50 = vmax.f32 %v3140_v46, 0.0 }
 0x32f   : > { %3252 = vst.msk [vmem:[#allocation2 + $0x13] sm:$0xff] %vm11141_vm3, %v3173_v48  ;;  %v3174_v51 = vmax.f32 %v3138_v49, 0.0 }
 0x330   : > { %3256 = vst.msk [vmem:[#allocation2 + $0x2b] sm:$0xff] %vm11141_vm3, %v3176_v50 }
 0x331   : > { %3253 = vst.msk [vmem:[#allocation2 + $0x1b] sm:$0xff] %vm11141_vm3, %v3174_v51  ;;  %v8378_v52 = vpop.f32.mrb[4].mxu0 }
 0x332   : > { %v3143_v53 = vadd.f32 %v8378_v52, %v10271_v39  ;;  %v2967_v54 = vpop.f32.mrb[5].mxu0 }
 0x333   : > { %v3141_v55 = vadd.f32 %v10271_v39, %v2967_v54  ;;  %v8379_v56 = vpop.f32.mrb[6].mxu0 }
 0x334   : > { %v3179_v57 = vmax.f32 %v3143_v53, 0.0  ;;  %v3144_v58 = vadd.f32 %v8379_v56, %v10271_v39  ;;  %v2970_v59 = vpop.f32.mrb[7].mxu0 }
 0x335   : > { %v3177_v61 = vmax.f32 %v3141_v55, 0.0  ;;  %v3142_v62 = vadd.f32 %v10271_v39, %v2970_v59 }
 0x336   : > { %3262 = vst.msk [vmem:[#allocation2 + $0x43] sm:$0xf] %vm3250_vm4, %v3179_v57  ;;  %v3180_v63 = vmax.f32 %v3144_v58, 0.0  ;;  %v3361_v1 = vld [vmem:[#allocation2 + $0x11] sm:$0xff] }
 0x337   : > { %3264 = vst.msk [vmem:[#allocation2 + $0x43] sm:$0xc0] %vm3263_vm6, %v3179_v57  ;;  %v3178_v60 = vmax.f32 %v3142_v62, 0.0  ;;  %v3364_v0 = vld [vmem:[#allocation2 + $0x29] sm:$0xff] }
 0x338   : > { %3258 = vst.msk [vmem:[#allocation2 + $0x33] sm:$0x3] %vm3257_vm7, %v3177_v61  ;;  %v3362_v2 = vld [vmem:[#allocation2 + $0x19] sm:$0xff]  ;;  %v3363_v5 = vld [vmem:[#allocation2 + $0x21] sm:$0xff] }
 0x339   : > { %3260 = vst.msk [vmem:[#allocation2 + $0x33] sm:$0xf0] %vm3259_vm8, %v3177_v61  ;;  %v8382_v6 = vpop.f32.mrb[8].mxu0  ;;  %v3396_v7 = vpack.c.bf16 %v3362_v2, %v3361_v1  ;;  %v3397_v3 = vpack.c.bf16 %v3364_v0, %v3363_v5 }
 0x33a   : > { %3265 = vst.msk [vmem:[#allocation2 + $0x4b] sm:$0xff] %vm11141_vm3, %v3180_v63  ;;  %3261 = vst.msk [vmem:[#allocation2 + $0x3b] sm:$0xff] %vm11141_vm3, %v3178_v60  ;;  %v3147_v9 = vadd.f32 %v8382_v6, %v10271_v39  ;;  %v2983_v10 = vpop.f32.mrb[9].mxu0 }
 0x33b   : > { %v3145_v11 = vadd.f32 %v10271_v39, %v2983_v10  ;;  %v8383_v12 = vpop.f32.mrb[10].mxu0  ;;  %8413 = vmatmul.mubr.msk.bf16.vlgmr.msra.gmra.mrb[4].mxu1 %vm11141_vm3, %v3396_v7 }
 0x33c   : > { %v3183_v13 = vmax.f32 %v3147_v9, 0.0  ;;  %v3148_v14 = vadd.f32 %v8383_v12, %v10271_v39  ;;  %v2986_v15 = vpop.f32.mrb[11].mxu0  ;;  %8416 = vmatprep.mubr.msk.bf16.mxu1 %vm11141_vm3, %v3397_v3  ;;  %8449 = vmatpush3.bf16.msra.mxu1 %v9449_v38 }
 0x33d   : > { %v3181_v16 = vmax.f32 %v3145_v11, 0.0  ;;  %v3146_v17 = vadd.f32 %v10271_v39, %v2986_v15  ;;  %8450 = vmatprep.subr.bf16.mxu1 %v9450_v8 }
 0x33e   : > { %3269 = vst.msk [vmem:[#allocation2 + $0x63] sm:$0xff] %vm11141_vm3, %v3183_v13  ;;  %v3184_v19 = vmax.f32 %v3148_v14, 0.0 }
 0x33f   : > { %3267 = vst.msk [vmem:[#allocation2 + $0x53] sm:$0x3f] %vm3266_vm9, %v3181_v16  ;;  %v3182_v20 = vmax.f32 %v3146_v17, 0.0 }
 0x340   : > { %3270 = vst.msk [vmem:[#allocation2 + $0x6b] sm:$0xfc] %vm3254_vm5, %v3184_v19  ;;  %v3365_v22 = vld [vmem:[#allocation2 + $0x31] sm:$0xff]  ;;  %8451 = vmatpush3.bf16.msra.mxu1 %v9450_v8 }
 0x341   : > { %v3368_v21 = vld [vmem:[#allocation2 + $0x49] sm:$0xff]  ;;  %v3366_v23 = vld [vmem:[#allocation2 + $0x39] sm:$0xff]  ;;  %v3367_v24 = vld [vmem:[#allocation2 + $0x41] sm:$0xff]  ;;  %3268 = vst.msk [vmem:[#allocation2 + $0x5b] sm:$0xff] %vm11141_vm3, %v3182_v20  ;;  %v8386_v25 = vpop.f32.mrb[12].mxu0  ;;  %8488 = vmatprep.subr.bf16.mxu1 %v10303_v18 }
 0x342   : > { %v3398_v26 = vpack.c.bf16 %v3366_v23, %v3365_v22  ;;  %v3399_v27 = vpack.c.bf16 %v3368_v21, %v3367_v24  ;;  %v3151_v28 = vadd.f32 %v8386_v25, %v10271_v39  ;;  %v2999_v30 = vpop.f32.mrb[13].mxu0 }
 0x343   : > { %v3149_v31 = vadd.f32 %v10271_v39, %v2999_v30  ;;  %v8387_v32 = vpop.f32.mrb[14].mxu0 }
 0x344   : > { %8417 = vmatmul.mubr.msk.bf16.gmra.mrb[8].mxu1 %vm11141_vm3, %v3398_v26  ;;  %v3187_v33 = vmax.f32 %v3151_v28, 0.0  ;;  %v3152_v34 = vadd.f32 %v8387_v32, %v10271_v39  ;;  %v3002_v38 = vpop.f32.mrb[15].mxu0 }
 0x345   : > { %8420 = vmatprep.mubr.msk.bf16.mxu1 %vm11141_vm3, %v3399_v27  ;;  %v3185_v40 = vmax.f32 %v3149_v31, 0.0  ;;  %v3150_v41 = vadd.f32 %v10271_v39, %v3002_v38 }
 0x346   : > { %3274 = vst.msk [vmem:[#allocation2 + $0x83] sm:$0xff] %vm11141_vm3, %v3187_v33  ;;  %v3188_v42 = vmax.f32 %v3152_v34, 0.0  ;;  %v3369_v45 = vld [vmem:[#allocation2 + $0x51] sm:$0xff] }
 0x347   : > { %3271 = vst.msk [vmem:[#allocation2 + $0x73] sm:$0xff] %vm11141_vm3, %v3185_v40  ;;  %v3186_v43 = vmax.f32 %v3150_v41, 0.0  ;;  %v3372_v44 = vld [vmem:[#allocation2 + $0x69] sm:$0xff] }
 0x348   : > { %3275 = vst.msk [vmem:[#allocation2 + $0x8b] sm:$0xf] %vm3250_vm4, %v3188_v42  ;;  %v3370_v46 = vld [vmem:[#allocation2 + $0x59] sm:$0xff]  ;;  %v3371_v47 = vld [vmem:[#allocation2 + $0x61] sm:$0xff] }
 0x349   : > { %3276 = vst.msk [vmem:[#allocation2 + $0x8b] sm:$0xc0] %vm3263_vm6, %v3188_v42  ;;  %v8390_v48 = vpop.f32.mrb[16].mxu0  ;;  %v3400_v49 = vpack.c.bf16 %v3370_v46, %v3369_v45  ;;  %v3401_v50 = vpack.c.bf16 %v3372_v44, %v3371_v47 }
 0x34a   : > { %3272 = vst.msk [vmem:[#allocation2 + $0x7b] sm:$0x3] %vm3257_vm7, %v3186_v43  ;;  %v3155_v51 = vadd.f32 %v8390_v48, %v10271_v39  ;;  %v3015_v52 = vpop.f32.mrb[17].mxu0 }
 0x34b   : > { %3273 = vst.msk [vmem:[#allocation2 + $0x7b] sm:$0xf0] %vm3259_vm8, %v3186_v43  ;;  %v3153_v53 = vadd.f32 %v10271_v39, %v3015_v52  ;;  %v8391_v54 = vpop.f32.mrb[18].mxu0 }
 0x34c   : > { %8421 = vmatmul.mubr.msk.bf16.gmra.mrb[12].mxu1 %vm11141_vm3, %v3400_v49  ;;  %v3191_v55 = vmax.f32 %v3155_v51, 0.0  ;;  %v3156_v56 = vadd.f32 %v8391_v54, %v10271_v39  ;;  %v3018_v57 = vpop.f32.mrb[19].mxu0 }
 0x34d   : > { %8424 = vmatprep.mubr.msk.bf16.mxu1 %vm11141_vm3, %v3401_v50  ;;  %v3189_v58 = vmax.f32 %v3153_v53, 0.0  ;;  %v3154_v59 = vadd.f32 %v10271_v39, %v3018_v57 }
 0x34e   : > { %3279 = vst.msk [vmem:[#allocation2 + $0xa3] sm:$0xff] %vm11141_vm3, %v3191_v55  ;;  %v3192_v61 = vmax.f32 %v3156_v56, 0.0  ;;  %v3373_v60 = vld [vmem:[#allocation2 + $0x71] sm:$0xff] }
 0x34f   : > { %3277 = vst.msk [vmem:[#allocation2 + $0x93] sm:$0xff] %vm11141_vm3, %v3189_v58  ;;  %v3190_v62 = vmax.f32 %v3154_v59, 0.0  ;;  %v3376_v63 = vld [vmem:[#allocation2 + $0x89] sm:$0xff] }
 0x350   : > { %3280 = vst.msk [vmem:[#allocation2 + $0xab] sm:$0xff] %vm11141_vm3, %v3192_v61 }
 0x351   : > { %3278 = vst.msk [vmem:[#allocation2 + $0x9b] sm:$0x3f] %vm3266_vm9, %v3190_v62  ;;  %v8394_v2 = vpop.f32.mrb[20].mxu0 }
 0x352   : > { %v3374_v0 = vld [vmem:[#allocation2 + $0x79] sm:$0xff]  ;;  %v3375_v1 = vld [vmem:[#allocation2 + $0x81] sm:$0xff]  ;;  %v3159_v7 = vadd.f32 %v8394_v2, %v10271_v39  ;;  %v3031_v3 = vpop.f32.mrb[21].mxu0 }
 0x353   : > { %v3402_v5 = vpack.c.bf16 %v3374_v0, %v3373_v60  ;;  %v3403_v6 = vpack.c.bf16 %v3376_v63, %v3375_v1  ;;  %v3157_v8 = vadd.f32 %v10271_v39, %v3031_v3  ;;  %v8395_v9 = vpop.f32.mrb[22].mxu0 }
 0x354   : > { %v3195_v10 = vmax.f32 %v3159_v7, 0.0  ;;  %v3160_v11 = vadd.f32 %v8395_v9, %v10271_v39  ;;  %v3034_v12 = vpop.f32.mrb[23].mxu0 }
 0x355   : > { %8425 = vmatmul.mubr.msk.bf16.gmra.mrb[16].mxu1 %vm11141_vm3, %v3402_v5  ;;  %v3193_v13 = vmax.f32 %v3157_v8, 0.0  ;;  %v3158_v14 = vadd.f32 %v10271_v39, %v3034_v12  ;;  %v3379_v23 = vld [vmem:[#allocation2 + $0xa1] sm:$0xff] }
 0x356   : > { %8428 = vmatprep.mubr.msk.bf16.mxu1 %vm11141_vm3, %v3403_v6  ;;  %3283 = vst.msk [vmem:[#allocation2 + $0xc3] sm:$0x3] %vm3257_vm7, %v3195_v10  ;;  %v3196_v15 = vmax.f32 %v3160_v11, 0.0  ;;  %v3377_v19 = vld [vmem:[#allocation2 + $0x91] sm:$0xff] }
 0x357   : > { %3284 = vst.msk [vmem:[#allocation2 + $0xc3] sm:$0xf0] %vm3259_vm8, %v3195_v10  ;;  %v3194_v16 = vmax.f32 %v3158_v14, 0.0  ;;  %v3380_v17 = vld [vmem:[#allocation2 + $0xa9] sm:$0xff] }
 0x358   : > { %3281 = vst.msk [vmem:[#allocation2 + $0xb3] sm:$0xfc] %vm3254_vm5, %v3193_v13  ;;  %v3378_v20 = vld [vmem:[#allocation2 + $0x99] sm:$0xff]  ;;  %v3405_v26 = vpack.c.bf16 %v3380_v17, %v3379_v23 }
 0x359   : > { %3285 = vst.msk [vmem:[#allocation2 + $0xcb] sm:$0xff] %vm11141_vm3, %v3196_v15  ;;  %3282 = vst.msk [vmem:[#allocation2 + $0xbb] sm:$0xff] %vm11141_vm3, %v3194_v16  ;;  %v8398_v21 = vpop.f32.mrb[24].mxu0  ;;  %v3404_v22 = vpack.c.bf16 %v3378_v20, %v3377_v19 }
 0x35a   : > { %v3163_v24 = vadd.f32 %v8398_v21, %v10271_v39  ;;  %v3047_v25 = vpop.f32.mrb[25].mxu0 }
 0x35b   : > { %v3161_v27 = vadd.f32 %v10271_v39, %v3047_v25  ;;  %v8399_v28 = vpop.f32.mrb[26].mxu0 }
 0x35c   : > { %v3199_v30 = vmax.f32 %v3163_v24, 0.0  ;;  %v3164_v31 = vadd.f32 %v8399_v28, %v10271_v39  ;;  %v3050_v32 = vpop.f32.mrb[27].mxu0  ;;  %v3306_v28 = vld [vmem:[#allocation2 + $0x28] sm:$0xff] }
 0x35d   : > { %8429 = vmatmul.mubr.msk.bf16.gmra.mrb[20].mxu1 %vm11141_vm3, %v3404_v22  ;;  %v3197_v33 = vmax.f32 %v3161_v27, 0.0  ;;  %v3162_v34 = vadd.f32 %v10271_v39, %v3050_v32  ;;  %v3305_v27 = vld [vmem:[#allocation2 + $0x20] sm:$0xff]  ;;  %v9452_v32 = vld [vmem:[%s11137_s3 + $0x28] sm:$0xff]  }
 0x35e   : > { %8432 = vmatprep.mubr.msk.bf16.mxu1 %vm11141_vm3, %v3405_v26  ;;  %3289 = vst.msk [vmem:[#allocation2 + $0xe3] sm:$0x3f] %vm3266_vm9, %v3199_v30  ;;  %v3200_v38 = vmax.f32 %v3164_v31, 0.0  ;;  %v3304_v26 = vld [vmem:[#allocation2 + $0x18] sm:$0xff]  ;;  %v3303_v30 = vld [vmem:[#allocation2 + $0x10] sm:$0xff] }
 0x35f   : > { %3286 = vst.msk [vmem:[#allocation2 + $0xd3] sm:$0xf] %vm3250_vm4, %v3197_v33  ;;  %v3198_v40 = vmax.f32 %v3162_v34, 0.0  ;;  %v3381_v42 = vld [vmem:[#allocation2 + $0xb1] sm:$0xff]  ;;  %v3338_v31 = vpack.c.bf16 %v3304_v26, %v3303_v30  ;;  %v10427_v26 = vld [vmem:[%s11137_s3 + $0x40] sm:$0xff]  }
 0x360   : > { %3287 = vst.msk [vmem:[#allocation2 + $0xd3] sm:$0xc0] %vm3263_vm6, %v3197_v33  ;;  %v3384_v41 = vld [vmem:[#allocation2 + $0xc9] sm:$0xff]  ;;  %v3382_v43 = vld [vmem:[#allocation2 + $0xb9] sm:$0xff]  ;;  %v3383_v44 = vld [vmem:[#allocation2 + $0xc1] sm:$0xff]  ;;  %v3339_v33 = vpack.c.bf16 %v3306_v28, %v3305_v27 }
 0x361   : > { %3290 = vst.msk [vmem:[#allocation2 + $0xeb] sm:$0xff] %vm11141_vm3, %v3200_v38  ;;  %3288 = vst.msk [vmem:[#allocation2 + $0xdb] sm:$0xff] %vm11141_vm3, %v3198_v40  ;;  %v8402_v45 = vpop.f32.mrb[28].mxu0  ;;  %v3406_v46 = vpack.c.bf16 %v3382_v43, %v3381_v42  ;;  %v3407_v47 = vpack.c.bf16 %v3384_v41, %v3383_v44  ;;  %v10393_v34 = vld [vmem:[%s11137_s3 + $0x30] sm:$0xff]   ;;  %v3308_v38 = vld [vmem:[#allocation2 + $0x38] sm:$0xff] }
 0x362   : > { %v3167_v48 = vadd.f32 %v8402_v45, %v10271_v39  ;;  %v3063_v49 = vpop.f32.mrb[29].mxu0  ;;  %v3309_v40 = vld [vmem:[#allocation2 + $0x40] sm:$0xff]  ;;  %v3310_v41 = vld [vmem:[#allocation2 + $0x48] sm:$0xff]  ;;  %v3307_v42 = vld [vmem:[#allocation2 + $0x30] sm:$0xff] }
 0x363   : > { %v3165_v50 = vadd.f32 %v10271_v39, %v3063_v49  ;;  %v8403_v51 = vpop.f32.mrb[30].mxu0  ;;  %v3340_v43 = vpack.c.bf16 %v3308_v38, %v3307_v42  ;;  %v3341_v44 = vpack.c.bf16 %v3310_v41, %v3309_v40  ;;  %v3313_v45 = vld [vmem:[#allocation2 + $0x60] sm:$0xff]  ;;  %v3913_v30 = vld [vmem:[#allocation2 + $0x4a] sm:$0xff]  ;;  %v3914_v41 = vld [vmem:[#allocation2 + $0x52] sm:$0xff] }
 0x364   : > { %v3203_v52 = vmax.f32 %v3167_v48, 0.0  ;;  %v3168_v53 = vadd.f32 %v8403_v51, %v10271_v39  ;;  %v3066_v54 = vpop.f32.mrb[31].mxu0  ;;  %v3317_v51 = vld [vmem:[#allocation2 + $0x80] sm:$0xff]  ;;  %v3917_v40 = vld [vmem:[#allocation2 + $0x6a] sm:$0xff] }
 0x365   : > { %8433 = vmatmul.mubr.msk.bf16.gmra.mrb[24].mxu1 %vm11141_vm3, %v3406_v46  ;;  %v3201_v55 = vmax.f32 %v3165_v50, 0.0  ;;  %v3166_v56 = vadd.f32 %v10271_v39, %v3066_v54  ;;  %v3314_v46 = vld [vmem:[#allocation2 + $0x68] sm:$0xff]  ;;  %v3316_v50 = vld [vmem:[#allocation2 + $0x78] sm:$0xff] }
 0x366   : > { %8436 = vmatprep.mubr.msk.bf16.mxu1 %vm11141_vm3, %v3407_v47  ;;  %3293 = vst.msk [vmem:[#allocation2 + $0x103] sm:$0xff] %vm11141_vm3, %v3203_v52  ;;  %v3204_v57 = vmax.f32 %v3168_v53, 0.0  ;;  %v3385_v61 = vld [vmem:[#allocation2 + $0xd1] sm:$0xff]  ;;  %v3343_v49 = vpack.c.bf16 %v3314_v46, %v3313_v45  ;;  %v3318_v52 = vld [vmem:[#allocation2 + $0x88] sm:$0xff]  ;;  %v3911_v27 = vld [vmem:[#allocation2 + $0x3a] sm:$0xff] }
 0x367   : > { %3291 = vst.msk [vmem:[#allocation2 + $0xf3] sm:$0xff] %vm11141_vm3, %v3201_v55  ;;  %v3202_v58 = vmax.f32 %v3166_v56, 0.0  ;;  %v3311_v47 = vld [vmem:[#allocation2 + $0x50] sm:$0xff]  ;;  %v3345_v55 = vpack.c.bf16 %v3318_v52, %v3317_v51  ;;  %v3320_v56 = vld [vmem:[#allocation2 + $0x98] sm:$0xff]  ;;  %v3912_v28 = vld [vmem:[#allocation2 + $0x42] sm:$0xff] }
 0x368   : > { %v3388_v59 = vld [vmem:[#allocation2 + $0xe9] sm:$0xff]  ;;  %3294 = vst.msk [vmem:[#allocation2 + $0x10b] sm:$0x3] %vm3257_vm7, %v3204_v57  ;;  %v3386_v62 = vld [vmem:[#allocation2 + $0xd9] sm:$0xff]  ;;  %v3387_v63 = vld [vmem:[#allocation2 + $0xe1] sm:$0xff]  ;;  %vm6383_vm7 = vcmask 1046528  }
 0x369   : > { %3295 = vst.msk [vmem:[#allocation2 + $0x10b] sm:$0xf0] %vm3259_vm8, %v3204_v57  ;;  %v8406_v60 = vpop.f32.mrb[32].mxu0  ;;  %v3408_v0 = vpack.c.bf16 %v3386_v62, %v3385_v61  ;;  %v3409_v1 = vpack.c.bf16 %v3388_v59, %v3387_v63  ;;  %v3315_v53 = vld [vmem:[#allocation2 + $0x70] sm:$0xff]  ;;  %v3321_v57 = vld [vmem:[#allocation2 + $0xa0] sm:$0xff]  ;;  %v3324_v63 = vld [vmem:[#allocation2 + $0xb8] sm:$0xff] }
 0x36a   : > { %3292 = vst.msk [vmem:[#allocation2 + $0xfb] sm:$0xfc] %vm3254_vm5, %v3202_v58  ;;  %v8824_v2 = vadd.f32 %v8406_v60, %v10257_v35  ;;  %v3079_v5 = vpop.f32.mrb[33].mxu0  ;;  %v3344_v54 = vpack.c.bf16 %v3316_v50, %v3315_v53  ;;  %v3322_v58 = vld [vmem:[#allocation2 + $0xa8] sm:$0xff]  ;;  %v3319_v59 = vld [vmem:[#allocation2 + $0x90] sm:$0xff]  ;;  %v3325_v60 = vld [vmem:[#allocation2 + $0xc0] sm:$0xff] }
 0x36b   : > { %v8825_v6 = vadd.f32 %v3079_v5, %v10259_v36  ;;  %v8407_v7 = vpop.f32.mrb[34].mxu0  ;;  %v3346_v61 = vpack.c.bf16 %v3320_v56, %v3319_v59  ;;  %v3347_v62 = vpack.c.bf16 %v3322_v58, %v3321_v57  ;;  %v3916_v38 = vld [vmem:[#allocation2 + $0x62] sm:$0xff]  ;;  %v3921_v45 = vld [vmem:[#allocation2 + $0x8a] sm:$0xff]  ;;  %v3918_v46 = vld [vmem:[#allocation2 + $0x72] sm:$0xff]  ;;  %vm6565_vm8 = vcmask 1045504  }
 0x36c   : > { %v3171_v3 = vadd.f32 %v8824_v2, %v10271_v39  ;;  %v8826_v8 = vadd.f32 %v8407_v7, %v10261_v37  ;;  %v3082_v9 = vpop.f32.mrb[35].mxu0  ;;  %v3329_v7 = vld [vmem:[#allocation2 + $0xe0] sm:$0xff]  ;;  %v3925_v50 = vld [vmem:[#allocation2 + $0xaa] sm:$0xff]  ;;  %v3922_v51 = vld [vmem:[#allocation2 + $0x92] sm:$0xff] }
 0x36d   : > { %8437 = vmatmul.mubr.msk.bf16.gmra.mrb[28].mxu1 %vm11141_vm3, %v3408_v0  ;;  %v3169_v10 = vadd.f32 %v8825_v6, %v10271_v39  ;;  %v8827_v11 = vadd.f32 %v3082_v9, %v10263_v4  ;;  %v3301_v4 = vld [vmem:[#allocation2] sm:$0xff]  ;;  %v3326_v0 = vld [vmem:[#allocation2 + $0xc8] sm:$0xff]  ;;  %v3328_v6 = vld [vmem:[#allocation2 + $0xd8] sm:$0xff] }
 0x36e   : > { %8440 = vmatprep.mubr.msk.bf16.mxu1 %vm11141_vm3, %v3409_v1  ;;  %v3207_v12 = vmax.f32 %v3171_v3, 0.0  ;;  %v3172_v35 = vadd.f32 %v8826_v8, %v10271_v39  ;;  %v3389_v16 = vld [vmem:[#allocation2 + $0xf1] sm:$0xff]  ;;  %v3349_v5 = vpack.c.bf16 %v3326_v0, %v3325_v60  ;;  %v3330_v3 = vld [vmem:[#allocation2 + $0xe8] sm:$0xff] }
 0x36f   : > { %v3205_v13 = vmax.f32 %v3169_v10, 0.0  ;;  %v3170_v36 = vadd.f32 %v8827_v11, %v10271_v39  ;;  %v3302_v39 = vld [vmem:[#allocation2 + $0x8] sm:$0xff]  ;;  %v3323_v1 = vld [vmem:[#allocation2 + $0xb0] sm:$0xff]  ;;  %v3351_v10 = vpack.c.bf16 %v3330_v3, %v3329_v7 }
 0x370   : > { %v3392_v14 = vld [vmem:[#allocation2 + $0x109] sm:$0xff]  ;;  %3299 = vst.msk [vmem:[#allocation2 + $0x123] sm:$0xff] %vm11141_vm3, %v3207_v12  ;;  %v3208_v15 = vmax.f32 %v3172_v35, 0.0  ;;  %v3337_v24 = vpack.c.bf16 %v3302_v39, %v3301_v4  ;;  %v3348_v2 = vpack.c.bf16 %v3324_v63, %v3323_v1  ;;  %v3926_v58 = vld [vmem:[#allocation2 + $0xb2] sm:$0xff] }
 0x371   : > { %v3390_v17 = vld [vmem:[#allocation2 + $0xf9] sm:$0xff]  ;;  %v3391_v37 = vld [vmem:[#allocation2 + $0x101] sm:$0xff]  ;;  %3296 = vst.msk [vmem:[#allocation2 + $0x113] sm:$0xff] %vm11141_vm3, %v3205_v13  ;;  %v3206_v19 = vmax.f32 %v3170_v36, 0.0  ;;  %v3327_v8 = vld [vmem:[#allocation2 + $0xd0] sm:$0xff] }
 0x372   : > { %v3410_v20 = vpack.c.bf16 %v3390_v17, %v3389_v16  ;;  %v3411_v21 = vpack.c.bf16 %v3392_v14, %v3391_v37  ;;  %3300 = vst.msk [vmem:[#allocation2 + $0x12b] sm:$0x3f] %vm3266_vm9, %v3208_v15  ;;  %v3350_v9 = vpack.c.bf16 %v3328_v6, %v3327_v8  ;;  %v3332_v11 = vld [vmem:[#allocation2 + $0xf8] sm:$0xff]  ;;  %v3333_v12 = vld [vmem:[#allocation2 + $0x100] sm:$0xff]  ;;  %v3334_v35 = vld [vmem:[#allocation2 + $0x108] sm:$0xff] }
 0x373   : > { %3297 = vst.msk [vmem:[#allocation2 + $0x11b] sm:$0xf] %vm3250_vm4, %v3206_v19  ;;  %v3331_v13 = vld [vmem:[#allocation2 + $0xf0] sm:$0xff]  ;;  %v3353_v14 = vpack.c.bf16 %v3334_v35, %v3333_v12  ;;  %v3904_v15 = vld [vmem:[#allocation2 + $0x2] sm:$0xff] }
 0x374   : > { %3298 = vst.msk [vmem:[#allocation2 + $0x11b] sm:$0xc0] %vm3263_vm6, %v3206_v19  ;;  %v3352_v36 = vpack.c.bf16 %v3332_v11, %v3331_v13  ;;  %v3905_v16 = vld [vmem:[#allocation2 + $0xa] sm:$0xff]  ;;  %v3908_v4 = vld [vmem:[#allocation2 + $0x22] sm:$0xff]  ;;  %v3930_v0 = vld [vmem:[#allocation2 + $0xd2] sm:$0xff]  ;;  %vm6851_vm6 = vcmask 1042432  }
 0x375   : > { %8441 = vmatmul.mubr.msk.bf16.gmra.mrb[32].mxu1 %vm11141_vm3, %v3410_v20  ;;  %v3940_v19 = vpack.c.bf16 %v3905_v16, %v3904_v15  ;;  %v3909_v39 = vld [vmem:[#allocation2 + $0x2a] sm:$0xff]  ;;  %v3924_v53 = vld [vmem:[#allocation2 + $0xa2] sm:$0xff]  ;;  %v3934_v3 = vld [vmem:[#allocation2 + $0xf2] sm:$0xff] }
 0x376   : > { %8444 = vmatprep.mubr.msk.bf16.mxu1 %vm11141_vm3, %v3411_v21  ;;  %v3907_v21 = vld [vmem:[#allocation2 + $0x1a] sm:$0xff]  ;;  %v3928_v56 = vld [vmem:[#allocation2 + $0xc2] sm:$0xff]  ;;  %v3929_v57 = vld [vmem:[#allocation2 + $0xca] sm:$0xff] }
 0x377   : > { %v3932_v63 = vld [vmem:[#allocation2 + $0xe2] sm:$0xff]  ;;  %v3933_v60 = vld [vmem:[#allocation2 + $0xea] sm:$0xff] }
 0x378   : > { %v3393_v22 = vld [vmem:[#allocation2 + $0x111] sm:$0xff]  ;;  %v3936_v6 = vld [vmem:[#allocation2 + $0x102] sm:$0xff] }
 0x379   : > { %v3335_v37 = vld [vmem:[#allocation2 + $0x110] sm:$0xff]  ;;  %v9456_v35 = vld [vmem:[%s11137_s3 + $0x48] sm:$0xff]  }
 0x37a   : > { %v3394_v23 = vld [vmem:[#allocation2 + $0x119] sm:$0x3f]  ;;  %v3937_v7 = vld [vmem:[#allocation2 + $0x10a] sm:$0xff] }
 0x37b   : > { %v3412_v25 = vpack.c.bf16 %v3394_v23, %v3393_v22  ;;  %v3336_v17 = vld [vmem:[#allocation2 + $0x118] sm:$0x3f]  ;;  %v9457_v13 = vld [vmem:[%s11137_s3 + $0x50] sm:$0xff]   ;;  %v4276_v15 = vld [vmem:[#allocation2 + $0x122] sm:$0xff] }
 0x37c   : > { %v3354_v20 = vpack.c.bf16 %v3336_v17, %v3335_v37  ;;  %v3906_v22 = vld [vmem:[#allocation2 + $0x12] sm:$0xff]  ;;  %v4277_v16 = vld [vmem:[#allocation2 + $0x12a] sm:$0x3f]  ;;  %v4581_v17 = vld [vmem:[#allocation2 + $0x1b] sm:$0xff] }
 0x37d   : > { %8445 = vmatmul.mubr.msk.bf16.gmra.mrb[36].mxu1 %vm11141_vm3, %v3412_v25  ;;  %v10412_v23 = vpack.c.bf16 %v3907_v21, %v3906_v22  ;;  %v10417_v25 = vpack.c.bf16 %v3909_v39, %v3908_v4  ;;  %v3938_v11 = vld [vmem:[#allocation2 + $0x112] sm:$0xff]  ;;  %v4295_v37 = vpack.c.bf16 %v4277_v16, %v4276_v15  ;;  %v4585_v4 = vld [vmem:[#allocation2 + $0x3b] sm:$0xff]  ;;  %v4582_v39 = vld [vmem:[#allocation2 + $0x23] sm:$0xff] }
 0x37e   : > { %8452 = vmatprep.mubr.msk.bf16.mxu1 %vm11141_vm3, %v3337_v24  ;;  %v9454_v24 = vld [vmem:[%s11137_s3 + $0x38] sm:$0xff]   ;;  %v4583_v21 = vld [vmem:[#allocation2 + $0x2b] sm:$0xff] }
 0x37f   : > { %v4617_v22 = vpack.c.bf16 %v4583_v21, %v4582_v39  ;;  %v4922_v15 = vld [vmem:[#allocation2 + $0x34] sm:$0xff]  ;;  %v4923_v16 = vld [vmem:[#allocation2 + $0x3c] sm:$0xff] }
 0x380   : > { %v10519_v21 = vld [vmem:[%s11137_s3 + $0x70] sm:$0xff]  }
 0x381   : > { %v4926_v39 = vld [vmem:[#allocation2 + $0x54] sm:$0xff] }
 0x385   : > { %8453 = vmatmul.mubr.msk.bf16.vlgmr.msra.gmra.mrb[4].mxu1 %vm11141_vm3, %v3338_v31  ;;  %v3910_v31 = vld [vmem:[#allocation2 + $0x32] sm:$0xff] }
 0x386   : > { %8456 = vmatprep.mubr.msk.bf16.mxu1 %vm11141_vm3, %v3339_v33  ;;  %8489 = vmatpush3.bf16.msra.mxu1 %v10303_v18  ;;  %v3312_v18 = vld [vmem:[#allocation2 + $0x58] sm:$0xff]  ;;  %v10430_v33 = vpack.c.bf16 %v3913_v30, %v3912_v28  ;;  %v4586_v30 = vld [vmem:[#allocation2 + $0x43] sm:$0xff] }
 0x387   : > { %8490 = vmatprep.subr.bf16.mxu1 %v9452_v32  ;;  %v3342_v48 = vpack.c.bf16 %v3312_v18, %v3311_v47  ;;  %v3920_v18 = vld [vmem:[#allocation2 + $0x82] sm:$0xff] }
 0x388   : > { %v4589_v28 = vld [vmem:[#allocation2 + $0x5b] sm:$0xff] }
 0x38a   : > { %8491 = vmatpush3.bf16.msra.mxu1 %v9452_v32  ;;  %v3943_v32 = vpack.c.bf16 %v3911_v27, %v3910_v31  ;;  %v4587_v27 = vld [vmem:[#allocation2 + $0x4b] sm:$0xff] }
 0x38b   : > { %8528 = vmatprep.subr.bf16.mxu1 %v10393_v34  ;;  %v4619_v31 = vpack.c.bf16 %v4587_v27, %v4586_v30  ;;  %v4930_v27 = vld [vmem:[#allocation2 + $0x74] sm:$0xff]  ;;  %v4928_v30 = vld [vmem:[#allocation2 + $0x64] sm:$0xff] }
 0x38d   : > { %8457 = vmatmul.mubr.msk.bf16.gmra.mrb[8].mxu1 %vm11141_vm3, %v3340_v43  ;;  %v3946_v43 = vpack.c.bf16 %v3917_v40, %v3916_v38  ;;  %v4593_v38 = vld [vmem:[#allocation2 + $0x7b] sm:$0xff]  ;;  %v4590_v40 = vld [vmem:[#allocation2 + $0x63] sm:$0xff] }
 0x38e   : > { %8460 = vmatprep.mubr.msk.bf16.mxu1 %vm11141_vm3, %v3341_v44  ;;  %v3919_v44 = vld [vmem:[#allocation2 + $0x7a] sm:$0xff] }
 0x38f   : > { %v3947_v47 = vpack.c.bf16 %v3919_v44, %v3918_v46  ;;  %v4595_v44 = vld [vmem:[#allocation2 + $0x8b] sm:$0xff] }
 0x395   : > { %8461 = vmatmul.mubr.msk.bf16.gmra.mrb[12].mxu1 %vm11141_vm3, %v3342_v48  ;;  %v3948_v48 = vpack.c.bf16 %v3921_v45, %v3920_v18  ;;  %v4597_v18 = vld [vmem:[#allocation2 + $0x9b] sm:$0xff]  ;;  %v4594_v45 = vld [vmem:[#allocation2 + $0x83] sm:$0xff] }
 0x396   : > { %8464 = vmatprep.mubr.msk.bf16.mxu1 %vm11141_vm3, %v3343_v49  ;;  %v3923_v49 = vld [vmem:[#allocation2 + $0x9a] sm:$0xff]  ;;  %v4623_v46 = vpack.c.bf16 %v4595_v44, %v4594_v45  ;;  %v4937_v44 = vld [vmem:[#allocation2 + $0xac] sm:$0xff] }
 0x397   : > { %v3949_v52 = vpack.c.bf16 %v3923_v49, %v3922_v51  ;;  %v4599_v49 = vld [vmem:[#allocation2 + $0xab] sm:$0xff]  ;;  %v4598_v51 = vld [vmem:[#allocation2 + $0xa3] sm:$0xff] }
 0x398   : > { %v4939_v45 = vld [vmem:[#allocation2 + $0xbc] sm:$0xff] }
 0x39d   : > { %8465 = vmatmul.mubr.msk.bf16.gmra.mrb[16].mxu1 %vm11141_vm3, %v3344_v54  ;;  %v3950_v54 = vpack.c.bf16 %v3925_v50, %v3924_v53  ;;  %v4601_v50 = vld [vmem:[#allocation2 + $0xbb] sm:$0xff]  ;;  %v4600_v53 = vld [vmem:[#allocation2 + $0xb3] sm:$0xff] }
 0x39e   : > { %8468 = vmatprep.mubr.msk.bf16.mxu1 %vm11141_vm3, %v3345_v55  ;;  %v3927_v55 = vld [vmem:[#allocation2 + $0xba] sm:$0xff] }
 0x39f   : > { %v3951_v59 = vpack.c.bf16 %v3927_v55, %v3926_v58  ;;  %v4603_v55 = vld [vmem:[#allocation2 + $0xcb] sm:$0xff] }
 0x3a5   : > { %8469 = vmatmul.mubr.msk.bf16.gmra.mrb[20].mxu1 %vm11141_vm3, %v3346_v61  ;;  %v3952_v61 = vpack.c.bf16 %v3929_v57, %v3928_v56  ;;  %v4605_v56 = vld [vmem:[#allocation2 + $0xdb] sm:$0xff]  ;;  %v4602_v57 = vld [vmem:[#allocation2 + $0xc3] sm:$0xff] }
 0x3a6   : > { %8472 = vmatprep.mubr.msk.bf16.mxu1 %vm11141_vm3, %v3347_v62  ;;  %v3931_v62 = vld [vmem:[#allocation2 + $0xda] sm:$0xff]  ;;  %v4627_v58 = vpack.c.bf16 %v4603_v55, %v4602_v57 }
 0x3a7   : > { %v3953_v1 = vpack.c.bf16 %v3931_v62, %v3930_v0  ;;  %v4607_v62 = vld [vmem:[#allocation2 + $0xeb] sm:$0xff]  ;;  %v4947_v55 = vld [vmem:[#allocation2 + $0xfc] sm:$0xff] }
 0x3ad   : > { %8473 = vmatmul.mubr.msk.bf16.gmra.mrb[24].mxu1 %vm11141_vm3, %v3348_v2  ;;  %v3954_v2 = vpack.c.bf16 %v3933_v60, %v3932_v63  ;;  %v4609_v63 = vld [vmem:[#allocation2 + $0xfb] sm:$0xff]  ;;  %v4606_v60 = vld [vmem:[#allocation2 + $0xe3] sm:$0xff] }
 0x3ae   : > { %8476 = vmatprep.mubr.msk.bf16.mxu1 %vm11141_vm3, %v3349_v5  ;;  %v3935_v5 = vld [vmem:[#allocation2 + $0xfa] sm:$0xff]  ;;  %v4629_v0 = vpack.c.bf16 %v4607_v62, %v4606_v60  ;;  %v4948_v60 = vld [vmem:[#allocation2 + $0x104] sm:$0xff] }
 0x3af   : > { %v3955_v8 = vpack.c.bf16 %v3935_v5, %v3934_v3  ;;  %v4611_v5 = vld [vmem:[#allocation2 + $0x10b] sm:$0xff]  ;;  %v4950_v62 = vld [vmem:[#allocation2 + $0x114] sm:$0xff] }
 0x3b5   : > { %8477 = vmatmul.mubr.msk.bf16.gmra.mrb[28].mxu1 %vm11141_vm3, %v3350_v9  ;;  %v3956_v9 = vpack.c.bf16 %v3937_v7, %v3936_v6  ;;  %v4613_v6 = vld [vmem:[#allocation2 + $0x11b] sm:$0xff]  ;;  %v4610_v7 = vld [vmem:[#allocation2 + $0x103] sm:$0xff] }
 0x3b6   : > { %8480 = vmatprep.mubr.msk.bf16.mxu1 %vm11141_vm3, %v3351_v10  ;;  %v3939_v10 = vld [vmem:[#allocation2 + $0x11a] sm:$0x3f]  ;;  %v4631_v3 = vpack.c.bf16 %v4611_v5, %v4610_v7  ;;  %v4953_v5 = vld [vmem:[#allocation2 + $0x12c] sm:$0x3f] }
 0x3b7   : > { %v3957_v12 = vpack.c.bf16 %v3939_v10, %v3938_v11  ;;  %v4615_v10 = vld [vmem:[#allocation2 + $0x12b] sm:$0x3f]  ;;  %v9462_v7 = vld [vmem:[%s11137_s3 + $0x78] sm:$0xff]  }
 0x3bd   : > { %8481 = vmatmul.mubr.msk.bf16.gmra.mrb[32].mxu1 %vm11141_vm3, %v3352_v36  ;;  %v4275_v36 = vld [vmem:[#allocation2 + $0x11a] sm:$0xff] }
 0x3be   : > { %8484 = vmatprep.mubr.msk.bf16.mxu1 %vm11141_vm3, %v3353_v14  ;;  %v4294_v14 = vpack.c.bf16 %v4275_v36, %v3938_v11  ;;  %v4918_v11 = vld [vmem:[#allocation2 + $0x14] sm:$0xff] }
 0x3c5   : > { %8485 = vmatmul.mubr.msk.bf16.gmra.mrb[36].mxu1 %vm11141_vm3, %v3354_v20 }
 0x3c6   : > { %8492 = vmatprep.mubr.msk.bf16.mxu1 %vm11141_vm3, %v3940_v19  ;;  %v4580_v19 = vld [vmem:[#allocation2 + $0x13] sm:$0xff] }
 0x3c7   : > { %v4616_v20 = vpack.c.bf16 %v4581_v17, %v4580_v19  ;;  %v4920_v17 = vld [vmem:[#allocation2 + $0x24] sm:$0xff] }
 0x3c8   : > { %v9460_v19 = vld [vmem:[%s11137_s3 + $0x68] sm:$0xff]  }
 0x3cd   : > { %8493 = vmatmul.mubr.msk.bf16.vlgmr.msra.gmra.mrb[4].mxu1 %vm11141_vm3, %v10412_v23 }
 0x3ce   : > { %8496 = vmatprep.mubr.msk.bf16.mxu1 %vm11141_vm3, %v10417_v25  ;;  %8529 = vmatpush3.bf16.msra.mxu1 %v10393_v34  ;;  %v3915_v34 = vld [vmem:[#allocation2 + $0x5a] sm:$0xff] }
 0x3cf   : > { %8530 = vmatprep.subr.bf16.mxu1 %v9454_v24  ;;  %v3945_v42 = vpack.c.bf16 %v3915_v34, %v3914_v41  ;;  %v4591_v34 = vld [vmem:[#allocation2 + $0x6b] sm:$0xff] }
 0x3d0   : > { %v4621_v41 = vpack.c.bf16 %v4591_v34, %v4590_v40  ;;  %v4934_v34 = vld [vmem:[#allocation2 + $0x94] sm:$0xff]  ;;  %v4932_v40 = vld [vmem:[#allocation2 + $0x84] sm:$0xff] }
 0x3d2   : > { %8531 = vmatpush3.bf16.msra.mxu1 %v9454_v24  ;;  %v9458_v24 = vld [vmem:[%s11137_s3 + $0x58] sm:$0xff]  }
 0x3d3   : > { %8568 = vmatprep.subr.bf16.mxu1 %v10427_v26 }
 0x3d5   : > { %8497 = vmatmul.mubr.msk.bf16.gmra.mrb[8].mxu1 %vm11141_vm3, %v3943_v32 }
 0x3d6   : > { %8500 = vmatprep.mubr.msk.bf16.mxu1 %vm11141_vm3, %v10430_v33 }
 0x3dd   : > { %8501 = vmatmul.mubr.msk.bf16.gmra.mrb[12].mxu1 %vm11141_vm3, %v3945_v42 }
 0x3de   : > { %8504 = vmatprep.mubr.msk.bf16.mxu1 %vm11141_vm3, %v3946_v43 }
 0x3e5   : > { %8505 = vmatmul.mubr.msk.bf16.gmra.mrb[16].mxu1 %vm11141_vm3, %v3947_v47 }
 0x3e6   : > { %8508 = vmatprep.mubr.msk.bf16.mxu1 %vm11141_vm3, %v3948_v48 }
 0x3ed   : > { %8509 = vmatmul.mubr.msk.bf16.gmra.mrb[20].mxu1 %vm11141_vm3, %v3949_v52 }
 0x3ee   : > { %8512 = vmatprep.mubr.msk.bf16.mxu1 %vm11141_vm3, %v3950_v54 }
 0x3f5   : > { %8513 = vmatmul.mubr.msk.bf16.gmra.mrb[24].mxu1 %vm11141_vm3, %v3951_v59 }
 0x3f6   : > { %8516 = vmatprep.mubr.msk.bf16.mxu1 %vm11141_vm3, %v3952_v61 }
 0x3fd   : > { %8517 = vmatmul.mubr.msk.bf16.gmra.mrb[28].mxu1 %vm11141_vm3, %v3953_v1 }
 0x3fe   : > { %8520 = vmatprep.mubr.msk.bf16.mxu1 %vm11141_vm3, %v3954_v2 }
 0x405   : > { %8521 = vmatmul.mubr.msk.bf16.gmra.mrb[32].mxu1 %vm11141_vm3, %v3955_v8 }
 0x406   : > { %8524 = vmatprep.mubr.msk.bf16.mxu1 %vm11141_vm3, %v3956_v9 }
 0x40d   : > { %8525 = vmatmul.mubr.msk.bf16.gmra.mrb[36].mxu1 %vm11141_vm3, %v3957_v12  ;;  %v4919_v12 = vld [vmem:[#allocation2 + $0x1c] sm:$0xff] }
 0x40e   : > { %8532 = vmatprep.mubr.msk.bf16.mxu1 %vm11141_vm3, %v10412_v23  ;;  %v4584_v23 = vld [vmem:[#allocation2 + $0x33] sm:$0xff]  ;;  %v4954_v36 = vpack.c.bf16 %v4919_v12, %v4918_v11  ;;  %v5291_v11 = vld [vmem:[#allocation2 + $0x13c] sm:$0x3f] }
 0x415   : > { %8533 = vmatmul.mubr.msk.bf16.vlgmr.msra.gmra.mrb[4].mxu1 %vm11141_vm3, %v10417_v25  ;;  %v4618_v25 = vpack.c.bf16 %v4585_v4, %v4584_v23  ;;  %v4925_v4 = vld [vmem:[#allocation2 + $0x4c] sm:$0xff]  ;;  %v4924_v23 = vld [vmem:[#allocation2 + $0x44] sm:$0xff] }
 0x416   : > { %8536 = vmatprep.mubr.msk.bf16.mxu1 %vm11141_vm3, %v3943_v32  ;;  %8569 = vmatpush3.bf16.msra.mxu1 %v10427_v26  ;;  %v10485_v26 = vld [vmem:[%s11137_s3 + $0x60] sm:$0xff]   ;;  %v4588_v32 = vld [vmem:[#allocation2 + $0x53] sm:$0xff] }
 0x417   : > { %8570 = vmatprep.subr.bf16.mxu1 %v9456_v35 }
 0x41a   : > { %8571 = vmatpush3.bf16.msra.mxu1 %v9456_v35  ;;  %v4614_v35 = vld [vmem:[#allocation2 + $0x123] sm:$0xff] }
 0x41b   : > { %8608 = vmatprep.subr.bf16.mxu1 %v9457_v13 }
 0x41d   : > { %8537 = vmatmul.mubr.msk.bf16.gmra.mrb[8].mxu1 %vm11141_vm3, %v10430_v33  ;;  %v4620_v33 = vpack.c.bf16 %v4589_v28, %v4588_v32  ;;  %v4931_v28 = vld [vmem:[#allocation2 + $0x7c] sm:$0xff] }
 0x41e   : > { %8540 = vmatprep.mubr.msk.bf16.mxu1 %vm11141_vm3, %v3945_v42  ;;  %v4592_v42 = vld [vmem:[#allocation2 + $0x73] sm:$0xff]  ;;  %v4960_v32 = vpack.c.bf16 %v4931_v28, %v4930_v27 }
 0x41f   : > { %v5607_v27 = vld [vmem:[#allocation2 + $0x8d] sm:$0xff] }
 0x425   : > { %8541 = vmatmul.mubr.msk.bf16.gmra.mrb[12].mxu1 %vm11141_vm3, %v3946_v43  ;;  %v4622_v43 = vpack.c.bf16 %v4593_v38, %v4592_v42  ;;  %v4935_v38 = vld [vmem:[#allocation2 + $0x9c] sm:$0xff] }
 0x426   : > { %8544 = vmatprep.mubr.msk.bf16.mxu1 %vm11141_vm3, %v3947_v47  ;;  %v4596_v47 = vld [vmem:[#allocation2 + $0x93] sm:$0xff]  ;;  %v4962_v42 = vpack.c.bf16 %v4935_v38, %v4934_v34  ;;  %v5610_v34 = vld [vmem:[#allocation2 + $0xa5] sm:$0xff] }
 0x427   : > { %v5611_v38 = vld [vmem:[#allocation2 + $0xad] sm:$0xff] }
 0x42d   : > { %8545 = vmatmul.mubr.msk.bf16.gmra.mrb[16].mxu1 %vm11141_vm3, %v3948_v48  ;;  %v4624_v48 = vpack.c.bf16 %v4597_v18, %v4596_v47  ;;  %v4938_v18 = vld [vmem:[#allocation2 + $0xb4] sm:$0xff] }
 0x42e   : > { %8548 = vmatprep.mubr.msk.bf16.mxu1 %vm11141_vm3, %v3949_v52  ;;  %v4625_v52 = vpack.c.bf16 %v4599_v49, %v4598_v51  ;;  %v4964_v47 = vpack.c.bf16 %v4939_v45, %v4938_v18  ;;  %v4942_v49 = vld [vmem:[#allocation2 + $0xd4] sm:$0xff]  ;;  %v4940_v51 = vld [vmem:[#allocation2 + $0xc4] sm:$0xff] }
 0x42f   : > { %v5614_v45 = vld [vmem:[#allocation2 + $0xc5] sm:$0xff] }
 0x435   : > { %8549 = vmatmul.mubr.msk.bf16.gmra.mrb[20].mxu1 %vm11141_vm3, %v3950_v54  ;;  %v4626_v54 = vpack.c.bf16 %v4601_v50, %v4600_v53  ;;  %v4943_v50 = vld [vmem:[#allocation2 + $0xdc] sm:$0xff] }
 0x436   : > { %8552 = vmatprep.mubr.msk.bf16.mxu1 %vm11141_vm3, %v3951_v59  ;;  %v4604_v59 = vld [vmem:[#allocation2 + $0xd3] sm:$0xff]  ;;  %v4966_v53 = vpack.c.bf16 %v4943_v50, %v4942_v49 }
 0x437   : > { %v5619_v49 = vld [vmem:[#allocation2 + $0xed] sm:$0xff] }
 0x43d   : > { %8553 = vmatmul.mubr.msk.bf16.gmra.mrb[24].mxu1 %vm11141_vm3, %v3952_v61  ;;  %v4628_v61 = vpack.c.bf16 %v4605_v56, %v4604_v59  ;;  %v4944_v56 = vld [vmem:[#allocation2 + $0xe4] sm:$0xff] }
 0x43e   : > { %8556 = vmatprep.mubr.msk.bf16.mxu1 %vm11141_vm3, %v3953_v1  ;;  %v4608_v1 = vld [vmem:[#allocation2 + $0xf3] sm:$0xff] }
 0x445   : > { %8557 = vmatmul.mubr.msk.bf16.gmra.mrb[28].mxu1 %vm11141_vm3, %v3954_v2  ;;  %v4630_v2 = vpack.c.bf16 %v4609_v63, %v4608_v1  ;;  %v4951_v63 = vld [vmem:[#allocation2 + $0x11c] sm:$0xff] }
 0x446   : > { %8560 = vmatprep.mubr.msk.bf16.mxu1 %vm11141_vm3, %v3955_v8  ;;  %v4612_v8 = vld [vmem:[#allocation2 + $0x113] sm:$0xff]  ;;  %v4970_v1 = vpack.c.bf16 %v4951_v63, %v4950_v62  ;;  %v5626_v62 = vld [vmem:[#allocation2 + $0x125] sm:$0xff] }
 0x447   : > { %v5627_v63 = vld [vmem:[#allocation2 + $0x12d] sm:$0xff] }
 0x44d   : > { %8561 = vmatmul.mubr.msk.bf16.gmra.mrb[32].mxu1 %vm11141_vm3, %v3956_v9  ;;  %v4632_v9 = vpack.c.bf16 %v4613_v6, %v4612_v8  ;;  %v5289_v8 = vld [vmem:[#allocation2 + $0x12c] sm:$0xff] }
 0x44e   : > { %8564 = vmatprep.mubr.msk.bf16.mxu1 %vm11141_vm3, %v4294_v14  ;;  %v4921_v14 = vld [vmem:[#allocation2 + $0x2c] sm:$0xff] }
 0x455   : > { %8565 = vmatmul.mubr.msk.bf16.gmra.mrb[36].mxu1 %vm11141_vm3, %v4295_v37  ;;  %v10504_v37 = vpack.c.bf16 %v4921_v14, %v4920_v17  ;;  %v5596_v14 = vld [vmem:[#allocation2 + $0x35] sm:$0xff] }
 0x456   : > { %8572 = vmatprep.mubr.msk.bf16.mxu1 %vm11141_vm3, %v4616_v20  ;;  %v10509_v20 = vpack.c.bf16 %v4923_v16, %v4922_v15  ;;  %v5597_v15 = vld [vmem:[#allocation2 + $0x3d] sm:$0xff]  ;;  %v5599_v16 = vld [vmem:[#allocation2 + $0x4d] sm:$0xff] }
 0x457   : > { %v5631_v17 = vpack.c.bf16 %v5597_v15, %v5596_v14  ;;  %v5941_v14 = vld [vmem:[#allocation2 + $0x6e] sm:$0xff] }
 0x45d   : > { %8573 = vmatmul.mubr.msk.bf16.vlgmr.msra.gmra.mrb[4].mxu1 %vm11141_vm3, %v4617_v22  ;;  %v4927_v22 = vld [vmem:[#allocation2 + $0x5c] sm:$0xff] }
 0x45e   : > { %8576 = vmatprep.mubr.msk.bf16.mxu1 %vm11141_vm3, %v4618_v25  ;;  %8609 = vmatpush3.bf16.msra.mxu1 %v9457_v13  ;;  %v4633_v13 = vpack.c.bf16 %v4615_v10, %v4614_v35  ;;  %v10522_v25 = vpack.c.bf16 %v4927_v22, %v4926_v39  ;;  %v5290_v10 = vld [vmem:[#allocation2 + $0x134] sm:$0xff] }
 0x45f   : > { %8610 = vmatprep.subr.bf16.mxu1 %v9458_v24  ;;  %v5309_v12 = vpack.c.bf16 %v5291_v11, %v5290_v10  ;;  %v5595_v35 = vld [vmem:[#allocation2 + $0x2d] sm:$0xff] }
 0x460   : > { %v5603_v39 = vld [vmem:[#allocation2 + $0x6d] sm:$0xff] }
 0x461   : > { %v5937_v10 = vld [vmem:[#allocation2 + $0x4e] sm:$0xff] }
 0x462   : > { %8611 = vmatpush3.bf16.msra.mxu1 %v9458_v24  ;;  %v4957_v24 = vpack.c.bf16 %v4925_v4, %v4924_v23  ;;  %v5601_v4 = vld [vmem:[#allocation2 + $0x5d] sm:$0xff]  ;;  %v5602_v23 = vld [vmem:[#allocation2 + $0x65] sm:$0xff] }
 0x463   : > { %8648 = vmatprep.subr.bf16.mxu1 %v10485_v26 }
 0x465   : > { %8577 = vmatmul.mubr.msk.bf16.gmra.mrb[8].mxu1 %vm11141_vm3, %v4619_v31 }
 0x466   : > { %8580 = vmatprep.mubr.msk.bf16.mxu1 %vm11141_vm3, %v4620_v33  ;;  %v4933_v33 = vld [vmem:[#allocation2 + $0x8c] sm:$0xff] }
 0x46d   : > { %8581 = vmatmul.mubr.msk.bf16.gmra.mrb[12].mxu1 %vm11141_vm3, %v4621_v41  ;;  %v4961_v41 = vpack.c.bf16 %v4933_v33, %v4932_v40  ;;  %v5609_v33 = vld [vmem:[#allocation2 + $0x9d] sm:$0xff] }
 0x46e   : > { %8584 = vmatprep.mubr.msk.bf16.mxu1 %vm11141_vm3, %v4622_v43  ;;  %v4936_v43 = vld [vmem:[#allocation2 + $0xa4] sm:$0xff] }
 0x475   : > { %8585 = vmatmul.mubr.msk.bf16.gmra.mrb[16].mxu1 %vm11141_vm3, %v4623_v46  ;;  %v4963_v46 = vpack.c.bf16 %v4937_v44, %v4936_v43  ;;  %v5613_v43 = vld [vmem:[#allocation2 + $0xbd] sm:$0xff]  ;;  %v5615_v44 = vld [vmem:[#allocation2 + $0xcd] sm:$0xff] }
 0x476   : > { %8588 = vmatprep.mubr.msk.bf16.mxu1 %vm11141_vm3, %v4624_v48  ;;  %v4941_v48 = vld [vmem:[#allocation2 + $0xcc] sm:$0xff] }
 0x47d   : > { %8589 = vmatmul.mubr.msk.bf16.gmra.mrb[20].mxu1 %vm11141_vm3, %v4625_v52  ;;  %v4965_v52 = vpack.c.bf16 %v4941_v48, %v4940_v51  ;;  %v5617_v48 = vld [vmem:[#allocation2 + $0xdd] sm:$0xff]  ;;  %v5618_v51 = vld [vmem:[#allocation2 + $0xe5] sm:$0xff] }
 0x47e   : > { %8592 = vmatprep.mubr.msk.bf16.mxu1 %vm11141_vm3, %v4626_v54  ;;  %v4945_v54 = vld [vmem:[#allocation2 + $0xec] sm:$0xff] }
 0x47f   : > { %v4967_v57 = vpack.c.bf16 %v4945_v54, %v4944_v56  ;;  %v5623_v54 = vld [vmem:[#allocation2 + $0x10d] sm:$0xff] }
 0x485   : > { %8593 = vmatmul.mubr.msk.bf16.gmra.mrb[24].mxu1 %vm11141_vm3, %v4627_v58  ;;  %v4946_v58 = vld [vmem:[#allocation2 + $0xf4] sm:$0xff] }
 0x486   : > { %8596 = vmatprep.mubr.msk.bf16.mxu1 %vm11141_vm3, %v4628_v61  ;;  %v4968_v59 = vpack.c.bf16 %v4947_v55, %v4946_v58  ;;  %v4949_v61 = vld [vmem:[#allocation2 + $0x10c] sm:$0xff]  ;;  %v5620_v55 = vld [vmem:[#allocation2 + $0xf5] sm:$0xff] }
 0x48d   : > { %8597 = vmatmul.mubr.msk.bf16.gmra.mrb[28].mxu1 %vm11141_vm3, %v4629_v0  ;;  %v4969_v0 = vpack.c.bf16 %v4949_v61, %v4948_v60  ;;  %v5625_v61 = vld [vmem:[#allocation2 + $0x11d] sm:$0xff] }
 0x48e   : > { %8600 = vmatprep.mubr.msk.bf16.mxu1 %vm11141_vm3, %v4630_v2  ;;  %v4952_v2 = vld [vmem:[#allocation2 + $0x124] sm:$0xff] }
 0x48f   : > { %v4971_v6 = vpack.c.bf16 %v4953_v5, %v4952_v2 }
 0x495   : > { %8601 = vmatmul.mubr.msk.bf16.gmra.mrb[32].mxu1 %vm11141_vm3, %v4631_v3  ;;  %v9463_v3 = vld [vmem:[%s11137_s3 + $0x80] sm:$0xff]  }
 0x496   : > { %8604 = vmatprep.mubr.msk.bf16.mxu1 %vm11141_vm3, %v4632_v9  ;;  %v5308_v9 = vpack.c.bf16 %v5289_v8, %v4952_v2  ;;  %v5629_v2 = vld [vmem:[#allocation2 + $0x13d] sm:$0x3f] }
 0x497   : > { %v5934_v8 = vld [vmem:[#allocation2 + $0x36] sm:$0xff] }
 0x49d   : > { %8605 = vmatmul.mubr.msk.bf16.gmra.mrb[36].mxu1 %vm11141_vm3, %v4633_v13  ;;  %v5594_v13 = vld [vmem:[#allocation2 + $0x25] sm:$0xff] }
 0x49e   : > { %8612 = vmatprep.mubr.msk.bf16.mxu1 %vm11141_vm3, %v4954_v36  ;;  %v5630_v36 = vpack.c.bf16 %v5595_v35, %v5594_v13  ;;  %v5938_v13 = vld [vmem:[#allocation2 + $0x56] sm:$0xff] }
 0x4a5   : > { %8613 = vmatmul.mubr.msk.bf16.vlgmr.msra.gmra.mrb[4].mxu1 %vm11141_vm3, %v10504_v37 }
 0x4a6   : > { %8616 = vmatprep.mubr.msk.bf16.mxu1 %vm11141_vm3, %v10509_v20  ;;  %8649 = vmatpush3.bf16.msra.mxu1 %v10485_v26  ;;  %v4929_v26 = vld [vmem:[#allocation2 + $0x6c] sm:$0xff] }
 0x4a7   : > { %8650 = vmatprep.subr.bf16.mxu1 %v9460_v19  ;;  %v4959_v31 = vpack.c.bf16 %v4929_v26, %v4928_v30  ;;  %v5605_v26 = vld [vmem:[#allocation2 + $0x7d] sm:$0xff]  ;;  %v5606_v30 = vld [vmem:[#allocation2 + $0x85] sm:$0xff] }
 0x4aa   : > { %8651 = vmatpush3.bf16.msra.mxu1 %v9460_v19  ;;  %v9464_v19 = vld [vmem:[%s11137_s3 + $0x88] sm:$0xff]  }
 0x4ab   : > { %8688 = vmatprep.subr.bf16.mxu1 %v10519_v21 }
 0x4ad   : > { %8617 = vmatmul.mubr.msk.bf16.gmra.mrb[8].mxu1 %vm11141_vm3, %v4957_v24 }
 0x4ae   : > { %8620 = vmatprep.mubr.msk.bf16.mxu1 %vm11141_vm3, %v10522_v25 }
 0x4b5   : > { %8621 = vmatmul.mubr.msk.bf16.gmra.mrb[12].mxu1 %vm11141_vm3, %v4959_v31 }
 0x4b6   : > { %8624 = vmatprep.mubr.msk.bf16.mxu1 %vm11141_vm3, %v4960_v32 }
 0x4bd   : > { %8625 = vmatmul.mubr.msk.bf16.gmra.mrb[16].mxu1 %vm11141_vm3, %v4961_v41 }
 0x4be   : > { %8628 = vmatprep.mubr.msk.bf16.mxu1 %vm11141_vm3, %v4962_v42 }
 0x4c5   : > { %8629 = vmatmul.mubr.msk.bf16.gmra.mrb[20].mxu1 %vm11141_vm3, %v4963_v46 }
 0x4c6   : > { %8632 = vmatprep.mubr.msk.bf16.mxu1 %vm11141_vm3, %v4964_v47 }
 0x4cd   : > { %8633 = vmatmul.mubr.msk.bf16.gmra.mrb[24].mxu1 %vm11141_vm3, %v4965_v52 }
 0x4ce   : > { %8636 = vmatprep.mubr.msk.bf16.mxu1 %vm11141_vm3, %v4966_v53 }
 0x4d5   : > { %8637 = vmatmul.mubr.msk.bf16.gmra.mrb[28].mxu1 %vm11141_vm3, %v4967_v57 }
 0x4d6   : > { %8640 = vmatprep.mubr.msk.bf16.mxu1 %vm11141_vm3, %v4968_v59 }
 0x4dd   : > { %8641 = vmatmul.mubr.msk.bf16.gmra.mrb[32].mxu1 %vm11141_vm3, %v4969_v0 }
 0x4de   : > { %8644 = vmatprep.mubr.msk.bf16.mxu1 %vm11141_vm3, %v4970_v1 }
 0x4e5   : > { %8645 = vmatmul.mubr.msk.bf16.gmra.mrb[36].mxu1 %vm11141_vm3, %v4971_v6  ;;  %v5933_v6 = vld [vmem:[#allocation2 + $0x2e] sm:$0xff] }
 0x4e6   : > { %8652 = vmatprep.mubr.msk.bf16.mxu1 %vm11141_vm3, %v10504_v37  ;;  %v5598_v37 = vld [vmem:[#allocation2 + $0x45] sm:$0xff] }
 0x4ed   : > { %8653 = vmatmul.mubr.msk.bf16.vlgmr.msra.gmra.mrb[4].mxu1 %vm11141_vm3, %v10509_v20  ;;  %v5632_v20 = vpack.c.bf16 %v5599_v16, %v5598_v37  ;;  %v5940_v16 = vld [vmem:[#allocation2 + $0x66] sm:$0xff]  ;;  %v5942_v37 = vld [vmem:[#allocation2 + $0x76] sm:$0xff] }
 0x4ee   : > { %8656 = vmatprep.mubr.msk.bf16.mxu1 %vm11141_vm3, %v4957_v24  ;;  %8689 = vmatpush3.bf16.msra.mxu1 %v10519_v21  ;;  %v5600_v21 = vld [vmem:[#allocation2 + $0x55] sm:$0xff]  ;;  %v5634_v24 = vpack.c.bf16 %v5603_v39, %v5602_v23  ;;  %v5947_v23 = vld [vmem:[#allocation2 + $0x9e] sm:$0xff] }
 0x4ef   : > { %8690 = vmatprep.subr.bf16.mxu1 %v9462_v7  ;;  %v5633_v22 = vpack.c.bf16 %v5601_v4, %v5600_v21  ;;  %v5944_v4 = vld [vmem:[#allocation2 + $0x86] sm:$0xff] }
 0x4f2   : > { %8691 = vmatpush3.bf16.msra.mxu1 %v9462_v7  ;;  %v5932_v7 = vld [vmem:[#allocation2 + $0x26] sm:$0xff] }
 0x4f3   : > { %8728 = vmatprep.subr.bf16.mxu1 %v9463_v3 }
 0x4f5   : > { %8657 = vmatmul.mubr.msk.bf16.gmra.mrb[8].mxu1 %vm11141_vm3, %v10522_v25  ;;  %v5604_v25 = vld [vmem:[#allocation2 + $0x75] sm:$0xff] }
 0x4f6   : > { %8660 = vmatprep.mubr.msk.bf16.mxu1 %vm11141_vm3, %v4959_v31  ;;  %v5635_v28 = vpack.c.bf16 %v5605_v26, %v5604_v25  ;;  %v5636_v31 = vpack.c.bf16 %v5607_v27, %v5606_v30  ;;  %v5948_v26 = vld [vmem:[#allocation2 + $0xa6] sm:$0xff]  ;;  %v5951_v30 = vld [vmem:[#allocation2 + $0xbe] sm:$0xff] }
 0x4fd   : > { %8661 = vmatmul.mubr.msk.bf16.gmra.mrb[12].mxu1 %vm11141_vm3, %v4960_v32  ;;  %v5608_v32 = vld [vmem:[#allocation2 + $0x95] sm:$0xff] }
 0x4fe   : > { %8664 = vmatprep.mubr.msk.bf16.mxu1 %vm11141_vm3, %v4961_v41  ;;  %v5637_v40 = vpack.c.bf16 %v5609_v33, %v5608_v32  ;;  %v5638_v41 = vpack.c.bf16 %v5611_v38, %v5610_v34  ;;  %v5952_v33 = vld [vmem:[#allocation2 + $0xc6] sm:$0xff]  ;;  %v5954_v38 = vld [vmem:[#allocation2 + $0xd6] sm:$0xff] }
 0x505   : > { %8665 = vmatmul.mubr.msk.bf16.gmra.mrb[16].mxu1 %vm11141_vm3, %v4962_v42  ;;  %v5612_v42 = vld [vmem:[#allocation2 + $0xb5] sm:$0xff] }
 0x506   : > { %8668 = vmatprep.mubr.msk.bf16.mxu1 %vm11141_vm3, %v4963_v46  ;;  %v5639_v18 = vpack.c.bf16 %v5613_v43, %v5612_v42  ;;  %v5640_v46 = vpack.c.bf16 %v5615_v44, %v5614_v45  ;;  %v5956_v43 = vld [vmem:[#allocation2 + $0xe6] sm:$0xff]  ;;  %v5959_v45 = vld [vmem:[#allocation2 + $0xfe] sm:$0xff] }
 0x50d   : > { %8669 = vmatmul.mubr.msk.bf16.gmra.mrb[20].mxu1 %vm11141_vm3, %v4964_v47  ;;  %v5616_v47 = vld [vmem:[#allocation2 + $0xd5] sm:$0xff] }
 0x50e   : > { %8672 = vmatprep.mubr.msk.bf16.mxu1 %vm11141_vm3, %v4965_v52  ;;  %v5641_v50 = vpack.c.bf16 %v5617_v48, %v5616_v47  ;;  %v5642_v52 = vpack.c.bf16 %v5619_v49, %v5618_v51  ;;  %v5960_v48 = vld [vmem:[#allocation2 + $0x106] sm:$0xff]  ;;  %v5963_v51 = vld [vmem:[#allocation2 + $0x11e] sm:$0xff] }
 0x515   : > { %8673 = vmatmul.mubr.msk.bf16.gmra.mrb[24].mxu1 %vm11141_vm3, %v4966_v53  ;;  %v5621_v53 = vld [vmem:[#allocation2 + $0xfd] sm:$0xff] }
 0x516   : > { %8676 = vmatprep.mubr.msk.bf16.mxu1 %vm11141_vm3, %v4967_v57  ;;  %v5643_v56 = vpack.c.bf16 %v5621_v53, %v5620_v55  ;;  %v5622_v57 = vld [vmem:[#allocation2 + $0x105] sm:$0xff]  ;;  %v5965_v53 = vld [vmem:[#allocation2 + $0x12e] sm:$0xff] }
 0x517   : > { %v5644_v58 = vpack.c.bf16 %v5623_v54, %v5622_v57  ;;  %v5967_v57 = vld [vmem:[#allocation2 + $0x13e] sm:$0x3f] }
 0x51d   : > { %8677 = vmatmul.mubr.msk.bf16.gmra.mrb[28].mxu1 %vm11141_vm3, %v4968_v59  ;;  %v5624_v59 = vld [vmem:[#allocation2 + $0x115] sm:$0xff] }
 0x51e   : > { %8680 = vmatprep.mubr.msk.bf16.mxu1 %vm11141_vm3, %v4969_v0  ;;  %v5645_v60 = vpack.c.bf16 %v5625_v61, %v5624_v59  ;;  %v5646_v0 = vpack.c.bf16 %v5627_v63, %v5626_v62  ;;  %v6701_v59 = vlaneseq }
 0x520   : > { %v6702_v61 = vshrl.u32 %v6701_v59, 7  ;;  %v10607_v62 = vand.u32 127, %v6701_v59 }
 0x522   : > { %v6714_v63 = vshra.s32 %v6702_v61, 3 }
 0x525   : > { %8681 = vmatmul.mubr.msk.bf16.gmra.mrb[32].mxu1 %vm11141_vm3, %v4970_v1  ;;  %v5628_v1 = vld [vmem:[#allocation2 + $0x135] sm:$0xff] }
 0x526   : > { %8684 = vmatprep.mubr.msk.bf16.mxu1 %vm11141_vm3, %v5308_v9  ;;  %v5647_v5 = vpack.c.bf16 %v5629_v2, %v5628_v1  ;;  %v5935_v9 = vld [vmem:[#allocation2 + $0x3e] sm:$0xff]  ;;  %v10610_v1 = vadd.s32 128, %v10607_v62  ;;  %v6722_v2 = vmul.u32 36, %v6714_v63 }
 0x527   : > { %v5969_v11 = vpack.c.bf16 %v5935_v9, %v5934_v8  ;;  %v6704_v8 = vadd.s32 16, %v6702_v61 }
 0x52d   : > { %8685 = vmatmul.mubr.msk.bf16.gmra.mrb[36].mxu1 %vm11141_vm3, %v5309_v12  ;;  %v5936_v12 = vld [vmem:[#allocation2 + $0x46] sm:$0xff] }
 0x52e   : > { %8692 = vmatprep.mubr.msk.bf16.mxu1 %vm11141_vm3, %v5630_v36  ;;  %v5970_v35 = vpack.c.bf16 %v5937_v10, %v5936_v12  ;;  %v5939_v36 = vld [vmem:[#allocation2 + $0x5e] sm:$0xff]  ;;  %v6716_v12 = vshra.s32 %v6704_v8, 3 }
 0x52f   : > { %v5971_v15 = vpack.c.bf16 %v5939_v36, %v5938_v13  ;;  %v11142_v13 = vmov 1.0  }
 0x535   : > { %8693 = vmatmul.mubr.msk.bf16.vlgmr.msra.gmra.mrb[4].mxu1 %vm11141_vm3, %v5631_v17  ;;  %v5972_v17 = vpack.c.bf16 %v5941_v14, %v5940_v16 }
 0x536   : > { %8696 = vmatprep.mubr.msk.bf16.mxu1 %vm11141_vm3, %v5632_v20  ;;  %8729 = vmatpush3.bf16.msra.mxu1 %v9463_v3  ;;  %v5968_v3 = vpack.c.bf16 %v5933_v6, %v5932_v7  ;;  %v5945_v20 = vld [vmem:[#allocation2 + $0x8e] sm:$0xff]  ;;  %v10613_v6 = vadd.s32 256, %v10607_v62 }
 0x537   : > { %8730 = vmatprep.subr.bf16.mxu1 %v9464_v19  ;;  %v5974_v39 = vpack.c.bf16 %v5945_v20, %v5944_v4 }
 0x53a   : > { %8731 = vmatpush3.bf16.msra.mxu1 %v9464_v19  ;;  %v5943_v19 = vld [vmem:[#allocation2 + $0x7e] sm:$0xff] }
 0x53b   : > { %v5973_v21 = vpack.c.bf16 %v5943_v19, %v5942_v37 }
 0x53d   : > { %8697 = vmatmul.mubr.msk.bf16.gmra.mrb[8].mxu1 %vm11141_vm3, %v5633_v22  ;;  %v5946_v22 = vld [vmem:[#allocation2 + $0x96] sm:$0xff] }
 0x53e   : > { %8700 = vmatprep.mubr.msk.bf16.mxu1 %vm11141_vm3, %v5634_v24  ;;  %v5949_v24 = vld [vmem:[#allocation2 + $0xae] sm:$0xff]  ;;  %v5975_v25 = vpack.c.bf16 %v5947_v23, %v5946_v22 }
 0x53f   : > { %v5976_v27 = vpack.c.bf16 %v5949_v24, %v5948_v26 }
 0x545   : > { %8701 = vmatmul.mubr.msk.bf16.gmra.mrb[12].mxu1 %vm11141_vm3, %v5635_v28  ;;  %v5950_v28 = vld [vmem:[#allocation2 + $0xb6] sm:$0xff] }
 0x546   : > { %8704 = vmatprep.mubr.msk.bf16.mxu1 %vm11141_vm3, %v5636_v31  ;;  %v5953_v31 = vld [vmem:[#allocation2 + $0xce] sm:$0xff]  ;;  %v5977_v32 = vpack.c.bf16 %v5951_v30, %v5950_v28 }
 0x547   : > { %v5978_v34 = vpack.c.bf16 %v5953_v31, %v5952_v33 }
 0x54d   : > { %8705 = vmatmul.mubr.msk.bf16.gmra.mrb[16].mxu1 %vm11141_vm3, %v5637_v40  ;;  %v5955_v40 = vld [vmem:[#allocation2 + $0xde] sm:$0xff] }
 0x54e   : > { %8708 = vmatprep.mubr.msk.bf16.mxu1 %vm11141_vm3, %v5638_v41  ;;  %v5957_v41 = vld [vmem:[#allocation2 + $0xee] sm:$0xff]  ;;  %v5979_v42 = vpack.c.bf16 %v5955_v40, %v5954_v38 }
 0x54f   : > { %v5980_v44 = vpack.c.bf16 %v5957_v41, %v5956_v43 }
 0x555   : > { %8709 = vmatmul.mubr.msk.bf16.gmra.mrb[20].mxu1 %vm11141_vm3, %v5639_v18  ;;  %v5958_v18 = vld [vmem:[#allocation2 + $0xf6] sm:$0xff] }
 0x556   : > { %8712 = vmatprep.mubr.msk.bf16.mxu1 %vm11141_vm3, %v5640_v46  ;;  %v5961_v46 = vld [vmem:[#allocation2 + $0x10e] sm:$0xff]  ;;  %v5981_v47 = vpack.c.bf16 %v5959_v45, %v5958_v18 }
 0x557   : > { %v5982_v49 = vpack.c.bf16 %v5961_v46, %v5960_v48 }
 0x55d   : > { %8713 = vmatmul.mubr.msk.bf16.gmra.mrb[24].mxu1 %vm11141_vm3, %v5641_v50  ;;  %v5962_v50 = vld [vmem:[#allocation2 + $0x116] sm:$0xff] }
 0x55e   : > { %8716 = vmatprep.mubr.msk.bf16.mxu1 %vm11141_vm3, %v5642_v52  ;;  %v5964_v52 = vld [vmem:[#allocation2 + $0x126] sm:$0xff]  ;;  %v5983_v54 = vpack.c.bf16 %v5963_v51, %v5962_v50  ;;  %v10679_v50 = vld [vmem:[%s11138_s4] ss:$0 sm:$0xff] }
 0x55f   : > { %v5984_v55 = vpack.c.bf16 %v5965_v53, %v5964_v52 }
 0x565   : > { %8717 = vmatmul.mubr.msk.bf16.gmra.mrb[28].mxu1 %vm11141_vm3, %v5643_v56  ;;  %v5966_v56 = vld [vmem:[#allocation2 + $0x136] sm:$0xff] }
 0x566   : > { %8720 = vmatprep.mubr.msk.bf16.mxu1 %vm11141_vm3, %v5644_v58  ;;  %v5985_v58 = vpack.c.bf16 %v5967_v57, %v5966_v56 }
 0x56d   : > { %8721 = vmatmul.mubr.msk.bf16.gmra.mrb[32].mxu1 %vm11141_vm3, %v5645_v60  ;;  %v6730_v60 = vand.u32 7, %v6702_v61 }
 0x56e   : > { %8724 = vmatprep.mubr.msk.bf16.mxu1 %vm11141_vm3, %v5646_v0  ;;  %v6703_v0 = vadd.s32 8, %v6702_v61 }
 0x570   : > { %v6715_v7 = vshra.s32 %v6703_v0, 3 }
 0x572   : > { %v6723_v10 = vmul.u32 36, %v6715_v7 }
 0x575   : > { %8725 = vmatmul.mubr.msk.bf16.gmra.mrb[36].mxu1 %vm11141_vm3, %v5647_v5  ;;  %v6738_v5 = vmul.u32 2, %v6730_v60 }
 0x576   : > { %8732 = vmatprep.mubr.msk.bf16.mxu1 %vm11141_vm3, %v5968_v3  ;;  %v6731_v3 = vand.u32 7, %v6703_v0 }
 0x577   : > { %v10615_v9 = vadd.s32 %v6738_v5, %v6722_v2 }
 0x579   : > { %vm6755_vm11 = vcmp.eq.s32.totalorder %v10610_v1, %v10615_v9  ;;  %vm6754_vm12 = vcmp.eq.s32.totalorder %v10607_v62, %v10615_v9  ;;  %vm6756_vm13 = vcmp.eq.s32.totalorder %v10613_v6, %v10615_v9 }
 0x57a   : > { %7618 = vmatprep.mubr.msk.f32.mxu0 %vm6755_vm11, %v11142_v13  ;;  %v7596_v36 = vsel %vm6756_vm13, 1.0, %v11144_v29 }
 0x57d   : > { %8733 = vmatmul.mubr.msk.bf16.vlgmr.msra.gmra.mrb[4].mxu1 %vm11141_vm3, %v5969_v11  ;;  %v6739_v11 = vmul.u32 2, %v6731_v3 }
 0x57e   : > { %8736 = vmatprep.mubr.msk.bf16.mxu1 %vm11141_vm3, %v5970_v35  ;;  %v6732_v35 = vand.u32 7, %v6704_v8 }
 0x57f   : > { %v10625_v14 = vadd.s32 %v6739_v11, %v6723_v10 }
 0x580   : > { %v6740_v16 = vmul.u32 2, %v6732_v35 }
 0x581   : > { %vm6759_vm14 = vcmp.eq.s32.totalorder %v10613_v6, %v10625_v14  ;;  %vm6758_vm15 = vcmp.eq.s32.totalorder %v10610_v1, %v10625_v14  ;;  %vm6757_vm0 = vcmp.eq.s32.totalorder %v10607_v62, %v10625_v14 }
 0x585   : > { %8737 = vmatmul.mubr.msk.bf16.gmra.mrb[8].mxu1 %vm11141_vm3, %v5971_v15  ;;  %v6724_v15 = vmul.u32 36, %v6716_v12 }
 0x586   : > { %8740 = vmatprep.mubr.msk.bf16.mxu1 %vm11141_vm3, %v5972_v17  ;;  %v6705_v17 = vadd.s32 24, %v6702_v61 }
 0x587   : > { %v10634_v37 = vadd.s32 %v6740_v16, %v6724_v15 }
 0x588   : > { %v6717_v19 = vshra.s32 %v6705_v17, 3  ;;  %v6733_v20 = vand.u32 7, %v6705_v17 }
 0x589   : > { %vm6761_vm1 = vcmp.eq.s32.totalorder %v10610_v1, %v10634_v37  ;;  %vm6762_vm4 = vcmp.eq.s32.totalorder %v10613_v6, %v10634_v37 }
 0x58a   : > { %v6725_v4 = vmul.u32 36, %v6717_v19 }
 0x58d   : > { %8741 = vmatmul.mubr.msk.bf16.gmra.mrb[12].mxu1 %vm11141_vm3, %v5973_v21  ;;  %v6706_v21 = vadd.s32 32, %v6702_v61 }
 0x58e   : > { %8744 = vmatprep.mubr.msk.bf16.mxu1 %vm11141_vm3, %v5974_v39  ;;  %v6741_v39 = vmul.u32 2, %v6733_v20 }
 0x58f   : > { %v6718_v22 = vshra.s32 %v6706_v21, 3  ;;  %v6734_v23 = vand.u32 7, %v6706_v21 }
 0x590   : > { %v10642_v24 = vadd.s32 %v6741_v39, %v6725_v4 }
 0x591   : > { %v6742_v26 = vmul.u32 2, %v6734_v23 }
 0x592   : > { %vm6765_vm5 = vcmp.eq.s32.totalorder %v10613_v6, %v10642_v24 }
 0x595   : > { %8745 = vmatmul.mubr.msk.bf16.gmra.mrb[16].mxu1 %vm11141_vm3, %v5975_v25  ;;  %v6726_v25 = vmul.u32 36, %v6718_v22 }
 0x596   : > { %8748 = vmatprep.mubr.msk.bf16.mxu1 %vm11141_vm3, %v5976_v27  ;;  %v6707_v27 = vadd.s32 40, %v6702_v61 }
 0x597   : > { %v10650_v28 = vadd.s32 %v6742_v26, %v6726_v25 }
 0x598   : > { %v6719_v30 = vshra.s32 %v6707_v27, 3  ;;  %v6735_v31 = vand.u32 7, %v6707_v27 }
 0x599   : > { %vm6768_vm11 = vcmp.eq.s32.totalorder %v10613_v6, %v10650_v28 }
 0x59a   : > { %v6743_v33 = vmul.u32 2, %v6735_v31 }
 0x59d   : > { %8749 = vmatmul.mubr.msk.bf16.gmra.mrb[20].mxu1 %vm11141_vm3, %v5977_v32  ;;  %v6727_v32 = vmul.u32 36, %v6719_v30 }
 0x59e   : > { %8752 = vmatprep.mubr.msk.bf16.mxu1 %vm11141_vm3, %v5978_v34  ;;  %v6708_v34 = vadd.s32 48, %v6702_v61 }
 0x59f   : > { %v10658_v38 = vadd.s32 %v6743_v33, %v6727_v32 }
 0x5a0   : > { %v6720_v40 = vshra.s32 %v6708_v34, 3  ;;  %v6736_v41 = vand.u32 7, %v6708_v34 }
 0x5a1   : > { %vm6771_vm13 = vcmp.eq.s32.totalorder %v10613_v6, %v10658_v38 }
 0x5a2   : > { %v6728_v43 = vmul.u32 36, %v6720_v40 }
 0x5a5   : > { %8753 = vmatmul.mubr.msk.bf16.gmra.mrb[24].mxu1 %vm11141_vm3, %v5979_v42  ;;  %v6709_v42 = vadd.s32 56, %v6702_v61 }
 0x5a6   : > { %8756 = vmatprep.mubr.msk.bf16.mxu1 %vm11141_vm3, %v5980_v44  ;;  %v6744_v44 = vmul.u32 2, %v6736_v41 }
 0x5a7   : > { %v6721_v18 = vshra.s32 %v6709_v42, 3  ;;  %v6737_v45 = vand.u32 7, %v6709_v42 }
 0x5a8   : > { %v10666_v46 = vadd.s32 %v6744_v44, %v6728_v43 }
 0x5a9   : > { %v6745_v48 = vmul.u32 2, %v6737_v45 }
 0x5ad   : > { %8757 = vmatmul.mubr.msk.bf16.gmra.mrb[28].mxu1 %vm11141_vm3, %v5981_v47  ;;  %v6729_v47 = vmul.u32 36, %v6721_v18 }
 0x5ae   : > { %8760 = vmatprep.mubr.msk.bf16.mxu1 %vm11141_vm3, %v5982_v49 }
 0x5af   : > { %v10674_v49 = vadd.s32 %v6745_v48, %v6729_v47 }
 0x5b1   : > { %vm6777_vm9 = vcmp.eq.s32.totalorder %v10613_v6, %v10674_v49 }
 0x5b5   : > { %8761 = vmatmul.mubr.msk.bf16.gmra.mrb[32].mxu1 %vm11141_vm3, %v5983_v54 }
 0x5b6   : > { %8764 = vmatprep.mubr.msk.bf16.mxu1 %vm11141_vm3, %v5984_v55 }
 0x5bd   : > { %8765 = vmatmul.mubr.msk.bf16.gmra.mrb[36].mxu1 %vm11141_vm3, %v5985_v58  ;;  %vm6774_vm3 = vcmp.eq.s32.totalorder %v10613_v6, %v10666_v46 }
 0x5be   : > { %8772 = vmatprep.mubr.msk.f32.mxu1 %vm6826_vm10, %v7596_v36 }
 0x650   : > { %v8734_v51 = vpop.f32.mrb[4].mxu1 }
 0x651   : > { %v6279_v52 = vadd.f32 %v8734_v51, %v10679_v50  ;;  %v6091_v53 = vpop.f32.mrb[5].mxu1 }
 0x652   : > { %v6277_v54 = vadd.f32 %v10679_v50, %v6091_v53  ;;  %v8735_v55 = vpop.f32.mrb[6].mxu1 }
 0x653   : > { %v6315_v56 = vmax.f32 %v6279_v52, 0.0  ;;  %v6280_v57 = vadd.f32 %v8735_v55, %v10679_v50  ;;  %v6094_v58 = vpop.f32.mrb[7].mxu1 }
 0x654   : > { %v6313_v59 = vmax.f32 %v6277_v54, 0.0  ;;  %v6278_v61 = vadd.f32 %v10679_v50, %v6094_v58 }
 0x655   : > { %v6316_v63 = vmax.f32 %v6280_v57, 0.0  ;;  %v6387_v0 = vrot.slane %v6315_v56, 1 }
 0x656   : > { %v6314_v60 = vmax.f32 %v6278_v61, 0.0  ;;  %v6384_v5 = vrot.slane %v6313_v59, 1 }
 0x657   : > { %v6389_v2 = vrot.slane %v6316_v63, 1 }
 0x658   : > { %v6385_v7 = vrot.slane %v6314_v60, 1  ;;  %v8738_v3 = vpop.f32.mrb[8].mxu1 }
 0x659   : > { %v6390_v8 = vsel %vm6383_vm7, %v6387_v0, %v6389_v2  ;;  %v6283_v10 = vadd.f32 %v8738_v3, %v10679_v50  ;;  %v6107_v11 = vpop.f32.mrb[9].mxu1 }
 0x65a   : > { %v10693_v12 = vmax.f32 %v6315_v56, %v6390_v8  ;;  %v6386_v35 = vsel %vm6383_vm7, %v6384_v5, %v6385_v7  ;;  %v6388_v36 = vsel %vm6383_vm7, %v6385_v7, %v6387_v0  ;;  %v6281_v15 = vadd.f32 %v10679_v50, %v6107_v11  ;;  %v8739_v16 = vpop.f32.mrb[10].mxu1 }
 0x65b   : > { %v10698_v17 = vmax.f32 %v6313_v59, %v6386_v35  ;;  %v10700_v19 = vmax.f32 %v6314_v60, %v6388_v36  ;;  %v6319_v20 = vmax.f32 %v6283_v10, 0.0  ;;  %v6284_v21 = vadd.f32 %v8739_v16, %v10679_v50  ;;  %v6110_v4 = vpop.f32.mrb[11].mxu1 }
 0x65c   : > { %v6317_v39 = vmax.f32 %v6281_v15, 0.0  ;;  %v6282_v22 = vadd.f32 %v10679_v50, %v6110_v4  ;;  %v6566_v34 = vrot.slane %v10693_v12, 2 }
 0x65d   : > { %v6320_v23 = vmax.f32 %v6284_v21, 0.0  ;;  %v6395_v27 = vrot.slane %v6319_v20, 1 }
 0x65e   : > { %v6391_v25 = vrot.slane %v6317_v39, 1  ;;  %v6318_v26 = vmax.f32 %v6282_v22, 0.0 }
 0x65f   : > { %v6397_v30 = vrot.slane %v6320_v23, 1 }
 0x660   : > { %v6392_v31 = vsel %vm6383_vm7, %v6389_v2, %v6391_v25  ;;  %v6393_v32 = vrot.slane %v6318_v26, 1  ;;  %v8742_v33 = vpop.f32.mrb[12].mxu1 }
 0x661   : > { %v10706_v40 = vmax.f32 %v6316_v63, %v6392_v31  ;;  %v6398_v41 = vsel %vm6383_vm7, %v6395_v27, %v6397_v30  ;;  %v6287_v42 = vadd.f32 %v8742_v33, %v10679_v50  ;;  %v6123_v43 = vpop.f32.mrb[13].mxu1 }
 0x662   : > { %v10710_v44 = vmax.f32 %v6319_v20, %v6398_v41  ;;  %v6394_v18 = vsel %vm6383_vm7, %v6391_v25, %v6393_v32  ;;  %v6396_v45 = vsel %vm6383_vm7, %v6393_v32, %v6395_v27  ;;  %v6285_v47 = vadd.f32 %v10679_v50, %v6123_v43  ;;  %v8743_v48 = vpop.f32.mrb[14].mxu1 }
 0x663   : > { %v6567_v51 = vrot.slane %v10706_v40, 2  ;;  %v10716_v52 = vmax.f32 %v6317_v39, %v6394_v18  ;;  %v10718_v53 = vmax.f32 %v6318_v26, %v6396_v45  ;;  %v6323_v54 = vmax.f32 %v6287_v42, 0.0  ;;  %v6126_v55 = vpop.f32.mrb[15].mxu1 }
 0x664   : > { %v6573_v56 = vrot.slane %v10710_v44, 2  ;;  %v6321_v57 = vmax.f32 %v6285_v47, 0.0  ;;  %v6288_v58 = vadd.f32 %v8743_v48, %v10679_v50  ;;  %v6286_v59 = vadd.f32 %v10679_v50, %v6126_v55 }
 0x665   : > { %v6569_v61 = vrot.slane %v10716_v52, 2  ;;  %v6571_v63 = vrot.slane %v10718_v53, 2  ;;  %v6568_v60 = vsel %vm6565_vm8, %v6566_v34, %v6567_v51  ;;  %v6403_v10 = vrot.slane %v6323_v54, 1 }
 0x666   : > { %v6399_v0 = vrot.slane %v6321_v57, 1  ;;  %v6324_v2 = vmax.f32 %v6288_v58, 0.0  ;;  %v6322_v5 = vmax.f32 %v6286_v59, 0.0  ;;  %v6667_v7 = vmax.f32 %v10698_v17, %v6568_v60 }
 0x667   : > { %v6572_v3 = vsel %vm6565_vm8, %v6569_v61, %v6571_v63  ;;  %v6574_v8 = vsel %vm6565_vm8, %v6571_v63, %v6573_v56  ;;  %v6570_v11 = vsel %vm6565_vm8, %v6567_v51, %v6569_v61 }
 0x668   : > { %v6400_v35 = vsel %vm6383_vm7, %v6397_v30, %v6399_v0  ;;  %v6405_v36 = vrot.slane %v6324_v2, 1  ;;  %v6401_v15 = vrot.slane %v6322_v5, 1  ;;  %v8746_v16 = vpop.f32.mrb[16].mxu1  ;;  %v6668_v20 = vmax.f32 %v10700_v19, %v6570_v11 }
 0x669   : > { %v10732_v21 = vmax.f32 %v6320_v23, %v6400_v35  ;;  %v6291_v4 = vadd.f32 %v8746_v16, %v10679_v50  ;;  %v6139_v39 = vpop.f32.mrb[17].mxu1  ;;  %v6669_v17 = vmax.f32 %v10693_v12, %v6572_v3  ;;  %v6670_v22 = vmax.f32 %v10706_v40, %v6574_v8 }
 0x66a   : > { %v6406_v25 = vsel %vm6383_vm7, %v6403_v10, %v6405_v36  ;;  %v6402_v26 = vsel %vm6383_vm7, %v6399_v0, %v6401_v15  ;;  %v6404_v27 = vsel %vm6383_vm7, %v6401_v15, %v6403_v10  ;;  %v6289_v30 = vadd.f32 %v10679_v50, %v6139_v39  ;;  %v8747_v31 = vpop.f32.mrb[18].mxu1 }
 0x66b   : > { %v6575_v19 = vrot.slane %v10732_v21, 2  ;;  %v10742_v23 = vmax.f32 %v6323_v54, %v6406_v25  ;;  %v10744_v32 = vmax.f32 %v6321_v57, %v6402_v26  ;;  %v10746_v33 = vmax.f32 %v6322_v5, %v6404_v27  ;;  %v6142_v12 = vpop.f32.mrb[19].mxu1 }
 0x66c   : > { %v6327_v34 = vmax.f32 %v6291_v4, 0.0  ;;  %v6325_v40 = vmax.f32 %v6289_v30, 0.0  ;;  %v6292_v41 = vadd.f32 %v8747_v31, %v10679_v50  ;;  %v6290_v42 = vadd.f32 %v10679_v50, %v6142_v12 }
 0x66d   : > { %v6581_v43 = vrot.slane %v10742_v23, 2  ;;  %v6577_v18 = vrot.slane %v10744_v32, 2  ;;  %v6579_v45 = vrot.slane %v10746_v33, 2  ;;  %v10753_v47 = vpack.c.bf16 %v6668_v20, %v6667_v7 }
 0x66e   : > { %v6411_v48 = vrot.slane %v6327_v34, 1  ;;  %v6407_v51 = vrot.slane %v6325_v40, 1  ;;  %v6328_v54 = vmax.f32 %v6292_v41, 0.0  ;;  %v6326_v55 = vmax.f32 %v6290_v42, 0.0 }
 0x66f   : > { %v6580_v57 = vsel %vm6565_vm8, %v6577_v18, %v6579_v45  ;;  %v6582_v58 = vsel %vm6565_vm8, %v6579_v45, %v6581_v43  ;;  %v10757_v59 = vpack.c.bf16 %v6670_v22, %v6669_v17  ;;  %v6576_v61 = vsel %vm6565_vm8, %v6573_v56, %v6575_v19 }
 0x670   : > { %v6408_v63 = vsel %vm6383_vm7, %v6405_v36, %v6407_v51  ;;  %v6413_v60 = vrot.slane %v6328_v54, 1  ;;  %v6409_v0 = vrot.slane %v6326_v55, 1  ;;  %v8750_v5 = vpop.f32.mrb[20].mxu1  ;;  %v6578_v7 = vsel %vm6565_vm8, %v6575_v19, %v6577_v18 }
 0x671   : > { %v10762_v3 = vmax.f32 %v6324_v2, %v6408_v63  ;;  %v6295_v8 = vadd.f32 %v8750_v5, %v10679_v50  ;;  %v6155_v10 = vpop.f32.mrb[21].mxu1  ;;  %v6671_v11 = vmax.f32 %v10716_v52, %v6576_v61  ;;  %v6672_v35 = vmax.f32 %v10718_v53, %v6578_v7 }
 0x672   : > { %v6414_v15 = vsel %vm6383_vm7, %v6411_v48, %v6413_v60  ;;  %v6410_v56 = vsel %vm6383_vm7, %v6407_v51, %v6409_v0  ;;  %v6412_v36 = vsel %vm6383_vm7, %v6409_v0, %v6411_v48  ;;  %v6293_v16 = vadd.f32 %v10679_v50, %v6155_v10  ;;  %v8751_v20 = vpop.f32.mrb[22].mxu1 }
 0x673   : > { %v6583_v4 = vrot.slane %v10762_v3, 2  ;;  %v10772_v2 = vmax.f32 %v6327_v34, %v6414_v15  ;;  %v10774_v39 = vmax.f32 %v6325_v40, %v6410_v56  ;;  %v10776_v17 = vmax.f32 %v6326_v55, %v6412_v36  ;;  %v6158_v52 = vpop.f32.mrb[23].mxu1 }
 0x674   : > { %v6331_v22 = vmax.f32 %v6295_v8, 0.0  ;;  %v6329_v53 = vmax.f32 %v6293_v16, 0.0  ;;  %v6296_v25 = vadd.f32 %v8751_v20, %v10679_v50  ;;  %v6294_v26 = vadd.f32 %v10679_v50, %v6158_v52 }
 0x675   : > { %v6589_v27 = vrot.slane %v10772_v2, 2  ;;  %v6585_v30 = vrot.slane %v10774_v39, 2  ;;  %v6587_v31 = vrot.slane %v10776_v17, 2  ;;  %v10783_v19 = vpack.c.bf16 %v6672_v35, %v6671_v11 }
 0x676   : > { %v6419_v12 = vrot.slane %v6331_v22, 1  ;;  %v6415_v34 = vrot.slane %v6329_v53, 1  ;;  %v6332_v40 = vmax.f32 %v6296_v25, 0.0  ;;  %v6330_v41 = vmax.f32 %v6294_v26, 0.0 }
 0x677   : > { %v6588_v42 = vsel %vm6565_vm8, %v6585_v30, %v6587_v31  ;;  %v6590_v18 = vsel %vm6565_vm8, %v6587_v31, %v6589_v27  ;;  %v6673_v45 = vmax.f32 %v10710_v44, %v6580_v57  ;;  %v6674_v48 = vmax.f32 %v10732_v21, %v6582_v58 }
 0x678   : > { %v6416_v51 = vsel %vm6383_vm7, %v6413_v60, %v6415_v34  ;;  %v6421_v55 = vrot.slane %v6332_v40, 1  ;;  %v6417_v61 = vrot.slane %v6330_v41, 1  ;;  %v8754_v63 = vpop.f32.mrb[24].mxu1  ;;  %v6584_v0 = vsel %vm6565_vm8, %v6581_v43, %v6583_v4 }
 0x679   : > { %v10791_v5 = vmax.f32 %v6328_v54, %v6416_v51  ;;  %v6299_v7 = vadd.f32 %v8754_v63, %v10679_v50  ;;  %v6171_v8 = vpop.f32.mrb[25].mxu1  ;;  %v10794_v10 = vpack.c.bf16 %v6674_v48, %v6673_v45  ;;  %v6586_v11 = vsel %vm6565_vm8, %v6583_v4, %v6585_v30 }
 0x67a   : > { %v6422_v44 = vsel %vm6383_vm7, %v6419_v12, %v6421_v55  ;;  %v6418_v21 = vsel %vm6383_vm7, %v6415_v34, %v6417_v61  ;;  %v6420_v57 = vsel %vm6383_vm7, %v6417_v61, %v6419_v12  ;;  %v6297_v58 = vadd.f32 %v10679_v50, %v6171_v8  ;;  %v8755_v60 = vpop.f32.mrb[26].mxu1 }
 0x67b   : > { %v6591_v43 = vrot.slane %v10791_v5, 2  ;;  %v10802_v54 = vmax.f32 %v6331_v22, %v6422_v44  ;;  %v10804_v35 = vmax.f32 %v6330_v41, %v6420_v57  ;;  %v6335_v15 = vmax.f32 %v6299_v7, 0.0  ;;  %v6174_v56 = vpop.f32.mrb[27].mxu1 }
 0x67c   : > { %v6333_v36 = vmax.f32 %v6297_v58, 0.0  ;;  %v6300_v16 = vadd.f32 %v8755_v60, %v10679_v50  ;;  %v6298_v20 = vadd.f32 %v10679_v50, %v6174_v56  ;;  %v10808_v4 = vmax.f32 %v6329_v53, %v6418_v21 }
 0x67d   : > { %v6597_v52 = vrot.slane %v10802_v54, 2  ;;  %v6595_v25 = vrot.slane %v10804_v35, 2  ;;  %v6427_v26 = vrot.slane %v6335_v15, 1  ;;  %v6675_v30 = vmax.f32 %v10744_v32, %v6584_v0 }
 0x67e   : > { %v6423_v22 = vrot.slane %v6333_v36, 1  ;;  %v6336_v31 = vmax.f32 %v6300_v16, 0.0  ;;  %v6334_v12 = vmax.f32 %v6298_v20, 0.0  ;;  %v6593_v34 = vrot.slane %v10808_v4, 2 }
 0x67f   : > { %v10817_v41 = vsel %vm6565_vm8, %v6595_v25, %v6597_v52  ;;  %v6676_v53 = vmax.f32 %v10746_v33, %v6586_v11  ;;  %v6677_v45 = vmax.f32 %v10742_v23, %v6588_v42  ;;  %v6678_v48 = vmax.f32 %v10762_v3, %v6590_v18 }
 0x680   : > { %v6424_v51 = vsel %vm6383_vm7, %v6421_v55, %v6423_v22  ;;  %v6429_v61 = vrot.slane %v6336_v31, 1  ;;  %v6425_v32 = vrot.slane %v6334_v12, 1  ;;  %v8758_v63 = vpop.f32.mrb[28].mxu1  ;;  %v10826_v0 = vsel %vm6565_vm8, %v6589_v27, %v6591_v43 }
 0x681   : > { %v10828_v7 = vmax.f32 %v6332_v40, %v6424_v51  ;;  %v6303_v8 = vadd.f32 %v8758_v63, %v10679_v50  ;;  %v6187_v44 = vpop.f32.mrb[29].mxu1  ;;  %v10831_v33 = vpack.c.bf16 %v6676_v53, %v6675_v30  ;;  %v10833_v23 = vpack.c.bf16 %v6678_v48, %v6677_v45 }
 0x682   : > { %v6430_v3 = vsel %vm6383_vm7, %v6427_v26, %v6429_v61  ;;  %v6426_v42 = vsel %vm6383_vm7, %v6423_v22, %v6425_v32  ;;  %v6428_v18 = vsel %vm6383_vm7, %v6425_v32, %v6427_v26  ;;  %v6301_v55 = vadd.f32 %v10679_v50, %v6187_v44  ;;  %v8759_v11 = vpop.f32.mrb[30].mxu1 }
 0x683   : > { %v6599_v27 = vrot.slane %v10828_v7, 2  ;;  %v10840_v40 = vmax.f32 %v6335_v15, %v6430_v3  ;;  %v10842_v21 = vmax.f32 %v6333_v36, %v6426_v42  ;;  %v10844_v57 = vmax.f32 %v6334_v12, %v6428_v18  ;;  %v6190_v58 = vpop.f32.mrb[31].mxu1 }
 0x684   : > { %v6339_v60 = vmax.f32 %v6303_v8, 0.0  ;;  %v6337_v56 = vmax.f32 %v6301_v55, 0.0  ;;  %v6304_v16 = vadd.f32 %v8759_v11, %v10679_v50  ;;  %v6302_v20 = vadd.f32 %v10679_v50, %v6190_v58 }
 0x685   : > { %v6605_v26 = vrot.slane %v10840_v40, 2  ;;  %v6601_v30 = vrot.slane %v10842_v21, 2  ;;  %v6603_v22 = vrot.slane %v10844_v57, 2  ;;  %v6600_v15 = vsel %vm6565_vm8, %v6597_v52, %v6599_v27 }
 0x686   : > { %v6435_v53 = vrot.slane %v6339_v60, 1  ;;  %v6431_v36 = vrot.slane %v6337_v56, 1  ;;  %v6340_v45 = vmax.f32 %v6304_v16, 0.0  ;;  %v6338_v12 = vmax.f32 %v6302_v20, 0.0 }
 0x687   : > { %v6602_v48 = vsel %vm6565_vm8, %v6599_v27, %v6601_v30  ;;  %v6683_v51 = vmax.f32 %v10808_v4, %v6600_v15  ;;  %v6604_v32 = vsel %vm6565_vm8, %v6601_v30, %v6603_v22  ;;  %v6606_v63 = vsel %vm6565_vm8, %v6603_v22, %v6605_v26 }
 0x688   : > { %v6432_v8 = vsel %vm6383_vm7, %v6429_v61, %v6431_v36  ;;  %v6437_v44 = vrot.slane %v6340_v45, 1  ;;  %v6433_v3 = vrot.slane %v6338_v12, 1  ;;  %v8762_v42 = vpop.f32.mrb[32].mxu1  ;;  %v6684_v18 = vmax.f32 %v10804_v35, %v6602_v48 }
 0x689   : > { %v10858_v52 = vmax.f32 %v6336_v31, %v6432_v8  ;;  %v6307_v55 = vadd.f32 %v8762_v42, %v10679_v50  ;;  %v6203_v11 = vpop.f32.mrb[33].mxu1  ;;  %v6685_v27 = vmax.f32 %v10802_v54, %v6604_v32  ;;  %v6686_v58 = vmax.f32 %v10828_v7, %v6606_v63 }
 0x68a   : > { %v6438_v16 = vsel %vm6383_vm7, %v6435_v53, %v6437_v44  ;;  %v6434_v20 = vsel %vm6383_vm7, %v6431_v36, %v6433_v3  ;;  %v6436_v61 = vsel %vm6383_vm7, %v6433_v3, %v6435_v53  ;;  %v6305_v30 = vadd.f32 %v10679_v50, %v6203_v11  ;;  %v8763_v22 = vpop.f32.mrb[34].mxu1 }
 0x68b   : > { %v6607_v15 = vrot.slane %v10858_v52, 2  ;;  %v10868_v31 = vmax.f32 %v6339_v60, %v6438_v16  ;;  %v10870_v48 = vmax.f32 %v6337_v56, %v6434_v20  ;;  %v10872_v8 = vmax.f32 %v6338_v12, %v6436_v61  ;;  %v6206_v54 = vpop.f32.mrb[35].mxu1 }
 0x68c   : > { %v6343_v32 = vmax.f32 %v6307_v55, 0.0  ;;  %v6341_v7 = vmax.f32 %v6305_v30, 0.0  ;;  %v6308_v63 = vadd.f32 %v8763_v22, %v10679_v50  ;;  %v6306_v36 = vadd.f32 %v10679_v50, %v6206_v54 }
 0x68d   : > { %v6613_v53 = vrot.slane %v10868_v31, 2  ;;  %v6609_v3 = vrot.slane %v10870_v48, 2  ;;  %v6611_v42 = vrot.slane %v10872_v8, 2  ;;  %v8784_v11 = vpack.c.bf16 %v6684_v18, %v6683_v51 }
 0x68e   : > { %v6443_v60 = vrot.slane %v6343_v32, 1  ;;  %v6439_v16 = vrot.slane %v6341_v7, 1  ;;  %v6344_v56 = vmax.f32 %v6308_v63, 0.0  ;;  %v6342_v20 = vmax.f32 %v6306_v36, 0.0 }
 0x68f   : > { %8785 = vmatprep.subr.bf16.mxu0 %v8784_v11  ;;  %v8788_v12 = vpack.c.bf16 %v6686_v58, %v6685_v27  ;;  %v6608_v55 = vsel %vm6565_vm8, %v6605_v26, %v6607_v15  ;;  %v6610_v61 = vsel %vm6565_vm8, %v6607_v15, %v6609_v3  ;;  %v6612_v30 = vsel %vm6565_vm8, %v6609_v3, %v6611_v42 }
 0x690   : > { %v6440_v22 = vsel %vm6383_vm7, %v6437_v44, %v6439_v16  ;;  %v6445_v54 = vrot.slane %v6344_v56, 1  ;;  %v6441_v13 = vrot.slane %v6342_v20, 1  ;;  %8787 = vmatpush3.bf16.msra.mxu0 %v10753_v47  ;;  %v8766_v29 = vpop.f32.mrb[36].mxu1  ;;  %v6687_v51 = vmax.f32 %v10842_v21, %v6608_v55 }
 0x691   : > { %v10885_v18 = vmax.f32 %v6340_v45, %v6440_v22  ;;  %8789 = vmatprep.subr.bf16.mxu0 %v8788_v12  ;;  %v6311_v27 = vadd.f32 %v8766_v29, %v10679_v50  ;;  %v6219_v58 = vpop.f32.mrb[37].mxu1  ;;  %v6688_v26 = vmax.f32 %v10844_v57, %v6610_v61  ;;  %v6614_v15 = vsel %vm6565_vm8, %v6611_v42, %v6613_v53 }
 0x692   : > { %v6446_v63 = vsel %vm6383_vm7, %v6443_v60, %v6445_v54  ;;  %v6442_v44 = vsel %vm6383_vm7, %v6439_v16, %v6441_v13  ;;  %v6444_v36 = vsel %vm6383_vm7, %v6441_v13, %v6443_v60  ;;  %v6309_v47 = vadd.f32 %v10679_v50, %v6219_v58  ;;  %v8767_v3 = vpop.f32.mrb[38].mxu1 }
 0x693   : > { %v6615_v21 = vrot.slane %v10885_v18, 2  ;;  %v10895_v45 = vmax.f32 %v6343_v32, %v6446_v63  ;;  %v10897_v11 = vmax.f32 %v6341_v7, %v6442_v44  ;;  %v10899_v29 = vmax.f32 %v6342_v20, %v6444_v36  ;;  %v6222_v57 = vpop.f32.mrb[39].mxu1 }
 0x694   : > { %v6347_v12 = vmax.f32 %v6311_v27, 0.0  ;;  %v6345_v42 = vmax.f32 %v6309_v47, 0.0  ;;  %8791 = vmatpush3.bf16.msra.mxu0 %v10757_v59  ;;  %v6312_v16 = vadd.f32 %v8767_v3, %v10679_v50  ;;  %v6310_v13 = vadd.f32 %v10679_v50, %v6222_v57 }
 0x695   : > { %v6621_v60 = vrot.slane %v10895_v45, 2  ;;  %v6617_v55 = vrot.slane %v10897_v11, 2  ;;  %v6619_v32 = vrot.slane %v10899_v29, 2  ;;  %v8792_v61 = vpack.c.bf16 %v6688_v26, %v6687_v51 }
 0x696   : > { %v6521_v7 = vrot.slane %v6347_v12, 1  ;;  %v6447_v22 = vrot.slane %v6345_v42, 1  ;;  %v6348_v20 = vmax.f32 %v6312_v16, 0.0  ;;  %v6346_v58 = vmax.f32 %v6310_v13, 0.0 }
 0x697   : > { %8793 = vmatprep.subr.bf16.mxu0 %v8792_v61  ;;  %v6689_v27 = vmax.f32 %v10840_v40, %v6612_v30  ;;  %v6690_v59 = vmax.f32 %v10858_v52, %v6614_v15  ;;  %v6616_v63 = vsel %vm6565_vm8, %v6613_v53, %v6615_v21  ;;  %v6618_v50 = vsel %vm6565_vm8, %v6615_v21, %v6617_v55 }
 0x698   : > { %v6448_v44 = vsel %vm6383_vm7, %v6445_v54, %v6447_v22  ;;  %v6523_v36 = vrot.slane %v6348_v20, 1  ;;  %v6449_v47 = vrot.slane %v6346_v58, 1  ;;  %8795 = vmatpush3.bf16.msra.mxu0 %v10783_v19  ;;  %v6691_v51 = vmax.f32 %v10870_v48, %v6616_v63 }
 0x699   : > { %v6516_v26 = vmax.f32 %v6344_v56, %v6448_v44  ;;  %v8796_v3 = vpack.c.bf16 %v6690_v59, %v6689_v27  ;;  %v6692_v57 = vmax.f32 %v10872_v8, %v6618_v50  ;;  %v6620_v40 = vsel %vm6565_vm8, %v6617_v55, %v6619_v32 }
 0x69a   : > { %v6524_v52 = vsel %vm6383_vm7, %v6521_v7, %v6523_v36  ;;  %v6530_v30 = vmax.f32 %v6348_v20, %v6523_v36  ;;  %v6450_v53 = vsel %vm6383_vm7, %v6447_v22, %v6449_v47  ;;  %v6518_v15 = vmax.f32 %v6346_v58, %v6449_v47 }
 0x69b   : > { %v6623_v21 = vrot.slane %v6516_v26, 2  ;;  %v6529_v54 = vmax.f32 %v6347_v12, %v6524_v52  ;;  %v6517_v16 = vmax.f32 %v6345_v42, %v6450_v53  ;;  %v6522_v13 = vsel %vm6383_vm7, %v6449_v47, %v6521_v7  ;;  %8797 = vmatprep.subr.bf16.mxu0 %v8796_v3 }
 0x69c   : > { %v6631_v19 = vrot.slane %v6530_v30, 2  ;;  %v6528_v48 = vmax.f32 %v6346_v58, %v6522_v13  ;;  %8799 = vmatpush3.bf16.msra.mxu0 %v10794_v10  ;;  %v8800_v56 = vpack.c.bf16 %v6692_v57, %v6691_v51  ;;  %v6622_v8 = vsel %vm6565_vm8, %v6619_v32, %v6621_v60 }
 0x69d   : > { %v6629_v55 = vrot.slane %v6529_v54, 2  ;;  %v6693_v61 = vmax.f32 %v10868_v31, %v6620_v40  ;;  %v6694_v20 = vmax.f32 %v10885_v18, %v6622_v8  ;;  %v6624_v22 = vsel %vm6565_vm8, %v6621_v60, %v6623_v21 }
 0x69e   : > { %v6627_v27 = vrot.slane %v6528_v48, 2  ;;  %v6700_v12 = vmax.f32 %v6518_v15, %v6631_v19  ;;  %8801 = vmatprep.subr.bf16.mxu0 %v8800_v56  ;;  %v6625_v42 = vrot.slane %v6517_v16, 2  ;;  %v6695_v7 = vmax.f32 %v10897_v11, %v6624_v22 }
 0x69f   : > { %v6632_v58 = vsel %vm6565_vm8, %v6629_v55, %v6631_v19  ;;  %v8804_v59 = vpack.c.bf16 %v6694_v20, %v6693_v61  ;;  %v6594_v10 = vsel %vm6565_vm8, %v6591_v43, %v6593_v34  ;;  %v6679_v31 = vmax.f32 %v10774_v39, %v10826_v0 }
 0x6a0   : > { %8803 = vmatpush3.bf16.msra.mxu0 %v10831_v33  ;;  %v6699_v18 = vmax.f32 %v6517_v16, %v6632_v58  ;;  %v6626_v60 = vsel %vm6565_vm8, %v6623_v21, %v6625_v42  ;;  %v6680_v32 = vmax.f32 %v10776_v17, %v6594_v10  ;;  %v6628_v11 = vsel %vm6565_vm8, %v6625_v42, %v6627_v27 }
 0x6a1   : > { %8805 = vmatprep.subr.bf16.mxu0 %v8804_v59  ;;  %vm9532_vm7 = vmmov 1   ;;  %v6696_v63 = vmax.f32 %v10899_v29, %v6626_v60  ;;  %v6630_v43 = vsel %vm6565_vm8, %v6627_v27, %v6629_v55  ;;  %v6697_v50 = vmax.f32 %v10895_v45, %v6628_v11 }
 0x6a2   : > { %vm8817_vm2 = vmpackc.low %vm6851_vm6, %vm9532_vm7  ;;  %v6596_v39 = vsel %vm6565_vm8, %v6593_v34, %v6595_v25  ;;  %v8816_v0 = vpack.c.bf16 %v6700_v12, %v6699_v18  ;;  %v8810_v17 = vpack.c.bf16 %v6680_v32, %v6679_v31  ;;  %v6698_v33 = vmax.f32 %v6516_v26, %v6630_v43 }
 0x6a3   : > { %v6681_v44 = vmax.f32 %v10772_v2, %v6596_v39  ;;  %v8808_v36 = vpack.c.bf16 %v6696_v63, %v6695_v7  ;;  %v6682_v47 = vmax.f32 %v10791_v5, %v10817_v41  ;;  %v11148_v45 = vmov 0.0  }
 0x6a4   : > { %8807 = vmatpush3.bf16.msra.mxu0 %v10833_v23  ;;  %8818 = vmatprep.subr.msk.bf16.mxu1 %vm8817_vm2, %v8816_v0  ;;  %v8812_v29 = vpack.c.bf16 %v6698_v33, %v6697_v50  ;;  %v7599_v4 = vsel %vm6759_vm14, 1.0, %v11148_v45  ;;  %v7602_v2 = vsel %vm6762_vm4, 1.0, %v11148_v45  ;;  %v7605_v5 = vsel %vm6765_vm5, 1.0, %v11148_v45 }
 0x6a5   : > { %8809 = vmatprep.subr.bf16.mxu0 %v8808_v36  ;;  %8821 = vmatpush3.bf16.msk.msra.mxu1 %vm8817_vm2, %v8816_v0  ;;  %v8814_v35 = vpack.c.bf16 %v6682_v47, %v6681_v44  ;;  %v7608_v25 = vsel %vm6768_vm11, 1.0, %v11148_v45  ;;  %v7611_v34 = vsel %vm6771_vm13, 1.0, %v11148_v45  ;;  %v7614_v41 = vsel %vm6774_vm3, 1.0, %v11148_v45 }
 0x6a6   : > { %v11149_v23 = vmov 1.0   ;;  %v7617_v51 = vsel %vm6777_vm9, 1.0, %v11148_v45  ;;  %vm11150_vm3 = vcmp.eq.s32.totalorder %v10607_v62, %v10634_v37  ;;  %vm11152_vm14 = vcmp.eq.s32.totalorder %v10607_v62, %v10642_v24 }
 0x6a7   : > { %vm11157_vm2 = vcmp.eq.s32.totalorder %v10610_v1, %v10666_v46  ;;  %vm11158_vm4 = vcmp.eq.s32.totalorder %v10607_v62, %v10666_v46  ;;  %vm11159_vm5 = vcmp.eq.s32.totalorder %v10610_v1, %v10674_v49  ;;  %vm11160_vm6 = vcmp.eq.s32.totalorder %v10607_v62, %v10674_v49 }
 0x6a8   : > { %8811 = vmatpush3.bf16.msra.mxu0 %v8810_v17  ;;  %8773 = vmatmul.mubr.msk.f32.vlgmr.msra.gmra.mrb[40].mxu1 %vm6826_vm10, %v7599_v4  ;;  %vm11161_vm8 = vcmask 261120  }
 0x6a9   : > { %8813 = vmatprep.subr.bf16.mxu0 %v8812_v29  ;;  %8775 = vmatprep.mubr.msk.f32.mxu1 %vm6826_vm10, %v7602_v2  ;;  %vm11162_vm9 = vmmov %vm11161_vm8 }
 0x6aa   : > { %vm11163_vm11 = vmmov %vm11161_vm8 }
 0x6ab   : > { %vm11164_vm13 = vmmov %vm11161_vm8 }
 0x6ac   : > { %8815 = vmatpush3.bf16.msra.mxu0 %v8814_v35  ;;  %8776 = vmatmul.mubr.msk.f32.gmra.mrb[42].mxu1 %vm6826_vm10, %v7605_v5  ;;  %vm11165_vm7 = vmmov %vm11161_vm8 }
 0x6ad   : > { %8778 = vmatprep.mubr.msk.f32.mxu1 %vm6826_vm10, %v7608_v25 }
 0x6af   : > { %7619 = vmatmul.mubr.msk.f32.vlgmr.msra.gmra.mrb[36].mxu0 %vm6754_vm12, %v11149_v23  ;;  %vm11151_vm12 = vcmp.eq.s32.totalorder %v10610_v1, %v10642_v24 }
 0x6b0   : > { %7620 = vmatprep.mubr.msk.f32.mxu0 %vm6758_vm15, %v11149_v23  ;;  %8779 = vmatmul.mubr.msk.f32.gmra.mrb[44].mxu1 %vm6826_vm10, %v7611_v34  ;;  %vm11154_vm15 = vcmp.eq.s32.totalorder %v10607_v62, %v10650_v28 }
 0x6b1   : > { %8781 = vmatprep.mubr.msk.f32.mxu1 %vm6826_vm10, %v7614_v41 }
 0x6b3   : > { %7621 = vmatmul.mubr.msk.f32.gmra.mrb[38].mxu0 %vm6757_vm0, %v11149_v23  ;;  %vm11155_vm0 = vcmp.eq.s32.totalorder %v10610_v1, %v10658_v38 }
 0x6b4   : > { %7622 = vmatprep.mubr.msk.f32.mxu0 %vm6761_vm1, %v11149_v23  ;;  %8782 = vmatmul.mubr.msk.f32.gmra.mrb[46].mxu1 %vm6826_vm10, %v7617_v51  ;;  %vm11153_vm10 = vcmp.eq.s32.totalorder %v10610_v1, %v10650_v28  ;;  %vm11156_vm1 = vcmp.eq.s32.totalorder %v10607_v62, %v10658_v38 }
 0x6b7   : > { %7623 = vmatmul.mubr.msk.f32.gmra.mrb[40].mxu0 %vm11150_vm3, %v11149_v23  ;;  %vm11166_vm3 = vmmov %vm11165_vm7 }
 0x6b8   : > { %7624 = vmatprep.mubr.msk.f32.mxu0 %vm11151_vm12, %v11149_v23  ;;  %vm11167_vm12 = vmmov %vm11166_vm3 }
 0x6bb   : > { %7625 = vmatmul.mubr.msk.f32.gmra.mrb[42].mxu0 %vm11152_vm14, %v11149_v23  ;;  %vm11168_vm14 = vmmov %vm11166_vm3 }
 0x6bc   : > { %7626 = vmatprep.mubr.msk.f32.mxu0 %vm11153_vm10, %v11149_v23  ;;  %vm11169_vm10 = vmmov %vm11166_vm3 }
 0x6bf   : > { %7627 = vmatmul.mubr.msk.f32.gmra.mrb[44].mxu0 %vm11154_vm15, %v11149_v23  ;;  %vm11170_vm15 = vmmov %vm11166_vm3 }
 0x6c0   : > { %7628 = vmatprep.mubr.msk.f32.mxu0 %vm11155_vm0, %v11149_v23  ;;  %vm11171_vm0 = vmmov %vm11166_vm3 }
 0x6c3   : > { %7629 = vmatmul.mubr.msk.f32.gmra.mrb[46].mxu0 %vm11156_vm1, %v11149_v23  ;;  %vm11172_vm1 = vmmov %vm11171_vm0 }
 0x6c4   : > { %7630 = vmatprep.mubr.msk.f32.mxu0 %vm11157_vm2, %v11149_v23  ;;  %vm11173_vm2 = vmmov %vm11171_vm0 }
 0x6c7   : > { %7631 = vmatmul.mubr.msk.f32.gmra.mrb[48].mxu0 %vm11158_vm4, %v11149_v23  ;;  %vm11174_vm4 = vmmov %vm11171_vm0 }
 0x6c8   : > { %7632 = vmatprep.mubr.msk.f32.mxu0 %vm11159_vm5, %v11149_v23  ;;  %vm11175_vm5 = vmmov %vm11171_vm0 }
 0x6cb   : > { %7633 = vmatmul.mubr.msk.f32.gmra.mrb[50].mxu0 %vm11160_vm6, %v11149_v23  ;;  %vm11176_vm6 = vmmov %vm11171_vm0 }
 0x77b   : > { %v8774_v6 = vpop.f32.mrb[40].mxu1 }
 0x77c   : > { %v7026_v9 = vpop.f32.mrb[41].mxu1 }
 0x77f   : > { %v8777_v14 = vpop.f32.mrb[42].mxu1 }
 0x780   : > { %v7036_v37 = vpop.f32.mrb[43].mxu1 }
 0x782   : > { %v8032_v24 = vpop.f32.mrb[36].mxu0 }
 0x783   : > { %v8033_v28 = vpop.f32.mrb[37].mxu0  ;;  %v8780_v38 = vpop.f32.mrb[44].mxu1 }
 0x784   : > { %v8034_v46 = vadd.f32 %v8033_v28, %v8032_v24  ;;  %v7046_v1 = vpop.f32.mrb[45].mxu1 }
 0x786   : > { %v7027_v26 = vadd.f32 %v8034_v46, %v7026_v9  ;;  %v8035_v3 = vpop.f32.mrb[38].mxu0 }
 0x787   : > { %v8036_v57 = vpop.f32.mrb[39].mxu0  ;;  %v8783_v40 = vpop.f32.mrb[46].mxu1 }
 0x788   : > { %7065 = vst.msk [vmem:[%s11048_s26] sm:$0xff] %vm11161_vm8, %v7027_v26  ;;  %v8037_v62 = vadd.f32 %v8036_v57, %v8035_v3  ;;  %v7056_v49 = vpop.f32.mrb[47].mxu1 }
 0x789   : > { %7086 = vst.msk [vmem:[%s10210_s29 + $0xb] sm:$0xff] %vm11162_vm9, %v7027_v26 }
 0x78a   : > { %v7032_v52 = vadd.f32 %v8774_v6, %v8037_v62  ;;  %v8038_v30 = vpop.f32.mrb[40].mxu0 }
 0x78b   : > { %v8039_v53 = vpop.f32.mrb[41].mxu0 }
 0x78c   : > { %7066 = vst.msk [vmem:[%s11048_s26 + $0x8] sm:$0xff] %vm11163_vm11, %v7032_v52  ;;  %v8040_v15 = vadd.f32 %v8039_v53, %v8038_v30 }
 0x78d   : > { %7087 = vst.msk [vmem:[%s10210_s29 + $0x15] sm:$0xff] %vm11164_vm13, %v7032_v52 }
 0x78e   : > { %v7037_v21 = vadd.f32 %v8040_v15, %v7036_v37  ;;  %v8041_v54 = vpop.f32.mrb[42].mxu0 }
 0x78f   : > { %v8042_v16 = vpop.f32.mrb[43].mxu0 }
 0x790   : > { %7067 = vst.msk [vmem:[%s11048_s26 + $0x10] sm:$0xff] %vm11165_vm7, %v7037_v21  ;;  %v8043_v13 = vadd.f32 %v8042_v16, %v8041_v54 }
 0x791   : > { %7088 = vst.msk [vmem:[%s10210_s29 + $0x1f] sm:$0xff] %vm11166_vm3, %v7037_v21 }
 0x792   : > { %v7042_v19 = vadd.f32 %v8777_v14, %v8043_v13  ;;  %v8044_v48 = vpop.f32.mrb[44].mxu0 }
 0x793   : > { %v8045_v56 = vpop.f32.mrb[45].mxu0 }
 0x794   : > { %7068 = vst.msk [vmem:[%s11048_s26 + $0x18] sm:$0xff] %vm11167_vm12, %v7042_v19  ;;  %v8046_v8 = vadd.f32 %v8045_v56, %v8044_v48 }
 0x795   : > { %7089 = vst.msk [vmem:[%s10210_s29 + $0x29] sm:$0xff] %vm11168_vm14, %v7042_v19 }
 0x796   : > { %v7047_v55 = vadd.f32 %v8046_v8, %v7046_v1  ;;  %v8047_v61 = vpop.f32.mrb[46].mxu0 }
 0x797   : > { %v8048_v20 = vpop.f32.mrb[47].mxu0 }
 0x798   : > { %7069 = vst.msk [vmem:[%s11048_s26 + $0x20] sm:$0xff] %vm11169_vm10, %v7047_v55  ;;  %v8049_v22 = vadd.f32 %v8048_v20, %v8047_v61 }
 0x799   : > { %7090 = vst.msk [vmem:[%s10210_s29 + $0x33] sm:$0xff] %vm11170_vm15, %v7047_v55 }
 0x79a   : > { %v7052_v27 = vadd.f32 %v8780_v38, %v8049_v22  ;;  %v8050_v12 = vpop.f32.mrb[48].mxu0 }
 0x79b   : > { %v8051_v42 = vpop.f32.mrb[49].mxu0 }
 0x79c   : > { %7070 = vst.msk [vmem:[%s11048_s26 + $0x28] sm:$0xff] %vm11171_vm0, %v7052_v27  ;;  %v8052_v7 = vadd.f32 %v8051_v42, %v8050_v12 }
 0x79d   : > { %7091 = vst.msk [vmem:[%s10210_s29 + $0x3d] sm:$0xff] %vm11172_vm1, %v7052_v27 }
 0x79e   : > { %v7057_v58 = vadd.f32 %v8052_v7, %v7056_v49  ;;  %v8053_v59 = vpop.f32.mrb[50].mxu0 }
 0x79f   : > { %v8054_v10 = vpop.f32.mrb[51].mxu0 }
 0x7a0   : > { %7071 = vst.msk [vmem:[%s11048_s26 + $0x30] sm:$0xff] %vm11173_vm2, %v7057_v58  ;;  %v8055_v31 = vadd.f32 %v8054_v10, %v8053_v59 }
 0x7a1   : > { %7092 = vst.msk [vmem:[%s10210_s29 + $0x47] sm:$0xff] %vm11174_vm4, %v7057_v58 }
 0x7a2   : > { %v7062_v18 = vadd.f32 %v8783_v40, %v8055_v31 }
 0x7a4   : > { %7072 = vst.msk [vmem:[%s11048_s26 + $0x38] sm:$0xff] %vm11175_vm5, %v7062_v18 }
 0x7a5   : > { %7093 = vst.msk [vmem:[%s10210_s29 + $0x51] sm:$0xff] %vm11176_vm6, %v7062_v18 }
 0x7a6   : > { %9478 = shalt.err (!%p9475_p3)
}
 0x7a7   : > { %s9479_s29 = scalar_lea.hbm %s11083_s11, 1024  ;;  %s9483_s19 = scalar_lea.hbm %s11139_s5, 2048 }
 0x7a8   : > { %p9480_p4 = scmp.ne.s32.totalorder %s11083_s11, %s9479_s29  ;;  %p9484_p9 = scmp.lt.u32.totalorder %s11083_s11, %s11139_s5 }
 0x7a9   : > { %p9485_p10 = scmp.lt.u32.totalorder %s9483_s19, %s9479_s29  ;;  %p9487_p12 = scmp.lt.u32.totalorder %s9479_s29, %s11083_s11 }
 0x7aa   : > { %p9481_p7 = pnand %p9480_p4, %p9609_p5 }
 0x7ab   : > { %p9486_p11 = por %p9485_p10, %p9484_p9 }
 0x7ac   : > { %p9482_p8 = pneg %p9481_p7 }
 0x7ad   : > { %p9488_p13 = por %p9487_p12, %p9486_p11 }
 0x7af   : > { %p9489_p0 = pnand %p9488_p13, %p9482_p8 }
 0x7b1   : > { %9492 = shalt.err (!%p9489_p0)
}
 0x7b2   : > { %s9534_s28 = smov 128   ;;  %s9535_s9 = smov 8  }
 0x7b3   : > { %9402 = dma.vmem_to_hbm [thread:$0]  (%p9609_p5), %s11085_s13, 1024, %s11083_s11, %s11093_s25, %s9534_s28, %s9534_s28, %s9535_s9  }
 0x7b4 PF: > { %p9408_p1 = scmp.ge.s32.totalorder %s9527_s24, 2  ;;  %s7131_s10 = sand.u32 1, %s9515_s21  }
 0x7b5   : > { %s7132_s12 = scalar_lea.sflag [#allocation4], %s7131_s10 }
 0x7b6   : > { %p9405_p2 = pnand %p9408_p1, %p9613_p6 }
 0x7b8   : > { %9510 = dma.done.wait (!%p9405_p2), %s7132_s12, 1024  }
 0x7b9   : > { %9512 = vsyncadd (!%p9405_p2), %s7132_s12, 4294966272  ;;  %p17_p3 = scmp.ge.s32.totalorder %s9596_s27, 4   ;;  %s11177_s21 = smov %s9519_s22 }
 0x7ba   : > { %s11178_s22 = smov %s9523_s23  ;;  %s11179_s23 = smov %s9607_s30 }
 0x7bb   : > { %s11180_s24 = smov %s9596_s27  ;;  %19 = sbr.rel (!%p17_p3) target bundleno = 3 (0x3), region = 103 }
 0x7c2   :  { %7145 = vsyncpa [#allocation4], 1 }
 0x7c3   :  { %7147 = vsyncpa [#allocation4 + $0x1], 1 }

</bundles_post_ra>
